<compile_context>
chip_gen: v7x
topology: tpu7x:2x2x1
jax: 0.10.0
libtpu: 0.0.40
codegen_flags: <defaults>
</compile_context>

<pallas_src>
import math
import jax
import jax.numpy as jnp
from jax.experimental import pallas as pl
from jax.experimental.pallas import tpu as pltpu

LOG2PI = math.log(2.0 * math.pi)


def _round_up(x, m):
    return ((x + m - 1) // m) * m


def _pad2(a, rp, cp):
    a = jnp.asarray(a, jnp.float32)
    r, c = a.shape
    if (r, c) == (rp, cp):
        return a
    return jnp.pad(a, ((0, rp - r), (0, cp - c)))


def _rowvec(v, n):
    v = jnp.asarray(v, jnp.float32).reshape(-1)
    if v.shape[0] < n:
        v = jnp.pad(v, (0, n - v.shape[0]))
    return v.reshape(1, n)


def _row_tiling(m, align, cap):
    """Row tile / padded rows.  Prefers >=2 row tiles (v7x megacore)."""
    tm = min(_round_up(m, align), cap)
    if m > align and _round_up(m, tm) == tm:      # single tile -> split in two
        tm = _round_up((m + 1) // 2, align)
    mp = _round_up(m, tm)
    return tm, mp


# ----------------------------------------------------------------------------
# Pallas kernels
# ----------------------------------------------------------------------------
def _make_mm_kernel(tm, m_valid, *, in_affine, leaky, has_out_scale, stats,
                    mask_rows):
    """Single-shot bf16 matmul with fused (affine-in, bias, leaky, scale,
    packed column stats)."""

    def kernel(*refs):
        it = iter(refs)
        x_ref = next(it)
        w_ref = next(it)
        ish_ref = next(it) if in_affine else None
        isc_ref = next(it) if in_affine else None
        b_ref = next(it)
        osc_ref = next(it) if has_out_scale else None
        o_ref = next(it)
        st_ref = next(it) if stats else None

        xv = x_ref[...]
        if in_affine:
            xv = (xv.astype(jnp.float32) + ish_ref[...]) * isc_ref[...]
        y = jnp.dot(xv.astype(jnp.bfloat16), w_ref[...],
                    preferred_element_type=jnp.float32) + b_ref[...]
        if leaky:
            y = jnp.where(y >= 0.0, y, 0.1 * y)
        if has_out_scale:
            y = y * osc_ref[...]
        o_ref[...] = y.astype(o_ref.dtype)

        if stats:
            ym = y
            if mask_rows:
                # NOTE: program_id only at kernel top level (never inside a
                # pl.when body).
                rows = (pl.program_id(0) * tm
                        + jax.lax.broadcasted_iota(jnp.int32, (tm, 1), 0))
                ym = jnp.where(rows < m_valid, y, 0.0)
            s = jnp.sum(ym, axis=0, keepdims=True)
            ss = jnp.sum(ym * ym, axis=0, keepdims=True)
            ri = jax.lax.broadcasted_iota(jnp.int32, st_ref.shape, 0)
            st_ref[...] = jnp.where(ri == 0, s, jnp.where(ri == 1, ss, 0.0))

    return kernel


def _affine_kernel(x_ref, shift_ref, scale_ref, o_ref):
    o_ref[...] = ((x_ref[...].astype(jnp.float32) + shift_ref[...])
                  * scale_ref[...]).astype(o_ref.dtype)


def _colstats_kernel(x_ref, st_ref):
    v = x_ref[...].astype(jnp.float32)
    s = jnp.sum(v, axis=0, keepdims=True)
    ss = jnp.sum(v * v, axis=0, keepdims=True)
    ri = jax.lax.broadcasted_iota(jnp.int32, st_ref.shape, 0)
    st_ref[...] = jnp.where(ri == 0, s, jnp.where(ri == 1, ss, 0.0))


def _coupling_kernel(inb_ref, ls0_ref, t_ref, outb_ref, logs_ref):
    log_s = jnp.tanh(ls0_ref[...])
    logs_ref[...] = log_s
    outb_ref[...] = (inb_ref[...] + t_ref[...]) * jnp.exp(log_s)


def _gauss_kernel(z_ref, mean_ref, lsd_ref, eps_ref, logp_ref):
    eps = (z_ref[...] - mean_ref[...]) * jnp.exp(-lsd_ref[...])
    eps_ref[...] = eps
    logp_ref[...] = -0.5 * LOG2PI - 0.5 * eps * eps


# ----------------------------------------------------------------------------
# Pallas wrappers
# ----------------------------------------------------------------------------
def pallas_matmul(x, w, b_row, n_out, *, in_shift=None, in_scale=None,
                  leaky=False, out_scale=None, stats=False,
                  out_dtype=jnp.float32):
    """y = epilogue((prologue(x)) @ w + b), weight VMEM-resident (no K grid).

    x     : (M, K) f32/bf16 activations (K == w.shape[0]).
    w     : (K, Np) bf16 weight, N padded to a multiple of 128 at prep time.
    b_row : (1, Np) f32 bias.
    prologue: per-K-column (x + in_shift) * in_scale  (actnorm / BN fold)
    epilogue: [leaky ReLU 0.1] [* out_scale] [packed column sum / sumsq]
    Returns y[:M, :n_out] (plus per-column sum, sum-of-squares if stats).
    """
    M, K = x.shape
    Kw, Np = w.shape
    assert K == Kw, (K, Kw)
    TM, Mp = _row_tiling(M, 16, 512)
    nrt = Mp // TM
    xp = x if Mp == M else jnp.pad(x, ((0, Mp - M), (0, 0)))

    inputs = [xp, w]
    in_specs = [pl.BlockSpec((TM, K), lambda i: (i, 0)),
                pl.BlockSpec((K, Np), lambda i: (0, 0))]
    if in_shift is not None:
        inputs += [_rowvec(in_shift, K), _rowvec(in_scale, K)]
        in_specs += [pl.BlockSpec((1, K), lambda i: (0, 0))] * 2
    inputs.append(b_row)
    in_specs.append(pl.BlockSpec((1, Np), lambda i: (0, 0)))
    if out_scale is not None:
        inputs.append(_rowvec(out_scale, Np))
        in_specs.append(pl.BlockSpec((1, Np), lambda i: (0, 0)))

    out_shapes = [jax.ShapeDtypeStruct((Mp, Np), out_dtype)]
    out_specs = [pl.BlockSpec((TM, Np), lambda i: (i, 0))]
    if stats:
        out_shapes.append(jax.ShapeDtypeStruct((nrt * 8, Np), jnp.float32))
        out_specs.append(pl.BlockSpec((8, Np), lambda i: (i, 0)))

    kernel = _make_mm_kernel(TM, M,
                             in_affine=in_shift is not None,
                             leaky=leaky,
                             has_out_scale=out_scale is not None,
                             stats=stats,
                             mask_rows=Mp != M)

    outs = pl.pallas_call(
        kernel,
        out_shape=tuple(out_shapes) if stats else out_shapes[0],
        grid=(nrt,),
        in_specs=in_specs,
        out_specs=tuple(out_specs) if stats else out_specs[0],
        compiler_params=pltpu.CompilerParams(
            dimension_semantics=("parallel",)),
    )(*inputs)

    if stats:
        y, st = outs
    else:
        y = outs
    if Mp != M or Np != n_out:
        y = y[:M, :n_out]
    if stats:
        st = st.reshape(nrt, 8, Np)
        s = jnp.sum(st[:, 0, :n_out], axis=0)
        ss = jnp.sum(st[:, 1, :n_out], axis=0)
        return y, s, ss
    return y


def pallas_affine(x, shift, scale, out_dtype=jnp.float32):
    """(x + shift) * scale with per-column shift/scale."""
    M, C = x.shape
    TM, Mp = _row_tiling(M, 16, 512)
    xp = x if Mp == M else jnp.pad(x, ((0, Mp - M), (0, 0)))
    out = pl.pallas_call(
        _affine_kernel,
        out_shape=jax.ShapeDtypeStruct((Mp, C), out_dtype),
        grid=(Mp // TM,),
        in_specs=[pl.BlockSpec((TM, C), lambda i: (i, 0)),
                  pl.BlockSpec((1, C), lambda i: (0, 0)),
                  pl.BlockSpec((1, C), lambda i: (0, 0))],
        out_specs=pl.BlockSpec((TM, C), lambda i: (i, 0)),
        compiler_params=pltpu.CompilerParams(dimension_semantics=("parallel",)),
    )(xp, _rowvec(shift, C), _rowvec(scale, C))
    return out if Mp == M else out[:M]


def pallas_col_stats(x):
    """Per-column sum and sum-of-squares over rows (row padding is zero)."""
    M, C = x.shape
    TM, Mp = _row_tiling(M, 16, 512)
    xp = x if Mp == M else jnp.pad(x, ((0, Mp - M), (0, 0)))
    nrt = Mp // TM
    st = pl.pallas_call(
        _colstats_kernel,
        out_shape=jax.ShapeDtypeStruct((nrt * 8, C), jnp.float32),
        grid=(nrt,),
        in_specs=[pl.BlockSpec((TM, C), lambda i: (i, 0))],
        out_specs=pl.BlockSpec((8, C), lambda i: (i, 0)),
        compiler_params=pltpu.CompilerParams(dimension_semantics=("parallel",)),
    )(xp)
    st = st.reshape(nrt, 8, C)
    return jnp.sum(st[:, 0], axis=0), jnp.sum(st[:, 1], axis=0)


def _ew_call_flat(kernel, inputs, n_out):
    """Lane-dense elementwise kernel: inputs flattened to (*, 128) tiles."""
    n = inputs[0].size
    R = pl.cdiv(n, 128)
    TR, Rp = _row_tiling(R, 8, 512)
    total = Rp * 128
    flat = []
    for a in inputs:
        a = a.astype(jnp.float32).reshape(-1)
        if total != n:
            a = jnp.pad(a, (0, total - n))
        flat.append(a.reshape(Rp, 128))
    spec = pl.BlockSpec((TR, 128), lambda i: (i, 0))
    out_shape = tuple(jax.ShapeDtypeStruct((Rp, 128), jnp.float32)
                      for _ in range(n_out))
    outs = pl.pallas_call(
        kernel,
        out_shape=out_shape if n_out > 1 else out_shape[0],
        grid=(Rp // TR,),
        in_specs=[spec] * len(flat),
        out_specs=tuple([spec] * n_out) if n_out > 1 else spec,
        compiler_params=pltpu.CompilerParams(dimension_semantics=("parallel",)),
    )(*flat)
    if n_out == 1:
        outs = (outs,)
    return tuple(o.reshape(-1)[:n] for o in outs)


# ----------------------------------------------------------------------------
# Layout / conv glue (plain JAX)
# ----------------------------------------------------------------------------
def im2col3x3_slab(slab, B, H, W, pad_value, k_out=None, dtype=jnp.bfloat16):
    """slab (B*H*W, C), rows (b,h,w) -> patches (B*H*W, k_out) in `dtype`.
    If k_out > 9*C the extra columns are zero (K-aligned output, no extra
    pad pass downstream)."""
    C = slab.shape[1]
    xb = slab.astype(dtype).reshape(B, H, W, C)
    xp = jnp.pad(xb, ((0, 0), (1, 1), (1, 1), (0, 0)),
                 constant_values=jnp.asarray(pad_value, dtype))
    cols = [xp[:, kh:kh + H, kw:kw + W, :]
            for kh in range(3) for kw in range(3)]
    if k_out is not None and k_out > 9 * C:
        cols.append(jnp.zeros((B, H, W, k_out - 9 * C), dtype))
    return jnp.concatenate(cols, axis=-1).reshape(B * H * W, -1)


def conv3x3_weight_mat(w):
    # torch weight (out, in, 3, 3) -> (9*in, out), matching im2col (kh,kw,c)
    return jnp.transpose(w, (2, 3, 1, 0)).reshape(-1, w.shape[0])


# ----------------------------------------------------------------------------
# Glow components (slab-based)
# ----------------------------------------------------------------------------
def coupling_forward(slab, B, C, H, W, cond_slab, cp):
    M = B * H * W
    half = C // 2
    fs = cp["fs"]

    in_a = slab[:, :half]
    in_b = slab[:, half:]

    h_in = jnp.concatenate([in_a, cond_slab], axis=1)        # (M, half+cfs)

    # Conv3x3 + bias + leaky + BN1 batch stats, all fused in one matmul.
    patches0 = im2col3x3_slab(h_in, B, H, W, 0.0, k_out=cp["w0"].shape[0])
    y0, s0, ss0 = pallas_matmul(patches0, cp["w0"], cp["b0"], fs,
                                leaky=True, stats=True,
                                out_dtype=jnp.bfloat16)
    mean0 = s0 / M
    inv0 = 1.0 / jnp.sqrt(jnp.maximum(ss0 / M - mean0 * mean0, 0.0) + 1e-5)

    # BN1 affine folded into Conv1x1 prologue; bias + leaky + BN2 stats fused.
    y1, s1, ss1 = pallas_matmul(y0, cp["w1"], cp["b1"], fs,
                                in_shift=-mean0, in_scale=inv0,
                                leaky=True, stats=True,
                                out_dtype=jnp.bfloat16)
    mean1 = s1 / M
    inv1 = 1.0 / jnp.sqrt(jnp.maximum(ss1 / M - mean1 * mean1, 0.0) + 1e-5)

    # BN2 affine stays standalone: ZeroConv2d pads with 1.0 and the padded
    # taps must NOT be normalized.
    y1n = pallas_affine(y1, -mean1, inv1, out_dtype=jnp.bfloat16)

    # ZeroConv2d: pad 1.0, 3x3 conv, * exp(scale*3) fused in the epilogue.
    patches_z = im2col3x3_slab(y1n, B, H, W, 1.0, k_out=cp["wz"].shape[0])
    net_out = pallas_matmul(patches_z, cp["wz"], cp["bz"], C,
                            out_scale=cp["zscale3"])

    log_s0 = net_out[:, :half]
    t = net_out[:, half:]
    outb_flat, logs_flat = _ew_call_flat(_coupling_kernel,
                                         [in_b, log_s0, t], 2)
    out = jnp.concatenate([in_a, outb_flat.reshape(M, half)], axis=1)
    logdet = jnp.sum(logs_flat.reshape(B, -1), axis=1)
    return out, logdet


def block_forward(slab, B, C, H, W, cond_slabs, bp):
    H2, W2 = H // 2, W // 2
    C4 = C * 4
    M = B * H2 * W2
    # squeeze in slab (BHWC) form: channel order (c, sh, sw) matches NCHW ref
    xb = slab.reshape(B, H2, 2, W2, 2, C)
    xb = jnp.transpose(xb, (0, 1, 3, 5, 2, 4))
    out = xb.reshape(M, C4)

    logdet = jnp.zeros((B,), jnp.float32)
    for fi, fp in enumerate(bp["flows"]):
        # --- ActNorm (data-dependent init, single forward matches ref) ---
        s, ss = pallas_col_stats(out)
        mean = s / M
        var = jnp.maximum(ss / M - mean * mean, 0.0)
        var_unb = var * (M / max(M - 1.0, 1.0))      # torch.std is unbiased
        scale_inv = jnp.sqrt(var_unb) + 1e-6
        det_act = H2 * W2 * jnp.sum(-jnp.log(jnp.abs(scale_inv)))
        # --- InvConv2dLU with the actnorm affine folded into its prologue ---
        ip = fp["invconv"]
        out = pallas_matmul(out, ip["wT"], ip["zero_b"], C4,
                            in_shift=-mean, in_scale=1.0 / scale_inv)
        det_inv = H2 * W2 * ip["sum_log_s"]
        # --- AffineCoupling ---
        out, det_cpl = coupling_forward(out, B, C4, H2, W2,
                                        cond_slabs[fi], fp["coupling"])
        logdet = logdet + det_act + det_inv + det_cpl

    pr = bp["prior"]
    if bp["split"]:
        half = C4 // 2
        out_slab = out[:, :half]
        z_slab = out[:, half:]
        prior_in = out_slab
        cz = half
    else:
        prior_in = jnp.zeros_like(out)
        z_slab = out
        out_slab = out
        cz = C4

    patches_p = im2col3x3_slab(prior_in, B, H2, W2, 1.0,
                               k_out=pr["w"].shape[0])
    prior_out = pallas_matmul(patches_p, pr["w"], pr["b"], 2 * cz,
                              out_scale=pr["scale3"])
    mean_p = prior_out[:, :cz]
    log_sd = prior_out[:, cz:]

    eps_flat, logp_flat = _ew_call_flat(_gauss_kernel,
                                        [z_slab, mean_p, log_sd], 2)
    logdet = logdet - jnp.sum(log_sd.reshape(B, -1), axis=1)
    log_p = jnp.sum(logp_flat.reshape(B, -1), axis=1)
    eps = eps_flat.reshape(M, cz)
    z_eps_nchw = jnp.transpose(eps.reshape(B, H2, W2, cz), (0, 3, 1, 2))
    return out_slab, logdet, log_p, z_eps_nchw


def glow_forward(x_nchw, cond, params):
    B, C, H, W = x_nchw.shape
    slab = jnp.transpose(x_nchw, (0, 2, 3, 1)).reshape(B * H * W, C)

    # All cond "net2" Linears of every flow/block batched into ONE matmul.
    cl = params["cond_linear"]
    cond_all = pallas_matmul(cond.astype(jnp.float32), cl["w"], cl["b"],
                             cl["ntot"])

    log_p_sum = jnp.zeros((B,), jnp.float32)
    logdet = jnp.zeros((B,), jnp.float32)
    z_outs = []
    c, h, w = C, H, W
    for bp in params["blocks"]:
        h2, w2 = h // 2, w // 2
        cond_slabs = []
        for (off, nsz), fp in zip(bp["lin_slices"], bp["flows"]):
            cfs = fp["coupling"]["cfs"]
            ct = cond_all[:, off:off + nsz].reshape(B, cfs, h2, w2)
            cond_slabs.append(
                jnp.transpose(ct, (0, 2, 3, 1)).reshape(B * h2 * w2, cfs))
        slab, det, log_p, z_new = block_forward(slab, B, c, h, w,
                                                cond_slabs, bp)
        z_outs.append(z_new)
        logdet = logdet + det
        log_p_sum = log_p_sum + log_p
        h, w = h2, w2
        c = (c * 4) // 2 if bp["split"] else c * 4
    return log_p_sum, logdet, z_outs


# ----------------------------------------------------------------------------
# Deterministic parameter init (mirrors module __init__ shapes/distributions)
# ----------------------------------------------------------------------------
def init_glow_params(key, in_channel, n_flow, n_block, H, W, ndim_cond,
                     filter_size=512):
    blocks = []
    n_channel = in_channel
    h, w = H, W
    for bi in range(n_block):
        split = (bi != n_block - 1)
        h, w = h // 2, w // 2
        squeeze_dim = n_channel * 4
        flows = []
        for _ in range(n_flow):
            key, k1, k2, k3, k4, k5 = jax.random.split(key, 6)
            # InvConv2dLU
            wmat = jax.random.normal(k1, (squeeze_dim, squeeze_dim),
                                     jnp.float32)
            q, _ = jnp.linalg.qr(wmat)
            p_mat, l_mat, u_mat = jax.scipy.linalg.lu(q)
            w_s = jnp.diag(u_mat)
            w_u = jnp.triu(u_mat, 1)
            u_mask = jnp.triu(jnp.ones_like(w_u), 1)
            invconv = dict(w_p=p_mat, w_l=l_mat, w_u=w_u,
                           log_s=jnp.log(jnp.abs(w_s)), s_sign=jnp.sign(w_s),
                           u_mask=u_mask, l_mask=u_mask.T,
                           l_eye=jnp.eye(squeeze_dim, dtype=jnp.float32))
            # AffineCoupling (net2 Linear is lazily created in torch; we use
            # a deterministic uniform +-1/sqrt(ndim_cond) stand-in).
            cfs = squeeze_dim // 4
            cin0 = squeeze_dim // 2 + cfs
            bound = 1.0 / math.sqrt(ndim_cond)
            coupling = dict(
                cond_filter_size=cfs,
                conv0_w=0.05 * jax.random.normal(k2, (filter_size, cin0, 3, 3)),
                conv0_b=jnp.zeros((filter_size,), jnp.float32),
                conv1_w=0.05 * jax.random.normal(k3,
                                                 (filter_size, filter_size,
                                                  1, 1)),
                conv1_b=jnp.zeros((filter_size,), jnp.float32),
                zconv_w=jnp.zeros((squeeze_dim, filter_size, 3, 3),
                                  jnp.float32),
                zconv_b=jnp.zeros((squeeze_dim,), jnp.float32),
                zconv_scale=jnp.zeros((squeeze_dim,), jnp.float32),
                lin_w=jax.random.uniform(k4, (h * w * cfs, ndim_cond),
                                         minval=-bound, maxval=bound),
                lin_b=jax.random.uniform(k5, (h * w * cfs,),
                                         minval=-bound, maxval=bound),
            )
            flows.append(dict(invconv=invconv, coupling=coupling))
        if split:
            prior_in, prior_out = n_channel * 2, n_channel * 4
        else:
            prior_in, prior_out = n_channel * 4, n_channel * 8
        prior = dict(w=jnp.zeros((prior_out, prior_in, 3, 3), jnp.float32),
                     b=jnp.zeros((prior_out,), jnp.float32),
                     scale=jnp.zeros((prior_out,), jnp.float32))
        blocks.append(dict(flows=flows, prior=prior, split=split))
        if split:
            n_channel *= 2
    return blocks


# ----------------------------------------------------------------------------
# One-time weight preprocessing: LU recomposition, transpose, pad, bf16 cast,
# and concatenation of all cond-Linear weights into a single matmul.
# ----------------------------------------------------------------------------
def prepare_params(raw_blocks):
    blocks = []
    lin_ws, lin_bs = [], []
    off = 0
    for bp in raw_blocks:
        flows = []
        blk_lin = []
        for fp in bp["flows"]:
            iv = fp["invconv"]
            weight = iv["w_p"] @ (iv["w_l"] * iv["l_mask"] + iv["l_eye"]) @ \
                (iv["w_u"] * iv["u_mask"] +
                 jnp.diag(iv["s_sign"] * jnp.exp(iv["log_s"])))
            csq = int(weight.shape[0])
            cpad = _round_up(csq, 128)
            invconv = dict(
                wT=_pad2(weight.T, csq, cpad).astype(jnp.bfloat16),
                zero_b=jnp.zeros((1, cpad), jnp.float32),
                sum_log_s=jnp.sum(iv["log_s"]),
            )

            cp = fp["coupling"]
            fs = int(cp["conv0_w"].shape[0])
            cin0 = int(cp["conv0_w"].shape[1])
            fsp = _round_up(fs, 128)
            coupling = dict(
                cfs=int(cp["cond_filter_size"]),
                fs=fs,
                w0=_pad2(conv3x3_weight_mat(cp["conv0_w"]),
                         _round_up(9 * cin0, 128), fsp).astype(jnp.bfloat16),
                b0=_rowvec(cp["conv0_b"], fsp),
                w1=_pad2(cp["conv1_w"][:, :, 0, 0].T, fs,
                         fsp).astype(jnp.bfloat16),
                b1=_rowvec(cp["conv1_b"], fsp),
                wz=_pad2(conv3x3_weight_mat(cp["zconv_w"]),
                         _round_up(9 * fs, 128), cpad).astype(jnp.bfloat16),
                bz=_rowvec(cp["zconv_b"], cpad),
                zscale3=jnp.exp(3.0 * cp["zconv_scale"]),
            )
            nlin = int(cp["lin_w"].shape[0])
            lin_ws.append(jnp.asarray(cp["lin_w"], jnp.float32).T)
            lin_bs.append(jnp.asarray(cp["lin_b"], jnp.float32))
            blk_lin.append((off, nlin))
            off += nlin
            flows.append(dict(invconv=invconv, coupling=coupling))

        pr = bp["prior"]
        n_out_p = int(pr["w"].shape[0])
        n_in_p = int(pr["w"].shape[1])
        prior = dict(
            w=_pad2(conv3x3_weight_mat(pr["w"]), _round_up(9 * n_in_p, 128),
                    _round_up(n_out_p, 128)).astype(jnp.bfloat16),
            b=_rowvec(pr["b"], _round_up(n_out_p, 128)),
            scale3=jnp.exp(3.0 * pr["scale"]),
        )
        blocks.append(dict(flows=flows, prior=prior, split=bp["split"],
                           lin_slices=blk_lin))

    ntot = off
    ntot_p = _round_up(ntot, 128)
    ndim_cond = int(lin_ws[0].shape[0])
    wlin = _pad2(jnp.concatenate(lin_ws, axis=1), ndim_cond,
                 ntot_p).astype(jnp.bfloat16)
    blin = _rowvec(jnp.concatenate(lin_bs), ntot_p)
    return dict(blocks=blocks,
                cond_linear=dict(w=wlin, b=blin, ntot=ntot))


# ----------------------------------------------------------------------------
if __name__ == "__main__":
    key = jax.random.PRNGKey(0)
    B, Cin, H, W = 2, 4, 16, 16
    n_flow, n_block, ndim_cond = 2, 2, 8

    kx, kc, kp = jax.random.split(key, 3)
    x = jax.random.normal(kx, (B, Cin, H, W), jnp.float32)
    cond = jax.random.normal(kc, (B, ndim_cond), jnp.float32)

    raw_params = init_glow_params(kp, Cin, n_flow, n_block, H, W, ndim_cond,
                                  filter_size=512)
    params = prepare_params(raw_params)

    fwd = jax.jit(lambda xx, cc: glow_forward(xx, cc, params))
    log_p, logdet, z_outs = fwd(x, cond)
    jax.block_until_ready((log_p, logdet, z_outs))
    print("KERNEL_OK")
</pallas_src>

<mosaic_0001>
module attributes {stable_mosaic.version = 11 : i64} {
  func.func @_colstats_kernel(%arg0: i32, %arg1: memref<64x16xf32, #tpu.memory_space<vmem>>, %arg2: memref<8x16xf32, #tpu.memory_space<vmem>>) attributes {dimension_semantics = [#tpu.dimension_semantics<parallel>], iteration_bounds = array<i64: 2>, scalar_prefetch = 0 : i64, scratch_operands = 0 : i64, tpu.core_type = #tpu.core_type<tc>, window_params = [{transform_indices = @transform_0, window_bounds = array<i64: 64, 16>}, {transform_indices = @transform_1, window_bounds = array<i64: 8, 16>}]} {
    %c0 = arith.constant 0 : index
    %c0_0 = arith.constant 0 : index
    %0 = vector.load %arg1[%c0, %c0_0] : memref<64x16xf32, #tpu.memory_space<vmem>>, vector<64x16xf32>
    %cst = arith.constant dense<0.000000e+00> : vector<16xf32>
    %1 = vector.multi_reduction <add>, %0, %cst [0] : vector<64x16xf32> to vector<16xf32>
    %2 = vector.shape_cast %1 : vector<16xf32> to vector<1x16xf32>
    %3 = arith.mulf %0, %0 : vector<64x16xf32>
    %cst_1 = arith.constant dense<0.000000e+00> : vector<16xf32>
    %4 = vector.multi_reduction <add>, %3, %cst_1 [0] : vector<64x16xf32> to vector<16xf32>
    %5 = vector.shape_cast %4 : vector<16xf32> to vector<1x16xf32>
    %6 = tpu.iota {dimensions = array<i32: 0>} : vector<8x16xi32>
    %c0_i32 = arith.constant 0 : i32
    %7 = vector.broadcast %c0_i32 : i32 to vector<8x16xi32>
    %8 = arith.cmpi eq, %6, %7 : vector<8x16xi32>
    %c1_i32 = arith.constant 1 : i32
    %9 = vector.broadcast %c1_i32 : i32 to vector<8x16xi32>
    %10 = arith.cmpi eq, %6, %9 : vector<8x16xi32>
    %cst_2 = arith.constant 0.000000e+00 : f32
    %11 = vector.shape_cast %5 : vector<1x16xf32> to vector<1x16xf32>
    %12 = vector.broadcast %11 : vector<1x16xf32> to vector<8x16xf32>
    %13 = vector.broadcast %cst_2 : f32 to vector<8x16xf32>
    %14 = arith.select %10, %12, %13 : vector<8x16xi1>, vector<8x16xf32>
    %15 = vector.shape_cast %2 : vector<1x16xf32> to vector<1x16xf32>
    %16 = vector.broadcast %15 : vector<1x16xf32> to vector<8x16xf32>
    %17 = arith.select %8, %16, %14 : vector<8x16xi1>, vector<8x16xf32>
    %c0_3 = arith.constant 0 : index
    %c0_4 = arith.constant 0 : index
    %18 = vector.load %arg2[%c0_3, %c0_4] : memref<8x16xf32, #tpu.memory_space<vmem>>, vector<8x16xf32>
    tpu.vector_store %arg2[%c0_3, %c0_4], %17 {strides = array<i32>} : memref<8x16xf32, #tpu.memory_space<vmem>>, vector<8x16xf32>,
    return
  }
  func.func @transform_0(%arg0: i32) -> (i32, i32) {
    %c0_i32 = arith.constant 0 : i32
    %c0_i32_0 = arith.constant 0 : i32
    return %arg0, %c0_i32 : i32, i32
  }
  func.func @transform_1(%arg0: i32) -> (i32, i32) {
    %c0_i32 = arith.constant 0 : i32
    %c0_i32_0 = arith.constant 0 : i32
    return %arg0, %c0_i32 : i32, i32
  }
}

module attributes {stable_mosaic.version = 11 : i64} {
  func.func @kernel(%arg0: i32, %arg1: memref<64x16xf32, #tpu.memory_space<vmem>>, %arg2: memref<16x128xbf16, #tpu.memory_space<vmem>>, %arg3: memref<1x16xf32, #tpu.memory_space<vmem>>, %arg4: memref<1x16xf32, #tpu.memory_space<vmem>>, %arg5: memref<1x128xf32, #tpu.memory_space<vmem>>, %arg6: memref<64x128xf32, #tpu.memory_space<vmem>>) attributes {dimension_semantics = [#tpu.dimension_semantics<parallel>], iteration_bounds = array<i64: 2>, scalar_prefetch = 0 : i64, scratch_operands = 0 : i64, tpu.core_type = #tpu.core_type<tc>, window_params = [{transform_indices = @transform_0, window_bounds = array<i64: 64, 16>}, {pipeline_mode = #tpu.pipeline_mode<synchronous>, transform_indices = @transform_1, window_bounds = array<i64: 16, 128>}, {pipeline_mode = #tpu.pipeline_mode<synchronous>, transform_indices = @transform_2, window_bounds = array<i64: 1, 16>}, {pipeline_mode = #tpu.pipeline_mode<synchronous>, transform_indices = @transform_3, window_bounds = array<i64: 1, 16>}, {pipeline_mode = #tpu.pipeline_mode<synchronous>, transform_indices = @transform_4, window_bounds = array<i64: 1, 128>}, {transform_indices = @transform_5, window_bounds = array<i64: 64, 128>}]} {
    %c0 = arith.constant 0 : index
    %c0_0 = arith.constant 0 : index
    %0 = vector.load %arg1[%c0, %c0_0] : memref<64x16xf32, #tpu.memory_space<vmem>>, vector<64x16xf32>
    %c0_1 = arith.constant 0 : index
    %c0_2 = arith.constant 0 : index
    %1 = vector.load %arg3[%c0_1, %c0_2] : memref<1x16xf32, #tpu.memory_space<vmem>>, vector<1x16xf32>
    %2 = vector.broadcast %1 : vector<1x16xf32> to vector<64x16xf32>
    %3 = arith.addf %0, %2 : vector<64x16xf32>
    %c0_3 = arith.constant 0 : index
    %c0_4 = arith.constant 0 : index
    %4 = vector.load %arg4[%c0_3, %c0_4] : memref<1x16xf32, #tpu.memory_space<vmem>>, vector<1x16xf32>
    %5 = vector.broadcast %4 : vector<1x16xf32> to vector<64x16xf32>
    %6 = arith.mulf %3, %5 : vector<64x16xf32>
    %7 = arith.truncf %6 : vector<64x16xf32> to vector<64x16xbf16>
    %c0_5 = arith.constant 0 : index
    %c0_6 = arith.constant 0 : index
    %8 = vector.load %arg2[%c0_5, %c0_6] : memref<16x128xbf16, #tpu.memory_space<vmem>>, vector<16x128xbf16>
    %cst = arith.constant dense<0.000000e+00> : vector<64x128xf32>
    %9 = tpu.matmul %7, %8, %cst {dimension_numbers = #tpu.dot_dimension_numbers<[1], [0], [0], [1], [0, 0, 1, 1], [], []>} : vector<64x16xbf16>, vector<16x128xbf16>, vector<64x128xf32> -> vector<64x128xf32>
    %c0_7 = arith.constant 0 : index
    %c0_8 = arith.constant 0 : index
    %10 = vector.load %arg5[%c0_7, %c0_8] : memref<1x128xf32, #tpu.memory_space<vmem>>, vector<1x128xf32>
    %11 = vector.broadcast %10 : vector<1x128xf32> to vector<64x128xf32>
    %12 = arith.addf %9, %11 : vector<64x128xf32>
    %c0_9 = arith.constant 0 : index
    %c0_10 = arith.constant 0 : index
    %13 = vector.load %arg6[%c0_9, %c0_10] : memref<64x128xf32, #tpu.memory_space<vmem>>, vector<64x128xf32>
    tpu.vector_store %arg6[%c0_9, %c0_10], %12 {strides = array<i32>} : memref<64x128xf32, #tpu.memory_space<vmem>>, vector<64x128xf32>,
    return
  }
  func.func @transform_0(%arg0: i32) -> (i32, i32) {
    %c0_i32 = arith.constant 0 : i32
    %c0_i32_0 = arith.constant 0 : i32
    return %arg0, %c0_i32 : i32, i32
  }
  func.func @transform_1(%arg0: i32) -> (i32, i32) {
    %c0_i32 = arith.constant 0 : i32
    %c0_i32_0 = arith.constant 0 : i32
    %c0_i32_1 = arith.constant 0 : i32
    return %c0_i32, %c0_i32_0 : i32, i32
  }
  func.func @transform_2(%arg0: i32) -> (i32, i32) {
    %c0_i32 = arith.constant 0 : i32
    %c0_i32_0 = arith.constant 0 : i32
    %c0_i32_1 = arith.constant 0 : i32
    return %c0_i32, %c0_i32_0 : i32, i32
  }
  func.func @transform_3(%arg0: i32) -> (i32, i32) {
    %c0_i32 = arith.constant 0 : i32
    %c0_i32_0 = arith.constant 0 : i32
    %c0_i32_1 = arith.constant 0 : i32
    return %c0_i32, %c0_i32_0 : i32, i32
  }
  func.func @transform_4(%arg0: i32) -> (i32, i32) {
    %c0_i32 = arith.constant 0 : i32
    %c0_i32_0 = arith.constant 0 : i32
    %c0_i32_1 = arith.constant 0 : i32
    return %c0_i32, %c0_i32_0 : i32, i32
  }
  func.func @transform_5(%arg0: i32) -> (i32, i32) {
    %c0_i32 = arith.constant 0 : i32
    %c0_i32_0 = arith.constant 0 : i32
    return %arg0, %c0_i32 : i32, i32
  }
}

module attributes {stable_mosaic.version = 11 : i64} {
  func.func @kernel(%arg0: i32, %arg1: memref<16x8xf32, #tpu.memory_space<vmem>>, %arg2: memref<8x768xbf16, #tpu.memory_space<vmem>>, %arg3: memref<1x768xf32, #tpu.memory_space<vmem>>, %arg4: memref<16x768xf32, #tpu.memory_space<vmem>>) attributes {dimension_semantics = [#tpu.dimension_semantics<parallel>], iteration_bounds = array<i64: 1>, scalar_prefetch = 0 : i64, scratch_operands = 0 : i64, tpu.core_type = #tpu.core_type<tc>, window_params = [{transform_indices = @transform_0, window_bounds = array<i64: 16, 8>}, {pipeline_mode = #tpu.pipeline_mode<synchronous>, transform_indices = @transform_1, window_bounds = array<i64: 8, 768>}, {pipeline_mode = #tpu.pipeline_mode<synchronous>, transform_indices = @transform_2, window_bounds = array<i64: 1, 768>}, {transform_indices = @transform_3, window_bounds = array<i64: 16, 768>}]} {
    %c0 = arith.constant 0 : index
    %c0_0 = arith.constant 0 : index
    %0 = vector.load %arg1[%c0, %c0_0] : memref<16x8xf32, #tpu.memory_space<vmem>>, vector<16x8xf32>
    %1 = arith.truncf %0 : vector<16x8xf32> to vector<16x8xbf16>
    %c0_1 = arith.constant 0 : index
    %c0_2 = arith.constant 0 : index
    %2 = vector.load %arg2[%c0_1, %c0_2] : memref<8x768xbf16, #tpu.memory_space<vmem>>, vector<8x768xbf16>
    %cst = arith.constant dense<0.000000e+00> : vector<16x768xf32>
    %3 = tpu.matmul %1, %2, %cst {dimension_numbers = #tpu.dot_dimension_numbers<[1], [0], [0], [1], [0, 0, 1, 1], [], []>} : vector<16x8xbf16>, vector<8x768xbf16>, vector<16x768xf32> -> vector<16x768xf32>
    %c0_3 = arith.constant 0 : index
    %c0_4 = arith.constant 0 : index
    %4 = vector.load %arg3[%c0_3, %c0_4] : memref<1x768xf32, #tpu.memory_space<vmem>>, vector<1x768xf32>
    %5 = vector.broadcast %4 : vector<1x768xf32> to vector<16x768xf32>
    %6 = arith.addf %3, %5 : vector<16x768xf32>
    %c0_5 = arith.constant 0 : index
    %c0_6 = arith.constant 0 : index
    %7 = vector.load %arg4[%c0_5, %c0_6] : memref<16x768xf32, #tpu.memory_space<vmem>>, vector<16x768xf32>
    tpu.vector_store %arg4[%c0_5, %c0_6], %6 {strides = array<i32>} : memref<16x768xf32, #tpu.memory_space<vmem>>, vector<16x768xf32>,
    return
  }
  func.func @transform_0(%arg0: i32) -> (i32, i32) {
    %c0_i32 = arith.constant 0 : i32
    %c0_i32_0 = arith.constant 0 : i32
    return %arg0, %c0_i32 : i32, i32
  }
  func.func @transform_1(%arg0: i32) -> (i32, i32) {
    %c0_i32 = arith.constant 0 : i32
    %c0_i32_0 = arith.constant 0 : i32
    %c0_i32_1 = arith.constant 0 : i32
    return %c0_i32, %c0_i32_0 : i32, i32
  }
  func.func @transform_2(%arg0: i32) -> (i32, i32) {
    %c0_i32 = arith.constant 0 : i32
    %c0_i32_0 = arith.constant 0 : i32
    %c0_i32_1 = arith.constant 0 : i32
    return %c0_i32, %c0_i32_0 : i32, i32
  }
  func.func @transform_3(%arg0: i32) -> (i32, i32) {
    %c0_i32 = arith.constant 0 : i32
    %c0_i32_0 = arith.constant 0 : i32
    return %arg0, %c0_i32 : i32, i32
  }
}

module attributes {stable_mosaic.version = 11 : i64} {
  func.func @kernel(%arg0: i32, %arg1: memref<64x128xbf16, #tpu.memory_space<vmem>>, %arg2: memref<128x512xbf16, #tpu.memory_space<vmem>>, %arg3: memref<1x512xf32, #tpu.memory_space<vmem>>, %arg4: memref<64x512xbf16, #tpu.memory_space<vmem>>, %arg5: memref<8x512xf32, #tpu.memory_space<vmem>>) attributes {dimension_semantics = [#tpu.dimension_semantics<parallel>], iteration_bounds = array<i64: 2>, scalar_prefetch = 0 : i64, scratch_operands = 0 : i64, tpu.core_type = #tpu.core_type<tc>, window_params = [{transform_indices = @transform_0, window_bounds = array<i64: 64, 128>}, {pipeline_mode = #tpu.pipeline_mode<synchronous>, transform_indices = @transform_1, window_bounds = array<i64: 128, 512>}, {pipeline_mode = #tpu.pipeline_mode<synchronous>, transform_indices = @transform_2, window_bounds = array<i64: 1, 512>}, {transform_indices = @transform_3, window_bounds = array<i64: 64, 512>}, {transform_indices = @transform_4, window_bounds = array<i64: 8, 512>}]} {
    %c0 = arith.constant 0 : index
    %c0_0 = arith.constant 0 : index
    %0 = vector.load %arg1[%c0, %c0_0] : memref<64x128xbf16, #tpu.memory_space<vmem>>, vector<64x128xbf16>
    %c0_1 = arith.constant 0 : index
    %c0_2 = arith.constant 0 : index
    %1 = vector.load %arg2[%c0_1, %c0_2] : memref<128x512xbf16, #tpu.memory_space<vmem>>, vector<128x512xbf16>
    %cst = arith.constant dense<0.000000e+00> : vector<64x512xf32>
    %2 = tpu.matmul %0, %1, %cst {dimension_numbers = #tpu.dot_dimension_numbers<[1], [0], [0], [1], [0, 0, 1, 1], [], []>} : vector<64x128xbf16>, vector<128x512xbf16>, vector<64x512xf32> -> vector<64x512xf32>
    %c0_3 = arith.constant 0 : index
    %c0_4 = arith.constant 0 : index
    %3 = vector.load %arg3[%c0_3, %c0_4] : memref<1x512xf32, #tpu.memory_space<vmem>>, vector<1x512xf32>
    %4 = vector.broadcast %3 : vector<1x512xf32> to vector<64x512xf32>
    %5 = arith.addf %2, %4 : vector<64x512xf32>
    %cst_5 = arith.constant 0.000000e+00 : f32
    %6 = vector.broadcast %cst_5 : f32 to vector<64x512xf32>
    %7 = arith.cmpf oge, %5, %6 : vector<64x512xf32>
    %cst_6 = arith.constant 1.000000e-01 : f32
    %8 = vector.broadcast %cst_6 : f32 to vector<64x512xf32>
    %9 = arith.mulf %8, %5 : vector<64x512xf32>
    %10 = arith.select %7, %5, %9 : vector<64x512xi1>, vector<64x512xf32>
    %11 = arith.truncf %10 : vector<64x512xf32> to vector<64x512xbf16>
    %c0_7 = arith.constant 0 : index
    %c0_8 = arith.constant 0 : index
    %12 = vector.load %arg4[%c0_7, %c0_8] : memref<64x512xbf16, #tpu.memory_space<vmem>>, vector<64x512xbf16>
    tpu.vector_store %arg4[%c0_7, %c0_8], %11 {strides = array<i32>} : memref<64x512xbf16, #tpu.memory_space<vmem>>, vector<64x512xbf16>,
    %cst_9 = arith.constant dense<0.000000e+00> : vector<512xf32>
    %13 = vector.multi_reduction <add>, %10, %cst_9 [0] : vector<64x512xf32> to vector<512xf32>
    %14 = vector.shape_cast %13 : vector<512xf32> to vector<1x512xf32>
    %15 = arith.mulf %10, %10 : vector<64x512xf32>
    %cst_10 = arith.constant dense<0.000000e+00> : vector<512xf32>
    %16 = vector.multi_reduction <add>, %15, %cst_10 [0] : vector<64x512xf32> to vector<512xf32>
    %17 = vector.shape_cast %16 : vector<512xf32> to vector<1x512xf32>
    %18 = tpu.iota {dimensions = array<i32: 0>} : vector<8x512xi32>
    %c0_i32 = arith.constant 0 : i32
    %19 = vector.broadcast %c0_i32 : i32 to vector<8x512xi32>
    %20 = arith.cmpi eq, %18, %19 : vector<8x512xi32>
    %c1_i32 = arith.constant 1 : i32
    %21 = vector.broadcast %c1_i32 : i32 to vector<8x512xi32>
    %22 = arith.cmpi eq, %18, %21 : vector<8x512xi32>
    %cst_11 = arith.constant 0.000000e+00 : f32
    %23 = vector.shape_cast %17 : vector<1x512xf32> to vector<1x512xf32>
    %24 = vector.broadcast %23 : vector<1x512xf32> to vector<8x512xf32>
    %25 = vector.broadcast %cst_11 : f32 to vector<8x512xf32>
    %26 = arith.select %22, %24, %25 : vector<8x512xi1>, vector<8x512xf32>
    %27 = vector.shape_cast %14 : vector<1x512xf32> to vector<1x512xf32>
    %28 = vector.broadcast %27 : vector<1x512xf32> to vector<8x512xf32>
    %29 = arith.select %20, %28, %26 : vector<8x512xi1>, vector<8x512xf32>
    %c0_12 = arith.constant 0 : index
    %c0_13 = arith.constant 0 : index
    %30 = vector.load %arg5[%c0_12, %c0_13] : memref<8x512xf32, #tpu.memory_space<vmem>>, vector<8x512xf32>
    tpu.vector_store %arg5[%c0_12, %c0_13], %29 {strides = array<i32>} : memref<8x512xf32, #tpu.memory_space<vmem>>, vector<8x512xf32>,
    return
  }
  func.func @transform_0(%arg0: i32) -> (i32, i32) {
    %c0_i32 = arith.constant 0 : i32
    %c0_i32_0 = arith.constant 0 : i32
    return %arg0, %c0_i32 : i32, i32
  }
  func.func @transform_1(%arg0: i32) -> (i32, i32) {
    %c0_i32 = arith.constant 0 : i32
    %c0_i32_0 = arith.constant 0 : i32
    %c0_i32_1 = arith.constant 0 : i32
    return %c0_i32, %c0_i32_0 : i32, i32
  }
  func.func @transform_2(%arg0: i32) -> (i32, i32) {
    %c0_i32 = arith.constant 0 : i32
    %c0_i32_0 = arith.constant 0 : i32
    %c0_i32_1 = arith.constant 0 : i32
    return %c0_i32, %c0_i32_0 : i32, i32
  }
  func.func @transform_3(%arg0: i32) -> (i32, i32) {
    %c0_i32 = arith.constant 0 : i32
    %c0_i32_0 = arith.constant 0 : i32
    return %arg0, %c0_i32 : i32, i32
  }
  func.func @transform_4(%arg0: i32) -> (i32, i32) {
    %c0_i32 = arith.constant 0 : i32
    %c0_i32_0 = arith.constant 0 : i32
    return %arg0, %c0_i32 : i32, i32
  }
}

module attributes {stable_mosaic.version = 11 : i64} {
  func.func @kernel(%arg0: i32, %arg1: memref<64x512xbf16, #tpu.memory_space<vmem>>, %arg2: memref<512x512xbf16, #tpu.memory_space<vmem>>, %arg3: memref<1x512xf32, #tpu.memory_space<vmem>>, %arg4: memref<1x512xf32, #tpu.memory_space<vmem>>, %arg5: memref<1x512xf32, #tpu.memory_space<vmem>>, %arg6: memref<64x512xbf16, #tpu.memory_space<vmem>>, %arg7: memref<8x512xf32, #tpu.memory_space<vmem>>) attributes {dimension_semantics = [#tpu.dimension_semantics<parallel>], iteration_bounds = array<i64: 2>, scalar_prefetch = 0 : i64, scratch_operands = 0 : i64, tpu.core_type = #tpu.core_type<tc>, window_params = [{transform_indices = @transform_0, window_bounds = array<i64: 64, 512>}, {pipeline_mode = #tpu.pipeline_mode<synchronous>, transform_indices = @transform_1, window_bounds = array<i64: 512, 512>}, {pipeline_mode = #tpu.pipeline_mode<synchronous>, transform_indices = @transform_2, window_bounds = array<i64: 1, 512>}, {pipeline_mode = #tpu.pipeline_mode<synchronous>, transform_indices = @transform_3, window_bounds = array<i64: 1, 512>}, {pipeline_mode = #tpu.pipeline_mode<synchronous>, transform_indices = @transform_4, window_bounds = array<i64: 1, 512>}, {transform_indices = @transform_5, window_bounds = array<i64: 64, 512>}, {transform_indices = @transform_6, window_bounds = array<i64: 8, 512>}]} {
    %c0 = arith.constant 0 : index
    %c0_0 = arith.constant 0 : index
    %0 = vector.load %arg1[%c0, %c0_0] : memref<64x512xbf16, #tpu.memory_space<vmem>>, vector<64x512xbf16>
    %1 = arith.extf %0 : vector<64x512xbf16> to vector<64x512xf32>
    %c0_1 = arith.constant 0 : index
    %c0_2 = arith.constant 0 : index
    %2 = vector.load %arg3[%c0_1, %c0_2] : memref<1x512xf32, #tpu.memory_space<vmem>>, vector<1x512xf32>
    %3 = vector.broadcast %2 : vector<1x512xf32> to vector<64x512xf32>
    %4 = arith.addf %1, %3 : vector<64x512xf32>
    %c0_3 = arith.constant 0 : index
    %c0_4 = arith.constant 0 : index
    %5 = vector.load %arg4[%c0_3, %c0_4] : memref<1x512xf32, #tpu.memory_space<vmem>>, vector<1x512xf32>
    %6 = vector.broadcast %5 : vector<1x512xf32> to vector<64x512xf32>
    %7 = arith.mulf %4, %6 : vector<64x512xf32>
    %8 = arith.truncf %7 : vector<64x512xf32> to vector<64x512xbf16>
    %c0_5 = arith.constant 0 : index
    %c0_6 = arith.constant 0 : index
    %9 = vector.load %arg2[%c0_5, %c0_6] : memref<512x512xbf16, #tpu.memory_space<vmem>>, vector<512x512xbf16>
    %cst = arith.constant dense<0.000000e+00> : vector<64x512xf32>
    %10 = tpu.matmul %8, %9, %cst {dimension_numbers = #tpu.dot_dimension_numbers<[1], [0], [0], [1], [0, 0, 1, 1], [], []>} : vector<64x512xbf16>, vector<512x512xbf16>, vector<64x512xf32> -> vector<64x512xf32>
    %c0_7 = arith.constant 0 : index
    %c0_8 = arith.constant 0 : index
    %11 = vector.load %arg5[%c0_7, %c0_8] : memref<1x512xf32, #tpu.memory_space<vmem>>, vector<1x512xf32>
    %12 = vector.broadcast %11 : vector<1x512xf32> to vector<64x512xf32>
    %13 = arith.addf %10, %12 : vector<64x512xf32>
    %cst_9 = arith.constant 0.000000e+00 : f32
    %14 = vector.broadcast %cst_9 : f32 to vector<64x512xf32>
    %15 = arith.cmpf oge, %13, %14 : vector<64x512xf32>
    %cst_10 = arith.constant 1.000000e-01 : f32
    %16 = vector.broadcast %cst_10 : f32 to vector<64x512xf32>
    %17 = arith.mulf %16, %13 : vector<64x512xf32>
    %18 = arith.select %15, %13, %17 : vector<64x512xi1>, vector<64x512xf32>
    %19 = arith.truncf %18 : vector<64x512xf32> to vector<64x512xbf16>
    %c0_11 = arith.constant 0 : index
    %c0_12 = arith.constant 0 : index
    %20 = vector.load %arg6[%c0_11, %c0_12] : memref<64x512xbf16, #tpu.memory_space<vmem>>, vector<64x512xbf16>
    tpu.vector_store %arg6[%c0_11, %c0_12], %19 {strides = array<i32>} : memref<64x512xbf16, #tpu.memory_space<vmem>>, vector<64x512xbf16>,
    %cst_13 = arith.constant dense<0.000000e+00> : vector<512xf32>
    %21 = vector.multi_reduction <add>, %18, %cst_13 [0] : vector<64x512xf32> to vector<512xf32>
    %22 = vector.shape_cast %21 : vector<512xf32> to vector<1x512xf32>
    %23 = arith.mulf %18, %18 : vector<64x512xf32>
    %cst_14 = arith.constant dense<0.000000e+00> : vector<512xf32>
    %24 = vector.multi_reduction <add>, %23, %cst_14 [0] : vector<64x512xf32> to vector<512xf32>
    %25 = vector.shape_cast %24 : vector<512xf32> to vector<1x512xf32>
    %26 = tpu.iota {dimensions = array<i32: 0>} : vector<8x512xi32>
    %c0_i32 = arith.constant 0 : i32
    %27 = vector.broadcast %c0_i32 : i32 to vector<8x512xi32>
    %28 = arith.cmpi eq, %26, %27 : vector<8x512xi32>
    %c1_i32 = arith.constant 1 : i32
    %29 = vector.broadcast %c1_i32 : i32 to vector<8x512xi32>
    %30 = arith.cmpi eq, %26, %29 : vector<8x512xi32>
    %cst_15 = arith.constant 0.000000e+00 : f32
    %31 = vector.shape_cast %25 : vector<1x512xf32> to vector<1x512xf32>
    %32 = vector.broadcast %31 : vector<1x512xf32> to vector<8x512xf32>
    %33 = vector.broadcast %cst_15 : f32 to vector<8x512xf32>
    %34 = arith.select %30, %32, %33 : vector<8x512xi1>, vector<8x512xf32>
    %35 = vector.shape_cast %22 : vector<1x512xf32> to vector<1x512xf32>
    %36 = vector.broadcast %35 : vector<1x512xf32> to vector<8x512xf32>
    %37 = arith.select %28, %36, %34 : vector<8x512xi1>, vector<8x512xf32>
    %c0_16 = arith.constant 0 : index
    %c0_17 = arith.constant 0 : index
    %38 = vector.load %arg7[%c0_16, %c0_17] : memref<8x512xf32, #tpu.memory_space<vmem>>, vector<8x512xf32>
    tpu.vector_store %arg7[%c0_16, %c0_17], %37 {strides = array<i32>} : memref<8x512xf32, #tpu.memory_space<vmem>>, vector<8x512xf32>,
    return
  }
  func.func @transform_0(%arg0: i32) -> (i32, i32) {
    %c0_i32 = arith.constant 0 : i32
    %c0_i32_0 = arith.constant 0 : i32
    return %arg0, %c0_i32 : i32, i32
  }
  func.func @transform_1(%arg0: i32) -> (i32, i32) {
    %c0_i32 = arith.constant 0 : i32
    %c0_i32_0 = arith.constant 0 : i32
    %c0_i32_1 = arith.constant 0 : i32
    return %c0_i32, %c0_i32_0 : i32, i32
  }
  func.func @transform_2(%arg0: i32) -> (i32, i32) {
    %c0_i32 = arith.constant 0 : i32
    %c0_i32_0 = arith.constant 0 : i32
    %c0_i32_1 = arith.constant 0 : i32
    return %c0_i32, %c0_i32_0 : i32, i32
  }
  func.func @transform_3(%arg0: i32) -> (i32, i32) {
    %c0_i32 = arith.constant 0 : i32
    %c0_i32_0 = arith.constant 0 : i32
    %c0_i32_1 = arith.constant 0 : i32
    return %c0_i32, %c0_i32_0 : i32, i32
  }
  func.func @transform_4(%arg0: i32) -> (i32, i32) {
    %c0_i32 = arith.constant 0 : i32
    %c0_i32_0 = arith.constant 0 : i32
    %c0_i32_1 = arith.constant 0 : i32
    return %c0_i32, %c0_i32_0 : i32, i32
  }
  func.func @transform_5(%arg0: i32) -> (i32, i32) {
    %c0_i32 = arith.constant 0 : i32
    %c0_i32_0 = arith.constant 0 : i32
    return %arg0, %c0_i32 : i32, i32
  }
  func.func @transform_6(%arg0: i32) -> (i32, i32) {
    %c0_i32 = arith.constant 0 : i32
    %c0_i32_0 = arith.constant 0 : i32
    return %arg0, %c0_i32 : i32, i32
  }
}

module attributes {stable_mosaic.version = 11 : i64} {
  func.func @_affine_kernel(%arg0: i32, %arg1: memref<64x512xbf16, #tpu.memory_space<vmem>>, %arg2: memref<1x512xf32, #tpu.memory_space<vmem>>, %arg3: memref<1x512xf32, #tpu.memory_space<vmem>>, %arg4: memref<64x512xbf16, #tpu.memory_space<vmem>>) attributes {dimension_semantics = [#tpu.dimension_semantics<parallel>], iteration_bounds = array<i64: 2>, scalar_prefetch = 0 : i64, scratch_operands = 0 : i64, tpu.core_type = #tpu.core_type<tc>, window_params = [{transform_indices = @transform_0, window_bounds = array<i64: 64, 512>}, {pipeline_mode = #tpu.pipeline_mode<synchronous>, transform_indices = @transform_1, window_bounds = array<i64: 1, 512>}, {pipeline_mode = #tpu.pipeline_mode<synchronous>, transform_indices = @transform_2, window_bounds = array<i64: 1, 512>}, {transform_indices = @transform_3, window_bounds = array<i64: 64, 512>}]} {
    %c0 = arith.constant 0 : index
    %c0_0 = arith.constant 0 : index
    %0 = vector.load %arg1[%c0, %c0_0] : memref<64x512xbf16, #tpu.memory_space<vmem>>, vector<64x512xbf16>
    %1 = arith.extf %0 : vector<64x512xbf16> to vector<64x512xf32>
    %c0_1 = arith.constant 0 : index
    %c0_2 = arith.constant 0 : index
    %2 = vector.load %arg2[%c0_1, %c0_2] : memref<1x512xf32, #tpu.memory_space<vmem>>, vector<1x512xf32>
    %3 = vector.broadcast %2 : vector<1x512xf32> to vector<64x512xf32>
    %4 = arith.addf %1, %3 : vector<64x512xf32>
    %c0_3 = arith.constant 0 : index
    %c0_4 = arith.constant 0 : index
    %5 = vector.load %arg3[%c0_3, %c0_4] : memref<1x512xf32, #tpu.memory_space<vmem>>, vector<1x512xf32>
    %6 = vector.broadcast %5 : vector<1x512xf32> to vector<64x512xf32>
    %7 = arith.mulf %4, %6 : vector<64x512xf32>
    %8 = arith.truncf %7 : vector<64x512xf32> to vector<64x512xbf16>
    %c0_5 = arith.constant 0 : index
    %c0_6 = arith.constant 0 : index
    %9 = vector.load %arg4[%c0_5, %c0_6] : memref<64x512xbf16, #tpu.memory_space<vmem>>, vector<64x512xbf16>
    tpu.vector_store %arg4[%c0_5, %c0_6], %8 {strides = array<i32>} : memref<64x512xbf16, #tpu.memory_space<vmem>>, vector<64x512xbf16>,
    return
  }
  func.func @transform_0(%arg0: i32) -> (i32, i32) {
    %c0_i32 = arith.constant 0 : i32
    %c0_i32_0 = arith.constant 0 : i32
    return %arg0, %c0_i32 : i32, i32
  }
  func.func @transform_1(%arg0: i32) -> (i32, i32) {
    %c0_i32 = arith.constant 0 : i32
    %c0_i32_0 = arith.constant 0 : i32
    %c0_i32_1 = arith.constant 0 : i32
    return %c0_i32, %c0_i32_0 : i32, i32
  }
  func.func @transform_2(%arg0: i32) -> (i32, i32) {
    %c0_i32 = arith.constant 0 : i32
    %c0_i32_0 = arith.constant 0 : i32
    %c0_i32_1 = arith.constant 0 : i32
    return %c0_i32, %c0_i32_0 : i32, i32
  }
  func.func @transform_3(%arg0: i32) -> (i32, i32) {
    %c0_i32 = arith.constant 0 : i32
    %c0_i32_0 = arith.constant 0 : i32
    return %arg0, %c0_i32 : i32, i32
  }
}

module attributes {stable_mosaic.version = 11 : i64} {
  func.func @_coupling_kernel(%arg0: i32, %arg1: memref<8x128xf32, #tpu.memory_space<vmem>>, %arg2: memref<8x128xf32, #tpu.memory_space<vmem>>, %arg3: memref<8x128xf32, #tpu.memory_space<vmem>>, %arg4: memref<8x128xf32, #tpu.memory_space<vmem>>, %arg5: memref<8x128xf32, #tpu.memory_space<vmem>>) attributes {dimension_semantics = [#tpu.dimension_semantics<parallel>], iteration_bounds = array<i64: 1>, scalar_prefetch = 0 : i64, scratch_operands = 0 : i64, tpu.core_type = #tpu.core_type<tc>, window_params = [{transform_indices = @transform_0, window_bounds = array<i64: 8, 128>}, {transform_indices = @transform_1, window_bounds = array<i64: 8, 128>}, {transform_indices = @transform_2, window_bounds = array<i64: 8, 128>}, {transform_indices = @transform_3, window_bounds = array<i64: 8, 128>}, {transform_indices = @transform_4, window_bounds = array<i64: 8, 128>}]} {
    %c0 = arith.constant 0 : index
    %c0_0 = arith.constant 0 : index
    %0 = vector.load %arg2[%c0, %c0_0] : memref<8x128xf32, #tpu.memory_space<vmem>>, vector<8x128xf32>
    %1 = math.tanh %0 : vector<8x128xf32>
    %c0_1 = arith.constant 0 : index
    %c0_2 = arith.constant 0 : index
    %2 = vector.load %arg5[%c0_1, %c0_2] : memref<8x128xf32, #tpu.memory_space<vmem>>, vector<8x128xf32>
    tpu.vector_store %arg5[%c0_1, %c0_2], %1 {strides = array<i32>} : memref<8x128xf32, #tpu.memory_space<vmem>>, vector<8x128xf32>,
    %c0_3 = arith.constant 0 : index
    %c0_4 = arith.constant 0 : index
    %3 = vector.load %arg1[%c0_3, %c0_4] : memref<8x128xf32, #tpu.memory_space<vmem>>, vector<8x128xf32>
    %c0_5 = arith.constant 0 : index
    %c0_6 = arith.constant 0 : index
    %4 = vector.load %arg3[%c0_5, %c0_6] : memref<8x128xf32, #tpu.memory_space<vmem>>, vector<8x128xf32>
    %5 = arith.addf %3, %4 : vector<8x128xf32>
    %6 = math.exp %1 : vector<8x128xf32>
    %7 = arith.mulf %5, %6 : vector<8x128xf32>
    %c0_7 = arith.constant 0 : index
    %c0_8 = arith.constant 0 : index
    %8 = vector.load %arg4[%c0_7, %c0_8] : memref<8x128xf32, #tpu.memory_space<vmem>>, vector<8x128xf32>
    tpu.vector_store %arg4[%c0_7, %c0_8], %7 {strides = array<i32>} : memref<8x128xf32, #tpu.memory_space<vmem>>, vector<8x128xf32>,
    return
  }
  func.func @transform_0(%arg0: i32) -> (i32, i32) {
    %c0_i32 = arith.constant 0 : i32
    %c0_i32_0 = arith.constant 0 : i32
    return %arg0, %c0_i32 : i32, i32
  }
  func.func @transform_1(%arg0: i32) -> (i32, i32) {
    %c0_i32 = arith.constant 0 : i32
    %c0_i32_0 = arith.constant 0 : i32
    return %arg0, %c0_i32 : i32, i32
  }
  func.func @transform_2(%arg0: i32) -> (i32, i32) {
    %c0_i32 = arith.constant 0 : i32
    %c0_i32_0 = arith.constant 0 : i32
    return %arg0, %c0_i32 : i32, i32
  }
  func.func @transform_3(%arg0: i32) -> (i32, i32) {
    %c0_i32 = arith.constant 0 : i32
    %c0_i32_0 = arith.constant 0 : i32
    return %arg0, %c0_i32 : i32, i32
  }
  func.func @transform_4(%arg0: i32) -> (i32, i32) {
    %c0_i32 = arith.constant 0 : i32
    %c0_i32_0 = arith.constant 0 : i32
    return %arg0, %c0_i32 : i32, i32
  }
}

module attributes {stable_mosaic.version = 11 : i64} {
  func.func @kernel(%arg0: i32, %arg1: memref<64x4608xbf16, #tpu.memory_space<vmem>>, %arg2: memref<4608x128xbf16, #tpu.memory_space<vmem>>, %arg3: memref<1x128xf32, #tpu.memory_space<vmem>>, %arg4: memref<1x128xf32, #tpu.memory_space<vmem>>, %arg5: memref<64x128xf32, #tpu.memory_space<vmem>>) attributes {dimension_semantics = [#tpu.dimension_semantics<parallel>], iteration_bounds = array<i64: 2>, scalar_prefetch = 0 : i64, scratch_operands = 0 : i64, tpu.core_type = #tpu.core_type<tc>, window_params = [{transform_indices = @transform_0, window_bounds = array<i64: 64, 4608>}, {pipeline_mode = #tpu.pipeline_mode<synchronous>, transform_indices = @transform_1, window_bounds = array<i64: 4608, 128>}, {pipeline_mode = #tpu.pipeline_mode<synchronous>, transform_indices = @transform_2, window_bounds = array<i64: 1, 128>}, {pipeline_mode = #tpu.pipeline_mode<synchronous>, transform_indices = @transform_3, window_bounds = array<i64: 1, 128>}, {transform_indices = @transform_4, window_bounds = array<i64: 64, 128>}]} {
    %c0 = arith.constant 0 : index
    %c0_0 = arith.constant 0 : index
    %0 = vector.load %arg1[%c0, %c0_0] : memref<64x4608xbf16, #tpu.memory_space<vmem>>, vector<64x4608xbf16>
    %c0_1 = arith.constant 0 : index
    %c0_2 = arith.constant 0 : index
    %1 = vector.load %arg2[%c0_1, %c0_2] : memref<4608x128xbf16, #tpu.memory_space<vmem>>, vector<4608x128xbf16>
    %cst = arith.constant dense<0.000000e+00> : vector<64x128xf32>
    %2 = tpu.matmul %0, %1, %cst {dimension_numbers = #tpu.dot_dimension_numbers<[1], [0], [0], [1], [0, 0, 1, 1], [], []>} : vector<64x4608xbf16>, vector<4608x128xbf16>, vector<64x128xf32> -> vector<64x128xf32>
    %c0_3 = arith.constant 0 : index
    %c0_4 = arith.constant 0 : index
    %3 = vector.load %arg3[%c0_3, %c0_4] : memref<1x128xf32, #tpu.memory_space<vmem>>, vector<1x128xf32>
    %4 = vector.broadcast %3 : vector<1x128xf32> to vector<64x128xf32>
    %5 = arith.addf %2, %4 : vector<64x128xf32>
    %c0_5 = arith.constant 0 : index
    %c0_6 = arith.constant 0 : index
    %6 = vector.load %arg4[%c0_5, %c0_6] : memref<1x128xf32, #tpu.memory_space<vmem>>, vector<1x128xf32>
    %7 = vector.broadcast %6 : vector<1x128xf32> to vector<64x128xf32>
    %8 = arith.mulf %5, %7 : vector<64x128xf32>
    %c0_7 = arith.constant 0 : index
    %c0_8 = arith.constant 0 : index
    %9 = vector.load %arg5[%c0_7, %c0_8] : memref<64x128xf32, #tpu.memory_space<vmem>>, vector<64x128xf32>
    tpu.vector_store %arg5[%c0_7, %c0_8], %8 {strides = array<i32>} : memref<64x128xf32, #tpu.memory_space<vmem>>, vector<64x128xf32>,
    return
  }
  func.func @transform_0(%arg0: i32) -> (i32, i32) {
    %c0_i32 = arith.constant 0 : i32
    %c0_i32_0 = arith.constant 0 : i32
    return %arg0, %c0_i32 : i32, i32
  }
  func.func @transform_1(%arg0: i32) -> (i32, i32) {
    %c0_i32 = arith.constant 0 : i32
    %c0_i32_0 = arith.constant 0 : i32
    %c0_i32_1 = arith.constant 0 : i32
    return %c0_i32, %c0_i32_0 : i32, i32
  }
  func.func @transform_2(%arg0: i32) -> (i32, i32) {
    %c0_i32 = arith.constant 0 : i32
    %c0_i32_0 = arith.constant 0 : i32
    %c0_i32_1 = arith.constant 0 : i32
    return %c0_i32, %c0_i32_0 : i32, i32
  }
  func.func @transform_3(%arg0: i32) -> (i32, i32) {
    %c0_i32 = arith.constant 0 : i32
    %c0_i32_0 = arith.constant 0 : i32
    %c0_i32_1 = arith.constant 0 : i32
    return %c0_i32, %c0_i32_0 : i32, i32
  }
  func.func @transform_4(%arg0: i32) -> (i32, i32) {
    %c0_i32 = arith.constant 0 : i32
    %c0_i32_0 = arith.constant 0 : i32
    return %arg0, %c0_i32 : i32, i32
  }
}

module attributes {stable_mosaic.version = 11 : i64} {
  func.func @kernel(%arg0: i32, %arg1: memref<64x16xf32, #tpu.memory_space<vmem>>, %arg2: memref<16x128xbf16, #tpu.memory_space<vmem>>, %arg3: memref<1x16xf32, #tpu.memory_space<vmem>>, %arg4: memref<1x16xf32, #tpu.memory_space<vmem>>, %arg5: memref<1x128xf32, #tpu.memory_space<vmem>>, %arg6: memref<64x128xf32, #tpu.memory_space<vmem>>) attributes {dimension_semantics = [#tpu.dimension_semantics<parallel>], iteration_bounds = array<i64: 2>, scalar_prefetch = 0 : i64, scratch_operands = 0 : i64, tpu.core_type = #tpu.core_type<tc>, window_params = [{transform_indices = @transform_0, window_bounds = array<i64: 64, 16>}, {pipeline_mode = #tpu.pipeline_mode<synchronous>, transform_indices = @transform_1, window_bounds = array<i64: 16, 128>}, {pipeline_mode = #tpu.pipeline_mode<synchronous>, transform_indices = @transform_2, window_bounds = array<i64: 1, 16>}, {pipeline_mode = #tpu.pipeline_mode<synchronous>, transform_indices = @transform_3, window_bounds = array<i64: 1, 16>}, {pipeline_mode = #tpu.pipeline_mode<synchronous>, transform_indices = @transform_4, window_bounds = array<i64: 1, 128>}, {transform_indices = @transform_5, window_bounds = array<i64: 64, 128>}]} {
    %c0 = arith.constant 0 : index
    %c0_0 = arith.constant 0 : index
    %0 = vector.load %arg1[%c0, %c0_0] : memref<64x16xf32, #tpu.memory_space<vmem>>, vector<64x16xf32>
    %c0_1 = arith.constant 0 : index
    %c0_2 = arith.constant 0 : index
    %1 = vector.load %arg3[%c0_1, %c0_2] : memref<1x16xf32, #tpu.memory_space<vmem>>, vector<1x16xf32>
    %2 = vector.broadcast %1 : vector<1x16xf32> to vector<64x16xf32>
    %3 = arith.addf %0, %2 : vector<64x16xf32>
    %c0_3 = arith.constant 0 : index
    %c0_4 = arith.constant 0 : index
    %4 = vector.load %arg4[%c0_3, %c0_4] : memref<1x16xf32, #tpu.memory_space<vmem>>, vector<1x16xf32>
    %5 = vector.broadcast %4 : vector<1x16xf32> to vector<64x16xf32>
    %6 = arith.mulf %3, %5 : vector<64x16xf32>
    %7 = arith.truncf %6 : vector<64x16xf32> to vector<64x16xbf16>
    %c0_5 = arith.constant 0 : index
    %c0_6 = arith.constant 0 : index
    %8 = vector.load %arg2[%c0_5, %c0_6] : memref<16x128xbf16, #tpu.memory_space<vmem>>, vector<16x128xbf16>
    %cst = arith.constant dense<0.000000e+00> : vector<64x128xf32>
    %9 = tpu.matmul %7, %8, %cst {dimension_numbers = #tpu.dot_dimension_numbers<[1], [0], [0], [1], [0, 0, 1, 1], [], []>} : vector<64x16xbf16>, vector<16x128xbf16>, vector<64x128xf32> -> vector<64x128xf32>
    %c0_7 = arith.constant 0 : index
    %c0_8 = arith.constant 0 : index
    %10 = vector.load %arg5[%c0_7, %c0_8] : memref<1x128xf32, #tpu.memory_space<vmem>>, vector<1x128xf32>
    %11 = vector.broadcast %10 : vector<1x128xf32> to vector<64x128xf32>
    %12 = arith.addf %9, %11 : vector<64x128xf32>
    %c0_9 = arith.constant 0 : index
    %c0_10 = arith.constant 0 : index
    %13 = vector.load %arg6[%c0_9, %c0_10] : memref<64x128xf32, #tpu.memory_space<vmem>>, vector<64x128xf32>
    tpu.vector_store %arg6[%c0_9, %c0_10], %12 {strides = array<i32>} : memref<64x128xf32, #tpu.memory_space<vmem>>, vector<64x128xf32>,
    return
  }
  func.func @transform_0(%arg0: i32) -> (i32, i32) {
    %c0_i32 = arith.constant 0 : i32
    %c0_i32_0 = arith.constant 0 : i32
    return %arg0, %c0_i32 : i32, i32
  }
  func.func @transform_1(%arg0: i32) -> (i32, i32) {
    %c0_i32 = arith.constant 0 : i32
    %c0_i32_0 = arith.constant 0 : i32
    %c0_i32_1 = arith.constant 0 : i32
    return %c0_i32, %c0_i32_0 : i32, i32
  }
  func.func @transform_2(%arg0: i32) -> (i32, i32) {
    %c0_i32 = arith.constant 0 : i32
    %c0_i32_0 = arith.constant 0 : i32
    %c0_i32_1 = arith.constant 0 : i32
    return %c0_i32, %c0_i32_0 : i32, i32
  }
  func.func @transform_3(%arg0: i32) -> (i32, i32) {
    %c0_i32 = arith.constant 0 : i32
    %c0_i32_0 = arith.constant 0 : i32
    %c0_i32_1 = arith.constant 0 : i32
    return %c0_i32, %c0_i32_0 : i32, i32
  }
  func.func @transform_4(%arg0: i32) -> (i32, i32) {
    %c0_i32 = arith.constant 0 : i32
    %c0_i32_0 = arith.constant 0 : i32
    %c0_i32_1 = arith.constant 0 : i32
    return %c0_i32, %c0_i32_0 : i32, i32
  }
  func.func @transform_5(%arg0: i32) -> (i32, i32) {
    %c0_i32 = arith.constant 0 : i32
    %c0_i32_0 = arith.constant 0 : i32
    return %arg0, %c0_i32 : i32, i32
  }
}

module attributes {stable_mosaic.version = 11 : i64} {
  func.func @kernel(%arg0: i32, %arg1: memref<64x128xbf16, #tpu.memory_space<vmem>>, %arg2: memref<128x128xbf16, #tpu.memory_space<vmem>>, %arg3: memref<1x128xf32, #tpu.memory_space<vmem>>, %arg4: memref<1x128xf32, #tpu.memory_space<vmem>>, %arg5: memref<64x128xf32, #tpu.memory_space<vmem>>) attributes {dimension_semantics = [#tpu.dimension_semantics<parallel>], iteration_bounds = array<i64: 2>, scalar_prefetch = 0 : i64, scratch_operands = 0 : i64, tpu.core_type = #tpu.core_type<tc>, window_params = [{transform_indices = @transform_0, window_bounds = array<i64: 64, 128>}, {pipeline_mode = #tpu.pipeline_mode<synchronous>, transform_indices = @transform_1, window_bounds = array<i64: 128, 128>}, {pipeline_mode = #tpu.pipeline_mode<synchronous>, transform_indices = @transform_2, window_bounds = array<i64: 1, 128>}, {pipeline_mode = #tpu.pipeline_mode<synchronous>, transform_indices = @transform_3, window_bounds = array<i64: 1, 128>}, {transform_indices = @transform_4, window_bounds = array<i64: 64, 128>}]} {
    %c0 = arith.constant 0 : index
    %c0_0 = arith.constant 0 : index
    %0 = vector.load %arg1[%c0, %c0_0] : memref<64x128xbf16, #tpu.memory_space<vmem>>, vector<64x128xbf16>
    %c0_1 = arith.constant 0 : index
    %c0_2 = arith.constant 0 : index
    %1 = vector.load %arg2[%c0_1, %c0_2] : memref<128x128xbf16, #tpu.memory_space<vmem>>, vector<128x128xbf16>
    %cst = arith.constant dense<0.000000e+00> : vector<64x128xf32>
    %2 = tpu.matmul %0, %1, %cst {dimension_numbers = #tpu.dot_dimension_numbers<[1], [0], [0], [1], [0, 0, 1, 1], [], []>} : vector<64x128xbf16>, vector<128x128xbf16>, vector<64x128xf32> -> vector<64x128xf32>
    %c0_3 = arith.constant 0 : index
    %c0_4 = arith.constant 0 : index
    %3 = vector.load %arg3[%c0_3, %c0_4] : memref<1x128xf32, #tpu.memory_space<vmem>>, vector<1x128xf32>
    %4 = vector.broadcast %3 : vector<1x128xf32> to vector<64x128xf32>
    %5 = arith.addf %2, %4 : vector<64x128xf32>
    %c0_5 = arith.constant 0 : index
    %c0_6 = arith.constant 0 : index
    %6 = vector.load %arg4[%c0_5, %c0_6] : memref<1x128xf32, #tpu.memory_space<vmem>>, vector<1x128xf32>
    %7 = vector.broadcast %6 : vector<1x128xf32> to vector<64x128xf32>
    %8 = arith.mulf %5, %7 : vector<64x128xf32>
    %c0_7 = arith.constant 0 : index
    %c0_8 = arith.constant 0 : index
    %9 = vector.load %arg5[%c0_7, %c0_8] : memref<64x128xf32, #tpu.memory_space<vmem>>, vector<64x128xf32>
    tpu.vector_store %arg5[%c0_7, %c0_8], %8 {strides = array<i32>} : memref<64x128xf32, #tpu.memory_space<vmem>>, vector<64x128xf32>,
    return
  }
  func.func @transform_0(%arg0: i32) -> (i32, i32) {
    %c0_i32 = arith.constant 0 : i32
    %c0_i32_0 = arith.constant 0 : i32
    return %arg0, %c0_i32 : i32, i32
  }
  func.func @transform_1(%arg0: i32) -> (i32, i32) {
    %c0_i32 = arith.constant 0 : i32
    %c0_i32_0 = arith.constant 0 : i32
    %c0_i32_1 = arith.constant 0 : i32
    return %c0_i32, %c0_i32_0 : i32, i32
  }
  func.func @transform_2(%arg0: i32) -> (i32, i32) {
    %c0_i32 = arith.constant 0 : i32
    %c0_i32_0 = arith.constant 0 : i32
    %c0_i32_1 = arith.constant 0 : i32
    return %c0_i32, %c0_i32_0 : i32, i32
  }
  func.func @transform_3(%arg0: i32) -> (i32, i32) {
    %c0_i32 = arith.constant 0 : i32
    %c0_i32_0 = arith.constant 0 : i32
    %c0_i32_1 = arith.constant 0 : i32
    return %c0_i32, %c0_i32_0 : i32, i32
  }
  func.func @transform_4(%arg0: i32) -> (i32, i32) {
    %c0_i32 = arith.constant 0 : i32
    %c0_i32_0 = arith.constant 0 : i32
    return %arg0, %c0_i32 : i32, i32
  }
}

module attributes {stable_mosaic.version = 11 : i64} {
  func.func @_gauss_kernel(%arg0: i32, %arg1: memref<8x128xf32, #tpu.memory_space<vmem>>, %arg2: memref<8x128xf32, #tpu.memory_space<vmem>>, %arg3: memref<8x128xf32, #tpu.memory_space<vmem>>, %arg4: memref<8x128xf32, #tpu.memory_space<vmem>>, %arg5: memref<8x128xf32, #tpu.memory_space<vmem>>) attributes {dimension_semantics = [#tpu.dimension_semantics<parallel>], iteration_bounds = array<i64: 1>, scalar_prefetch = 0 : i64, scratch_operands = 0 : i64, tpu.core_type = #tpu.core_type<tc>, window_params = [{transform_indices = @transform_0, window_bounds = array<i64: 8, 128>}, {transform_indices = @transform_1, window_bounds = array<i64: 8, 128>}, {transform_indices = @transform_2, window_bounds = array<i64: 8, 128>}, {transform_indices = @transform_3, window_bounds = array<i64: 8, 128>}, {transform_indices = @transform_4, window_bounds = array<i64: 8, 128>}]} {
    %c0 = arith.constant 0 : index
    %c0_0 = arith.constant 0 : index
    %0 = vector.load %arg1[%c0, %c0_0] : memref<8x128xf32, #tpu.memory_space<vmem>>, vector<8x128xf32>
    %c0_1 = arith.constant 0 : index
    %c0_2 = arith.constant 0 : index
    %1 = vector.load %arg2[%c0_1, %c0_2] : memref<8x128xf32, #tpu.memory_space<vmem>>, vector<8x128xf32>
    %2 = arith.subf %0, %1 : vector<8x128xf32>
    %c0_3 = arith.constant 0 : index
    %c0_4 = arith.constant 0 : index
    %3 = vector.load %arg3[%c0_3, %c0_4] : memref<8x128xf32, #tpu.memory_space<vmem>>, vector<8x128xf32>
    %cst = arith.constant 0.000000e+00 : f32
    %4 = vector.broadcast %cst : f32 to vector<8x128xf32>
    %5 = arith.subf %4, %3 : vector<8x128xf32>
    %6 = math.exp %5 : vector<8x128xf32>
    %7 = arith.mulf %2, %6 : vector<8x128xf32>
    %c0_5 = arith.constant 0 : index
    %c0_6 = arith.constant 0 : index
    %8 = vector.load %arg4[%c0_5, %c0_6] : memref<8x128xf32, #tpu.memory_space<vmem>>, vector<8x128xf32>
    tpu.vector_store %arg4[%c0_5, %c0_6], %7 {strides = array<i32>} : memref<8x128xf32, #tpu.memory_space<vmem>>, vector<8x128xf32>,
    %cst_7 = arith.constant 5.000000e-01 : f32
    %9 = vector.broadcast %cst_7 : f32 to vector<8x128xf32>
    %10 = arith.mulf %9, %7 : vector<8x128xf32>
    %11 = arith.mulf %10, %7 : vector<8x128xf32>
    %cst_8 = arith.constant -0.918938517 : f32
    %12 = vector.broadcast %cst_8 : f32 to vector<8x128xf32>
    %13 = arith.subf %12, %11 : vector<8x128xf32>
    %c0_9 = arith.constant 0 : index
    %c0_10 = arith.constant 0 : index
    %14 = vector.load %arg5[%c0_9, %c0_10] : memref<8x128xf32, #tpu.memory_space<vmem>>, vector<8x128xf32>
    tpu.vector_store %arg5[%c0_9, %c0_10], %13 {strides = array<i32>} : memref<8x128xf32, #tpu.memory_space<vmem>>, vector<8x128xf32>,
    return
  }
  func.func @transform_0(%arg0: i32) -> (i32, i32) {
    %c0_i32 = arith.constant 0 : i32
    %c0_i32_0 = arith.constant 0 : i32
    return %arg0, %c0_i32 : i32, i32
  }
  func.func @transform_1(%arg0: i32) -> (i32, i32) {
    %c0_i32 = arith.constant 0 : i32
    %c0_i32_0 = arith.constant 0 : i32
    return %arg0, %c0_i32 : i32, i32
  }
  func.func @transform_2(%arg0: i32) -> (i32, i32) {
    %c0_i32 = arith.constant 0 : i32
    %c0_i32_0 = arith.constant 0 : i32
    return %arg0, %c0_i32 : i32, i32
  }
  func.func @transform_3(%arg0: i32) -> (i32, i32) {
    %c0_i32 = arith.constant 0 : i32
    %c0_i32_0 = arith.constant 0 : i32
    return %arg0, %c0_i32 : i32, i32
  }
  func.func @transform_4(%arg0: i32) -> (i32, i32) {
    %c0_i32 = arith.constant 0 : i32
    %c0_i32_0 = arith.constant 0 : i32
    return %arg0, %c0_i32 : i32, i32
  }
}

module attributes {stable_mosaic.version = 11 : i64} {
  func.func @_colstats_kernel(%arg0: i32, %arg1: memref<16x32xf32, #tpu.memory_space<vmem>>, %arg2: memref<8x32xf32, #tpu.memory_space<vmem>>) attributes {dimension_semantics = [#tpu.dimension_semantics<parallel>], iteration_bounds = array<i64: 2>, scalar_prefetch = 0 : i64, scratch_operands = 0 : i64, tpu.core_type = #tpu.core_type<tc>, window_params = [{transform_indices = @transform_0, window_bounds = array<i64: 16, 32>}, {transform_indices = @transform_1, window_bounds = array<i64: 8, 32>}]} {
    %c0 = arith.constant 0 : index
    %c0_0 = arith.constant 0 : index
    %0 = vector.load %arg1[%c0, %c0_0] : memref<16x32xf32, #tpu.memory_space<vmem>>, vector<16x32xf32>
    %cst = arith.constant dense<0.000000e+00> : vector<32xf32>
    %1 = vector.multi_reduction <add>, %0, %cst [0] : vector<16x32xf32> to vector<32xf32>
    %2 = vector.shape_cast %1 : vector<32xf32> to vector<1x32xf32>
    %3 = arith.mulf %0, %0 : vector<16x32xf32>
    %cst_1 = arith.constant dense<0.000000e+00> : vector<32xf32>
    %4 = vector.multi_reduction <add>, %3, %cst_1 [0] : vector<16x32xf32> to vector<32xf32>
    %5 = vector.shape_cast %4 : vector<32xf32> to vector<1x32xf32>
    %6 = tpu.iota {dimensions = array<i32: 0>} : vector<8x32xi32>
    %c0_i32 = arith.constant 0 : i32
    %7 = vector.broadcast %c0_i32 : i32 to vector<8x32xi32>
    %8 = arith.cmpi eq, %6, %7 : vector<8x32xi32>
    %c1_i32 = arith.constant 1 : i32
    %9 = vector.broadcast %c1_i32 : i32 to vector<8x32xi32>
    %10 = arith.cmpi eq, %6, %9 : vector<8x32xi32>
    %cst_2 = arith.constant 0.000000e+00 : f32
    %11 = vector.shape_cast %5 : vector<1x32xf32> to vector<1x32xf32>
    %12 = vector.broadcast %11 : vector<1x32xf32> to vector<8x32xf32>
    %13 = vector.broadcast %cst_2 : f32 to vector<8x32xf32>
    %14 = arith.select %10, %12, %13 : vector<8x32xi1>, vector<8x32xf32>
    %15 = vector.shape_cast %2 : vector<1x32xf32> to vector<1x32xf32>
    %16 = vector.broadcast %15 : vector<1x32xf32> to vector<8x32xf32>
    %17 = arith.select %8, %16, %14 : vector<8x32xi1>, vector<8x32xf32>
    %c0_3 = arith.constant 0 : index
    %c0_4 = arith.constant 0 : index
    %18 = vector.load %arg2[%c0_3, %c0_4] : memref<8x32xf32, #tpu.memory_space<vmem>>, vector<8x32xf32>
    tpu.vector_store %arg2[%c0_3, %c0_4], %17 {strides = array<i32>} : memref<8x32xf32, #tpu.memory_space<vmem>>, vector<8x32xf32>,
    return
  }
  func.func @transform_0(%arg0: i32) -> (i32, i32) {
    %c0_i32 = arith.constant 0 : i32
    %c0_i32_0 = arith.constant 0 : i32
    return %arg0, %c0_i32 : i32, i32
  }
  func.func @transform_1(%arg0: i32) -> (i32, i32) {
    %c0_i32 = arith.constant 0 : i32
    %c0_i32_0 = arith.constant 0 : i32
    return %arg0, %c0_i32 : i32, i32
  }
}

module attributes {stable_mosaic.version = 11 : i64} {
  func.func @kernel(%arg0: i32, %arg1: memref<16x32xf32, #tpu.memory_space<vmem>>, %arg2: memref<32x128xbf16, #tpu.memory_space<vmem>>, %arg3: memref<1x32xf32, #tpu.memory_space<vmem>>, %arg4: memref<1x32xf32, #tpu.memory_space<vmem>>, %arg5: memref<1x128xf32, #tpu.memory_space<vmem>>, %arg6: memref<16x128xf32, #tpu.memory_space<vmem>>) attributes {dimension_semantics = [#tpu.dimension_semantics<parallel>], iteration_bounds = array<i64: 2>, scalar_prefetch = 0 : i64, scratch_operands = 0 : i64, tpu.core_type = #tpu.core_type<tc>, window_params = [{transform_indices = @transform_0, window_bounds = array<i64: 16, 32>}, {pipeline_mode = #tpu.pipeline_mode<synchronous>, transform_indices = @transform_1, window_bounds = array<i64: 32, 128>}, {pipeline_mode = #tpu.pipeline_mode<synchronous>, transform_indices = @transform_2, window_bounds = array<i64: 1, 32>}, {pipeline_mode = #tpu.pipeline_mode<synchronous>, transform_indices = @transform_3, window_bounds = array<i64: 1, 32>}, {pipeline_mode = #tpu.pipeline_mode<synchronous>, transform_indices = @transform_4, window_bounds = array<i64: 1, 128>}, {transform_indices = @transform_5, window_bounds = array<i64: 16, 128>}]} {
    %c0 = arith.constant 0 : index
    %c0_0 = arith.constant 0 : index
    %0 = vector.load %arg1[%c0, %c0_0] : memref<16x32xf32, #tpu.memory_space<vmem>>, vector<16x32xf32>
    %c0_1 = arith.constant 0 : index
    %c0_2 = arith.constant 0 : index
    %1 = vector.load %arg3[%c0_1, %c0_2] : memref<1x32xf32, #tpu.memory_space<vmem>>, vector<1x32xf32>
    %2 = vector.broadcast %1 : vector<1x32xf32> to vector<16x32xf32>
    %3 = arith.addf %0, %2 : vector<16x32xf32>
    %c0_3 = arith.constant 0 : index
    %c0_4 = arith.constant 0 : index
    %4 = vector.load %arg4[%c0_3, %c0_4] : memref<1x32xf32, #tpu.memory_space<vmem>>, vector<1x32xf32>
    %5 = vector.broadcast %4 : vector<1x32xf32> to vector<16x32xf32>
    %6 = arith.mulf %3, %5 : vector<16x32xf32>
    %7 = arith.truncf %6 : vector<16x32xf32> to vector<16x32xbf16>
    %c0_5 = arith.constant 0 : index
    %c0_6 = arith.constant 0 : index
    %8 = vector.load %arg2[%c0_5, %c0_6] : memref<32x128xbf16, #tpu.memory_space<vmem>>, vector<32x128xbf16>
    %cst = arith.constant dense<0.000000e+00> : vector<16x128xf32>
    %9 = tpu.matmul %7, %8, %cst {dimension_numbers = #tpu.dot_dimension_numbers<[1], [0], [0], [1], [0, 0, 1, 1], [], []>} : vector<16x32xbf16>, vector<32x128xbf16>, vector<16x128xf32> -> vector<16x128xf32>
    %c0_7 = arith.constant 0 : index
    %c0_8 = arith.constant 0 : index
    %10 = vector.load %arg5[%c0_7, %c0_8] : memref<1x128xf32, #tpu.memory_space<vmem>>, vector<1x128xf32>
    %11 = vector.broadcast %10 : vector<1x128xf32> to vector<16x128xf32>
    %12 = arith.addf %9, %11 : vector<16x128xf32>
    %c0_9 = arith.constant 0 : index
    %c0_10 = arith.constant 0 : index
    %13 = vector.load %arg6[%c0_9, %c0_10] : memref<16x128xf32, #tpu.memory_space<vmem>>, vector<16x128xf32>
    tpu.vector_store %arg6[%c0_9, %c0_10], %12 {strides = array<i32>} : memref<16x128xf32, #tpu.memory_space<vmem>>, vector<16x128xf32>,
    return
  }
  func.func @transform_0(%arg0: i32) -> (i32, i32) {
    %c0_i32 = arith.constant 0 : i32
    %c0_i32_0 = arith.constant 0 : i32
    return %arg0, %c0_i32 : i32, i32
  }
  func.func @transform_1(%arg0: i32) -> (i32, i32) {
    %c0_i32 = arith.constant 0 : i32
    %c0_i32_0 = arith.constant 0 : i32
    %c0_i32_1 = arith.constant 0 : i32
    return %c0_i32, %c0_i32_0 : i32, i32
  }
  func.func @transform_2(%arg0: i32) -> (i32, i32) {
    %c0_i32 = arith.constant 0 : i32
    %c0_i32_0 = arith.constant 0 : i32
    %c0_i32_1 = arith.constant 0 : i32
    return %c0_i32, %c0_i32_0 : i32, i32
  }
  func.func @transform_3(%arg0: i32) -> (i32, i32) {
    %c0_i32 = arith.constant 0 : i32
    %c0_i32_0 = arith.constant 0 : i32
    %c0_i32_1 = arith.constant 0 : i32
    return %c0_i32, %c0_i32_0 : i32, i32
  }
  func.func @transform_4(%arg0: i32) -> (i32, i32) {
    %c0_i32 = arith.constant 0 : i32
    %c0_i32_0 = arith.constant 0 : i32
    %c0_i32_1 = arith.constant 0 : i32
    return %c0_i32, %c0_i32_0 : i32, i32
  }
  func.func @transform_5(%arg0: i32) -> (i32, i32) {
    %c0_i32 = arith.constant 0 : i32
    %c0_i32_0 = arith.constant 0 : i32
    return %arg0, %c0_i32 : i32, i32
  }
}

module attributes {stable_mosaic.version = 11 : i64} {
  func.func @kernel(%arg0: i32, %arg1: memref<16x256xbf16, #tpu.memory_space<vmem>>, %arg2: memref<256x512xbf16, #tpu.memory_space<vmem>>, %arg3: memref<1x512xf32, #tpu.memory_space<vmem>>, %arg4: memref<16x512xbf16, #tpu.memory_space<vmem>>, %arg5: memref<8x512xf32, #tpu.memory_space<vmem>>) attributes {dimension_semantics = [#tpu.dimension_semantics<parallel>], iteration_bounds = array<i64: 2>, scalar_prefetch = 0 : i64, scratch_operands = 0 : i64, tpu.core_type = #tpu.core_type<tc>, window_params = [{transform_indices = @transform_0, window_bounds = array<i64: 16, 256>}, {pipeline_mode = #tpu.pipeline_mode<synchronous>, transform_indices = @transform_1, window_bounds = array<i64: 256, 512>}, {pipeline_mode = #tpu.pipeline_mode<synchronous>, transform_indices = @transform_2, window_bounds = array<i64: 1, 512>}, {transform_indices = @transform_3, window_bounds = array<i64: 16, 512>}, {transform_indices = @transform_4, window_bounds = array<i64: 8, 512>}]} {
    %c0 = arith.constant 0 : index
    %c0_0 = arith.constant 0 : index
    %0 = vector.load %arg1[%c0, %c0_0] : memref<16x256xbf16, #tpu.memory_space<vmem>>, vector<16x256xbf16>
    %c0_1 = arith.constant 0 : index
    %c0_2 = arith.constant 0 : index
    %1 = vector.load %arg2[%c0_1, %c0_2] : memref<256x512xbf16, #tpu.memory_space<vmem>>, vector<256x512xbf16>
    %cst = arith.constant dense<0.000000e+00> : vector<16x512xf32>
    %2 = tpu.matmul %0, %1, %cst {dimension_numbers = #tpu.dot_dimension_numbers<[1], [0], [0], [1], [0, 0, 1, 1], [], []>} : vector<16x256xbf16>, vector<256x512xbf16>, vector<16x512xf32> -> vector<16x512xf32>
    %c0_3 = arith.constant 0 : index
    %c0_4 = arith.constant 0 : index
    %3 = vector.load %arg3[%c0_3, %c0_4] : memref<1x512xf32, #tpu.memory_space<vmem>>, vector<1x512xf32>
    %4 = vector.broadcast %3 : vector<1x512xf32> to vector<16x512xf32>
    %5 = arith.addf %2, %4 : vector<16x512xf32>
    %cst_5 = arith.constant 0.000000e+00 : f32
    %6 = vector.broadcast %cst_5 : f32 to vector<16x512xf32>
    %7 = arith.cmpf oge, %5, %6 : vector<16x512xf32>
    %cst_6 = arith.constant 1.000000e-01 : f32
    %8 = vector.broadcast %cst_6 : f32 to vector<16x512xf32>
    %9 = arith.mulf %8, %5 : vector<16x512xf32>
    %10 = arith.select %7, %5, %9 : vector<16x512xi1>, vector<16x512xf32>
    %11 = arith.truncf %10 : vector<16x512xf32> to vector<16x512xbf16>
    %c0_7 = arith.constant 0 : index
    %c0_8 = arith.constant 0 : index
    %12 = vector.load %arg4[%c0_7, %c0_8] : memref<16x512xbf16, #tpu.memory_space<vmem>>, vector<16x512xbf16>
    tpu.vector_store %arg4[%c0_7, %c0_8], %11 {strides = array<i32>} : memref<16x512xbf16, #tpu.memory_space<vmem>>, vector<16x512xbf16>,
    %cst_9 = arith.constant dense<0.000000e+00> : vector<512xf32>
    %13 = vector.multi_reduction <add>, %10, %cst_9 [0] : vector<16x512xf32> to vector<512xf32>
    %14 = vector.shape_cast %13 : vector<512xf32> to vector<1x512xf32>
    %15 = arith.mulf %10, %10 : vector<16x512xf32>
    %cst_10 = arith.constant dense<0.000000e+00> : vector<512xf32>
    %16 = vector.multi_reduction <add>, %15, %cst_10 [0] : vector<16x512xf32> to vector<512xf32>
    %17 = vector.shape_cast %16 : vector<512xf32> to vector<1x512xf32>
    %18 = tpu.iota {dimensions = array<i32: 0>} : vector<8x512xi32>
    %c0_i32 = arith.constant 0 : i32
    %19 = vector.broadcast %c0_i32 : i32 to vector<8x512xi32>
    %20 = arith.cmpi eq, %18, %19 : vector<8x512xi32>
    %c1_i32 = arith.constant 1 : i32
    %21 = vector.broadcast %c1_i32 : i32 to vector<8x512xi32>
    %22 = arith.cmpi eq, %18, %21 : vector<8x512xi32>
    %cst_11 = arith.constant 0.000000e+00 : f32
    %23 = vector.shape_cast %17 : vector<1x512xf32> to vector<1x512xf32>
    %24 = vector.broadcast %23 : vector<1x512xf32> to vector<8x512xf32>
    %25 = vector.broadcast %cst_11 : f32 to vector<8x512xf32>
    %26 = arith.select %22, %24, %25 : vector<8x512xi1>, vector<8x512xf32>
    %27 = vector.shape_cast %14 : vector<1x512xf32> to vector<1x512xf32>
    %28 = vector.broadcast %27 : vector<1x512xf32> to vector<8x512xf32>
    %29 = arith.select %20, %28, %26 : vector<8x512xi1>, vector<8x512xf32>
    %c0_12 = arith.constant 0 : index
    %c0_13 = arith.constant 0 : index
    %30 = vector.load %arg5[%c0_12, %c0_13] : memref<8x512xf32, #tpu.memory_space<vmem>>, vector<8x512xf32>
    tpu.vector_store %arg5[%c0_12, %c0_13], %29 {strides = array<i32>} : memref<8x512xf32, #tpu.memory_space<vmem>>, vector<8x512xf32>,
    return
  }
  func.func @transform_0(%arg0: i32) -> (i32, i32) {
    %c0_i32 = arith.constant 0 : i32
    %c0_i32_0 = arith.constant 0 : i32
    return %arg0, %c0_i32 : i32, i32
  }
  func.func @transform_1(%arg0: i32) -> (i32, i32) {
    %c0_i32 = arith.constant 0 : i32
    %c0_i32_0 = arith.constant 0 : i32
    %c0_i32_1 = arith.constant 0 : i32
    return %c0_i32, %c0_i32_0 : i32, i32
  }
  func.func @transform_2(%arg0: i32) -> (i32, i32) {
    %c0_i32 = arith.constant 0 : i32
    %c0_i32_0 = arith.constant 0 : i32
    %c0_i32_1 = arith.constant 0 : i32
    return %c0_i32, %c0_i32_0 : i32, i32
  }
  func.func @transform_3(%arg0: i32) -> (i32, i32) {
    %c0_i32 = arith.constant 0 : i32
    %c0_i32_0 = arith.constant 0 : i32
    return %arg0, %c0_i32 : i32, i32
  }
  func.func @transform_4(%arg0: i32) -> (i32, i32) {
    %c0_i32 = arith.constant 0 : i32
    %c0_i32_0 = arith.constant 0 : i32
    return %arg0, %c0_i32 : i32, i32
  }
}

module attributes {stable_mosaic.version = 11 : i64} {
  func.func @_affine_kernel(%arg0: i32, %arg1: memref<16x512xbf16, #tpu.memory_space<vmem>>, %arg2: memref<1x512xf32, #tpu.memory_space<vmem>>, %arg3: memref<1x512xf32, #tpu.memory_space<vmem>>, %arg4: memref<16x512xbf16, #tpu.memory_space<vmem>>) attributes {dimension_semantics = [#tpu.dimension_semantics<parallel>], iteration_bounds = array<i64: 2>, scalar_prefetch = 0 : i64, scratch_operands = 0 : i64, tpu.core_type = #tpu.core_type<tc>, window_params = [{transform_indices = @transform_0, window_bounds = array<i64: 16, 512>}, {pipeline_mode = #tpu.pipeline_mode<synchronous>, transform_indices = @transform_1, window_bounds = array<i64: 1, 512>}, {pipeline_mode = #tpu.pipeline_mode<synchronous>, transform_indices = @transform_2, window_bounds = array<i64: 1, 512>}, {transform_indices = @transform_3, window_bounds = array<i64: 16, 512>}]} {
    %c0 = arith.constant 0 : index
    %c0_0 = arith.constant 0 : index
    %0 = vector.load %arg1[%c0, %c0_0] : memref<16x512xbf16, #tpu.memory_space<vmem>>, vector<16x512xbf16>
    %1 = arith.extf %0 : vector<16x512xbf16> to vector<16x512xf32>
    %c0_1 = arith.constant 0 : index
    %c0_2 = arith.constant 0 : index
    %2 = vector.load %arg2[%c0_1, %c0_2] : memref<1x512xf32, #tpu.memory_space<vmem>>, vector<1x512xf32>
    %3 = vector.broadcast %2 : vector<1x512xf32> to vector<16x512xf32>
    %4 = arith.addf %1, %3 : vector<16x512xf32>
    %c0_3 = arith.constant 0 : index
    %c0_4 = arith.constant 0 : index
    %5 = vector.load %arg3[%c0_3, %c0_4] : memref<1x512xf32, #tpu.memory_space<vmem>>, vector<1x512xf32>
    %6 = vector.broadcast %5 : vector<1x512xf32> to vector<16x512xf32>
    %7 = arith.mulf %4, %6 : vector<16x512xf32>
    %8 = arith.truncf %7 : vector<16x512xf32> to vector<16x512xbf16>
    %c0_5 = arith.constant 0 : index
    %c0_6 = arith.constant 0 : index
    %9 = vector.load %arg4[%c0_5, %c0_6] : memref<16x512xbf16, #tpu.memory_space<vmem>>, vector<16x512xbf16>
    tpu.vector_store %arg4[%c0_5, %c0_6], %8 {strides = array<i32>} : memref<16x512xbf16, #tpu.memory_space<vmem>>, vector<16x512xbf16>,
    return
  }
  func.func @transform_0(%arg0: i32) -> (i32, i32) {
    %c0_i32 = arith.constant 0 : i32
    %c0_i32_0 = arith.constant 0 : i32
    return %arg0, %c0_i32 : i32, i32
  }
  func.func @transform_1(%arg0: i32) -> (i32, i32) {
    %c0_i32 = arith.constant 0 : i32
    %c0_i32_0 = arith.constant 0 : i32
    %c0_i32_1 = arith.constant 0 : i32
    return %c0_i32, %c0_i32_0 : i32, i32
  }
  func.func @transform_2(%arg0: i32) -> (i32, i32) {
    %c0_i32 = arith.constant 0 : i32
    %c0_i32_0 = arith.constant 0 : i32
    %c0_i32_1 = arith.constant 0 : i32
    return %c0_i32, %c0_i32_0 : i32, i32
  }
  func.func @transform_3(%arg0: i32) -> (i32, i32) {
    %c0_i32 = arith.constant 0 : i32
    %c0_i32_0 = arith.constant 0 : i32
    return %arg0, %c0_i32 : i32, i32
  }
}

module attributes {stable_mosaic.version = 11 : i64} {
  func.func @kernel(%arg0: i32, %arg1: memref<16x512xbf16, #tpu.memory_space<vmem>>, %arg2: memref<512x512xbf16, #tpu.memory_space<vmem>>, %arg3: memref<1x512xf32, #tpu.memory_space<vmem>>, %arg4: memref<1x512xf32, #tpu.memory_space<vmem>>, %arg5: memref<1x512xf32, #tpu.memory_space<vmem>>, %arg6: memref<16x512xbf16, #tpu.memory_space<vmem>>, %arg7: memref<8x512xf32, #tpu.memory_space<vmem>>) attributes {dimension_semantics = [#tpu.dimension_semantics<parallel>], iteration_bounds = array<i64: 2>, scalar_prefetch = 0 : i64, scratch_operands = 0 : i64, tpu.core_type = #tpu.core_type<tc>, window_params = [{transform_indices = @transform_0, window_bounds = array<i64: 16, 512>}, {pipeline_mode = #tpu.pipeline_mode<synchronous>, transform_indices = @transform_1, window_bounds = array<i64: 512, 512>}, {pipeline_mode = #tpu.pipeline_mode<synchronous>, transform_indices = @transform_2, window_bounds = array<i64: 1, 512>}, {pipeline_mode = #tpu.pipeline_mode<synchronous>, transform_indices = @transform_3, window_bounds = array<i64: 1, 512>}, {pipeline_mode = #tpu.pipeline_mode<synchronous>, transform_indices = @transform_4, window_bounds = array<i64: 1, 512>}, {transform_indices = @transform_5, window_bounds = array<i64: 16, 512>}, {transform_indices = @transform_6, window_bounds = array<i64: 8, 512>}]} {
    %c0 = arith.constant 0 : index
    %c0_0 = arith.constant 0 : index
    %0 = vector.load %arg1[%c0, %c0_0] : memref<16x512xbf16, #tpu.memory_space<vmem>>, vector<16x512xbf16>
    %1 = arith.extf %0 : vector<16x512xbf16> to vector<16x512xf32>
    %c0_1 = arith.constant 0 : index
    %c0_2 = arith.constant 0 : index
    %2 = vector.load %arg3[%c0_1, %c0_2] : memref<1x512xf32, #tpu.memory_space<vmem>>, vector<1x512xf32>
    %3 = vector.broadcast %2 : vector<1x512xf32> to vector<16x512xf32>
    %4 = arith.addf %1, %3 : vector<16x512xf32>
    %c0_3 = arith.constant 0 : index
    %c0_4 = arith.constant 0 : index
    %5 = vector.load %arg4[%c0_3, %c0_4] : memref<1x512xf32, #tpu.memory_space<vmem>>, vector<1x512xf32>
    %6 = vector.broadcast %5 : vector<1x512xf32> to vector<16x512xf32>
    %7 = arith.mulf %4, %6 : vector<16x512xf32>
    %8 = arith.truncf %7 : vector<16x512xf32> to vector<16x512xbf16>
    %c0_5 = arith.constant 0 : index
    %c0_6 = arith.constant 0 : index
    %9 = vector.load %arg2[%c0_5, %c0_6] : memref<512x512xbf16, #tpu.memory_space<vmem>>, vector<512x512xbf16>
    %cst = arith.constant dense<0.000000e+00> : vector<16x512xf32>
    %10 = tpu.matmul %8, %9, %cst {dimension_numbers = #tpu.dot_dimension_numbers<[1], [0], [0], [1], [0, 0, 1, 1], [], []>} : vector<16x512xbf16>, vector<512x512xbf16>, vector<16x512xf32> -> vector<16x512xf32>
    %c0_7 = arith.constant 0 : index
    %c0_8 = arith.constant 0 : index
    %11 = vector.load %arg5[%c0_7, %c0_8] : memref<1x512xf32, #tpu.memory_space<vmem>>, vector<1x512xf32>
    %12 = vector.broadcast %11 : vector<1x512xf32> to vector<16x512xf32>
    %13 = arith.addf %10, %12 : vector<16x512xf32>
    %cst_9 = arith.constant 0.000000e+00 : f32
    %14 = vector.broadcast %cst_9 : f32 to vector<16x512xf32>
    %15 = arith.cmpf oge, %13, %14 : vector<16x512xf32>
    %cst_10 = arith.constant 1.000000e-01 : f32
    %16 = vector.broadcast %cst_10 : f32 to vector<16x512xf32>
    %17 = arith.mulf %16, %13 : vector<16x512xf32>
    %18 = arith.select %15, %13, %17 : vector<16x512xi1>, vector<16x512xf32>
    %19 = arith.truncf %18 : vector<16x512xf32> to vector<16x512xbf16>
    %c0_11 = arith.constant 0 : index
    %c0_12 = arith.constant 0 : index
    %20 = vector.load %arg6[%c0_11, %c0_12] : memref<16x512xbf16, #tpu.memory_space<vmem>>, vector<16x512xbf16>
    tpu.vector_store %arg6[%c0_11, %c0_12], %19 {strides = array<i32>} : memref<16x512xbf16, #tpu.memory_space<vmem>>, vector<16x512xbf16>,
    %cst_13 = arith.constant dense<0.000000e+00> : vector<512xf32>
    %21 = vector.multi_reduction <add>, %18, %cst_13 [0] : vector<16x512xf32> to vector<512xf32>
    %22 = vector.shape_cast %21 : vector<512xf32> to vector<1x512xf32>
    %23 = arith.mulf %18, %18 : vector<16x512xf32>
    %cst_14 = arith.constant dense<0.000000e+00> : vector<512xf32>
    %24 = vector.multi_reduction <add>, %23, %cst_14 [0] : vector<16x512xf32> to vector<512xf32>
    %25 = vector.shape_cast %24 : vector<512xf32> to vector<1x512xf32>
    %26 = tpu.iota {dimensions = array<i32: 0>} : vector<8x512xi32>
    %c0_i32 = arith.constant 0 : i32
    %27 = vector.broadcast %c0_i32 : i32 to vector<8x512xi32>
    %28 = arith.cmpi eq, %26, %27 : vector<8x512xi32>
    %c1_i32 = arith.constant 1 : i32
    %29 = vector.broadcast %c1_i32 : i32 to vector<8x512xi32>
    %30 = arith.cmpi eq, %26, %29 : vector<8x512xi32>
    %cst_15 = arith.constant 0.000000e+00 : f32
    %31 = vector.shape_cast %25 : vector<1x512xf32> to vector<1x512xf32>
    %32 = vector.broadcast %31 : vector<1x512xf32> to vector<8x512xf32>
    %33 = vector.broadcast %cst_15 : f32 to vector<8x512xf32>
    %34 = arith.select %30, %32, %33 : vector<8x512xi1>, vector<8x512xf32>
    %35 = vector.shape_cast %22 : vector<1x512xf32> to vector<1x512xf32>
    %36 = vector.broadcast %35 : vector<1x512xf32> to vector<8x512xf32>
    %37 = arith.select %28, %36, %34 : vector<8x512xi1>, vector<8x512xf32>
    %c0_16 = arith.constant 0 : index
    %c0_17 = arith.constant 0 : index
    %38 = vector.load %arg7[%c0_16, %c0_17] : memref<8x512xf32, #tpu.memory_space<vmem>>, vector<8x512xf32>
    tpu.vector_store %arg7[%c0_16, %c0_17], %37 {strides = array<i32>} : memref<8x512xf32, #tpu.memory_space<vmem>>, vector<8x512xf32>,
    return
  }
  func.func @transform_0(%arg0: i32) -> (i32, i32) {
    %c0_i32 = arith.constant 0 : i32
    %c0_i32_0 = arith.constant 0 : i32
    return %arg0, %c0_i32 : i32, i32
  }
  func.func @transform_1(%arg0: i32) -> (i32, i32) {
    %c0_i32 = arith.constant 0 : i32
    %c0_i32_0 = arith.constant 0 : i32
    %c0_i32_1 = arith.constant 0 : i32
    return %c0_i32, %c0_i32_0 : i32, i32
  }
  func.func @transform_2(%arg0: i32) -> (i32, i32) {
    %c0_i32 = arith.constant 0 : i32
    %c0_i32_0 = arith.constant 0 : i32
    %c0_i32_1 = arith.constant 0 : i32
    return %c0_i32, %c0_i32_0 : i32, i32
  }
  func.func @transform_3(%arg0: i32) -> (i32, i32) {
    %c0_i32 = arith.constant 0 : i32
    %c0_i32_0 = arith.constant 0 : i32
    %c0_i32_1 = arith.constant 0 : i32
    return %c0_i32, %c0_i32_0 : i32, i32
  }
  func.func @transform_4(%arg0: i32) -> (i32, i32) {
    %c0_i32 = arith.constant 0 : i32
    %c0_i32_0 = arith.constant 0 : i32
    %c0_i32_1 = arith.constant 0 : i32
    return %c0_i32, %c0_i32_0 : i32, i32
  }
  func.func @transform_5(%arg0: i32) -> (i32, i32) {
    %c0_i32 = arith.constant 0 : i32
    %c0_i32_0 = arith.constant 0 : i32
    return %arg0, %c0_i32 : i32, i32
  }
  func.func @transform_6(%arg0: i32) -> (i32, i32) {
    %c0_i32 = arith.constant 0 : i32
    %c0_i32_0 = arith.constant 0 : i32
    return %arg0, %c0_i32 : i32, i32
  }
}

module attributes {stable_mosaic.version = 11 : i64} {
  func.func @kernel(%arg0: i32, %arg1: memref<16x4608xbf16, #tpu.memory_space<vmem>>, %arg2: memref<4608x128xbf16, #tpu.memory_space<vmem>>, %arg3: memref<1x128xf32, #tpu.memory_space<vmem>>, %arg4: memref<1x128xf32, #tpu.memory_space<vmem>>, %arg5: memref<16x128xf32, #tpu.memory_space<vmem>>) attributes {dimension_semantics = [#tpu.dimension_semantics<parallel>], iteration_bounds = array<i64: 2>, scalar_prefetch = 0 : i64, scratch_operands = 0 : i64, tpu.core_type = #tpu.core_type<tc>, window_params = [{transform_indices = @transform_0, window_bounds = array<i64: 16, 4608>}, {pipeline_mode = #tpu.pipeline_mode<synchronous>, transform_indices = @transform_1, window_bounds = array<i64: 4608, 128>}, {pipeline_mode = #tpu.pipeline_mode<synchronous>, transform_indices = @transform_2, window_bounds = array<i64: 1, 128>}, {pipeline_mode = #tpu.pipeline_mode<synchronous>, transform_indices = @transform_3, window_bounds = array<i64: 1, 128>}, {transform_indices = @transform_4, window_bounds = array<i64: 16, 128>}]} {
    %c0 = arith.constant 0 : index
    %c0_0 = arith.constant 0 : index
    %0 = vector.load %arg1[%c0, %c0_0] : memref<16x4608xbf16, #tpu.memory_space<vmem>>, vector<16x4608xbf16>
    %c0_1 = arith.constant 0 : index
    %c0_2 = arith.constant 0 : index
    %1 = vector.load %arg2[%c0_1, %c0_2] : memref<4608x128xbf16, #tpu.memory_space<vmem>>, vector<4608x128xbf16>
    %cst = arith.constant dense<0.000000e+00> : vector<16x128xf32>
    %2 = tpu.matmul %0, %1, %cst {dimension_numbers = #tpu.dot_dimension_numbers<[1], [0], [0], [1], [0, 0, 1, 1], [], []>} : vector<16x4608xbf16>, vector<4608x128xbf16>, vector<16x128xf32> -> vector<16x128xf32>
    %c0_3 = arith.constant 0 : index
    %c0_4 = arith.constant 0 : index
    %3 = vector.load %arg3[%c0_3, %c0_4] : memref<1x128xf32, #tpu.memory_space<vmem>>, vector<1x128xf32>
    %4 = vector.broadcast %3 : vector<1x128xf32> to vector<16x128xf32>
    %5 = arith.addf %2, %4 : vector<16x128xf32>
    %c0_5 = arith.constant 0 : index
    %c0_6 = arith.constant 0 : index
    %6 = vector.load %arg4[%c0_5, %c0_6] : memref<1x128xf32, #tpu.memory_space<vmem>>, vector<1x128xf32>
    %7 = vector.broadcast %6 : vector<1x128xf32> to vector<16x128xf32>
    %8 = arith.mulf %5, %7 : vector<16x128xf32>
    %c0_7 = arith.constant 0 : index
    %c0_8 = arith.constant 0 : index
    %9 = vector.load %arg5[%c0_7, %c0_8] : memref<16x128xf32, #tpu.memory_space<vmem>>, vector<16x128xf32>
    tpu.vector_store %arg5[%c0_7, %c0_8], %8 {strides = array<i32>} : memref<16x128xf32, #tpu.memory_space<vmem>>, vector<16x128xf32>,
    return
  }
  func.func @transform_0(%arg0: i32) -> (i32, i32) {
    %c0_i32 = arith.constant 0 : i32
    %c0_i32_0 = arith.constant 0 : i32
    return %arg0, %c0_i32 : i32, i32
  }
  func.func @transform_1(%arg0: i32) -> (i32, i32) {
    %c0_i32 = arith.constant 0 : i32
    %c0_i32_0 = arith.constant 0 : i32
    %c0_i32_1 = arith.constant 0 : i32
    return %c0_i32, %c0_i32_0 : i32, i32
  }
  func.func @transform_2(%arg0: i32) -> (i32, i32) {
    %c0_i32 = arith.constant 0 : i32
    %c0_i32_0 = arith.constant 0 : i32
    %c0_i32_1 = arith.constant 0 : i32
    return %c0_i32, %c0_i32_0 : i32, i32
  }
  func.func @transform_3(%arg0: i32) -> (i32, i32) {
    %c0_i32 = arith.constant 0 : i32
    %c0_i32_0 = arith.constant 0 : i32
    %c0_i32_1 = arith.constant 0 : i32
    return %c0_i32, %c0_i32_0 : i32, i32
  }
  func.func @transform_4(%arg0: i32) -> (i32, i32) {
    %c0_i32 = arith.constant 0 : i32
    %c0_i32_0 = arith.constant 0 : i32
    return %arg0, %c0_i32 : i32, i32
  }
}

module attributes {stable_mosaic.version = 11 : i64} {
  func.func @kernel(%arg0: i32, %arg1: memref<16x384xbf16, #tpu.memory_space<vmem>>, %arg2: memref<384x128xbf16, #tpu.memory_space<vmem>>, %arg3: memref<1x128xf32, #tpu.memory_space<vmem>>, %arg4: memref<1x128xf32, #tpu.memory_space<vmem>>, %arg5: memref<16x128xf32, #tpu.memory_space<vmem>>) attributes {dimension_semantics = [#tpu.dimension_semantics<parallel>], iteration_bounds = array<i64: 2>, scalar_prefetch = 0 : i64, scratch_operands = 0 : i64, tpu.core_type = #tpu.core_type<tc>, window_params = [{transform_indices = @transform_0, window_bounds = array<i64: 16, 384>}, {pipeline_mode = #tpu.pipeline_mode<synchronous>, transform_indices = @transform_1, window_bounds = array<i64: 384, 128>}, {pipeline_mode = #tpu.pipeline_mode<synchronous>, transform_indices = @transform_2, window_bounds = array<i64: 1, 128>}, {pipeline_mode = #tpu.pipeline_mode<synchronous>, transform_indices = @transform_3, window_bounds = array<i64: 1, 128>}, {transform_indices = @transform_4, window_bounds = array<i64: 16, 128>}]} {
    %c0 = arith.constant 0 : index
    %c0_0 = arith.constant 0 : index
    %0 = vector.load %arg1[%c0, %c0_0] : memref<16x384xbf16, #tpu.memory_space<vmem>>, vector<16x384xbf16>
    %c0_1 = arith.constant 0 : index
    %c0_2 = arith.constant 0 : index
    %1 = vector.load %arg2[%c0_1, %c0_2] : memref<384x128xbf16, #tpu.memory_space<vmem>>, vector<384x128xbf16>
    %cst = arith.constant dense<0.000000e+00> : vector<16x128xf32>
    %2 = tpu.matmul %0, %1, %cst {dimension_numbers = #tpu.dot_dimension_numbers<[1], [0], [0], [1], [0, 0, 1, 1], [], []>} : vector<16x384xbf16>, vector<384x128xbf16>, vector<16x128xf32> -> vector<16x128xf32>
    %c0_3 = arith.constant 0 : index
    %c0_4 = arith.constant 0 : index
    %3 = vector.load %arg3[%c0_3, %c0_4] : memref<1x128xf32, #tpu.memory_space<vmem>>, vector<1x128xf32>
    %4 = vector.broadcast %3 : vector<1x128xf32> to vector<16x128xf32>
    %5 = arith.addf %2, %4 : vector<16x128xf32>
    %c0_5 = arith.constant 0 : index
    %c0_6 = arith.constant 0 : index
    %6 = vector.load %arg4[%c0_5, %c0_6] : memref<1x128xf32, #tpu.memory_space<vmem>>, vector<1x128xf32>
    %7 = vector.broadcast %6 : vector<1x128xf32> to vector<16x128xf32>
    %8 = arith.mulf %5, %7 : vector<16x128xf32>
    %c0_7 = arith.constant 0 : index
    %c0_8 = arith.constant 0 : index
    %9 = vector.load %arg5[%c0_7, %c0_8] : memref<16x128xf32, #tpu.memory_space<vmem>>, vector<16x128xf32>
    tpu.vector_store %arg5[%c0_7, %c0_8], %8 {strides = array<i32>} : memref<16x128xf32, #tpu.memory_space<vmem>>, vector<16x128xf32>,
    return
  }
  func.func @transform_0(%arg0: i32) -> (i32, i32) {
    %c0_i32 = arith.constant 0 : i32
    %c0_i32_0 = arith.constant 0 : i32
    return %arg0, %c0_i32 : i32, i32
  }
  func.func @transform_1(%arg0: i32) -> (i32, i32) {
    %c0_i32 = arith.constant 0 : i32
    %c0_i32_0 = arith.constant 0 : i32
    %c0_i32_1 = arith.constant 0 : i32
    return %c0_i32, %c0_i32_0 : i32, i32
  }
  func.func @transform_2(%arg0: i32) -> (i32, i32) {
    %c0_i32 = arith.constant 0 : i32
    %c0_i32_0 = arith.constant 0 : i32
    %c0_i32_1 = arith.constant 0 : i32
    return %c0_i32, %c0_i32_0 : i32, i32
  }
  func.func @transform_3(%arg0: i32) -> (i32, i32) {
    %c0_i32 = arith.constant 0 : i32
    %c0_i32_0 = arith.constant 0 : i32
    %c0_i32_1 = arith.constant 0 : i32
    return %c0_i32, %c0_i32_0 : i32, i32
  }
  func.func @transform_4(%arg0: i32) -> (i32, i32) {
    %c0_i32 = arith.constant 0 : i32
    %c0_i32_0 = arith.constant 0 : i32
    return %arg0, %c0_i32 : i32, i32
  }
}

</mosaic_0001>

<bundles_post_ra>
// kernel: _lambda_.34
= control target key start
LH: loop header
LB: loop body
LE: loop exit
PB: predicated region body
PF: predicated region fallthrough
CT: control target
= control target key end

     0   :  { %s272_s6 = smov 0   ;;  %s311_s0 = inlined_call_operand.vmem [shape: f32[128,16], index: 0, kind: input, shape index: {}]   ;;  %s312_s1 = inlined_call_operand.vmem [shape: f32[16,16], index: 1, kind: output, shape index: {}]  }
   0x1 LB: > { %s278_s7 = sadd.s32 4294967295, %s260_s6   ;;  %p240_p0 = scmp.ge.s32.totalorder %s260_s6, 1  ;;  %s260_s6 = sphi %s272_s6, %s11_s6  }
   0x2   : > { %p88_p1 = scmp.lt.s32.totalorder %s260_s6, 3 }
   0x4   : > { %p89_p2 = pnand %p240_p0, %p88_p1 }
   0x5   : > { %s241_s8 = sshll.u32 (!%p89_p2), %s278_s7, 3  ;;  %vm125_vm0 = vcmask (!%p89_p2), 130048   ;;  %p113_p4 = scmp.lt.s32.totalorder (!%p89_p2), %s278_s7, 1  ;;  %v176_v50 = vlaneseq (!%p89_p2) }
   0x6   : > { %92 = sbr.rel (%p89_p2) target bundleno = 50 (0x32), region = 24  ;;  %p108_p3 = scmp.lt.s32.totalorder (!%p89_p2), %s241_s8, 15 }
   0x7   : > { %v177_v55 = vshrl.u32 (!%p89_p2), %v176_v50, 7 }
   0x9   : > { %vm179_vm1 = vcmp.eq.s32.totalorder (!%p89_p2), %v177_v55, 1  ;;  %vm178_vm2 = vcmp.eq.s32.totalorder (!%p89_p2), %v177_v55, 0 }
   0xd   : > { %s314_s8 = smov (!%p108_p3, %s241_s8), 15  ;;  %s316_s7 = smov (!%p113_p4, %s278_s7), 1 }
   0xe   : > { %s242_s9 = sshll.u32 %s314_s8, 3  ;;  %s243_s13 = sshll.u32 %s316_s7, 3 }
   0xf   : > { %s111_s12 = scalar_lea.vmem %s311_s0, %s242_s9  ;;  %s116_s16 = scalar_lea.vmem %s312_s1, %s243_s13 }
  0x10   : > { %v117_v0 = vld [vmem:[%s111_s12] sm:$0xff]  ;;  %v118_v1 = vld [vmem:[%s111_s12 + $0x8] sm:$0xff]  ;;  %v119_v2 = vld [vmem:[%s111_s12 + $0x10] sm:$0xff] }
  0x11   : > { %v120_v3 = vld [vmem:[%s111_s12 + $0x18] sm:$0xff]  ;;  %v126_v4 = vsel %vm125_vm0, %v117_v0, 0.0  ;;  %v127_v5 = vsel %vm125_vm0, %v118_v1, 0.0  ;;  %v129_v6 = vsel %vm125_vm0, %v119_v2, 0.0  ;;  %v147_v7 = vmul.f32 %v117_v0, %v117_v0  ;;  %v121_v8 = vld [vmem:[%s111_s12 + $0x20] sm:$0xff]  ;;  %v122_v13 = vld [vmem:[%s111_s12 + $0x28] sm:$0xff] }
  0x12   : > { %v128_v9 = vadd.f32 %v127_v5, %v126_v4  ;;  %v131_v10 = vsel %vm125_vm0, %v120_v3, 0.0  ;;  %v148_v11 = vmul.f32 %v118_v1, %v118_v1  ;;  %v149_v12 = vmul.f32 %v119_v2, %v119_v2  ;;  %v123_v20 = vld [vmem:[%s111_s12 + $0x30] sm:$0xff]  ;;  %v124_v27 = vld [vmem:[%s111_s12 + $0x38] sm:$0xff] }
  0x13   : > { %v150_v15 = vmul.f32 %v120_v3, %v120_v3  ;;  %v133_v16 = vsel %vm125_vm0, %v121_v8, 0.0  ;;  %v151_v17 = vmul.f32 %v121_v8, %v121_v8  ;;  %v155_v18 = vsel %vm125_vm0, %v147_v7, 0.0 }
  0x14   : > { %v130_v14 = vadd.f32 %v129_v6, %v128_v9  ;;  %v156_v19 = vsel %vm125_vm0, %v148_v11, 0.0  ;;  %v158_v23 = vsel %vm125_vm0, %v149_v12, 0.0  ;;  %v135_v24 = vsel %vm125_vm0, %v122_v13, 0.0 }
  0x15   : > { %v157_v22 = vadd.f32 %v156_v19, %v155_v18  ;;  %v152_v25 = vmul.f32 %v122_v13, %v122_v13  ;;  %v160_v26 = vsel %vm125_vm0, %v150_v15, 0.0  ;;  %v137_v30 = vsel %vm125_vm0, %v123_v20, 0.0 }
  0x16   : > { %v132_v21 = vadd.f32 %v131_v10, %v130_v14  ;;  %v153_v31 = vmul.f32 %v123_v20, %v123_v20  ;;  %v162_v32 = vsel %vm125_vm0, %v151_v17, 0.0  ;;  %v139_v35 = vsel %vm125_vm0, %v124_v27, 0.0 }
  0x17   : > { %v159_v29 = vadd.f32 %v158_v23, %v157_v22  ;;  %v154_v36 = vmul.f32 %v124_v27, %v124_v27  ;;  %v164_v37 = vsel %vm125_vm0, %v152_v25, 0.0 }
  0x18   : > { %v134_v28 = vadd.f32 %v133_v16, %v132_v21  ;;  %v166_v40 = vsel %vm125_vm0, %v153_v31, 0.0 }
  0x19   : > { %v161_v34 = vadd.f32 %v160_v26, %v159_v29  ;;  %v168_v43 = vsel %vm125_vm0, %v154_v36, 0.0 }
  0x1a   : > { %v136_v33 = vadd.f32 %v135_v24, %v134_v28 }
  0x1b   : > { %v163_v39 = vadd.f32 %v162_v32, %v161_v34 }
  0x1c   : > { %v138_v38 = vadd.f32 %v137_v30, %v136_v33 }
  0x1d   : > { %v165_v42 = vadd.f32 %v164_v37, %v163_v39 }
  0x1e   : > { %v140_v41 = vadd.f32 %v139_v35, %v138_v38 }
  0x1f   : > { %v167_v45 = vadd.f32 %v166_v40, %v165_v42 }
  0x20   : > { %v141_v44 = vrot.slane %v140_v41, 4 }
  0x21   : > { %v169_v47 = vadd.f32 %v168_v43, %v167_v45 }
  0x22   : > { %v142_v46 = vadd.f32 %v141_v44, %v140_v41 }
  0x23   : > { %v170_v49 = vrot.slane %v169_v47, 4 }
  0x24   : > { %v143_v48 = vrot.slane %v142_v46, 2 }
  0x25   : > { %v171_v52 = vadd.f32 %v170_v49, %v169_v47 }
  0x26   : > { %v144_v51 = vadd.f32 %v143_v48, %v142_v46 }
  0x27   : > { %v172_v53 = vrot.slane %v171_v52, 2 }
  0x28   : > { %v145_v54 = vrot.slane %v144_v51, 1 }
  0x29   : > { %v173_v56 = vadd.f32 %v172_v53, %v171_v52 }
  0x2a   : > { %v146_v58 = vadd.f32 %v145_v54, %v144_v51 }
  0x2b   : > { %v174_v57 = vrot.slane %v173_v56, 1 }
  0x2d   : > { %v175_v59 = vadd.f32 %v174_v57, %v173_v56 }
  0x2f   : > { %v180_v60 = vsel %vm179_vm1, %v175_v59, 0.0 }
  0x30   : > { %v181_v61 = vsel %vm178_vm2, %v146_v58, %v180_v60 }
  0x31   : > { %182 = vst.msk [vmem:[%s116_s16] sm:$0xff] %vm125_vm0, %v181_v61 }
  0x32 PF: > { %s11_s6 = sadd.s32 1, %s260_s6  }
  0x33   : > { %p8_p5 = scmp.ge.s32.totalorder %s11_s6, 4  }
  0x35   :  { %10 = sbr.rel (!%p8_p5) target bundleno = 1 (0x1), region = 54 }

// kernel: _lambda_.35
= control target key start
LH: loop header
LB: loop body
LE: loop exit
PB: predicated region body
PF: predicated region fallthrough
CT: control target
= control target key end

     0   :  { %10 = vsyncpa [#allocation3], 0  ;;  %s588_s18 = smov 0   ;;  %s667_s0 = inlined_call_operand.vmem [shape: f32[128,16], index: 0, kind: input, shape index: {}]   ;;  %s668_s1 = inlined_call_operand.hbm [shape: bf16[16,128], index: 1, kind: input, shape index: {}]   ;;  %s669_s2 = inlined_call_operand.vmem [shape: f32[1,16], index: 2, kind: input, shape index: {}]   ;;  %s670_s3 = inlined_call_operand.vmem [shape: f32[1,16], index: 3, kind: input, shape index: {}]   ;;  %s671_s4 = inlined_call_operand.vmem [shape: f32[1,128], index: 4, kind: input, shape index: {}]   ;;  %s672_s5 = inlined_call_operand.vmem [shape: f32[128,128], index: 5, kind: output, shape index: {}]  }
   0x1 LB: > { %s455_s19 = sadd.s32 4294967295, %s553_s18   ;;  %p457_p0 = scmp.ge.s32.totalorder %s553_s18, 1  ;;  %s553_s18 = sphi %s588_s18, %s16_s18  }
   0x2   : > { %p157_p1 = scmp.lt.s32.totalorder %s553_s18, 3  ;;  %s555_s20 = smov [#allocation2]  }
   0x3   : > { %s169_s21 = sshll.u32 %s555_s20, 4  ;;  %p602_p3 = scmp.eq.s32.totalorder %s455_s19, 0  ;;  %s170_s21 = int_to_ptr.vmem [resolvable:$true] %s169_s21 }
   0x4   : > { %p596_p2 = pnand %p457_p0, %p157_p1  ;;  %s515_s27 = scalar_lea.hbm %s668_s1, 128 }
   0x5   : > { %s677_s23 = scalar_select %p602_p3, 1, 0 }
   0x6   : > { %s676_s22 = scalar_select %p596_p2, 1, 0 }
   0x7   : > { %p497_p4 = pneg %p596_p2  ;;  %p516_p6 = scmp.ne.s32.totalorder %s668_s1, %s515_s27 }
   0x8   : > { %p522_p10 = scmp.lt.u32.totalorder %s515_s27, %s668_s1 }
   0x9   : > { %p610_p5 = pnand %p602_p3, %p497_p4 }
   0xb   : > { %p517_p7 = pneg %p610_p5 }
   0xd   : > { %p518_p8 = pnand %p517_p7, %p516_p6 }
   0xf   : > { %p519_p9 = pneg %p518_p8 }
  0x11   : > { %p524_p11 = pnand %p522_p10, %p519_p9 }
  0x13   : > { %527 = shalt.err (!%p524_p11)
}
  0x14   : > { %s528_s7 = scalar_lea.vmem %s170_s21, 128  ;;  %p536_p1 = scmp.lt.s32.totalorder %s170_s21, %s170_s21 }
  0x15   : > { %p529_p12 = scmp.ne.s32.totalorder %s170_s21, %s528_s7  ;;  %p537_p4 = scmp.lt.s32.totalorder %s528_s7, %s528_s7 }
  0x17   : > { %p531_p13 = pnand %p529_p12, %p517_p7  ;;  %p538_p3 = por %p537_p4, %p536_p1 }
  0x19   : > { %p532_p0 = pneg %p531_p13 }
  0x1b   : > { %p539_p2 = pnand %p538_p3, %p532_p0 }
  0x1d   : > { %542 = shalt.err (!%p539_p2)
}
  0x1e   : > { %s556_s8 = smov 64   ;;  %s557_s9 = smov 4  }
  0x1f   : > { %500 = dma.hbm_to_vmem [thread:$0]  (!%p610_p5), %s668_s1, 128, %s170_s21, [#allocation3], %s556_s8, %s556_s8, %s557_s9  }
  0x20   : > { %p679_p6 = scmp.ne.s32.totalorder %s676_s22, 0 }
  0x21   : > { %p680_p8 = scmp.ne.s32.totalorder (!%p679_p6), %s677_s23, 0 }
  0x22   : > { %203 = sbr.rel (%p679_p6) target bundleno = 275 (0x113), region = 40 }
  0x29   : > { %548 = dma.done.wait (%p680_p8), [#allocation3], 128  }
  0x2a   : > { %550 = vsyncadd (%p680_p8), [#allocation3], 4294967168  ;;  %s462_s12 = sshll.u32 %s455_s19, 3  ;;  %v514_v0 = vld [vmem:[#allocation2] sm:$0xff]   ;;  %vm301_vm0 = vcmask 130048  }
  0x2b   : > { %p232_p2 = scmp.lt.s32.totalorder %s462_s12, 15  ;;  %v466_v3 = vld [vmem:[%s669_s2] ss:$0 sm:$0xff]  ;;  %481 = vmatprep.subr.bf16.mxu0 %v514_v0  ;;  %491 = vmatprep.subr.bf16.mxu1 %v514_v0 }
  0x2c   : > { %v467_v6 = vld [vmem:[%s670_s3] ss:$0 sm:$0xff]  ;;  %482 = vmatpush3.bf16.msra.mxu0 %v514_v0  ;;  %492 = vmatpush3.bf16.msra.mxu1 %v514_v0 }
  0x2d   : > { %s682_s12 = smov (!%p232_p2, %s462_s12), 15  ;;  %v468_v31 = vld [vmem:[%s671_s4] ss:$0 sm:$0xff] }
  0x2e   : > { %s463_s13 = sshll.u32 %s682_s12, 3 }
  0x2f   : > { %s235_s16 = scalar_lea.vmem %s667_s0, %s463_s13  ;;  %s241_s26 = scalar_lea.vmem %s672_s5, %s463_s13 }
  0x30   : > { %v244_v1 = vld [vmem:[%s235_s16] sm:$0xff]  ;;  %v245_v2 = vld [vmem:[%s235_s16 + $0x8] sm:$0xff]  ;;  %v246_v11 = vld [vmem:[%s235_s16 + $0x10] sm:$0xff] }
  0x31   : > { %v259_v4 = vadd.f32 %v466_v3, %v244_v1  ;;  %v260_v5 = vadd.f32 %v466_v3, %v245_v2  ;;  %v248_v7 = vld [vmem:[%s235_s16 + $0x20] sm:$0xff]  ;;  %v249_v8 = vld [vmem:[%s235_s16 + $0x28] sm:$0xff]  ;;  %v247_v12 = vld [vmem:[%s235_s16 + $0x18] sm:$0xff]  ;;  %v261_v16 = vadd.f32 %v466_v3, %v246_v11 }
  0x32   : > { %v263_v9 = vadd.f32 %v466_v3, %v248_v7  ;;  %v264_v10 = vadd.f32 %v466_v3, %v249_v8  ;;  %v250_v13 = vld [vmem:[%s235_s16 + $0x30] sm:$0xff]  ;;  %v262_v17 = vadd.f32 %v466_v3, %v247_v12  ;;  %v251_v18 = vld [vmem:[%s235_s16 + $0x38] sm:$0xff] }
  0x33   : > { %v274_v14 = vmul.f32 %v467_v6, %v259_v4  ;;  %v275_v15 = vmul.f32 %v467_v6, %v260_v5  ;;  %v265_v21 = vadd.f32 %v466_v3, %v250_v13  ;;  %v266_v22 = vadd.f32 %v466_v3, %v251_v18 }
  0x34   : > { %v278_v19 = vmul.f32 %v467_v6, %v263_v9  ;;  %v279_v20 = vmul.f32 %v467_v6, %v264_v10  ;;  %v276_v24 = vmul.f32 %v467_v6, %v261_v16  ;;  %v277_v25 = vmul.f32 %v467_v6, %v262_v17 }
  0x35   : > { %v282_v23 = vpack.c.bf16 %v275_v15, %v274_v14  ;;  %v280_v27 = vmul.f32 %v467_v6, %v265_v21  ;;  %v281_v28 = vmul.f32 %v467_v6, %v266_v22 }
  0x36   : > { %v284_v26 = vpack.c.bf16 %v279_v20, %v278_v19  ;;  %v283_v29 = vpack.c.bf16 %v277_v25, %v276_v24 }
  0x37   : > { %483 = vmatprep.mubr.msk.bf16.mxu0 %vm301_vm0, %v282_v23  ;;  %v285_v30 = vpack.c.bf16 %v281_v28, %v280_v27 }
  0x38   : > { %487 = vmatprep.mubr.msk.bf16.mxu1 %vm301_vm0, %v284_v26  ;;  %484 = vmatmul.mubr.msk.bf16.vlgmr.msra.gmra.mrb[0].mxu0 %vm301_vm0, %v283_v29 }
  0x39   : > { %488 = vmatmul.mubr.msk.bf16.vlgmr.msra.gmra.mrb[0].mxu1 %vm301_vm0, %v285_v30 }
 0x10b   : > { %v485_v32 = vpop.f32.mrb[0].mxu0 }
 0x10c   : > { %v357_v33 = vadd.f32 %v485_v32, %v468_v31  ;;  %v489_v34 = vpop.f32.mrb[0].mxu1  ;;  %v348_v35 = vpop.f32.mrb[1].mxu0 }
 0x10d   : > { %v373_v36 = vadd.f32 %v489_v34, %v468_v31  ;;  %v349_v37 = vadd.f32 %v468_v31, %v348_v35  ;;  %v364_v38 = vpop.f32.mrb[1].mxu1  ;;  %v486_v39 = vpop.f32.mrb[2].mxu0 }
 0x10e   : > { %381 = vst [vmem:[%s241_s26 + $0x10] sm:$0xff] %v357_v33  ;;  %v365_v40 = vadd.f32 %v468_v31, %v364_v38  ;;  %v360_v41 = vadd.f32 %v486_v39, %v468_v31  ;;  %v490_v42 = vpop.f32.mrb[2].mxu1  ;;  %v351_v43 = vpop.f32.mrb[3].mxu0 }
 0x10f   : > { %385 = vst [vmem:[%s241_s26 + $0x30] sm:$0xff] %v373_v36  ;;  %379 = vst [vmem:[%s241_s26] sm:$0xff] %v349_v37  ;;  %v376_v44 = vadd.f32 %v490_v42, %v468_v31  ;;  %v352_v45 = vadd.f32 %v468_v31, %v351_v43  ;;  %v367_v46 = vpop.f32.mrb[3].mxu1 }
 0x110   : > { %383 = vst [vmem:[%s241_s26 + $0x20] sm:$0xff] %v365_v40  ;;  %382 = vst [vmem:[%s241_s26 + $0x18] sm:$0xff] %v360_v41  ;;  %v368_v47 = vadd.f32 %v468_v31, %v367_v46 }
 0x111   : > { %386 = vst [vmem:[%s241_s26 + $0x38] sm:$0xff] %v376_v44  ;;  %380 = vst [vmem:[%s241_s26 + $0x8] sm:$0xff] %v352_v45 }
 0x112   : > { %384 = vst [vmem:[%s241_s26 + $0x28] sm:$0xff] %v368_v47 }
 0x113 PF: > { %s16_s18 = sadd.s32 1, %s553_s18  }
 0x114   : > { %p13_p3 = scmp.ge.s32.totalorder %s16_s18, 4  }
 0x116   :  { %15 = sbr.rel (!%p13_p3) target bundleno = 1 (0x1), region = 75 }
 0x11d   :  { %409 = vsyncpa [#allocation3], 1 }
 0x11e   :  { %411 = vsyncpa [#allocation3 + $0x1], 1 }

// kernel: _lambda_.33
= control target key start
LH: loop header
LB: loop body
LE: loop exit
PB: predicated region body
PF: predicated region fallthrough
CT: control target
= control target key end

     0   :  { %vm72_vm0 = vcmask 1043456   ;;  %v255_v2 = vmov 0   ;;  %vm68_vm1 = vcmask 64512   ;;  %v23_v16 = vlaneseq  ;;  %s336_s1 = inlined_call_operand.vmem [shape: bf16[8,768], index: 1, kind: input, shape index: {}]   ;;  %s337_s0 = inlined_call_operand.vmem [shape: f32[16,8], index: 0, kind: input, shape index: {}]   ;;  %s338_s2 = inlined_call_operand.vmem [shape: f32[1,768], index: 2, kind: input, shape index: {}]   ;;  %s339_s3 = inlined_call_operand.vmem [shape: f32[16,768], index: 3, kind: output, shape index: {}]  }
   0x1   :  { %v18_v0 = vld [vmem:[%s336_s1] sm:$0xff]  ;;  %v20_v1 = vld [vmem:[%s336_s1 + $0x10] sm:$0xff]  ;;  %123 = vmatprep.mubr.bf16.mxu0 %v255_v2  ;;  %166 = vmatprep.mubr.bf16.mxu1 %v255_v2  ;;  %v16_v6 = vld [vmem:[%s337_s0 + $0x8] sm:$0xff] }
   0x2   :  { %v15_v3 = vld [vmem:[%s337_s0] sm:$0xff]  ;;  %v237_v4 = vcombine.high %v18_v0, %v18_v0  ;;  %v236_v5 = vcombine.low %v18_v0, %v18_v0  ;;  %v241_v7 = vcombine.high %v20_v1, %v20_v1  ;;  %v240_v8 = vcombine.low %v20_v1, %v20_v1  ;;  %v19_v9 = vld [vmem:[%s336_s1 + $0x8] sm:$0xff] }
   0x3   :  { %v239_v10 = vcombine.high %v19_v9, %v19_v9  ;;  %v238_v11 = vcombine.low %v19_v9, %v19_v9  ;;  %v17_v13 = vpack.c.bf16 %v16_v6, %v15_v3  ;;  %v24_v17 = vshrl.u32 %v23_v16, 7  ;;  %v21_v19 = vld [vmem:[%s338_s2] sm:$0x3f] }
   0x4   :  { %242 = vmatprep.subr.msk.bf16.mxu0 %vm72_vm0, %v237_v4  ;;  %v74_v12 = vsel %vm72_vm0, %v236_v5, 0  ;;  %v86_v15 = vsel %vm72_vm0, %v240_v8, 0 }
   0x5   :  { %92 = vmatpush1.bf16.msra.mxu0 %v74_v12  ;;  %244 = vmatprep.subr.msk.bf16.mxu1 %vm72_vm0, %v239_v10  ;;  %v80_v14 = vsel %vm72_vm0, %v238_v11, 0  ;;  %v25_v18 = vsub.s32 0, %v24_v17  ;;  %v29_v20 = vsub.s32 1, %v24_v17  ;;  %v33_v21 = vsub.s32 2, %v24_v17 }
   0x6   :  { %246 = vmatprep.subr.msk.bf16.mxu0 %vm72_vm0, %v241_v7  ;;  %135 = vmatpush1.bf16.msra.mxu1 %v80_v14  ;;  %v37_v22 = vsub.s32 3, %v24_v17  ;;  %v41_v31 = vsub.s32 4, %v24_v17  ;;  %v45_v36 = vsub.s32 5, %v24_v17 }
   0x7   :  { %v26_v23 = vrot.slane %v21_v19, %v25_v18  ;;  %v30_v24 = vrot.slane %v21_v19, %v29_v20  ;;  %v34_v25 = vrot.slane %v21_v19, %v33_v21 }
   0x8   :  { %243 = vmatmul.mubr.msk.bf16.vlgmr.msra.gmra.mrb[0].mxu0 %vm68_vm1, %v17_v13  ;;  %v38_v26 = vrot.slane %v21_v19, %v37_v22  ;;  %v42_v44 = vrot.slane %v21_v19, %v41_v31  ;;  %v46_v46 = vrot.slane %v21_v19, %v45_v36 }
   0x9   :  { %178 = vmatpush1.bf16.msra.mxu0 %v86_v15  ;;  %245 = vmatmul.mubr.msk.bf16.vlgmr.msra.gmra.mrb[0].mxu1 %vm68_vm1, %v17_v13 }
   0xa   :  { %209 = vmatprep.mubr.bf16.mxu0 %v255_v2 }
  0x10   :  { %247 = vmatmul.mubr.msk.bf16.vlgmr.msra.gmra.mrb[4].mxu0 %vm68_vm1, %v17_v13 }
  0xdb   :  { %v125_v27 = vpop.f32.mrb[0].mxu0 }
  0xdc   :  { %v126_v28 = vadd.f32 %v125_v27, %v26_v23  ;;  %v127_v29 = vpop.f32.mrb[1].mxu0  ;;  %v168_v30 = vpop.f32.mrb[0].mxu1 }
  0xdd   :  { %v128_v32 = vadd.f32 %v127_v29, %v30_v24  ;;  %v129_v33 = vpop.f32.mrb[2].mxu0  ;;  %v169_v34 = vadd.f32 %v168_v30, %v34_v25  ;;  %v170_v35 = vpop.f32.mrb[1].mxu1 }
  0xde   :  { %220 = vst [vmem:[%s339_s3] sm:$0xff] %v126_v28  ;;  %v130_v37 = vadd.f32 %v129_v33, %v26_v23  ;;  %v131_v38 = vpop.f32.mrb[3].mxu0  ;;  %v171_v39 = vadd.f32 %v170_v35, %v38_v26  ;;  %v172_v40 = vpop.f32.mrb[2].mxu1 }
  0xdf   :  { %221 = vst [vmem:[%s339_s3 + $0x8] sm:$0xff] %v128_v32  ;;  %v132_v41 = vadd.f32 %v131_v38, %v30_v24  ;;  %222 = vst [vmem:[%s339_s3 + $0x10] sm:$0xff] %v169_v34  ;;  %v173_v42 = vadd.f32 %v172_v40, %v34_v25  ;;  %v174_v43 = vpop.f32.mrb[3].mxu1 }
  0xe0   :  { %226 = vst [vmem:[%s339_s3 + $0x30] sm:$0xff] %v130_v37  ;;  %223 = vst [vmem:[%s339_s3 + $0x18] sm:$0xff] %v171_v39  ;;  %v175_v45 = vadd.f32 %v174_v43, %v38_v26 }
  0xe1   :  { %227 = vst [vmem:[%s339_s3 + $0x38] sm:$0xff] %v132_v41  ;;  %228 = vst [vmem:[%s339_s3 + $0x40] sm:$0xff] %v173_v42 }
  0xe2   :  { %229 = vst [vmem:[%s339_s3 + $0x48] sm:$0xff] %v175_v45 }
  0xe3   :  { %v211_v47 = vpop.f32.mrb[4].mxu0 }
  0xe4   :  { %v212_v48 = vadd.f32 %v211_v47, %v42_v44  ;;  %v213_v49 = vpop.f32.mrb[5].mxu0 }
  0xe5   :  { %v214_v50 = vadd.f32 %v213_v49, %v46_v46  ;;  %v215_v51 = vpop.f32.mrb[6].mxu0 }
  0xe6   :  { %224 = vst [vmem:[%s339_s3 + $0x20] sm:$0xff] %v212_v48  ;;  %v216_v52 = vadd.f32 %v215_v51, %v42_v44  ;;  %v217_v53 = vpop.f32.mrb[7].mxu0 }
  0xe7   :  { %225 = vst [vmem:[%s339_s3 + $0x28] sm:$0xff] %v214_v50  ;;  %v218_v54 = vadd.f32 %v217_v53, %v46_v46 }
  0xe8   :  { %230 = vst [vmem:[%s339_s3 + $0x50] sm:$0xff] %v216_v52 }
  0xe9   :  { %231 = vst [vmem:[%s339_s3 + $0x58] sm:$0xff] %v218_v54 }

// kernel: _lambda_.36
= control target key start
LH: loop header
LB: loop body
LE: loop exit
PB: predicated region body
PF: predicated region fallthrough
CT: control target
= control target key end

     0   :  { %s1239_s15 = smov 0   ;;  %s1513_s0 = inlined_call_operand.vmem [shape: bf16[128,128], index: 0, kind: input, shape index: {}]   ;;  %s1514_s1 = inlined_call_operand.vmem [shape: bf16[128,512], index: 1, kind: input, shape index: {}]   ;;  %s1515_s2 = inlined_call_operand.vmem [shape: f32[1,512], index: 2, kind: input, shape index: {}]   ;;  %s1516_s3 = inlined_call_operand.vmem [shape: bf16[128,512], index: 3, kind: output, shape index: {0}]   ;;  %s1517_s4 = inlined_call_operand.vmem [shape: f32[16,512], index: 4, kind: output, shape index: {1}]  }
   0x1 LB: > { %s1245_s16 = sadd.s32 4294967295, %s1211_s15   ;;  %p1064_p0 = scmp.ge.s32.totalorder %s1211_s15, 1  ;;  %s1211_s15 = sphi %s1239_s15, %s15_s15  }
   0x2   : > { %p166_p1 = scmp.lt.s32.totalorder %s1211_s15, 3 }
   0x4   : > { %p167_p2 = pnand %p1064_p0, %p166_p1 }
   0x5   : > { %v1153_v0 = vld [vmem:[%s1514_s1 + $0x4] ss:$16 sps:$4 sm:$0xff] (!%p167_p2)   ;;  %v1155_v1 = vld [vmem:[%s1514_s1 + $0xc] ss:$16 sps:$4 sm:$0xff] (!%p167_p2)   ;;  %v1213_v2 = vmov (!%p167_p2), 0   ;;  %s1065_s9 = sshll.u32 (!%p167_p2), %s1245_s16, 3  ;;  %v259_v37 = vlaneseq (!%p167_p2) }
   0x6   : > { %170 = sbr.rel (%p167_p2) target bundleno = 332 (0x14c), region = 32  ;;  %495 = vmatprep.mubr.bf16.mxu0 (!%p167_p2), %v1213_v2  ;;  %568 = vmatprep.mubr.bf16.mxu1 (!%p167_p2), %v1213_v2  ;;  %v1157_v3 = vld [vmem:[%s1514_s1] ss:$16 sps:$4 sm:$0xff] (!%p167_p2)   ;;  %v1158_v4 = vld [vmem:[%s1514_s1 + $0x8] ss:$16 sps:$4 sm:$0xff] (!%p167_p2)   ;;  %p199_p3 = scmp.lt.s32.totalorder (!%p167_p2), %s1065_s9, 15 }
   0x7   : > { %463 = vmatprep.subr.bf16.mxu0 (!%p167_p2), %v1153_v0  ;;  %536 = vmatprep.subr.bf16.mxu1 (!%p167_p2), %v1155_v1  ;;  %v1159_v5 = vld [vmem:[%s1514_s1 + $0x24] ss:$16 sps:$4 sm:$0xff] (!%p167_p2)   ;;  %v1161_v6 = vld [vmem:[%s1514_s1 + $0x2c] ss:$16 sps:$4 sm:$0xff] (!%p167_p2)   ;;  %v1163_v7 = vld [vmem:[%s1514_s1 + $0x20] ss:$16 sps:$4 sm:$0xff] (!%p167_p2)  }
   0x8   : > { %464 = vmatpush1.bf16.msra.mxu0 (!%p167_p2), %v1157_v3  ;;  %537 = vmatpush1.bf16.msra.mxu1 (!%p167_p2), %v1158_v4  ;;  %v1164_v8 = vld [vmem:[%s1514_s1 + $0x28] ss:$16 sps:$4 sm:$0xff] (!%p167_p2)   ;;  %v1165_v9 = vld [vmem:[%s1514_s1 + $0x44] ss:$16 sps:$4 sm:$0xff] (!%p167_p2)   ;;  %v1167_v10 = vld [vmem:[%s1514_s1 + $0x4c] ss:$16 sps:$4 sm:$0xff] (!%p167_p2)  }
   0x9   : > { %465 = vmatprep.subr.bf16.mxu0 (!%p167_p2), %v1159_v5  ;;  %538 = vmatprep.subr.bf16.mxu1 (!%p167_p2), %v1161_v6  ;;  %v1169_v11 = vld [vmem:[%s1514_s1 + $0x40] ss:$16 sps:$4 sm:$0xff] (!%p167_p2)   ;;  %v1170_v12 = vld [vmem:[%s1514_s1 + $0x48] ss:$16 sps:$4 sm:$0xff] (!%p167_p2)   ;;  %v1171_v13 = vld [vmem:[%s1514_s1 + $0x64] ss:$16 sps:$4 sm:$0xff] (!%p167_p2)  }
   0xa   : > { %v1173_v14 = vld [vmem:[%s1514_s1 + $0x6c] ss:$16 sps:$4 sm:$0xff] (!%p167_p2)   ;;  %v1175_v15 = vld [vmem:[%s1514_s1 + $0x60] ss:$16 sps:$4 sm:$0xff] (!%p167_p2)   ;;  %v1176_v16 = vld [vmem:[%s1514_s1 + $0x68] ss:$16 sps:$4 sm:$0xff] (!%p167_p2)  }
   0xb   : > { %v1177_v17 = vld [vmem:[%s1514_s1 + $0x84] ss:$16 sps:$4 sm:$0xff] (!%p167_p2)   ;;  %v1179_v18 = vld [vmem:[%s1514_s1 + $0x8c] ss:$16 sps:$4 sm:$0xff] (!%p167_p2)   ;;  %v1181_v19 = vld [vmem:[%s1514_s1 + $0x80] ss:$16 sps:$4 sm:$0xff] (!%p167_p2)  }
   0xc   : > { %466 = vmatpush1.bf16.msra.mxu0 (!%p167_p2), %v1163_v7  ;;  %539 = vmatpush1.bf16.msra.mxu1 (!%p167_p2), %v1164_v8  ;;  %v1182_v20 = vld [vmem:[%s1514_s1 + $0x88] ss:$16 sps:$4 sm:$0xff] (!%p167_p2)   ;;  %v1183_v21 = vld [vmem:[%s1514_s1 + $0xa4] ss:$16 sps:$4 sm:$0xff] (!%p167_p2)   ;;  %v1185_v22 = vld [vmem:[%s1514_s1 + $0xac] ss:$16 sps:$4 sm:$0xff] (!%p167_p2)  }
   0xd   : > { %467 = vmatprep.subr.bf16.mxu0 %v1165_v9  ;;  %540 = vmatprep.subr.bf16.mxu1 %v1167_v10  ;;  %s1519_s9 = smov (!%p199_p3, %s1065_s9), 15  ;;  %v1187_v23 = vld [vmem:[%s1514_s1 + $0xa0] ss:$16 sps:$4 sm:$0xff]   ;;  %v1188_v24 = vld [vmem:[%s1514_s1 + $0xa8] ss:$16 sps:$4 sm:$0xff]   ;;  %v1366_v38 = vshrl.u32 %v259_v37, 7 }
   0xe   : > { %s1066_s13 = sshll.u32 %s1519_s9, 2  ;;  %v1189_v25 = vld [vmem:[%s1514_s1 + $0xc4] ss:$16 sps:$4 sm:$0xff]   ;;  %v1191_v26 = vld [vmem:[%s1514_s1 + $0xcc] ss:$16 sps:$4 sm:$0xff]   ;;  %s1126_s18 = sshll.u32 %s1519_s9, 4 }
   0xf   : > { %s1333_s24 = scalar_lea.vmem %s1513_s0, %s1066_s13  ;;  %v1193_v27 = vld [vmem:[%s1514_s1 + $0xc0] ss:$16 sps:$4 sm:$0xff]   ;;  %v1194_v28 = vld [vmem:[%s1514_s1 + $0xc8] ss:$16 sps:$4 sm:$0xff]   ;;  %v1195_v29 = vld [vmem:[%s1514_s1 + $0xe4] ss:$16 sps:$4 sm:$0xff]   ;;  %s1393_s20 = scalar_lea.vmem %s1516_s3, %s1126_s18 }
  0x10   : > { %468 = vmatpush1.bf16.msra.mxu0 %v1169_v11  ;;  %541 = vmatpush1.bf16.msra.mxu1 %v1170_v12  ;;  %v1197_v30 = vld [vmem:[%s1514_s1 + $0xec] ss:$16 sps:$4 sm:$0xff]   ;;  %v1199_v31 = vld [vmem:[%s1514_s1 + $0xe0] ss:$16 sps:$4 sm:$0xff]   ;;  %v1200_v32 = vld [vmem:[%s1514_s1 + $0xe8] ss:$16 sps:$4 sm:$0xff]  }
  0x11   : > { %469 = vmatprep.subr.bf16.mxu0 %v1171_v13  ;;  %542 = vmatprep.subr.bf16.mxu1 %v1173_v14  ;;  %v1201_v33 = vld [vmem:[%s1333_s24] sm:$0xff]   ;;  %v1202_v34 = vld [vmem:[%s1333_s24 + $0x8] sm:$0xff]   ;;  %v1203_v35 = vld [vmem:[%s1333_s24 + $0x10] sm:$0xff]   ;;  %v261_v39 = vsub.s32 0, %v1366_v38  ;;  %v269_v40 = vsub.s32 2, %v1366_v38  ;;  %v265_v42 = vsub.s32 1, %v1366_v38 }
  0x12   : > { %v1204_v36 = vld [vmem:[%s1333_s24 + $0x18] sm:$0xff]   ;;  %v257_v41 = vld [vmem:[%s1515_s2] sm:$0xf]  ;;  %v273_v43 = vsub.s32 3, %v1366_v38  ;;  %p211_p4 = scmp.lt.s32.totalorder %s1245_s16, 1 }
  0x13   : > { %v1375_v44 = vrot.slane %v257_v41, %v261_v39  ;;  %v1377_v45 = vrot.slane %v257_v41, %v269_v40  ;;  %v1379_v46 = vrot.slane %v257_v41, %v265_v42 }
  0x14   : > { %470 = vmatpush1.bf16.msra.mxu0 %v1175_v15  ;;  %543 = vmatpush1.bf16.msra.mxu1 %v1176_v16  ;;  %v1381_v47 = vrot.slane %v257_v41, %v273_v43  ;;  %s1521_s16 = smov (!%p211_p4, %s1245_s16), 1 }
  0x15   : > { %471 = vmatprep.subr.bf16.mxu0 %v1177_v17  ;;  %544 = vmatprep.subr.bf16.mxu1 %v1179_v18  ;;  %s1127_s21 = sshll.u32 %s1521_s16, 5 }
  0x16   : > { %s215_s24 = scalar_lea.vmem %s1517_s4, %s1127_s21 }
  0x18   : > { %472 = vmatpush1.bf16.msra.mxu0 %v1181_v19  ;;  %545 = vmatpush1.bf16.msra.mxu1 %v1182_v20 }
  0x19   : > { %473 = vmatprep.subr.bf16.mxu0 %v1183_v21  ;;  %546 = vmatprep.subr.bf16.mxu1 %v1185_v22 }
  0x1c   : > { %474 = vmatpush1.bf16.msra.mxu0 %v1187_v23  ;;  %547 = vmatpush1.bf16.msra.mxu1 %v1188_v24 }
  0x1d   : > { %475 = vmatprep.subr.bf16.mxu0 %v1189_v25  ;;  %548 = vmatprep.subr.bf16.mxu1 %v1191_v26 }
  0x20   : > { %476 = vmatpush1.bf16.msra.mxu0 %v1193_v27  ;;  %549 = vmatpush1.bf16.msra.mxu1 %v1194_v28 }
  0x21   : > { %477 = vmatprep.subr.bf16.mxu0 %v1195_v29  ;;  %550 = vmatprep.subr.bf16.mxu1 %v1197_v30 }
  0x24   : > { %478 = vmatpush1.bf16.msra.mxu0 %v1199_v31  ;;  %551 = vmatpush1.bf16.msra.mxu1 %v1200_v32 }
  0x27   : > { %496 = vmatmul.mubr.bf16.vlgmr.msra.gmra.mrb[0].mxu0 %v1201_v33  ;;  %569 = vmatmul.mubr.bf16.vlgmr.msra.gmra.mrb[0].mxu1 %v1201_v33 }
  0x28   : > { %505 = vmatprep.mubr.bf16.mxu0 %v1213_v2  ;;  %578 = vmatprep.mubr.bf16.mxu1 %v1213_v2 }
  0x2f   : > { %506 = vmatmul.mubr.bf16.gmra.mrb[4].mxu0 %v1202_v34  ;;  %579 = vmatmul.mubr.bf16.gmra.mrb[4].mxu1 %v1202_v34 }
  0x30   : > { %515 = vmatprep.mubr.bf16.mxu0 %v1213_v2  ;;  %588 = vmatprep.mubr.bf16.mxu1 %v1213_v2 }
  0x37   : > { %516 = vmatmul.mubr.bf16.gmra.mrb[8].mxu0 %v1203_v35  ;;  %589 = vmatmul.mubr.bf16.gmra.mrb[8].mxu1 %v1203_v35 }
  0x38   : > { %525 = vmatprep.mubr.bf16.mxu0 %v1213_v2  ;;  %598 = vmatprep.mubr.bf16.mxu1 %v1213_v2 }
  0x3f   : > { %526 = vmatmul.mubr.bf16.gmra.mrb[12].mxu0 %v1204_v36  ;;  %599 = vmatmul.mubr.bf16.gmra.mrb[12].mxu1 %v1204_v36 }
  0xfa   : > { %v497_v48 = vpop.f32.mrb[0].mxu0  ;;  %v570_v49 = vpop.f32.mrb[0].mxu1 }
  0xfb   : > { %v498_v50 = vadd.f32 %v497_v48, %v1375_v44  ;;  %v571_v51 = vadd.f32 %v570_v49, %v1377_v45  ;;  %v499_v52 = vpop.f32.mrb[1].mxu0  ;;  %v572_v53 = vpop.f32.mrb[1].mxu1 }
  0xfc   : > { %v500_v54 = vadd.f32 %v499_v52, %v1379_v46  ;;  %v573_v55 = vadd.f32 %v572_v53, %v1381_v47  ;;  %v501_v56 = vpop.f32.mrb[2].mxu0  ;;  %v574_v57 = vpop.f32.mrb[2].mxu1 }
  0xfd   : > { %vm609_vm0 = vcmp.ge.f32.partialorder %v498_v50, 0.0  ;;  %v641_v58 = vmul.f32 0.1, %v498_v50  ;;  %vm611_vm1 = vcmp.ge.f32.partialorder %v571_v51, 0.0  ;;  %v643_v59 = vmul.f32 0.1, %v571_v51 }
  0xfe   : > { %vm610_vm2 = vcmp.ge.f32.partialorder %v500_v54, 0.0  ;;  %v642_v60 = vmul.f32 0.1, %v500_v54  ;;  %vm612_vm3 = vcmp.ge.f32.partialorder %v573_v55, 0.0  ;;  %v644_v61 = vmul.f32 0.1, %v573_v55 }
  0xff   : > { %v673_v62 = vsel %vm609_vm0, %v498_v50, %v641_v58  ;;  %v675_v63 = vsel %vm611_vm1, %v571_v51, %v643_v59  ;;  %v502_v0 = vadd.f32 %v501_v56, %v1375_v44  ;;  %v575_v1 = vadd.f32 %v574_v57, %v1377_v45  ;;  %v503_v2 = vpop.f32.mrb[3].mxu0  ;;  %v576_v3 = vpop.f32.mrb[3].mxu1 }
 0x100   : > { %v674_v4 = vsel %vm610_vm2, %v500_v54, %v642_v60  ;;  %v676_v5 = vsel %vm612_vm3, %v573_v55, %v644_v61  ;;  %v869_v6 = vmul.f32 %v673_v62, %v673_v62  ;;  %v871_v7 = vmul.f32 %v675_v63, %v675_v63 }
 0x101   : > { %v1128_v8 = vpack.c.bf16 %v674_v4, %v673_v62  ;;  %v1129_v9 = vpack.c.bf16 %v676_v5, %v675_v63  ;;  %vm613_vm4 = vcmp.ge.f32.partialorder %v502_v0, 0.0  ;;  %v645_v10 = vmul.f32 0.1, %v502_v0 }
 0x102   : > { %vm615_vm5 = vcmp.ge.f32.partialorder %v575_v1, 0.0  ;;  %v647_v11 = vmul.f32 0.1, %v575_v1  ;;  %v870_v12 = vmul.f32 %v674_v4, %v674_v4  ;;  %v872_v13 = vmul.f32 %v676_v5, %v676_v5  ;;  %v507_v16 = vpop.f32.mrb[4].mxu0  ;;  %v580_v17 = vpop.f32.mrb[4].mxu1 }
 0x103   : > { %801 = vst [vmem:[%s1393_s20] sm:$0xff] %v1128_v8  ;;  %802 = vst [vmem:[%s1393_s20 + $0x8] sm:$0xff] %v1129_v9  ;;  %v504_v14 = vadd.f32 %v503_v2, %v1379_v46  ;;  %v577_v15 = vadd.f32 %v576_v3, %v1381_v47  ;;  %v677_v18 = vsel %vm613_vm4, %v502_v0, %v645_v10  ;;  %v509_v22 = vpop.f32.mrb[5].mxu0  ;;  %v582_v23 = vpop.f32.mrb[5].mxu1 }
 0x104   : > { %v679_v19 = vsel %vm615_vm5, %v575_v1, %v647_v11  ;;  %v508_v20 = vadd.f32 %v507_v16, %v1375_v44  ;;  %v581_v21 = vadd.f32 %v580_v17, %v1377_v45  ;;  %v817_v24 = vadd.f32 %v677_v18, %v673_v62  ;;  %v511_v28 = vpop.f32.mrb[6].mxu0  ;;  %v584_v29 = vpop.f32.mrb[6].mxu1 }
 0x105   : > { %v873_v25 = vmul.f32 %v677_v18, %v677_v18  ;;  %v843_v26 = vadd.f32 %v679_v19, %v675_v63  ;;  %v875_v27 = vmul.f32 %v679_v19, %v679_v19  ;;  %vm614_vm6 = vcmp.ge.f32.partialorder %v504_v14, 0.0  ;;  %v513_v35 = vpop.f32.mrb[7].mxu0  ;;  %v1401_v36 = vpop.f32.mrb[7].mxu1 }
 0x106   : > { %v646_v30 = vmul.f32 0.1, %v504_v14  ;;  %vm616_vm7 = vcmp.ge.f32.partialorder %v577_v15, 0.0  ;;  %v648_v31 = vmul.f32 0.1, %v577_v15  ;;  %vm617_vm8 = vcmp.ge.f32.partialorder %v508_v20, 0.0 }
 0x107   : > { %v901_v32 = vadd.f32 %v873_v25, %v869_v6  ;;  %v927_v33 = vadd.f32 %v875_v27, %v871_v7  ;;  %v649_v34 = vmul.f32 0.1, %v508_v20  ;;  %vm619_vm9 = vcmp.ge.f32.partialorder %v581_v21, 0.0 }
 0x108   : > { %v678_v37 = vsel %vm614_vm6, %v504_v14, %v646_v30  ;;  %v680_v39 = vsel %vm616_vm7, %v577_v15, %v648_v31  ;;  %v651_v40 = vmul.f32 0.1, %v581_v21  ;;  %v510_v63 = vadd.f32 %v509_v22, %v1379_v46 }
 0x109   : > { %v1130_v41 = vpack.c.bf16 %v678_v37, %v677_v18  ;;  %v830_v42 = vadd.f32 %v678_v37, %v674_v4  ;;  %v874_v43 = vmul.f32 %v678_v37, %v678_v37  ;;  %v1131_v48 = vpack.c.bf16 %v680_v39, %v679_v19 }
 0x10a   : > { %v856_v49 = vadd.f32 %v680_v39, %v676_v5  ;;  %v876_v50 = vmul.f32 %v680_v39, %v680_v39  ;;  %v681_v51 = vsel %vm617_vm8, %v508_v20, %v649_v34  ;;  %v683_v52 = vsel %vm619_vm9, %v581_v21, %v651_v40  ;;  %v1403_v53 = vpop.f32.mrb[8].mxu0  ;;  %v1405_v54 = vpop.f32.mrb[8].mxu1 }
 0x10b   : > { %803 = vst [vmem:[%s1393_s20 + $0x10] sm:$0xff] %v1130_v41  ;;  %v914_v55 = vadd.f32 %v874_v43, %v870_v12  ;;  %804 = vst [vmem:[%s1393_s20 + $0x18] sm:$0xff] %v1131_v48  ;;  %v818_v56 = vadd.f32 %v817_v24, %v681_v51  ;;  %v877_v57 = vmul.f32 %v681_v51, %v681_v51  ;;  %v519_v59 = vpop.f32.mrb[9].mxu0  ;;  %v592_v60 = vpop.f32.mrb[9].mxu1  ;;  %vm618_vm10 = vcmp.ge.f32.partialorder %v510_v63, 0.0 }
 0x10c   : > { %v844_v58 = vadd.f32 %v843_v26, %v683_v52  ;;  %v940_v61 = vadd.f32 %v876_v50, %v872_v13  ;;  %v879_v62 = vmul.f32 %v683_v52, %v683_v52  ;;  %v583_v0 = vadd.f32 %v582_v23, %v1381_v47  ;;  %v521_v1 = vpop.f32.mrb[10].mxu0  ;;  %v1411_v2 = vpop.f32.mrb[10].mxu1 }
 0x10d   : > { %v902_v3 = vadd.f32 %v901_v32, %v877_v57  ;;  %v512_v4 = vadd.f32 %v511_v28, %v1375_v44  ;;  %v585_v5 = vadd.f32 %v584_v29, %v1377_v45  ;;  %v514_v6 = vadd.f32 %v513_v35, %v1379_v46  ;;  %v1416_v7 = vpop.f32.mrb[11].mxu0  ;;  %v1418_v8 = vpop.f32.mrb[11].mxu1 }
 0x10e   : > { %v928_v9 = vadd.f32 %v927_v33, %v879_v62  ;;  %v650_v10 = vmul.f32 0.1, %v510_v63  ;;  %vm620_vm11 = vcmp.ge.f32.partialorder %v583_v0, 0.0  ;;  %v652_v11 = vmul.f32 0.1, %v583_v0 }
 0x10f   : > { %vm621_vm12 = vcmp.ge.f32.partialorder %v512_v4, 0.0  ;;  %v653_v12 = vmul.f32 0.1, %v512_v4  ;;  %vm623_vm13 = vcmp.ge.f32.partialorder %v585_v5, 0.0  ;;  %v655_v14 = vmul.f32 0.1, %v585_v5 }
 0x110   : > { %v682_v13 = vsel %vm618_vm10, %v510_v63, %v650_v10  ;;  %vm622_vm14 = vcmp.ge.f32.partialorder %v514_v6, 0.0  ;;  %v654_v15 = vmul.f32 0.1, %v514_v6  ;;  %v684_v19 = vsel %vm620_vm11, %v583_v0, %v652_v11 }
 0x111   : > { %v1132_v16 = vpack.c.bf16 %v682_v13, %v681_v51  ;;  %v831_v17 = vadd.f32 %v830_v42, %v682_v13  ;;  %v878_v18 = vmul.f32 %v682_v13, %v682_v13  ;;  %v1133_v20 = vpack.c.bf16 %v684_v19, %v683_v52 }
 0x112   : > { %v857_v21 = vadd.f32 %v856_v49, %v684_v19  ;;  %v880_v22 = vmul.f32 %v684_v19, %v684_v19  ;;  %v685_v23 = vsel %vm621_vm12, %v512_v4, %v653_v12  ;;  %v1420_v24 = vpop.f32.mrb[12].mxu0  ;;  %v1422_v25 = vpop.f32.mrb[12].mxu1  ;;  %v687_v29 = vsel %vm623_vm13, %v585_v5, %v655_v14 }
 0x113   : > { %805 = vst [vmem:[%s1393_s20 + $0x20] sm:$0xff] %v1132_v16  ;;  %v915_v26 = vadd.f32 %v914_v55, %v878_v18  ;;  %v819_v27 = vadd.f32 %v818_v56, %v685_v23  ;;  %v881_v28 = vmul.f32 %v685_v23, %v685_v23  ;;  %v1426_v30 = vpop.f32.mrb[13].mxu0  ;;  %v1428_v31 = vpop.f32.mrb[13].mxu1  ;;  %806 = vst [vmem:[%s1393_s20 + $0x28] sm:$0xff] %v1133_v20 }
 0x114   : > { %v941_v32 = vadd.f32 %v940_v61, %v880_v22  ;;  %v845_v33 = vadd.f32 %v844_v58, %v687_v29  ;;  %v883_v34 = vmul.f32 %v687_v29, %v687_v29  ;;  %v686_v35 = vsel %vm622_vm14, %v514_v6, %v654_v15  ;;  %v1432_v37 = vpop.f32.mrb[14].mxu0  ;;  %v1434_v39 = vpop.f32.mrb[14].mxu1 }
 0x115   : > { %v903_v40 = vadd.f32 %v902_v3, %v881_v28  ;;  %v1134_v41 = vpack.c.bf16 %v686_v35, %v685_v23  ;;  %v832_v42 = vadd.f32 %v831_v17, %v686_v35  ;;  %v882_v43 = vmul.f32 %v686_v35, %v686_v35  ;;  %v1436_v48 = vpop.f32.mrb[15].mxu0  ;;  %v1438_v49 = vpop.f32.mrb[15].mxu1 }
 0x116   : > { %v929_v50 = vadd.f32 %v928_v9, %v883_v34  ;;  %v587_v51 = vadd.f32 %v1401_v36, %v1381_v47  ;;  %v518_v52 = vadd.f32 %v1403_v53, %v1375_v44  ;;  %v591_v55 = vadd.f32 %v1405_v54, %v1377_v45 }
 0x117   : > { %807 = vst [vmem:[%s1393_s20 + $0x30] sm:$0xff] %v1134_v41  ;;  %v916_v56 = vadd.f32 %v915_v26, %v882_v43  ;;  %v520_v57 = vadd.f32 %v519_v59, %v1379_v46  ;;  %v593_v58 = vadd.f32 %v592_v60, %v1381_v47  ;;  %v522_v61 = vadd.f32 %v521_v1, %v1375_v44 }
 0x118   : > { %vm624_vm15 = vcmp.ge.f32.partialorder %v587_v51, 0.0  ;;  %v656_v62 = vmul.f32 0.1, %v587_v51  ;;  %vm625_vm0 = vcmp.ge.f32.partialorder %v518_v52, 0.0  ;;  %v657_v63 = vmul.f32 0.1, %v518_v52 }
 0x119   : > { %vm627_vm1 = vcmp.ge.f32.partialorder %v591_v55, 0.0  ;;  %v659_v36 = vmul.f32 0.1, %v591_v55  ;;  %vm626_vm2 = vcmp.ge.f32.partialorder %v520_v57, 0.0  ;;  %v658_v53 = vmul.f32 0.1, %v520_v57 }
 0x11a   : > { %v688_v0 = vsel %vm624_vm15, %v587_v51, %v656_v62  ;;  %v689_v3 = vsel %vm625_vm0, %v518_v52, %v657_v63  ;;  %vm628_vm3 = vcmp.ge.f32.partialorder %v593_v58, 0.0  ;;  %v660_v54 = vmul.f32 0.1, %v593_v58 }
 0x11b   : > { %v1135_v4 = vpack.c.bf16 %v688_v0, %v687_v29  ;;  %v858_v5 = vadd.f32 %v857_v21, %v688_v0  ;;  %v884_v59 = vmul.f32 %v688_v0, %v688_v0  ;;  %v820_v60 = vadd.f32 %v819_v27, %v689_v3 }
 0x11c   : > { %v885_v6 = vmul.f32 %v689_v3, %v689_v3  ;;  %v691_v1 = vsel %vm627_vm1, %v591_v55, %v659_v36  ;;  %v690_v9 = vsel %vm626_vm2, %v520_v57, %v658_v53  ;;  %v692_v10 = vsel %vm628_vm3, %v593_v58, %v660_v54 }
 0x11d   : > { %808 = vst [vmem:[%s1393_s20 + $0x38] sm:$0xff] %v1135_v4  ;;  %v942_v11 = vadd.f32 %v941_v32, %v884_v59  ;;  %v846_v12 = vadd.f32 %v845_v33, %v691_v1  ;;  %v887_v13 = vmul.f32 %v691_v1, %v691_v1  ;;  %v1136_v14 = vpack.c.bf16 %v690_v9, %v689_v3 }
 0x11e   : > { %v904_v15 = vadd.f32 %v903_v40, %v885_v6  ;;  %v833_v16 = vadd.f32 %v832_v42, %v690_v9  ;;  %v886_v17 = vmul.f32 %v690_v9, %v690_v9  ;;  %v1137_v18 = vpack.c.bf16 %v692_v10, %v691_v1 }
 0x11f   : > { %v930_v19 = vadd.f32 %v929_v50, %v887_v13  ;;  %809 = vst [vmem:[%s1393_s20 + $0x40] sm:$0xff] %v1136_v14  ;;  %v859_v20 = vadd.f32 %v858_v5, %v692_v10  ;;  %v888_v21 = vmul.f32 %v692_v10, %v692_v10  ;;  %vm629_vm4 = vcmp.ge.f32.partialorder %v522_v61, 0.0 }
 0x120   : > { %v917_v22 = vadd.f32 %v916_v56, %v886_v17  ;;  %810 = vst [vmem:[%s1393_s20 + $0x48] sm:$0xff] %v1137_v18  ;;  %v661_v23 = vmul.f32 0.1, %v522_v61  ;;  %v595_v26 = vadd.f32 %v1411_v2, %v1377_v45  ;;  %v524_v27 = vadd.f32 %v1416_v7, %v1379_v46 }
 0x121   : > { %v943_v28 = vadd.f32 %v942_v11, %v888_v21  ;;  %v597_v29 = vadd.f32 %v1418_v8, %v1381_v47  ;;  %v528_v32 = vadd.f32 %v1420_v24, %v1375_v44  ;;  %v601_v33 = vadd.f32 %v1422_v25, %v1377_v45 }
 0x122   : > { %v693_v34 = vsel %vm629_vm4, %v522_v61, %v661_v23  ;;  %vm631_vm5 = vcmp.ge.f32.partialorder %v595_v26, 0.0  ;;  %v663_v35 = vmul.f32 0.1, %v595_v26  ;;  %vm630_vm6 = vcmp.ge.f32.partialorder %v524_v27, 0.0 }
 0x123   : > { %v821_v40 = vadd.f32 %v820_v60, %v693_v34  ;;  %v889_v41 = vmul.f32 %v693_v34, %v693_v34  ;;  %v662_v2 = vmul.f32 0.1, %v524_v27  ;;  %vm632_vm7 = vcmp.ge.f32.partialorder %v597_v29, 0.0 }
 0x124   : > { %v695_v42 = vsel %vm631_vm5, %v595_v26, %v663_v35  ;;  %v664_v7 = vmul.f32 0.1, %v597_v29  ;;  %vm633_vm8 = vcmp.ge.f32.partialorder %v528_v32, 0.0  ;;  %v665_v43 = vmul.f32 0.1, %v528_v32 }
 0x125   : > { %v905_v8 = vadd.f32 %v904_v15, %v889_v41  ;;  %v847_v50 = vadd.f32 %v846_v12, %v695_v42  ;;  %v891_v24 = vmul.f32 %v695_v42, %v695_v42  ;;  %v694_v51 = vsel %vm630_vm6, %v524_v27, %v662_v2 }
 0x126   : > { %v1138_v52 = vpack.c.bf16 %v694_v51, %v693_v34  ;;  %v834_v25 = vadd.f32 %v833_v16, %v694_v51  ;;  %v890_v55 = vmul.f32 %v694_v51, %v694_v51  ;;  %v696_v56 = vsel %vm632_vm7, %v597_v29, %v664_v7 }
 0x127   : > { %v931_v57 = vadd.f32 %v930_v19, %v891_v24  ;;  %v1139_v58 = vpack.c.bf16 %v696_v56, %v695_v42  ;;  %v860_v61 = vadd.f32 %v859_v20, %v696_v56  ;;  %v892_v62 = vmul.f32 %v696_v56, %v696_v56 }
 0x128   : > { %811 = vst [vmem:[%s1393_s20 + $0x50] sm:$0xff] %v1138_v52  ;;  %v918_v63 = vadd.f32 %v917_v22, %v890_v55  ;;  %v697_v36 = vsel %vm633_vm8, %v528_v32, %v665_v43  ;;  %vm635_vm9 = vcmp.ge.f32.partialorder %v601_v33, 0.0  ;;  %v667_v53 = vmul.f32 0.1, %v601_v33 }
 0x129   : > { %812 = vst [vmem:[%s1393_s20 + $0x58] sm:$0xff] %v1139_v58  ;;  %v944_v0 = vadd.f32 %v943_v28, %v892_v62  ;;  %v822_v3 = vadd.f32 %v821_v40, %v697_v36  ;;  %v893_v54 = vmul.f32 %v697_v36, %v697_v36  ;;  %v530_v4 = vadd.f32 %v1426_v30, %v1379_v46 }
 0x12a   : > { %v699_v5 = vsel %vm635_vm9, %v601_v33, %v667_v53  ;;  %v603_v59 = vadd.f32 %v1428_v31, %v1381_v47  ;;  %v532_v60 = vadd.f32 %v1432_v37, %v1375_v44  ;;  %v605_v6 = vadd.f32 %v1434_v39, %v1377_v45 }
 0x12b   : > { %v906_v1 = vadd.f32 %v905_v8, %v893_v54  ;;  %v848_v9 = vadd.f32 %v847_v50, %v699_v5  ;;  %v895_v10 = vmul.f32 %v699_v5, %v699_v5  ;;  %vm634_vm10 = vcmp.ge.f32.partialorder %v530_v4, 0.0 }
 0x12c   : > { %v666_v11 = vmul.f32 0.1, %v530_v4  ;;  %vm636_vm11 = vcmp.ge.f32.partialorder %v603_v59, 0.0  ;;  %v668_v12 = vmul.f32 0.1, %v603_v59  ;;  %vm637_vm12 = vcmp.ge.f32.partialorder %v532_v60, 0.0 }
 0x12d   : > { %v932_v13 = vadd.f32 %v931_v57, %v895_v10  ;;  %v669_v30 = vmul.f32 0.1, %v532_v60  ;;  %vm639_vm13 = vcmp.ge.f32.partialorder %v605_v6, 0.0  ;;  %v671_v31 = vmul.f32 0.1, %v605_v6 }
 0x12e   : > { %v698_v14 = vsel %vm634_vm10, %v530_v4, %v666_v11  ;;  %v700_v15 = vsel %vm636_vm11, %v603_v59, %v668_v12  ;;  %v534_v44 = vadd.f32 %v1436_v48, %v1379_v46  ;;  %v607_v45 = vadd.f32 %v1438_v49, %v1381_v47 }
 0x12f   : > { %v1140_v37 = vpack.c.bf16 %v698_v14, %v697_v36  ;;  %v835_v39 = vadd.f32 %v834_v25, %v698_v14  ;;  %v894_v16 = vmul.f32 %v698_v14, %v698_v14  ;;  %v1141_v17 = vpack.c.bf16 %v700_v15, %v699_v5 }
 0x130   : > { %v861_v18 = vadd.f32 %v860_v61, %v700_v15  ;;  %v896_v19 = vmul.f32 %v700_v15, %v700_v15  ;;  %v701_v20 = vsel %vm637_vm12, %v532_v60, %v669_v30  ;;  %v703_v21 = vsel %vm639_vm13, %v605_v6, %v671_v31 }
 0x131   : > { %813 = vst [vmem:[%s1393_s20 + $0x60] sm:$0xff] %v1140_v37  ;;  %v919_v22 = vadd.f32 %v918_v63, %v894_v16  ;;  %814 = vst [vmem:[%s1393_s20 + $0x68] sm:$0xff] %v1141_v17  ;;  %v823_v23 = vadd.f32 %v822_v3, %v701_v20  ;;  %v897_v26 = vmul.f32 %v701_v20, %v701_v20  ;;  %vm638_vm14 = vcmp.ge.f32.partialorder %v534_v44, 0.0 }
 0x132   : > { %v849_v27 = vadd.f32 %v848_v9, %v703_v21  ;;  %v945_v28 = vadd.f32 %v944_v0, %v896_v19  ;;  %v899_v46 = vmul.f32 %v703_v21, %v703_v21  ;;  %v670_v48 = vmul.f32 0.1, %v534_v44 }
 0x133   : > { %v824_v47 = vrot.slane %v823_v23, 4  ;;  %v907_v49 = vadd.f32 %v906_v1, %v897_v26  ;;  %vm640_vm15 = vcmp.ge.f32.partialorder %v607_v45, 0.0  ;;  %v672_v34 = vmul.f32 0.1, %v607_v45 }
 0x134   : > { %v850_v29 = vrot.slane %v849_v27, 4  ;;  %v933_v32 = vadd.f32 %v932_v13, %v899_v46  ;;  %v702_v33 = vsel %vm638_vm14, %v534_v44, %v670_v48  ;;  %vm956_vm0 = vcmp.eq.s32.totalorder %v1366_v38, 1 }
 0x135   : > { %v825_v35 = vadd.f32 %v824_v47, %v823_v23  ;;  %v908_v40 = vrot.slane %v907_v49, 4  ;;  %v1142_v2 = vpack.c.bf16 %v702_v33, %v701_v20  ;;  %v836_v7 = vadd.f32 %v835_v39, %v702_v33 }
 0x136   : > { %v851_v41 = vadd.f32 %v850_v29, %v849_v27  ;;  %v934_v42 = vrot.slane %v933_v32, 4  ;;  %v898_v43 = vmul.f32 %v702_v33, %v702_v33  ;;  %v704_v8 = vsel %vm640_vm15, %v607_v45, %v672_v34 }
 0x137   : > { %v826_v50 = vrot.slane %v825_v35, 2  ;;  %v909_v24 = vadd.f32 %v908_v40, %v907_v49  ;;  %815 = vst [vmem:[%s1393_s20 + $0x70] sm:$0xff] %v1142_v2  ;;  %v1143_v52 = vpack.c.bf16 %v704_v8, %v703_v21  ;;  %v837_v55 = vrot.slane %v836_v7, 4 }
 0x138   : > { %v852_v51 = vrot.slane %v851_v41, 2  ;;  %v935_v25 = vadd.f32 %v934_v42, %v933_v32  ;;  %v920_v56 = vadd.f32 %v919_v22, %v898_v43  ;;  %v862_v57 = vadd.f32 %v861_v18, %v704_v8 }
 0x139   : > { %v827_v58 = vadd.f32 %v826_v50, %v825_v35  ;;  %v910_v61 = vrot.slane %v909_v24, 2  ;;  %816 = vst [vmem:[%s1393_s20 + $0x78] sm:$0xff] %v1143_v52  ;;  %v900_v63 = vmul.f32 %v704_v8, %v704_v8  ;;  %v838_v53 = vadd.f32 %v837_v55, %v836_v7 }
 0x13a   : > { %v853_v62 = vadd.f32 %v852_v51, %v851_v41  ;;  %v936_v36 = vrot.slane %v935_v25, 2  ;;  %v921_v0 = vrot.slane %v920_v56, 4  ;;  %v863_v3 = vrot.slane %v862_v57, 4 }
 0x13b   : > { %v828_v54 = vrot.slane %v827_v58, 1  ;;  %v911_v4 = vadd.f32 %v910_v61, %v909_v24  ;;  %v946_v5 = vadd.f32 %v945_v28, %v900_v63  ;;  %v839_v60 = vrot.slane %v838_v53, 2 }
 0x13c   : > { %v937_v59 = vadd.f32 %v936_v36, %v935_v25  ;;  %v922_v6 = vadd.f32 %v921_v0, %v920_v56  ;;  %v864_v1 = vadd.f32 %v863_v3, %v862_v57  ;;  %v854_v10 = vrot.slane %v853_v62, 1 }
 0x13d   : > { %v912_v9 = vrot.slane %v911_v4, 1  ;;  %v947_v11 = vrot.slane %v946_v5, 4  ;;  %v840_v13 = vadd.f32 %v839_v60, %v838_v53  ;;  %vm955_vm1 = vcmp.eq.s32.totalorder %v1366_v38, 0 }
 0x13e   : > { %v938_v12 = vrot.slane %v937_v59, 1  ;;  %v923_v30 = vrot.slane %v922_v6, 2  ;;  %v865_v31 = vrot.slane %v864_v1, 2  ;;  %v829_v44 = vadd.f32 %v828_v54, %v827_v58 }
 0x13f   : > { %v913_v14 = vadd.f32 %v912_v9, %v911_v4  ;;  %v948_v15 = vadd.f32 %v947_v11, %v946_v5  ;;  %v855_v17 = vadd.f32 %v854_v10, %v853_v62  ;;  %v841_v18 = vrot.slane %v840_v13, 1 }
 0x140   : > { %v939_v45 = vadd.f32 %v938_v12, %v937_v59  ;;  %v924_v37 = vadd.f32 %v923_v30, %v922_v6  ;;  %v866_v39 = vadd.f32 %v865_v31, %v864_v1 }
 0x141   : > { %v957_v16 = vsel %vm956_vm0, %v913_v14, 0.0  ;;  %v949_v19 = vrot.slane %v948_v15, 2  ;;  %v842_v46 = vadd.f32 %v841_v18, %v840_v13 }
 0x142   : > { %v961_v20 = vsel %vm955_vm1, %v829_v44, %v957_v16  ;;  %v959_v21 = vsel %vm956_vm0, %v939_v45, 0.0  ;;  %v925_v22 = vrot.slane %v924_v37, 1  ;;  %v867_v28 = vrot.slane %v866_v39, 1 }
 0x143   : > { %965 = vst [vmem:[%s215_s24] sm:$0xff] %v961_v20  ;;  %v963_v23 = vsel %vm955_vm1, %v855_v17, %v959_v21  ;;  %v950_v26 = vadd.f32 %v949_v19, %v948_v15 }
 0x144   : > { %967 = vst [vmem:[%s215_s24 + $0x10] sm:$0xff] %v963_v23  ;;  %v926_v27 = vadd.f32 %v925_v22, %v924_v37  ;;  %v868_v32 = vadd.f32 %v867_v28, %v866_v39 }
 0x145   : > { %v951_v48 = vrot.slane %v950_v26, 1 }
 0x146   : > { %v958_v47 = vsel %vm956_vm0, %v926_v27, 0.0 }
 0x147   : > { %v962_v49 = vsel %vm955_vm1, %v842_v46, %v958_v47  ;;  %v952_v29 = vadd.f32 %v951_v48, %v950_v26 }
 0x148   : > { %966 = vst [vmem:[%s215_s24 + $0x8] sm:$0xff] %v962_v49 }
 0x149   : > { %v960_v33 = vsel %vm956_vm0, %v952_v29, 0.0 }
 0x14a   : > { %v964_v34 = vsel %vm955_vm1, %v868_v32, %v960_v33 }
 0x14b   : > { %968 = vst [vmem:[%s215_s24 + $0x18] sm:$0xff] %v964_v34 }
 0x14c PF: > { %s15_s15 = sadd.s32 1, %s1211_s15  }
 0x14d   : > { %p12_p5 = scmp.ge.s32.totalorder %s15_s15, 4  }
 0x14f   :  { %14 = sbr.rel (!%p12_p5) target bundleno = 1 (0x1), region = 74 }

// kernel: _lambda_.38
= control target key start
LH: loop header
LB: loop body
LE: loop exit
PB: predicated region body
PF: predicated region fallthrough
CT: control target
= control target key end

     0   :  { %s588_s12 = smov 0   ;;  %s734_s0 = inlined_call_operand.vmem [shape: bf16[128,512], index: 0, kind: input, shape index: {}]   ;;  %s735_s1 = inlined_call_operand.vmem [shape: f32[1,512], index: 1, kind: input, shape index: {}]   ;;  %s736_s2 = inlined_call_operand.vmem [shape: f32[1,512], index: 2, kind: input, shape index: {}]   ;;  %s737_s3 = inlined_call_operand.vmem [shape: bf16[128,512], index: 3, kind: output, shape index: {}]  }
   0x1 LB: > { %s505_s13 = sadd.s32 4294967295, %s566_s12   ;;  %p509_p0 = scmp.ge.s32.totalorder %s566_s12, 1  ;;  %s566_s12 = sphi %s588_s12, %s13_s12  }
   0x2   : > { %p139_p1 = scmp.lt.s32.totalorder %s566_s12, 3 }
   0x4   : > { %p140_p2 = pnand %p509_p0, %p139_p1 }
   0x5   : > { %s510_s14 = sshll.u32 (!%p140_p2), %s505_s13, 3  ;;  %v229_v0 = vlaneseq (!%p140_p2)  ;;  %v227_v2 = vld [vmem:[%s735_s1] sm:$0xf] (!%p140_p2) }
   0x6   : > { %143 = sbr.rel (%p140_p2) target bundleno = 50 (0x32), region = 32  ;;  %p166_p3 = scmp.lt.s32.totalorder (!%p140_p2), %s510_s14, 15  ;;  %v281_v3 = vld [vmem:[%s736_s2] sm:$0xf] (!%p140_p2) }
   0x7   : > { %v230_v1 = vshrl.u32 (!%p140_p2), %v229_v0, 7 }
   0x9   : > { %v231_v4 = vsub.s32 (!%p140_p2), 0, %v230_v1  ;;  %v235_v5 = vsub.s32 (!%p140_p2), 1, %v230_v1  ;;  %v239_v6 = vsub.s32 (!%p140_p2), 2, %v230_v1  ;;  %v243_v7 = vsub.s32 (!%p140_p2), 3, %v230_v1 }
   0xb   : > { %v612_v8 = vrot.slane (!%p140_p2), %v227_v2, %v231_v4  ;;  %v614_v9 = vrot.slane (!%p140_p2), %v227_v2, %v235_v5  ;;  %v616_v10 = vrot.slane (!%p140_p2), %v281_v3, %v231_v4  ;;  %v618_v11 = vrot.slane (!%p140_p2), %v281_v3, %v235_v5 }
   0xc   : > { %v622_v14 = vrot.slane (!%p140_p2), %v227_v2, %v239_v6  ;;  %v624_v15 = vrot.slane (!%p140_p2), %v227_v2, %v243_v7  ;;  %v626_v16 = vrot.slane (!%p140_p2), %v281_v3, %v239_v6  ;;  %v628_v17 = vrot.slane (!%p140_p2), %v281_v3, %v243_v7 }
   0xd   : > { %s739_s14 = smov (!%p166_p3, %s510_s14), 15 }
   0xe   : > { %s534_s19 = sshll.u32 %s739_s14, 4 }
   0xf   : > { %s610_s22 = scalar_lea.vmem %s734_s0, %s534_s19  ;;  %s651_s25 = scalar_lea.vmem %s737_s3, %s534_s19 }
  0x10   : > { %v179_v12 = vld [vmem:[%s610_s22] sm:$0xff]  ;;  %v180_v13 = vld [vmem:[%s610_s22 + $0x8] sm:$0xff]  ;;  %v181_v18 = vld [vmem:[%s610_s22 + $0x10] sm:$0xff] }
  0x11   : > { %v195_v19 = vunpack.c.l.bf16 %v179_v12  ;;  %v196_v20 = vunpack.c.h.bf16 %v179_v12  ;;  %v197_v21 = vunpack.c.l.bf16 %v180_v13  ;;  %v198_v22 = vunpack.c.h.bf16 %v180_v13  ;;  %v182_v23 = vld [vmem:[%s610_s22 + $0x18] sm:$0xff]  ;;  %v183_v36 = vld [vmem:[%s610_s22 + $0x20] sm:$0xff]  ;;  %v184_v41 = vld [vmem:[%s610_s22 + $0x28] sm:$0xff] }
  0x12   : > { %v199_v24 = vunpack.c.l.bf16 %v181_v18  ;;  %v200_v25 = vunpack.c.h.bf16 %v181_v18  ;;  %v201_v26 = vunpack.c.l.bf16 %v182_v23  ;;  %v202_v27 = vunpack.c.h.bf16 %v182_v23  ;;  %v185_v46 = vld [vmem:[%s610_s22 + $0x30] sm:$0xff]  ;;  %v186_v51 = vld [vmem:[%s610_s22 + $0x38] sm:$0xff]  ;;  %v187_v0 = vld [vmem:[%s610_s22 + $0x40] sm:$0xff] }
  0x13   : > { %v249_v28 = vadd.f32 %v612_v8, %v195_v19  ;;  %v250_v29 = vadd.f32 %v614_v9, %v196_v20  ;;  %v251_v30 = vadd.f32 %v622_v14, %v197_v21  ;;  %v252_v31 = vadd.f32 %v624_v15, %v198_v22  ;;  %v188_v13 = vld [vmem:[%s610_s22 + $0x48] sm:$0xff]  ;;  %v189_v22 = vld [vmem:[%s610_s22 + $0x50] sm:$0xff] }
  0x14   : > { %v253_v32 = vadd.f32 %v612_v8, %v199_v24  ;;  %v254_v33 = vadd.f32 %v614_v9, %v200_v25  ;;  %v255_v34 = vadd.f32 %v622_v14, %v201_v26  ;;  %v256_v35 = vadd.f32 %v624_v15, %v202_v27  ;;  %v190_v27 = vld [vmem:[%s610_s22 + $0x58] sm:$0xff] }
  0x15   : > { %v303_v37 = vmul.f32 %v616_v10, %v249_v28  ;;  %v304_v38 = vmul.f32 %v618_v11, %v250_v29  ;;  %v305_v39 = vmul.f32 %v626_v16, %v251_v30  ;;  %v306_v40 = vmul.f32 %v628_v17, %v252_v31 }
  0x16   : > { %v307_v42 = vmul.f32 %v616_v10, %v253_v32  ;;  %v308_v43 = vmul.f32 %v618_v11, %v254_v33  ;;  %v309_v44 = vmul.f32 %v626_v16, %v255_v34  ;;  %v310_v45 = vmul.f32 %v628_v17, %v256_v35 }
  0x17   : > { %v536_v47 = vpack.c.bf16 %v304_v38, %v303_v37  ;;  %v537_v48 = vpack.c.bf16 %v306_v40, %v305_v39  ;;  %v203_v49 = vunpack.c.l.bf16 %v183_v36  ;;  %v204_v50 = vunpack.c.h.bf16 %v183_v36  ;;  %v191_v36 = vld [vmem:[%s610_s22 + $0x60] sm:$0xff] }
  0x18   : > { %v538_v52 = vpack.c.bf16 %v308_v43, %v307_v42  ;;  %v539_v53 = vpack.c.bf16 %v310_v45, %v309_v44  ;;  %v205_v54 = vunpack.c.l.bf16 %v184_v41  ;;  %v206_v55 = vunpack.c.h.bf16 %v184_v41 }
  0x19   : > { %431 = vst [vmem:[%s651_s25] sm:$0xff] %v536_v47  ;;  %432 = vst [vmem:[%s651_s25 + $0x8] sm:$0xff] %v537_v48  ;;  %v257_v56 = vadd.f32 %v612_v8, %v203_v49  ;;  %v258_v57 = vadd.f32 %v614_v9, %v204_v50  ;;  %v207_v58 = vunpack.c.l.bf16 %v185_v46  ;;  %v208_v59 = vunpack.c.h.bf16 %v185_v46  ;;  %v192_v49 = vld [vmem:[%s610_s22 + $0x68] sm:$0xff] }
  0x1a   : > { %433 = vst [vmem:[%s651_s25 + $0x10] sm:$0xff] %v538_v52  ;;  %434 = vst [vmem:[%s651_s25 + $0x18] sm:$0xff] %v539_v53  ;;  %v259_v60 = vadd.f32 %v622_v14, %v205_v54  ;;  %v260_v61 = vadd.f32 %v624_v15, %v206_v55  ;;  %v209_v62 = vunpack.c.l.bf16 %v186_v51  ;;  %v210_v63 = vunpack.c.h.bf16 %v186_v51  ;;  %v193_v54 = vld [vmem:[%s610_s22 + $0x70] sm:$0xff] }
  0x1b   : > { %v311_v1 = vmul.f32 %v616_v10, %v257_v56  ;;  %v312_v2 = vmul.f32 %v618_v11, %v258_v57  ;;  %v261_v3 = vadd.f32 %v612_v8, %v207_v58  ;;  %v262_v4 = vadd.f32 %v614_v9, %v208_v59  ;;  %v194_v59 = vld [vmem:[%s610_s22 + $0x78] sm:$0xff] }
  0x1c   : > { %v313_v5 = vmul.f32 %v626_v16, %v259_v60  ;;  %v314_v6 = vmul.f32 %v628_v17, %v260_v61  ;;  %v263_v7 = vadd.f32 %v622_v14, %v209_v62  ;;  %v264_v12 = vadd.f32 %v624_v15, %v210_v63 }
  0x1d   : > { %v540_v18 = vpack.c.bf16 %v312_v2, %v311_v1  ;;  %v315_v19 = vmul.f32 %v616_v10, %v261_v3  ;;  %v316_v20 = vmul.f32 %v618_v11, %v262_v4  ;;  %v211_v21 = vunpack.c.l.bf16 %v187_v0 }
  0x1e   : > { %v541_v23 = vpack.c.bf16 %v314_v6, %v313_v5  ;;  %v317_v24 = vmul.f32 %v626_v16, %v263_v7  ;;  %v318_v25 = vmul.f32 %v628_v17, %v264_v12  ;;  %v212_v26 = vunpack.c.h.bf16 %v187_v0 }
  0x1f   : > { %435 = vst [vmem:[%s651_s25 + $0x20] sm:$0xff] %v540_v18  ;;  %v542_v28 = vpack.c.bf16 %v316_v20, %v315_v19  ;;  %v265_v29 = vadd.f32 %v612_v8, %v211_v21  ;;  %v213_v30 = vunpack.c.l.bf16 %v188_v13  ;;  %v214_v31 = vunpack.c.h.bf16 %v188_v13 }
  0x20   : > { %436 = vst [vmem:[%s651_s25 + $0x28] sm:$0xff] %v541_v23  ;;  %v543_v32 = vpack.c.bf16 %v318_v25, %v317_v24  ;;  %v266_v33 = vadd.f32 %v614_v9, %v212_v26  ;;  %v215_v34 = vunpack.c.l.bf16 %v189_v22  ;;  %v216_v35 = vunpack.c.h.bf16 %v189_v22 }
  0x21   : > { %437 = vst [vmem:[%s651_s25 + $0x30] sm:$0xff] %v542_v28  ;;  %v319_v37 = vmul.f32 %v616_v10, %v265_v29  ;;  %v267_v38 = vadd.f32 %v622_v14, %v213_v30  ;;  %v268_v39 = vadd.f32 %v624_v15, %v214_v31  ;;  %v217_v40 = vunpack.c.l.bf16 %v190_v27 }
  0x22   : > { %438 = vst [vmem:[%s651_s25 + $0x38] sm:$0xff] %v543_v32  ;;  %v320_v41 = vmul.f32 %v618_v11, %v266_v33  ;;  %v269_v42 = vadd.f32 %v612_v8, %v215_v34  ;;  %v270_v43 = vadd.f32 %v614_v9, %v216_v35  ;;  %v218_v44 = vunpack.c.h.bf16 %v190_v27 }
  0x23   : > { %v321_v45 = vmul.f32 %v626_v16, %v267_v38  ;;  %v322_v46 = vmul.f32 %v628_v17, %v268_v39  ;;  %v271_v47 = vadd.f32 %v622_v14, %v217_v40  ;;  %v219_v48 = vunpack.c.l.bf16 %v191_v36 }
  0x24   : > { %v544_v50 = vpack.c.bf16 %v320_v41, %v319_v37  ;;  %v323_v51 = vmul.f32 %v616_v10, %v269_v42  ;;  %v324_v52 = vmul.f32 %v618_v11, %v270_v43  ;;  %v272_v53 = vadd.f32 %v624_v15, %v218_v44 }
  0x25   : > { %v545_v55 = vpack.c.bf16 %v322_v46, %v321_v45  ;;  %v325_v56 = vmul.f32 %v626_v16, %v271_v47  ;;  %v220_v57 = vunpack.c.h.bf16 %v191_v36  ;;  %v273_v58 = vadd.f32 %v612_v8, %v219_v48 }
  0x26   : > { %439 = vst [vmem:[%s651_s25 + $0x40] sm:$0xff] %v544_v50  ;;  %v546_v60 = vpack.c.bf16 %v324_v52, %v323_v51  ;;  %v326_v61 = vmul.f32 %v628_v17, %v272_v53  ;;  %v221_v62 = vunpack.c.l.bf16 %v192_v49  ;;  %v222_v63 = vunpack.c.h.bf16 %v192_v49 }
  0x27   : > { %440 = vst [vmem:[%s651_s25 + $0x48] sm:$0xff] %v545_v55  ;;  %v274_v0 = vadd.f32 %v614_v9, %v220_v57  ;;  %v327_v1 = vmul.f32 %v616_v10, %v273_v58  ;;  %v223_v2 = vunpack.c.l.bf16 %v193_v54  ;;  %v224_v3 = vunpack.c.h.bf16 %v193_v54 }
  0x28   : > { %441 = vst [vmem:[%s651_s25 + $0x50] sm:$0xff] %v546_v60  ;;  %v547_v4 = vpack.c.bf16 %v326_v61, %v325_v56  ;;  %v275_v5 = vadd.f32 %v622_v14, %v221_v62  ;;  %v276_v6 = vadd.f32 %v624_v15, %v222_v63  ;;  %v225_v7 = vunpack.c.l.bf16 %v194_v59 }
  0x29   : > { %v328_v12 = vmul.f32 %v618_v11, %v274_v0  ;;  %v277_v13 = vadd.f32 %v612_v8, %v223_v2  ;;  %v278_v18 = vadd.f32 %v614_v9, %v224_v3  ;;  %v226_v19 = vunpack.c.h.bf16 %v194_v59 }
  0x2a   : > { %442 = vst [vmem:[%s651_s25 + $0x58] sm:$0xff] %v547_v4  ;;  %v329_v20 = vmul.f32 %v626_v16, %v275_v5  ;;  %v330_v21 = vmul.f32 %v628_v17, %v276_v6  ;;  %v279_v22 = vadd.f32 %v622_v14, %v225_v7 }
  0x2b   : > { %v548_v23 = vpack.c.bf16 %v328_v12, %v327_v1  ;;  %v331_v24 = vmul.f32 %v616_v10, %v277_v13  ;;  %v332_v25 = vmul.f32 %v618_v11, %v278_v18  ;;  %v280_v8 = vadd.f32 %v624_v15, %v226_v19 }
  0x2c   : > { %v549_v26 = vpack.c.bf16 %v330_v21, %v329_v20  ;;  %v333_v9 = vmul.f32 %v626_v16, %v279_v22 }
  0x2d   : > { %443 = vst [vmem:[%s651_s25 + $0x60] sm:$0xff] %v548_v23  ;;  %v550_v27 = vpack.c.bf16 %v332_v25, %v331_v24  ;;  %v334_v28 = vmul.f32 %v628_v17, %v280_v8 }
  0x2e   : > { %444 = vst [vmem:[%s651_s25 + $0x68] sm:$0xff] %v549_v26 }
  0x2f   : > { %445 = vst [vmem:[%s651_s25 + $0x70] sm:$0xff] %v550_v27  ;;  %v551_v29 = vpack.c.bf16 %v334_v28, %v333_v9 }
  0x31   : > { %446 = vst [vmem:[%s651_s25 + $0x78] sm:$0xff] %v551_v29 }
  0x32 PF: > { %s13_s12 = sadd.s32 1, %s566_s12  }
  0x33   : > { %p10_p4 = scmp.ge.s32.totalorder %s13_s12, 4  }
  0x35   :  { %12 = sbr.rel (!%p10_p4) target bundleno = 1 (0x1), region = 62 }

// kernel: _lambda_.37
= control target key start
LH: loop header
LB: loop body
LE: loop exit
PB: predicated region body
PF: predicated region fallthrough
CT: control target
= control target key end

     0   :  { %s2463_s21 = smov 0   ;;  %s3190_s0 = inlined_call_operand.vmem [shape: bf16[128,512], index: 0, kind: input, shape index: {}]   ;;  %s3191_s1 = inlined_call_operand.vmem [shape: bf16[512,512], index: 1, kind: input, shape index: {}]   ;;  %s3192_s2 = inlined_call_operand.vmem [shape: f32[1,512], index: 2, kind: input, shape index: {}]   ;;  %s3193_s3 = inlined_call_operand.vmem [shape: f32[1,512], index: 3, kind: input, shape index: {}]   ;;  %s3194_s4 = inlined_call_operand.vmem [shape: f32[1,512], index: 4, kind: input, shape index: {}]   ;;  %s3195_s5 = inlined_call_operand.vmem [shape: bf16[128,512], index: 5, kind: output, shape index: {0}]   ;;  %s3196_s6 = inlined_call_operand.vmem [shape: f32[16,512], index: 6, kind: output, shape index: {1}]  }
   0x1 LB: > { %s2469_s22 = sadd.s32 4294967295, %s2426_s21   ;;  %p1982_p0 = scmp.ge.s32.totalorder %s2426_s21, 1  ;;  %s2426_s21 = sphi %s2463_s21, %s17_s21  }
   0x2   : > { %p217_p1 = scmp.lt.s32.totalorder %s2426_s21, 3 }
   0x4   : > { %p218_p2 = pnand %p1982_p0, %p217_p1 }
   0x5   : > { %v2228_v0 = vld [vmem:[%s3191_s1 + $0x4] ss:$16 sps:$4 sm:$0xff] (!%p218_p2)   ;;  %v2230_v1 = vld [vmem:[%s3191_s1 + $0xc] ss:$16 sps:$4 sm:$0xff] (!%p218_p2)   ;;  %v2232_v2 = vld [vmem:[%s3191_s1] ss:$16 sps:$4 sm:$0xff] (!%p218_p2)   ;;  %v323_v36 = vlaneseq (!%p218_p2) }
   0x6   : > { %221 = sbr.rel (%p218_p2) target bundleno = 427 (0x1ab), region = 40  ;;  %1235 = vmatprep.subr.bf16.mxu0 (!%p218_p2), %v2228_v0  ;;  %v2233_v3 = vld [vmem:[%s3191_s1 + $0x8] ss:$16 sps:$4 sm:$0xff] (!%p218_p2)   ;;  %1381 = vmatprep.subr.bf16.mxu1 (!%p218_p2), %v2230_v1  ;;  %v2234_v4 = vld [vmem:[%s3191_s1 + $0x24] ss:$16 sps:$4 sm:$0xff] (!%p218_p2)   ;;  %s1983_s15 = sshll.u32 (!%p218_p2), %s2469_s22, 3 }
   0x7   : > { %1236 = vmatpush1.bf16.msra.mxu0 (!%p218_p2), %v2232_v2  ;;  %1382 = vmatpush1.bf16.msra.mxu1 (!%p218_p2), %v2233_v3  ;;  %v2236_v5 = vld [vmem:[%s3191_s1 + $0x2c] ss:$16 sps:$4 sm:$0xff] (!%p218_p2)   ;;  %v2238_v6 = vld [vmem:[%s3191_s1 + $0x20] ss:$16 sps:$4 sm:$0xff] (!%p218_p2)   ;;  %v2239_v7 = vld [vmem:[%s3191_s1 + $0x28] ss:$16 sps:$4 sm:$0xff] (!%p218_p2)  }
   0x8   : > { %1237 = vmatprep.subr.bf16.mxu0 (!%p218_p2), %v2234_v4  ;;  %1383 = vmatprep.subr.bf16.mxu1 (!%p218_p2), %v2236_v5  ;;  %v2240_v8 = vld [vmem:[%s3191_s1 + $0x44] ss:$16 sps:$4 sm:$0xff] (!%p218_p2)   ;;  %v2242_v9 = vld [vmem:[%s3191_s1 + $0x4c] ss:$16 sps:$4 sm:$0xff] (!%p218_p2)   ;;  %v2244_v10 = vld [vmem:[%s3191_s1 + $0x40] ss:$16 sps:$4 sm:$0xff] (!%p218_p2)  }
   0x9   : > { %v2245_v11 = vld [vmem:[%s3191_s1 + $0x48] ss:$16 sps:$4 sm:$0xff] (!%p218_p2)   ;;  %v2246_v12 = vld [vmem:[%s3191_s1 + $0x64] ss:$16 sps:$4 sm:$0xff] (!%p218_p2)   ;;  %v2248_v13 = vld [vmem:[%s3191_s1 + $0x6c] ss:$16 sps:$4 sm:$0xff] (!%p218_p2)  }
   0xa   : > { %v2250_v14 = vld [vmem:[%s3191_s1 + $0x60] ss:$16 sps:$4 sm:$0xff] (!%p218_p2)   ;;  %v2251_v15 = vld [vmem:[%s3191_s1 + $0x68] ss:$16 sps:$4 sm:$0xff] (!%p218_p2)   ;;  %v2252_v16 = vld [vmem:[%s3191_s1 + $0x84] ss:$16 sps:$4 sm:$0xff] (!%p218_p2)  }
   0xb   : > { %1238 = vmatpush1.bf16.msra.mxu0 (!%p218_p2), %v2238_v6  ;;  %1384 = vmatpush1.bf16.msra.mxu1 (!%p218_p2), %v2239_v7  ;;  %v2254_v17 = vld [vmem:[%s3191_s1 + $0x8c] ss:$16 sps:$4 sm:$0xff] (!%p218_p2)   ;;  %v2256_v18 = vld [vmem:[%s3191_s1 + $0x80] ss:$16 sps:$4 sm:$0xff] (!%p218_p2)   ;;  %v2257_v19 = vld [vmem:[%s3191_s1 + $0x88] ss:$16 sps:$4 sm:$0xff] (!%p218_p2)  }
   0xc   : > { %1239 = vmatprep.subr.bf16.mxu0 (!%p218_p2), %v2240_v8  ;;  %1385 = vmatprep.subr.bf16.mxu1 (!%p218_p2), %v2242_v9  ;;  %v2258_v20 = vld [vmem:[%s3191_s1 + $0xa4] ss:$16 sps:$4 sm:$0xff] (!%p218_p2)   ;;  %v2260_v21 = vld [vmem:[%s3191_s1 + $0xac] ss:$16 sps:$4 sm:$0xff] (!%p218_p2)   ;;  %v2262_v22 = vld [vmem:[%s3191_s1 + $0xa0] ss:$16 sps:$4 sm:$0xff] (!%p218_p2)  }
   0xd   : > { %v2263_v23 = vld [vmem:[%s3191_s1 + $0xa8] ss:$16 sps:$4 sm:$0xff]   ;;  %v2264_v24 = vld [vmem:[%s3191_s1 + $0xc4] ss:$16 sps:$4 sm:$0xff]   ;;  %v2266_v25 = vld [vmem:[%s3191_s1 + $0xcc] ss:$16 sps:$4 sm:$0xff]  }
   0xe   : > { %v2268_v26 = vld [vmem:[%s3191_s1 + $0xc0] ss:$16 sps:$4 sm:$0xff]   ;;  %v2269_v27 = vld [vmem:[%s3191_s1 + $0xc8] ss:$16 sps:$4 sm:$0xff]   ;;  %v2270_v28 = vld [vmem:[%s3191_s1 + $0xe4] ss:$16 sps:$4 sm:$0xff]  }
   0xf   : > { %1240 = vmatpush1.bf16.msra.mxu0 %v2244_v10  ;;  %1386 = vmatpush1.bf16.msra.mxu1 %v2245_v11  ;;  %v2272_v29 = vld [vmem:[%s3191_s1 + $0xec] ss:$16 sps:$4 sm:$0xff]   ;;  %v2274_v30 = vld [vmem:[%s3191_s1 + $0xe0] ss:$16 sps:$4 sm:$0xff]   ;;  %v2275_v31 = vld [vmem:[%s3191_s1 + $0xe8] ss:$16 sps:$4 sm:$0xff]  }
  0x10   : > { %1241 = vmatprep.subr.bf16.mxu0 %v2246_v12  ;;  %1387 = vmatprep.subr.bf16.mxu1 %v2248_v13  ;;  %v2276_v32 = vld [vmem:[%s3191_s1 + $0x104] ss:$16 sps:$4 sm:$0xff]   ;;  %p255_p3 = scmp.lt.s32.totalorder %s1983_s15, 15  ;;  %v2278_v33 = vld [vmem:[%s3191_s1 + $0x10c] ss:$16 sps:$4 sm:$0xff]   ;;  %v2593_v40 = vshrl.u32 %v323_v36, 7 }
  0x11   : > { %v2280_v34 = vld [vmem:[%s3191_s1 + $0x100] ss:$16 sps:$4 sm:$0xff]   ;;  %v2281_v35 = vld [vmem:[%s3191_s1 + $0x108] ss:$16 sps:$4 sm:$0xff]   ;;  %v2282_v37 = vld [vmem:[%s3191_s1 + $0x124] ss:$16 sps:$4 sm:$0xff]  }
  0x12   : > { %s3198_s15 = smov (!%p255_p3, %s1983_s15), 15  ;;  %v2284_v38 = vld [vmem:[%s3191_s1 + $0x12c] ss:$16 sps:$4 sm:$0xff]   ;;  %v2286_v39 = vld [vmem:[%s3191_s1 + $0x120] ss:$16 sps:$4 sm:$0xff]   ;;  %v2622_v47 = vsub.s32 1, %v2593_v40 }
  0x13   : > { %1242 = vmatpush1.bf16.msra.mxu0 %v2250_v14  ;;  %1388 = vmatpush1.bf16.msra.mxu1 %v2251_v15  ;;  %v2287_v41 = vld [vmem:[%s3191_s1 + $0x128] ss:$16 sps:$4 sm:$0xff]   ;;  %v2288_v42 = vld [vmem:[%s3191_s1 + $0x144] ss:$16 sps:$4 sm:$0xff]   ;;  %s2137_s17 = sshll.u32 %s3198_s15, 4  ;;  %v2668_v1 = vsub.s32 0, %v2593_v40 }
  0x14   : > { %1243 = vmatprep.subr.bf16.mxu0 %v2252_v16  ;;  %1389 = vmatprep.subr.bf16.mxu1 %v2254_v17  ;;  %v2290_v43 = vld [vmem:[%s3191_s1 + $0x14c] ss:$16 sps:$4 sm:$0xff]   ;;  %v2292_v44 = vld [vmem:[%s3191_s1 + $0x140] ss:$16 sps:$4 sm:$0xff]   ;;  %v2293_v45 = vld [vmem:[%s3191_s1 + $0x148] ss:$16 sps:$4 sm:$0xff]   ;;  %s2616_s28 = scalar_lea.vmem %s3190_s0, %s2137_s17  ;;  %s3070_s7 = scalar_lea.vmem %s3195_s5, %s2137_s17 }
  0x15   : > { %v2294_v46 = vld [vmem:[%s3191_s1 + $0x164] ss:$16 sps:$4 sm:$0xff]   ;;  %v2296_v48 = vld [vmem:[%s3191_s1 + $0x16c] ss:$16 sps:$4 sm:$0xff]   ;;  %v2298_v49 = vld [vmem:[%s3191_s1 + $0x160] ss:$16 sps:$4 sm:$0xff]  }
  0x16   : > { %v2299_v50 = vld [vmem:[%s3191_s1 + $0x168] ss:$16 sps:$4 sm:$0xff]   ;;  %v273_v51 = vld [vmem:[%s2616_s28] sm:$0xff]  ;;  %v275_v52 = vld [vmem:[%s2616_s28 + $0x10] sm:$0xff]  ;;  %p268_p4 = scmp.lt.s32.totalorder %s2469_s22, 1 }
  0x17   : > { %1244 = vmatpush1.bf16.msra.mxu0 %v2256_v18  ;;  %1390 = vmatpush1.bf16.msra.mxu1 %v2257_v19  ;;  %v290_v53 = vunpack.c.h.bf16 %v273_v51  ;;  %v2638_v54 = vld [vmem:[%s3192_s2] sm:$0xf]  ;;  %v2300_v56 = vld [vmem:[%s3191_s1 + $0x184] ss:$16 sps:$4 sm:$0xff]   ;;  %v294_v57 = vunpack.c.h.bf16 %v275_v52  ;;  %v2302_v59 = vld [vmem:[%s3191_s1 + $0x18c] ss:$16 sps:$4 sm:$0xff]   ;;  %v289_v9 = vunpack.c.l.bf16 %v273_v51  ;;  %v293_v10 = vunpack.c.l.bf16 %v275_v52 }
  0x18   : > { %1245 = vmatprep.subr.bf16.mxu0 %v2258_v20  ;;  %1391 = vmatprep.subr.bf16.mxu1 %v2260_v21  ;;  %v2643_v55 = vld [vmem:[%s3193_s3] sm:$0xf]  ;;  %v2650_v58 = vrot.slane %v2638_v54, %v2622_v47  ;;  %v2305_v0 = vld [vmem:[%s3191_s1 + $0x188] ss:$16 sps:$4 sm:$0xff]   ;;  %v2306_v2 = vld [vmem:[%s3191_s1 + $0x1a4] ss:$16 sps:$4 sm:$0xff]   ;;  %v2686_v11 = vrot.slane %v2638_v54, %v2668_v1 }
  0x19   : > { %v2657_v60 = vrot.slane %v2643_v55, %v2622_v47  ;;  %v2304_v63 = vld [vmem:[%s3191_s1 + $0x180] ss:$16 sps:$4 sm:$0xff]   ;;  %v2308_v5 = vld [vmem:[%s3191_s1 + $0x1ac] ss:$16 sps:$4 sm:$0xff]   ;;  %v2311_v8 = vld [vmem:[%s3191_s1 + $0x1a8] ss:$16 sps:$4 sm:$0xff]   ;;  %v2704_v18 = vrot.slane %v2643_v55, %v2668_v1 }
  0x1a   : > { %v344_v61 = vadd.f32 %v2650_v58, %v290_v53  ;;  %v348_v62 = vadd.f32 %v2650_v58, %v294_v57  ;;  %v2310_v7 = vld [vmem:[%s3191_s1 + $0x1a0] ss:$16 sps:$4 sm:$0xff]   ;;  %v2312_v12 = vld [vmem:[%s3191_s1 + $0x1c4] ss:$16 sps:$4 sm:$0xff]   ;;  %v2314_v13 = vld [vmem:[%s3191_s1 + $0x1cc] ss:$16 sps:$4 sm:$0xff]   ;;  %v343_v16 = vadd.f32 %v2686_v11, %v289_v9  ;;  %v347_v17 = vadd.f32 %v2686_v11, %v293_v10 }
  0x1b   : > { %1246 = vmatpush1.bf16.msra.mxu0 %v2262_v22  ;;  %1392 = vmatpush1.bf16.msra.mxu1 %v2263_v23  ;;  %v2316_v14 = vld [vmem:[%s3191_s1 + $0x1c0] ss:$16 sps:$4 sm:$0xff]   ;;  %v2317_v15 = vld [vmem:[%s3191_s1 + $0x1c8] ss:$16 sps:$4 sm:$0xff]   ;;  %v2318_v19 = vld [vmem:[%s3191_s1 + $0x1e4] ss:$16 sps:$4 sm:$0xff]  }
  0x1c   : > { %1247 = vmatprep.subr.bf16.mxu0 %v2264_v24  ;;  %1393 = vmatprep.subr.bf16.mxu1 %v2266_v25  ;;  %v398_v3 = vmul.f32 %v2657_v60, %v344_v61  ;;  %v402_v4 = vmul.f32 %v2657_v60, %v348_v62  ;;  %v2320_v20 = vld [vmem:[%s3191_s1 + $0x1ec] ss:$16 sps:$4 sm:$0xff]   ;;  %v2322_v21 = vld [vmem:[%s3191_s1 + $0x1e0] ss:$16 sps:$4 sm:$0xff]   ;;  %v2323_v22 = vld [vmem:[%s3191_s1 + $0x1e8] ss:$16 sps:$4 sm:$0xff]   ;;  %v397_v23 = vmul.f32 %v2704_v18, %v343_v16 }
  0x1d   : > { %v401_v24 = vmul.f32 %v2704_v18, %v347_v17  ;;  %v2326_v25 = vld [vmem:[%s3191_s1 + $0x204] ss:$16 sps:$4 sm:$0xff]   ;;  %v2345_v53 = vld [vmem:[%s3191_s1 + $0x268] ss:$16 sps:$4 sm:$0xff]   ;;  %v2353_v61 = vld [vmem:[%s3191_s1 + $0x28c] ss:$16 sps:$4 sm:$0xff]  }
  0x1e   : > { %v430_v6 = vpack.c.bf16 %v402_v4, %v398_v3  ;;  %v277_v36 = vld [vmem:[%s2616_s28 + $0x20] sm:$0xff]  ;;  %v2351_v9 = vld [vmem:[%s3191_s1 + $0x288] ss:$16 sps:$4 sm:$0xff]   ;;  %v2359_v17 = vld [vmem:[%s3191_s1 + $0x2ac] ss:$16 sps:$4 sm:$0xff]   ;;  %s3200_s22 = smov (!%p268_p4, %s2469_s22), 1 }
  0x1f   : > { %1248 = vmatpush1.bf16.msra.mxu0 %v2268_v26  ;;  %1394 = vmatpush1.bf16.msra.mxu1 %v2269_v27  ;;  %v2329_v26 = vld [vmem:[%s3191_s1 + $0x20c] ss:$16 sps:$4 sm:$0xff]   ;;  %v2324_v27 = vld [vmem:[%s3191_s1 + $0x200] ss:$16 sps:$4 sm:$0xff]   ;;  %s2139_s15 = sshll.u32 %s3200_s22, 5 }
  0x20   : > { %1249 = vmatprep.subr.bf16.mxu0 %v2270_v28  ;;  %1395 = vmatprep.subr.bf16.mxu1 %v2272_v29  ;;  %v2327_v28 = vld [vmem:[%s3191_s1 + $0x208] ss:$16 sps:$4 sm:$0xff]   ;;  %v429_v29 = vpack.c.bf16 %v401_v24, %v397_v23  ;;  %v2809_v23 = vsub.s32 3, %v2593_v40  ;;  %s272_s9 = scalar_lea.vmem %s3196_s6, %s2139_s15 }
  0x21   : > { %1267 = vmatprep.mubr.bf16.mxu0 %v430_v6  ;;  %1413 = vmatprep.mubr.bf16.mxu1 %v430_v6 }
  0x23   : > { %1250 = vmatpush1.bf16.msra.mxu0 %v2274_v30  ;;  %1396 = vmatpush1.bf16.msra.mxu1 %v2275_v31  ;;  %v2332_v30 = vld [vmem:[%s3191_s1 + $0x224] ss:$16 sps:$4 sm:$0xff]   ;;  %v2335_v31 = vld [vmem:[%s3191_s1 + $0x22c] ss:$16 sps:$4 sm:$0xff]  }
  0x24   : > { %1251 = vmatprep.subr.bf16.mxu0 %v2276_v32  ;;  %1397 = vmatprep.subr.bf16.mxu1 %v2278_v33  ;;  %v2330_v32 = vld [vmem:[%s3191_s1 + $0x220] ss:$16 sps:$4 sm:$0xff]   ;;  %v2333_v33 = vld [vmem:[%s3191_s1 + $0x228] ss:$16 sps:$4 sm:$0xff]  }
  0x27   : > { %1252 = vmatpush1.bf16.msra.mxu0 %v2280_v34  ;;  %1398 = vmatpush1.bf16.msra.mxu1 %v2281_v35  ;;  %v2338_v34 = vld [vmem:[%s3191_s1 + $0x244] ss:$16 sps:$4 sm:$0xff]   ;;  %v2341_v35 = vld [vmem:[%s3191_s1 + $0x24c] ss:$16 sps:$4 sm:$0xff]  }
  0x28   : > { %1253 = vmatprep.subr.bf16.mxu0 %v2282_v37  ;;  %1399 = vmatprep.subr.bf16.mxu1 %v2284_v38  ;;  %v279_v37 = vld [vmem:[%s2616_s28 + $0x30] sm:$0xff]  ;;  %v298_v38 = vunpack.c.h.bf16 %v277_v36 }
  0x2b   : > { %1254 = vmatpush1.bf16.msra.mxu0 %v2286_v39  ;;  %1400 = vmatpush1.bf16.msra.mxu1 %v2287_v41  ;;  %v297_v39 = vunpack.c.l.bf16 %v277_v36  ;;  %v2336_v41 = vld [vmem:[%s3191_s1 + $0x240] ss:$16 sps:$4 sm:$0xff]  }
  0x2c   : > { %1255 = vmatprep.subr.bf16.mxu0 %v2288_v42  ;;  %1401 = vmatprep.subr.bf16.mxu1 %v2290_v43  ;;  %v2339_v42 = vld [vmem:[%s3191_s1 + $0x248] ss:$16 sps:$4 sm:$0xff]   ;;  %v302_v43 = vunpack.c.h.bf16 %v279_v37 }
  0x2e   : > { %v356_v51 = vadd.f32 %v2650_v58, %v302_v43 }
  0x2f   : > { %1256 = vmatpush1.bf16.msra.mxu0 %v2292_v44  ;;  %1402 = vmatpush1.bf16.msra.mxu1 %v2293_v45  ;;  %v301_v44 = vunpack.c.l.bf16 %v279_v37  ;;  %v2344_v45 = vld [vmem:[%s3191_s1 + $0x264] ss:$16 sps:$4 sm:$0xff]  }
  0x30   : > { %1257 = vmatprep.subr.bf16.mxu0 %v2294_v46  ;;  %1403 = vmatprep.subr.bf16.mxu1 %v2296_v48  ;;  %v2347_v46 = vld [vmem:[%s3191_s1 + $0x26c] ss:$16 sps:$4 sm:$0xff]   ;;  %v352_v48 = vadd.f32 %v2650_v58, %v298_v38  ;;  %v410_v62 = vmul.f32 %v2657_v60, %v356_v51  ;;  %v2360_v38 = vld [vmem:[%s3191_s1 + $0x2c0] ss:$16 sps:$4 sm:$0xff]  }
  0x31   : > { %v355_v52 = vadd.f32 %v2686_v11, %v301_v44 }
  0x33   : > { %1258 = vmatpush1.bf16.msra.mxu0 %v2298_v49  ;;  %1404 = vmatpush1.bf16.msra.mxu1 %v2299_v50  ;;  %v351_v49 = vadd.f32 %v2686_v11, %v297_v39  ;;  %v2342_v50 = vld [vmem:[%s3191_s1 + $0x260] ss:$16 sps:$4 sm:$0xff]  }
  0x34   : > { %1259 = vmatprep.subr.bf16.mxu0 %v2300_v56  ;;  %1405 = vmatprep.subr.bf16.mxu1 %v2302_v59  ;;  %v406_v56 = vmul.f32 %v2657_v60, %v352_v48  ;;  %v2350_v59 = vld [vmem:[%s3191_s1 + $0x284] ss:$16 sps:$4 sm:$0xff]   ;;  %v2371_v48 = vld [vmem:[%s3191_s1 + $0x2ec] ss:$16 sps:$4 sm:$0xff]  }
  0x35   : > { %v405_v57 = vmul.f32 %v2704_v18, %v351_v49 }
  0x37   : > { %1260 = vmatpush1.bf16.msra.mxu0 %v2304_v63  ;;  %1406 = vmatpush1.bf16.msra.mxu1 %v2305_v0  ;;  %v409_v63 = vmul.f32 %v2704_v18, %v355_v52  ;;  %v281_v0 = vld [vmem:[%s2616_s28 + $0x40] sm:$0xff] }
  0x38   : > { %1261 = vmatprep.subr.bf16.mxu0 %v2306_v2  ;;  %1407 = vmatprep.subr.bf16.mxu1 %v2308_v5  ;;  %v283_v2 = vld [vmem:[%s2616_s28 + $0x50] sm:$0xff]  ;;  %v306_v3 = vunpack.c.h.bf16 %v281_v0  ;;  %v305_v4 = vunpack.c.l.bf16 %v281_v0  ;;  %v434_v5 = vpack.c.bf16 %v410_v62, %v406_v56  ;;  %v2863_v56 = vld [vmem:[%s2616_s28 + $0x28] sm:$0xff] }
  0x39   : > { %v310_v6 = vunpack.c.h.bf16 %v283_v2  ;;  %v433_v10 = vpack.c.bf16 %v409_v63, %v405_v57  ;;  %v2866_v57 = vld [vmem:[%s2616_s28 + $0x38] sm:$0xff] }
  0x3b   : > { %1262 = vmatpush1.bf16.msra.mxu0 %v2310_v7  ;;  %1408 = vmatpush1.bf16.msra.mxu1 %v2311_v8  ;;  %v309_v7 = vunpack.c.l.bf16 %v283_v2  ;;  %v2348_v8 = vld [vmem:[%s3191_s1 + $0x280] ss:$16 sps:$4 sm:$0xff]  }
  0x3c   : > { %1263 = vmatprep.subr.bf16.mxu0 %v2312_v12  ;;  %1409 = vmatprep.subr.bf16.mxu1 %v2314_v13  ;;  %v360_v12 = vadd.f32 %v2650_v58, %v306_v3  ;;  %v359_v13 = vadd.f32 %v2686_v11, %v305_v4  ;;  %v2369_v3 = vld [vmem:[%s3191_s1 + $0x2e8] ss:$16 sps:$4 sm:$0xff]  }
  0x3d   : > { %v363_v16 = vadd.f32 %v2686_v11, %v309_v7  ;;  %v2374_v7 = vld [vmem:[%s3191_s1 + $0x304] ss:$16 sps:$4 sm:$0xff]  }
  0x3e   : > { %v413_v24 = vmul.f32 %v2704_v18, %v359_v13 }
  0x3f   : > { %1264 = vmatpush1.bf16.msra.mxu0 %v2316_v14  ;;  %1410 = vmatpush1.bf16.msra.mxu1 %v2317_v15  ;;  %v2356_v14 = vld [vmem:[%s3191_s1 + $0x2a4] ss:$16 sps:$4 sm:$0xff]   ;;  %v364_v15 = vadd.f32 %v2650_v58, %v310_v6  ;;  %v303_v6 = vunpack.c.l.bf16 %v2866_v57 }
  0x40   : > { %1265 = vmatprep.subr.bf16.mxu0 %v2318_v19  ;;  %1411 = vmatprep.subr.bf16.mxu1 %v2320_v20  ;;  %v414_v19 = vmul.f32 %v2657_v60, %v360_v12  ;;  %v2804_v20 = vsub.s32 2, %v2593_v40 }
  0x42   : > { %v2829_v37 = vrot.slane %v2638_v54, %v2804_v20 }
  0x43   : > { %1266 = vmatpush1.bf16.msra.mxu0 %v2322_v21  ;;  %1412 = vmatpush1.bf16.msra.mxu1 %v2323_v22  ;;  %v418_v21 = vmul.f32 %v2657_v60, %v364_v15  ;;  %v285_v22 = vld [vmem:[%s2616_s28 + $0x60] sm:$0xff]  ;;  %v2896_v15 = vld [vmem:[%s2616_s28 + $0x58] sm:$0xff] }
  0x44   : > { %1308 = vmatprep.subr.bf16.mxu0 %v2326_v25  ;;  %1454 = vmatprep.subr.bf16.mxu1 %v2329_v26  ;;  %v417_v25 = vmul.f32 %v2704_v18, %v363_v16  ;;  %v287_v26 = vld [vmem:[%s2616_s28 + $0x70] sm:$0xff] }
  0x46   : > { %1268 = vmatmul.mubr.bf16.vlgmr.msra.gmra.mrb[0].mxu0 %v429_v29  ;;  %1414 = vmatmul.mubr.bf16.vlgmr.msra.gmra.mrb[0].mxu1 %v429_v29  ;;  %v2354_v29 = vld [vmem:[%s3191_s1 + $0x2a0] ss:$16 sps:$4 sm:$0xff]   ;;  %v437_v43 = vpack.c.bf16 %v417_v25, %v413_v24  ;;  %v2380_v24 = vld [vmem:[%s3191_s1 + $0x324] ss:$16 sps:$4 sm:$0xff]  }
  0x47   : > { %1309 = vmatpush1.bf16.msra.mxu0 %v2324_v27  ;;  %1455 = vmatpush1.bf16.msra.mxu1 %v2327_v28  ;;  %v314_v27 = vunpack.c.h.bf16 %v285_v22  ;;  %v313_v28 = vunpack.c.l.bf16 %v285_v22  ;;  %v2375_v22 = vld [vmem:[%s3191_s1 + $0x308] ss:$16 sps:$4 sm:$0xff]  }
  0x48   : > { %1310 = vmatprep.subr.bf16.mxu0 %v2332_v30  ;;  %1456 = vmatprep.subr.bf16.mxu1 %v2335_v31  ;;  %v2357_v30 = vld [vmem:[%s3191_s1 + $0x2a8] ss:$16 sps:$4 sm:$0xff]   ;;  %v438_v31 = vpack.c.bf16 %v418_v21, %v414_v19  ;;  %v357_v19 = vadd.f32 %v2829_v37, %v303_v6  ;;  %v2372_v21 = vld [vmem:[%s3191_s1 + $0x300] ss:$16 sps:$4 sm:$0xff]   ;;  %v300_v6 = vunpack.c.h.bf16 %v2863_v56 }
  0x49   : > { %1277 = vmatprep.mubr.bf16.mxu0 %v434_v5  ;;  %1423 = vmatprep.mubr.bf16.mxu1 %v434_v5  ;;  %v368_v36 = vadd.f32 %v2650_v58, %v314_v27  ;;  %v299_v5 = vunpack.c.l.bf16 %v2863_v56  ;;  %v2383_v27 = vld [vmem:[%s3191_s1 + $0x32c] ss:$16 sps:$4 sm:$0xff]   ;;  %v2411_v56 = vld [vmem:[%s3191_s1 + $0x3c8] ss:$16 sps:$4 sm:$0xff]  }
  0x4b   : > { %1311 = vmatpush1.bf16.msra.mxu0 %v2330_v32  ;;  %1457 = vmatpush1.bf16.msra.mxu1 %v2333_v33  ;;  %v318_v32 = vunpack.c.h.bf16 %v287_v26  ;;  %v317_v33 = vunpack.c.l.bf16 %v287_v26  ;;  %v422_v44 = vmul.f32 %v2657_v60, %v368_v36 }
  0x4c   : > { %1312 = vmatprep.subr.bf16.mxu0 %v2338_v34  ;;  %1458 = vmatprep.subr.bf16.mxu1 %v2341_v35  ;;  %v2362_v34 = vld [vmem:[%s3191_s1 + $0x2c4] ss:$16 sps:$4 sm:$0xff]   ;;  %v2365_v35 = vld [vmem:[%s3191_s1 + $0x2cc] ss:$16 sps:$4 sm:$0xff]  }
  0x4d   : > { %v372_v39 = vadd.f32 %v2650_v58, %v318_v32  ;;  %v2368_v58 = vld [vmem:[%s3191_s1 + $0x2e4] ss:$16 sps:$4 sm:$0xff]   ;;  %v2922_v32 = vld [vmem:[%s2616_s28 + $0x78] sm:$0xff] }
  0x4e   : > { %1278 = vmatmul.mubr.bf16.gmra.mrb[4].mxu0 %v433_v10  ;;  %1424 = vmatmul.mubr.bf16.gmra.mrb[4].mxu1 %v433_v10  ;;  %v2890_v10 = vld [vmem:[%s2616_s28 + $0x48] sm:$0xff] }
  0x4f   : > { %1313 = vmatpush1.bf16.msra.mxu0 %v2336_v41  ;;  %1459 = vmatpush1.bf16.msra.mxu1 %v2339_v42  ;;  %v367_v41 = vadd.f32 %v2686_v11, %v313_v28  ;;  %v2363_v42 = vld [vmem:[%s3191_s1 + $0x2c8] ss:$16 sps:$4 sm:$0xff]   ;;  %v426_v49 = vmul.f32 %v2657_v60, %v372_v39  ;;  %v307_v26 = vunpack.c.l.bf16 %v2890_v10 }
  0x50   : > { %1314 = vmatprep.subr.bf16.mxu0 %v2344_v45  ;;  %1460 = vmatprep.subr.bf16.mxu1 %v2347_v46  ;;  %v371_v45 = vadd.f32 %v2686_v11, %v317_v33  ;;  %v2843_v46 = vrot.slane %v2638_v54, %v2809_v23  ;;  %v2855_v11 = vrot.slane %v2643_v55, %v2804_v20  ;;  %v276_v54 = vld [vmem:[%s2616_s28 + $0x18] sm:$0xff] }
  0x51   : > { %1287 = vmatprep.mubr.bf16.mxu0 %v438_v31  ;;  %1433 = vmatprep.mubr.bf16.mxu1 %v438_v31  ;;  %v421_v60 = vmul.f32 %v2704_v18, %v367_v41  ;;  %v296_v62 = vunpack.c.h.bf16 %v276_v54  ;;  %v2919_v31 = vld [vmem:[%s2616_s28 + $0x68] sm:$0xff] }
  0x52   : > { %v425_v63 = vmul.f32 %v2704_v18, %v371_v45  ;;  %v2381_v39 = vld [vmem:[%s3191_s1 + $0x328] ss:$16 sps:$4 sm:$0xff]   ;;  %v2389_v45 = vld [vmem:[%s3191_s1 + $0x34c] ss:$16 sps:$4 sm:$0xff]  }
  0x53   : > { %1315 = vmatpush1.bf16.msra.mxu0 %v2342_v50  ;;  %1461 = vmatpush1.bf16.msra.mxu1 %v2345_v53  ;;  %v274_v50 = vld [vmem:[%s2616_s28 + $0x8] sm:$0xff]  ;;  %v2860_v53 = vrot.slane %v2643_v55, %v2809_v23  ;;  %v2366_v55 = vld [vmem:[%s3191_s1 + $0x2e0] ss:$16 sps:$4 sm:$0xff]   ;;  %v350_v18 = vadd.f32 %v2843_v46, %v296_v62 }
  0x54   : > { %1316 = vmatprep.subr.bf16.mxu0 %v2350_v59  ;;  %1462 = vmatprep.subr.bf16.mxu1 %v2353_v61  ;;  %v291_v51 = vunpack.c.l.bf16 %v274_v50  ;;  %v292_v52 = vunpack.c.h.bf16 %v274_v50  ;;  %v442_v59 = vpack.c.bf16 %v426_v49, %v422_v44  ;;  %v295_v61 = vunpack.c.l.bf16 %v276_v54  ;;  %v2386_v44 = vld [vmem:[%s3191_s1 + $0x344] ss:$16 sps:$4 sm:$0xff]   ;;  %v2384_v54 = vld [vmem:[%s3191_s1 + $0x340] ss:$16 sps:$4 sm:$0xff]  }
  0x55   : > { %v404_v13 = vmul.f32 %v2860_v53, %v350_v18  ;;  %v441_v16 = vpack.c.bf16 %v425_v63, %v421_v60  ;;  %v2395_v60 = vld [vmem:[%s3191_s1 + $0x36c] ss:$16 sps:$4 sm:$0xff]   ;;  %v2390_v62 = vld [vmem:[%s3191_s1 + $0x360] ss:$16 sps:$4 sm:$0xff]   ;;  %v2398_v63 = vld [vmem:[%s3191_s1 + $0x384] ss:$16 sps:$4 sm:$0xff]  }
  0x56   : > { %1288 = vmatmul.mubr.bf16.gmra.mrb[8].mxu0 %v437_v43  ;;  %1434 = vmatmul.mubr.bf16.gmra.mrb[8].mxu1 %v437_v43  ;;  %v345_v0 = vadd.f32 %v2829_v37, %v291_v51  ;;  %v346_v2 = vadd.f32 %v2843_v46, %v292_v52  ;;  %v349_v4 = vadd.f32 %v2829_v37, %v295_v61  ;;  %v319_v43 = vunpack.c.l.bf16 %v2922_v32  ;;  %v2387_v51 = vld [vmem:[%s3191_s1 + $0x348] ss:$16 sps:$4 sm:$0xff]   ;;  %v2402_v18 = vld [vmem:[%s3191_s1 + $0x3a0] ss:$16 sps:$4 sm:$0xff]  }
  0x57   : > { %1317 = vmatpush1.bf16.msra.mxu0 %v2348_v8  ;;  %1463 = vmatpush1.bf16.msra.mxu1 %v2351_v9  ;;  %v2377_v8 = vld [vmem:[%s3191_s1 + $0x30c] ss:$16 sps:$4 sm:$0xff]  }
  0x58   : > { %1318 = vmatprep.subr.bf16.mxu0 %v2356_v14  ;;  %1464 = vmatprep.subr.bf16.mxu1 %v2359_v17  ;;  %v399_v9 = vmul.f32 %v2855_v11, %v345_v0  ;;  %v400_v12 = vmul.f32 %v2860_v53, %v346_v2  ;;  %v403_v14 = vmul.f32 %v2855_v11, %v349_v4  ;;  %v2401_v0 = vld [vmem:[%s3191_s1 + $0x38c] ss:$16 sps:$4 sm:$0xff]   ;;  %v2396_v2 = vld [vmem:[%s3191_s1 + $0x380] ss:$16 sps:$4 sm:$0xff]  }
  0x59   : > { %1297 = vmatprep.mubr.bf16.mxu0 %v442_v59  ;;  %1443 = vmatprep.mubr.bf16.mxu1 %v442_v59  ;;  %v353_v17 = vadd.f32 %v2829_v37, %v299_v5  ;;  %v373_v49 = vadd.f32 %v2829_v37, %v319_v43  ;;  %v2407_v4 = vld [vmem:[%s3191_s1 + $0x3ac] ss:$16 sps:$4 sm:$0xff]   ;;  %v2405_v5 = vld [vmem:[%s3191_s1 + $0x3a8] ss:$16 sps:$4 sm:$0xff]  }
  0x5a   : > { %v2909_v25 = vpack.c.bf16 %v403_v14, %v399_v9  ;;  %v432_v33 = vpack.c.bf16 %v404_v13, %v400_v12  ;;  %v2413_v9 = vld [vmem:[%s3191_s1 + $0x3cc] ss:$16 sps:$4 sm:$0xff]   ;;  %v2408_v12 = vld [vmem:[%s3191_s1 + $0x3c0] ss:$16 sps:$4 sm:$0xff]   ;;  %v2416_v14 = vld [vmem:[%s3191_s1 + $0x3e4] ss:$16 sps:$4 sm:$0xff]  }
  0x5b   : > { %1319 = vmatpush1.bf16.msra.mxu0 %v2354_v29  ;;  %1465 = vmatpush1.bf16.msra.mxu1 %v2357_v30  ;;  %v407_v28 = vmul.f32 %v2855_v11, %v353_v17  ;;  %v411_v29 = vmul.f32 %v2855_v11, %v357_v19  ;;  %v311_v30 = vunpack.c.l.bf16 %v2896_v15  ;;  %v427_v59 = vmul.f32 %v2855_v11, %v373_v49  ;;  %v2414_v17 = vld [vmem:[%s3191_s1 + $0x3e0] ss:$16 sps:$4 sm:$0xff]   ;;  %v2417_v19 = vld [vmem:[%s3191_s1 + $0x3e8] ss:$16 sps:$4 sm:$0xff]  }
  0x5c   : > { %1320 = vmatprep.subr.bf16.mxu0 %v2362_v34  ;;  %1466 = vmatprep.subr.bf16.mxu1 %v2365_v35  ;;  %v361_v34 = vadd.f32 %v2829_v37, %v307_v26  ;;  %v312_v26 = vunpack.c.h.bf16 %v2896_v15  ;;  %v316_v15 = vunpack.c.h.bf16 %v2919_v31 }
  0x5d   : > { %v2925_v35 = vpack.c.bf16 %v411_v29, %v407_v28  ;;  %v365_v36 = vadd.f32 %v2829_v37, %v311_v30 }
  0x5e   : > { %1298 = vmatmul.mubr.bf16.gmra.mrb[12].mxu0 %v441_v16  ;;  %1444 = vmatmul.mubr.bf16.gmra.mrb[12].mxu1 %v441_v16  ;;  %v415_v41 = vmul.f32 %v2855_v11, %v361_v34  ;;  %v2419_v16 = vld [vmem:[%s3191_s1 + $0x3ec] ss:$16 sps:$4 sm:$0xff]   ;;  %v366_v29 = vadd.f32 %v2843_v46, %v312_v26 }
  0x5f   : > { %1321 = vmatpush1.bf16.msra.mxu0 %v2360_v38  ;;  %1467 = vmatpush1.bf16.msra.mxu1 %v2363_v42  ;;  %v2378_v38 = vld [vmem:[%s3191_s1 + $0x320] ss:$16 sps:$4 sm:$0xff]   ;;  %v315_v42 = vunpack.c.l.bf16 %v2919_v31 }
  0x60   : > { %1322 = vmatprep.subr.bf16.mxu0 %v2368_v58  ;;  %1468 = vmatprep.subr.bf16.mxu1 %v2371_v48  ;;  %v419_v58 = vmul.f32 %v2855_v11, %v365_v36  ;;  %v370_v36 = vadd.f32 %v2843_v46, %v316_v15 }
  0x61   : > { %1340 = vmatprep.mubr.bf16.mxu0 %v432_v33  ;;  %1486 = vmatprep.mubr.bf16.mxu1 %v432_v33  ;;  %v369_v48 = vadd.f32 %v2829_v37, %v315_v42  ;;  %v2392_v37 = vld [vmem:[%s3191_s1 + $0x364] ss:$16 sps:$4 sm:$0xff]   ;;  %v320_v33 = vunpack.c.h.bf16 %v2922_v32 }
  0x62   : > { %v2946_v50 = vpack.c.bf16 %v419_v58, %v415_v41 }
  0x63   : > { %1323 = vmatpush1.bf16.msra.mxu0 %v2366_v55  ;;  %1469 = vmatpush1.bf16.msra.mxu1 %v2369_v3  ;;  %v423_v52 = vmul.f32 %v2855_v11, %v369_v48  ;;  %v2393_v11 = vld [vmem:[%s3191_s1 + $0x368] ss:$16 sps:$4 sm:$0xff]   ;;  %v2404_v3 = vld [vmem:[%s3191_s1 + $0x3a4] ss:$16 sps:$4 sm:$0xff]  }
  0x64   : > { %1324 = vmatprep.subr.bf16.mxu0 %v2374_v7  ;;  %1470 = vmatprep.subr.bf16.mxu1 %v2377_v8  ;;  %v2399_v55 = vld [vmem:[%s3191_s1 + $0x388] ss:$16 sps:$4 sm:$0xff]   ;;  %v304_v7 = vunpack.c.h.bf16 %v2866_v57  ;;  %v2410_v8 = vld [vmem:[%s3191_s1 + $0x3c4] ss:$16 sps:$4 sm:$0xff]   ;;  %v354_v57 = vadd.f32 %v2843_v46, %v300_v6 }
  0x65   : > { %v2962_v61 = vpack.c.bf16 %v427_v59, %v423_v52 }
  0x66   : > { %v358_v13 = vadd.f32 %v2843_v46, %v304_v7 }
  0x67   : > { %1325 = vmatpush1.bf16.msra.mxu0 %v2372_v21  ;;  %1471 = vmatpush1.bf16.msra.mxu1 %v2375_v22  ;;  %v408_v21 = vmul.f32 %v2860_v53, %v354_v57 }
  0x68   : > { %1326 = vmatprep.subr.bf16.mxu0 %v2380_v24  ;;  %1472 = vmatprep.subr.bf16.mxu1 %v2383_v27  ;;  %v412_v22 = vmul.f32 %v2860_v53, %v358_v13  ;;  %v308_v24 = vunpack.c.h.bf16 %v2890_v10  ;;  %v420_v10 = vmul.f32 %v2860_v53, %v366_v29 }
  0x6a   : > { %v436_v27 = vpack.c.bf16 %v412_v22, %v408_v21  ;;  %v362_v28 = vadd.f32 %v2843_v46, %v308_v24 }
  0x6b   : > { %1327 = vmatpush1.bf16.msra.mxu0 %v2378_v38  ;;  %1473 = vmatpush1.bf16.msra.mxu1 %v2381_v39  ;;  %v374_v38 = vadd.f32 %v2843_v46, %v320_v33  ;;  %v573_v46 = vld [vmem:[%s3194_s4] sm:$0xf] }
  0x6c   : > { %1328 = vmatprep.subr.bf16.mxu0 %v2386_v44  ;;  %1474 = vmatprep.subr.bf16.mxu1 %v2389_v45  ;;  %v416_v30 = vmul.f32 %v2860_v53, %v362_v28  ;;  %v3048_v31 = vrot.slane %v573_v46, %v2668_v1  ;;  %v3054_v32 = vrot.slane %v573_v46, %v2622_v47 }
  0x6d   : > { %v428_v39 = vmul.f32 %v2860_v53, %v374_v38 }
  0x6e   : > { %v440_v34 = vpack.c.bf16 %v420_v10, %v416_v30 }
  0x6f   : > { %1329 = vmatpush1.bf16.msra.mxu0 %v2384_v54  ;;  %1475 = vmatpush1.bf16.msra.mxu1 %v2387_v51 }
  0x70   : > { %1330 = vmatprep.subr.bf16.mxu0 %v2392_v37  ;;  %1476 = vmatprep.subr.bf16.mxu1 %v2395_v60 }
  0x73   : > { %1331 = vmatpush1.bf16.msra.mxu0 %v2390_v62  ;;  %1477 = vmatpush1.bf16.msra.mxu1 %v2393_v11 }
  0x74   : > { %1332 = vmatprep.subr.bf16.mxu0 %v2398_v63  ;;  %1478 = vmatprep.subr.bf16.mxu1 %v2401_v0 }
  0x77   : > { %1333 = vmatpush1.bf16.msra.mxu0 %v2396_v2  ;;  %1479 = vmatpush1.bf16.msra.mxu1 %v2399_v55 }
  0x78   : > { %1334 = vmatprep.subr.bf16.mxu0 %v2404_v3  ;;  %1480 = vmatprep.subr.bf16.mxu1 %v2407_v4 }
  0x7b   : > { %1335 = vmatpush1.bf16.msra.mxu0 %v2402_v18  ;;  %1481 = vmatpush1.bf16.msra.mxu1 %v2405_v5 }
  0x7c   : > { %1336 = vmatprep.subr.bf16.mxu0 %v2410_v8  ;;  %1482 = vmatprep.subr.bf16.mxu1 %v2413_v9 }
  0x7f   : > { %1337 = vmatpush1.bf16.msra.mxu0 %v2408_v12  ;;  %1483 = vmatpush1.bf16.msra.mxu1 %v2411_v56 }
  0x80   : > { %1338 = vmatprep.subr.bf16.mxu0 %v2416_v14  ;;  %1484 = vmatprep.subr.bf16.mxu1 %v2419_v16 }
  0x83   : > { %1339 = vmatpush1.bf16.msra.mxu0 %v2414_v17  ;;  %1485 = vmatpush1.bf16.msra.mxu1 %v2417_v19 }
  0x86   : > { %1341 = vmatmul.mubr.bf16.vlgmr.msra.gmra.mrb[0].mxu0 %v2909_v25  ;;  %1487 = vmatmul.mubr.bf16.vlgmr.msra.gmra.mrb[0].mxu1 %v2909_v25  ;;  %v424_v25 = vmul.f32 %v2860_v53, %v370_v36  ;;  %v3051_v53 = vrot.slane %v573_v46, %v2804_v20 }
  0x87   : > { %1350 = vmatprep.mubr.bf16.mxu0 %v436_v27  ;;  %1496 = vmatprep.mubr.bf16.mxu1 %v436_v27 }
  0x88   : > { %v444_v41 = vpack.c.bf16 %v428_v39, %v424_v25 }
  0x8e   : > { %1351 = vmatmul.mubr.bf16.gmra.mrb[4].mxu0 %v2925_v35  ;;  %1497 = vmatmul.mubr.bf16.gmra.mrb[4].mxu1 %v2925_v35  ;;  %v3057_v35 = vrot.slane %v573_v46, %v2809_v23 }
  0x8f   : > { %1360 = vmatprep.mubr.bf16.mxu0 %v440_v34  ;;  %1506 = vmatprep.mubr.bf16.mxu1 %v440_v34 }
  0x96   : > { %1361 = vmatmul.mubr.bf16.gmra.mrb[8].mxu0 %v2946_v50  ;;  %1507 = vmatmul.mubr.bf16.gmra.mrb[8].mxu1 %v2946_v50 }
  0x97   : > { %1370 = vmatprep.mubr.bf16.mxu0 %v444_v41  ;;  %1516 = vmatprep.mubr.bf16.mxu1 %v444_v41 }
  0x9e   : > { %1371 = vmatmul.mubr.bf16.gmra.mrb[12].mxu0 %v2962_v61  ;;  %1517 = vmatmul.mubr.bf16.gmra.mrb[12].mxu1 %v2962_v61 }
 0x159   : > { %v1342_v42 = vpop.f32.mrb[0].mxu0  ;;  %v1488_v43 = vpop.f32.mrb[0].mxu1 }
 0x15a   : > { %v2156_v44 = vadd.f32 %v1342_v42, %v3048_v31  ;;  %v2172_v45 = vadd.f32 %v1488_v43, %v3051_v53  ;;  %v1344_v58 = vpop.f32.mrb[1].mxu0  ;;  %v1490_v48 = vpop.f32.mrb[1].mxu1 }
 0x15b   : > { %v2157_v1 = vadd.f32 %v1344_v58, %v3054_v32  ;;  %v2173_v49 = vadd.f32 %v1490_v48, %v3057_v35  ;;  %v1346_v20 = vpop.f32.mrb[2].mxu0  ;;  %v1492_v50 = vpop.f32.mrb[2].mxu1 }
 0x15c   : > { %vm1527_vm0 = vcmp.ge.f32.partialorder %v2156_v44, 0.0  ;;  %v1559_v47 = vmul.f32 0.1, %v2156_v44  ;;  %vm1529_vm1 = vcmp.ge.f32.partialorder %v2172_v45, 0.0  ;;  %v1561_v23 = vmul.f32 0.1, %v2172_v45 }
 0x15d   : > { %vm1528_vm2 = vcmp.ge.f32.partialorder %v2157_v1, 0.0  ;;  %v1560_v54 = vmul.f32 0.1, %v2157_v1  ;;  %vm1530_vm3 = vcmp.ge.f32.partialorder %v2173_v49, 0.0  ;;  %v1562_v51 = vmul.f32 0.1, %v2173_v49 }
 0x15e   : > { %v1591_v52 = vsel %vm1527_vm0, %v2156_v44, %v1559_v47  ;;  %v1593_v59 = vsel %vm1529_vm1, %v2172_v45, %v1561_v23  ;;  %v2158_v37 = vadd.f32 %v1346_v20, %v3048_v31  ;;  %v2174_v60 = vadd.f32 %v1492_v50, %v3051_v53  ;;  %v1348_v61 = vpop.f32.mrb[3].mxu0  ;;  %v1494_v62 = vpop.f32.mrb[3].mxu1 }
 0x15f   : > { %v1592_v11 = vsel %vm1528_vm2, %v2157_v1, %v1560_v54  ;;  %v1594_v63 = vsel %vm1530_vm3, %v2173_v49, %v1562_v51  ;;  %v1787_v0 = vmul.f32 %v1591_v52, %v1591_v52  ;;  %v1789_v2 = vmul.f32 %v1593_v59, %v1593_v59 }
 0x160   : > { %v2140_v55 = vpack.c.bf16 %v1592_v11, %v1591_v52  ;;  %v2141_v3 = vpack.c.bf16 %v1594_v63, %v1593_v59  ;;  %vm1531_vm4 = vcmp.ge.f32.partialorder %v2158_v37, 0.0  ;;  %v1563_v4 = vmul.f32 0.1, %v2158_v37 }
 0x161   : > { %vm1533_vm5 = vcmp.ge.f32.partialorder %v2174_v60, 0.0  ;;  %v1565_v18 = vmul.f32 0.1, %v2174_v60  ;;  %v1788_v5 = vmul.f32 %v1592_v11, %v1592_v11  ;;  %v1790_v6 = vmul.f32 %v1594_v63, %v1594_v63  ;;  %v1352_v9 = vpop.f32.mrb[4].mxu0  ;;  %v1498_v12 = vpop.f32.mrb[4].mxu1 }
 0x162   : > { %1719 = vst [vmem:[%s3070_s7] sm:$0xff] %v2140_v55  ;;  %1720 = vst [vmem:[%s3070_s7 + $0x8] sm:$0xff] %v2141_v3  ;;  %v2159_v7 = vadd.f32 %v1348_v61, %v3054_v32  ;;  %v2175_v8 = vadd.f32 %v1494_v62, %v3057_v35  ;;  %v1595_v56 = vsel %vm1531_vm4, %v2158_v37, %v1563_v4  ;;  %v1354_v16 = vpop.f32.mrb[5].mxu0  ;;  %v1500_v17 = vpop.f32.mrb[5].mxu1 }
 0x163   : > { %v1597_v57 = vsel %vm1533_vm5, %v2174_v60, %v1565_v18  ;;  %v2160_v13 = vadd.f32 %v1352_v9, %v3048_v31  ;;  %v2176_v14 = vadd.f32 %v1498_v12, %v3051_v53  ;;  %v1735_v19 = vadd.f32 %v1595_v56, %v1591_v52  ;;  %v1356_v26 = vpop.f32.mrb[6].mxu0  ;;  %v1502_v27 = vpop.f32.mrb[6].mxu1 }
 0x164   : > { %v1791_v21 = vmul.f32 %v1595_v56, %v1595_v56  ;;  %v1761_v22 = vadd.f32 %v1597_v57, %v1593_v59  ;;  %v1793_v24 = vmul.f32 %v1597_v57, %v1597_v57  ;;  %vm1532_vm6 = vcmp.ge.f32.partialorder %v2159_v7, 0.0  ;;  %v1358_v33 = vpop.f32.mrb[7].mxu0  ;;  %v3078_v34 = vpop.f32.mrb[7].mxu1 }
 0x165   : > { %v1564_v28 = vmul.f32 0.1, %v2159_v7  ;;  %vm1534_vm7 = vcmp.ge.f32.partialorder %v2175_v8, 0.0  ;;  %v1566_v29 = vmul.f32 0.1, %v2175_v8  ;;  %vm1535_vm8 = vcmp.ge.f32.partialorder %v2160_v13, 0.0 }
 0x166   : > { %v1819_v30 = vadd.f32 %v1791_v21, %v1787_v0  ;;  %v1845_v10 = vadd.f32 %v1793_v24, %v1789_v2  ;;  %v1567_v15 = vmul.f32 0.1, %v2160_v13  ;;  %vm1537_vm9 = vcmp.ge.f32.partialorder %v2176_v14, 0.0 }
 0x167   : > { %v1596_v36 = vsel %vm1532_vm6, %v2159_v7, %v1564_v28  ;;  %v1598_v38 = vsel %vm1534_vm7, %v2175_v8, %v1566_v29  ;;  %v1569_v25 = vmul.f32 0.1, %v2176_v14  ;;  %v2161_v59 = vadd.f32 %v1354_v16, %v3054_v32 }
 0x168   : > { %v2142_v39 = vpack.c.bf16 %v1596_v36, %v1595_v56  ;;  %v1748_v41 = vadd.f32 %v1596_v36, %v1592_v11  ;;  %v1792_v46 = vmul.f32 %v1596_v36, %v1596_v36  ;;  %v2143_v42 = vpack.c.bf16 %v1598_v38, %v1597_v57 }
 0x169   : > { %v1774_v43 = vadd.f32 %v1598_v38, %v1594_v63  ;;  %v1794_v44 = vmul.f32 %v1598_v38, %v1598_v38  ;;  %v1599_v45 = vsel %vm1535_vm8, %v2160_v13, %v1567_v15  ;;  %v1601_v58 = vsel %vm1537_vm9, %v2176_v14, %v1569_v25  ;;  %v3080_v48 = vpop.f32.mrb[8].mxu0  ;;  %v3082_v1 = vpop.f32.mrb[8].mxu1 }
 0x16a   : > { %1721 = vst [vmem:[%s3070_s7 + $0x10] sm:$0xff] %v2142_v39  ;;  %v1832_v49 = vadd.f32 %v1792_v46, %v1788_v5  ;;  %1722 = vst [vmem:[%s3070_s7 + $0x18] sm:$0xff] %v2143_v42  ;;  %v1736_v20 = vadd.f32 %v1735_v19, %v1599_v45  ;;  %v1795_v50 = vmul.f32 %v1599_v45, %v1599_v45  ;;  %v1364_v23 = vpop.f32.mrb[9].mxu0  ;;  %v1510_v54 = vpop.f32.mrb[9].mxu1  ;;  %vm1536_vm10 = vcmp.ge.f32.partialorder %v2161_v59, 0.0 }
 0x16b   : > { %v1762_v47 = vadd.f32 %v1761_v22, %v1601_v58  ;;  %v1858_v51 = vadd.f32 %v1794_v44, %v1790_v6  ;;  %v1797_v52 = vmul.f32 %v1601_v58, %v1601_v58  ;;  %v2177_v37 = vadd.f32 %v1500_v17, %v3057_v35  ;;  %v1366_v60 = vpop.f32.mrb[10].mxu0  ;;  %v3088_v61 = vpop.f32.mrb[10].mxu1 }
 0x16c   : > { %v1820_v62 = vadd.f32 %v1819_v30, %v1795_v50  ;;  %v2162_v11 = vadd.f32 %v1356_v26, %v3048_v31  ;;  %v2178_v63 = vadd.f32 %v1502_v27, %v3051_v53  ;;  %v2163_v0 = vadd.f32 %v1358_v33, %v3054_v32  ;;  %v3093_v2 = vpop.f32.mrb[11].mxu0  ;;  %v3095_v55 = vpop.f32.mrb[11].mxu1 }
 0x16d   : > { %v1846_v3 = vadd.f32 %v1845_v10, %v1797_v52  ;;  %v1568_v4 = vmul.f32 0.1, %v2161_v59  ;;  %vm1538_vm11 = vcmp.ge.f32.partialorder %v2177_v37, 0.0  ;;  %v1570_v18 = vmul.f32 0.1, %v2177_v37 }
 0x16e   : > { %vm1539_vm12 = vcmp.ge.f32.partialorder %v2162_v11, 0.0  ;;  %v1571_v5 = vmul.f32 0.1, %v2162_v11  ;;  %vm1541_vm13 = vcmp.ge.f32.partialorder %v2178_v63, 0.0  ;;  %v1573_v7 = vmul.f32 0.1, %v2178_v63 }
 0x16f   : > { %v1600_v6 = vsel %vm1536_vm10, %v2161_v59, %v1568_v4  ;;  %vm1540_vm14 = vcmp.ge.f32.partialorder %v2163_v0, 0.0  ;;  %v1572_v8 = vmul.f32 0.1, %v2163_v0  ;;  %v1602_v57 = vsel %vm1538_vm11, %v2177_v37, %v1570_v18 }
 0x170   : > { %v2144_v9 = vpack.c.bf16 %v1600_v6, %v1599_v45  ;;  %v1749_v12 = vadd.f32 %v1748_v41, %v1600_v6  ;;  %v1796_v56 = vmul.f32 %v1600_v6, %v1600_v6  ;;  %v2145_v13 = vpack.c.bf16 %v1602_v57, %v1601_v58 }
 0x171   : > { %v1775_v14 = vadd.f32 %v1774_v43, %v1602_v57  ;;  %v1798_v16 = vmul.f32 %v1602_v57, %v1602_v57  ;;  %v1603_v17 = vsel %vm1539_vm12, %v2162_v11, %v1571_v5  ;;  %v3097_v19 = vpop.f32.mrb[12].mxu0  ;;  %v3099_v21 = vpop.f32.mrb[12].mxu1  ;;  %v1605_v27 = vsel %vm1541_vm13, %v2178_v63, %v1573_v7 }
 0x172   : > { %1723 = vst [vmem:[%s3070_s7 + $0x20] sm:$0xff] %v2144_v9  ;;  %v1833_v22 = vadd.f32 %v1832_v49, %v1796_v56  ;;  %v1737_v24 = vadd.f32 %v1736_v20, %v1603_v17  ;;  %v1799_v26 = vmul.f32 %v1603_v17, %v1603_v17  ;;  %v3103_v28 = vpop.f32.mrb[13].mxu0  ;;  %v3105_v29 = vpop.f32.mrb[13].mxu1  ;;  %1724 = vst [vmem:[%s3070_s7 + $0x28] sm:$0xff] %v2145_v13 }
 0x173   : > { %v1859_v30 = vadd.f32 %v1858_v51, %v1798_v16  ;;  %v1763_v10 = vadd.f32 %v1762_v47, %v1605_v27  ;;  %v1801_v15 = vmul.f32 %v1605_v27, %v1605_v27  ;;  %v1604_v33 = vsel %vm1540_vm14, %v2163_v0, %v1572_v8  ;;  %v3109_v36 = vpop.f32.mrb[14].mxu0  ;;  %v3111_v38 = vpop.f32.mrb[14].mxu1 }
 0x174   : > { %v1821_v25 = vadd.f32 %v1820_v62, %v1799_v26  ;;  %v2146_v39 = vpack.c.bf16 %v1604_v33, %v1603_v17  ;;  %v1750_v41 = vadd.f32 %v1749_v12, %v1604_v33  ;;  %v1800_v46 = vmul.f32 %v1604_v33, %v1604_v33  ;;  %v3113_v42 = vpop.f32.mrb[15].mxu0  ;;  %v3115_v43 = vpop.f32.mrb[15].mxu1 }
 0x175   : > { %v1847_v44 = vadd.f32 %v1846_v3, %v1801_v15  ;;  %v2179_v45 = vadd.f32 %v3078_v34, %v3057_v35  ;;  %v2164_v58 = vadd.f32 %v3080_v48, %v3048_v31  ;;  %v2180_v49 = vadd.f32 %v3082_v1, %v3051_v53 }
 0x176   : > { %1725 = vst [vmem:[%s3070_s7 + $0x30] sm:$0xff] %v2146_v39  ;;  %v1834_v20 = vadd.f32 %v1833_v22, %v1800_v46  ;;  %v2165_v50 = vadd.f32 %v1364_v23, %v3054_v32  ;;  %v2181_v47 = vadd.f32 %v1510_v54, %v3057_v35  ;;  %v2166_v51 = vadd.f32 %v1366_v60, %v3048_v31 }
 0x177   : > { %vm1542_vm15 = vcmp.ge.f32.partialorder %v2179_v45, 0.0  ;;  %v1574_v52 = vmul.f32 0.1, %v2179_v45  ;;  %vm1543_vm0 = vcmp.ge.f32.partialorder %v2164_v58, 0.0  ;;  %v1575_v59 = vmul.f32 0.1, %v2164_v58 }
 0x178   : > { %vm1545_vm1 = vcmp.ge.f32.partialorder %v2180_v49, 0.0  ;;  %v1577_v34 = vmul.f32 0.1, %v2180_v49  ;;  %vm1544_vm2 = vcmp.ge.f32.partialorder %v2165_v50, 0.0  ;;  %v1576_v48 = vmul.f32 0.1, %v2165_v50 }
 0x179   : > { %v1606_v37 = vsel %vm1542_vm15, %v2179_v45, %v1574_v52  ;;  %v1607_v62 = vsel %vm1543_vm0, %v2164_v58, %v1575_v59  ;;  %vm1546_vm3 = vcmp.ge.f32.partialorder %v2181_v47, 0.0  ;;  %v1578_v1 = vmul.f32 0.1, %v2181_v47 }
 0x17a   : > { %v2147_v11 = vpack.c.bf16 %v1606_v37, %v1605_v27  ;;  %v1776_v63 = vadd.f32 %v1775_v14, %v1606_v37  ;;  %v1802_v23 = vmul.f32 %v1606_v37, %v1606_v37  ;;  %v1738_v54 = vadd.f32 %v1737_v24, %v1607_v62 }
 0x17b   : > { %v1803_v0 = vmul.f32 %v1607_v62, %v1607_v62  ;;  %v1609_v60 = vsel %vm1545_vm1, %v2180_v49, %v1577_v34  ;;  %v1608_v3 = vsel %vm1544_vm2, %v2165_v50, %v1576_v48  ;;  %v1610_v4 = vsel %vm1546_vm3, %v2181_v47, %v1578_v1 }
 0x17c   : > { %1726 = vst [vmem:[%s3070_s7 + $0x38] sm:$0xff] %v2147_v11  ;;  %v1860_v18 = vadd.f32 %v1859_v30, %v1802_v23  ;;  %v1764_v5 = vadd.f32 %v1763_v10, %v1609_v60  ;;  %v1805_v6 = vmul.f32 %v1609_v60, %v1609_v60  ;;  %v2148_v7 = vpack.c.bf16 %v1608_v3, %v1607_v62 }
 0x17d   : > { %v1822_v8 = vadd.f32 %v1821_v25, %v1803_v0  ;;  %v1751_v9 = vadd.f32 %v1750_v41, %v1608_v3  ;;  %v1804_v12 = vmul.f32 %v1608_v3, %v1608_v3  ;;  %v2149_v56 = vpack.c.bf16 %v1610_v4, %v1609_v60 }
 0x17e   : > { %v1848_v57 = vadd.f32 %v1847_v44, %v1805_v6  ;;  %1727 = vst [vmem:[%s3070_s7 + $0x40] sm:$0xff] %v2148_v7  ;;  %v1777_v13 = vadd.f32 %v1776_v63, %v1610_v4  ;;  %v1806_v14 = vmul.f32 %v1610_v4, %v1610_v4  ;;  %vm1547_vm4 = vcmp.ge.f32.partialorder %v2166_v51, 0.0 }
 0x17f   : > { %v1835_v16 = vadd.f32 %v1834_v20, %v1804_v12  ;;  %1728 = vst [vmem:[%s3070_s7 + $0x48] sm:$0xff] %v2149_v56  ;;  %v1579_v17 = vmul.f32 0.1, %v2166_v51  ;;  %v2182_v22 = vadd.f32 %v3088_v61, %v3051_v53  ;;  %v2167_v24 = vadd.f32 %v3093_v2, %v3054_v32 }
 0x180   : > { %v1861_v26 = vadd.f32 %v1860_v18, %v1806_v14  ;;  %v2183_v27 = vadd.f32 %v3095_v55, %v3057_v35  ;;  %v2168_v30 = vadd.f32 %v3097_v19, %v3048_v31  ;;  %v2184_v10 = vadd.f32 %v3099_v21, %v3051_v53 }
 0x181   : > { %v1611_v15 = vsel %vm1547_vm4, %v2166_v51, %v1579_v17  ;;  %vm1549_vm5 = vcmp.ge.f32.partialorder %v2182_v22, 0.0  ;;  %v1581_v33 = vmul.f32 0.1, %v2182_v22  ;;  %vm1548_vm6 = vcmp.ge.f32.partialorder %v2167_v24, 0.0 }
 0x182   : > { %v1739_v25 = vadd.f32 %v1738_v54, %v1611_v15  ;;  %v1807_v39 = vmul.f32 %v1611_v15, %v1611_v15  ;;  %v1580_v61 = vmul.f32 0.1, %v2167_v24  ;;  %vm1550_vm7 = vcmp.ge.f32.partialorder %v2183_v27, 0.0 }
 0x183   : > { %v1613_v41 = vsel %vm1549_vm5, %v2182_v22, %v1581_v33  ;;  %v1582_v2 = vmul.f32 0.1, %v2183_v27  ;;  %vm1551_vm8 = vcmp.ge.f32.partialorder %v2168_v30, 0.0  ;;  %v1583_v46 = vmul.f32 0.1, %v2168_v30 }
 0x184   : > { %v1823_v55 = vadd.f32 %v1822_v8, %v1807_v39  ;;  %v1765_v44 = vadd.f32 %v1764_v5, %v1613_v41  ;;  %v1809_v19 = vmul.f32 %v1613_v41, %v1613_v41  ;;  %v1612_v45 = vsel %vm1548_vm6, %v2167_v24, %v1580_v61 }
 0x185   : > { %v2150_v58 = vpack.c.bf16 %v1612_v45, %v1611_v15  ;;  %v1752_v21 = vadd.f32 %v1751_v9, %v1612_v45  ;;  %v1808_v49 = vmul.f32 %v1612_v45, %v1612_v45  ;;  %v1614_v20 = vsel %vm1550_vm7, %v2183_v27, %v1582_v2 }
 0x186   : > { %v1849_v50 = vadd.f32 %v1848_v57, %v1809_v19  ;;  %v2151_v47 = vpack.c.bf16 %v1614_v20, %v1613_v41  ;;  %v1778_v51 = vadd.f32 %v1777_v13, %v1614_v20  ;;  %v1810_v52 = vmul.f32 %v1614_v20, %v1614_v20 }
 0x187   : > { %1729 = vst [vmem:[%s3070_s7 + $0x50] sm:$0xff] %v2150_v58  ;;  %v1836_v59 = vadd.f32 %v1835_v16, %v1808_v49  ;;  %v1615_v34 = vsel %vm1551_vm8, %v2168_v30, %v1583_v46  ;;  %vm1553_vm9 = vcmp.ge.f32.partialorder %v2184_v10, 0.0  ;;  %v1585_v48 = vmul.f32 0.1, %v2184_v10 }
 0x188   : > { %1730 = vst [vmem:[%s3070_s7 + $0x58] sm:$0xff] %v2151_v47  ;;  %v1862_v37 = vadd.f32 %v1861_v26, %v1810_v52  ;;  %v1740_v62 = vadd.f32 %v1739_v25, %v1615_v34  ;;  %v1811_v1 = vmul.f32 %v1615_v34, %v1615_v34  ;;  %v2169_v11 = vadd.f32 %v3103_v28, %v3054_v32 }
 0x189   : > { %v1617_v63 = vsel %vm1553_vm9, %v2184_v10, %v1585_v48  ;;  %v2185_v23 = vadd.f32 %v3105_v29, %v3057_v35  ;;  %v2170_v54 = vadd.f32 %v3109_v36, %v3048_v31  ;;  %v2186_v0 = vadd.f32 %v3111_v38, %v3051_v53 }
 0x18a   : > { %v1824_v60 = vadd.f32 %v1823_v55, %v1811_v1  ;;  %v1766_v3 = vadd.f32 %v1765_v44, %v1617_v63  ;;  %v1813_v4 = vmul.f32 %v1617_v63, %v1617_v63  ;;  %vm1552_vm10 = vcmp.ge.f32.partialorder %v2169_v11, 0.0 }
 0x18b   : > { %v1584_v18 = vmul.f32 0.1, %v2169_v11  ;;  %vm1554_vm11 = vcmp.ge.f32.partialorder %v2185_v23, 0.0  ;;  %v1586_v5 = vmul.f32 0.1, %v2185_v23  ;;  %vm1555_vm12 = vcmp.ge.f32.partialorder %v2170_v54, 0.0 }
 0x18c   : > { %v1850_v6 = vadd.f32 %v1849_v50, %v1813_v4  ;;  %v1587_v28 = vmul.f32 0.1, %v2170_v54  ;;  %vm1557_vm13 = vcmp.ge.f32.partialorder %v2186_v0, 0.0  ;;  %v1589_v29 = vmul.f32 0.1, %v2186_v0 }
 0x18d   : > { %v1616_v7 = vsel %vm1552_vm10, %v2169_v11, %v1584_v18  ;;  %v1618_v8 = vsel %vm1554_vm11, %v2185_v23, %v1586_v5  ;;  %v2171_v31 = vadd.f32 %v3113_v42, %v3054_v32  ;;  %v2187_v53 = vadd.f32 %v3115_v43, %v3057_v35 }
 0x18e   : > { %v2152_v36 = vpack.c.bf16 %v1616_v7, %v1615_v34  ;;  %v1753_v38 = vadd.f32 %v1752_v21, %v1616_v7  ;;  %v1812_v9 = vmul.f32 %v1616_v7, %v1616_v7  ;;  %v2153_v12 = vpack.c.bf16 %v1618_v8, %v1617_v63 }
 0x18f   : > { %v1779_v56 = vadd.f32 %v1778_v51, %v1618_v8  ;;  %v1814_v57 = vmul.f32 %v1618_v8, %v1618_v8  ;;  %v1619_v13 = vsel %vm1555_vm12, %v2170_v54, %v1587_v28  ;;  %v1621_v14 = vsel %vm1557_vm13, %v2186_v0, %v1589_v29 }
 0x190   : > { %1731 = vst [vmem:[%s3070_s7 + $0x60] sm:$0xff] %v2152_v36  ;;  %v1837_v16 = vadd.f32 %v1836_v59, %v1812_v9  ;;  %1732 = vst [vmem:[%s3070_s7 + $0x68] sm:$0xff] %v2153_v12  ;;  %v1741_v17 = vadd.f32 %v1740_v62, %v1619_v13  ;;  %v1815_v22 = vmul.f32 %v1619_v13, %v1619_v13  ;;  %vm1556_vm14 = vcmp.ge.f32.partialorder %v2171_v31, 0.0 }
 0x191   : > { %v1767_v24 = vadd.f32 %v1766_v3, %v1621_v14  ;;  %v1863_v26 = vadd.f32 %v1862_v37, %v1814_v57  ;;  %v1817_v32 = vmul.f32 %v1621_v14, %v1621_v14  ;;  %v1588_v42 = vmul.f32 0.1, %v2171_v31 }
 0x192   : > { %v1742_v35 = vrot.slane %v1741_v17, 4  ;;  %v1825_v43 = vadd.f32 %v1824_v60, %v1815_v22  ;;  %vm1558_vm15 = vcmp.ge.f32.partialorder %v2187_v53, 0.0  ;;  %v1590_v15 = vmul.f32 0.1, %v2187_v53 }
 0x193   : > { %v1768_v27 = vrot.slane %v1767_v24, 4  ;;  %v1851_v30 = vadd.f32 %v1850_v6, %v1817_v32  ;;  %v1620_v10 = vsel %vm1556_vm14, %v2171_v31, %v1588_v42  ;;  %vm1874_vm0 = vcmp.eq.s32.totalorder %v2593_v40, 1 }
 0x194   : > { %v1743_v33 = vadd.f32 %v1742_v35, %v1741_v17  ;;  %v1826_v25 = vrot.slane %v1825_v43, 4  ;;  %v2154_v61 = vpack.c.bf16 %v1620_v10, %v1619_v13  ;;  %v1754_v2 = vadd.f32 %v1753_v38, %v1620_v10 }
 0x195   : > { %v1769_v39 = vadd.f32 %v1768_v27, %v1767_v24  ;;  %v1852_v41 = vrot.slane %v1851_v30, 4  ;;  %v1816_v46 = vmul.f32 %v1620_v10, %v1620_v10  ;;  %v1622_v55 = vsel %vm1558_vm15, %v2187_v53, %v1590_v15 }
 0x196   : > { %v1744_v44 = vrot.slane %v1743_v33, 2  ;;  %v1827_v19 = vadd.f32 %v1826_v25, %v1825_v43  ;;  %1733 = vst [vmem:[%s3070_s7 + $0x70] sm:$0xff] %v2154_v61  ;;  %v2155_v58 = vpack.c.bf16 %v1622_v55, %v1621_v14  ;;  %v1755_v49 = vrot.slane %v1754_v2, 4 }
 0x197   : > { %v1770_v45 = vrot.slane %v1769_v39, 2  ;;  %v1853_v21 = vadd.f32 %v1852_v41, %v1851_v30  ;;  %v1838_v20 = vadd.f32 %v1837_v16, %v1816_v46  ;;  %v1780_v50 = vadd.f32 %v1779_v56, %v1622_v55 }
 0x198   : > { %v1745_v47 = vadd.f32 %v1744_v44, %v1743_v33  ;;  %v1828_v51 = vrot.slane %v1827_v19, 2  ;;  %1734 = vst [vmem:[%s3070_s7 + $0x78] sm:$0xff] %v2155_v58  ;;  %v1818_v59 = vmul.f32 %v1622_v55, %v1622_v55  ;;  %v1756_v48 = vadd.f32 %v1755_v49, %v1754_v2 }
 0x199   : > { %v1771_v52 = vadd.f32 %v1770_v45, %v1769_v39  ;;  %v1854_v34 = vrot.slane %v1853_v21, 2  ;;  %v1839_v37 = vrot.slane %v1838_v20, 4  ;;  %v1781_v62 = vrot.slane %v1780_v50, 4 }
 0x19a   : > { %v1746_v1 = vrot.slane %v1745_v47, 1  ;;  %v1829_v11 = vadd.f32 %v1828_v51, %v1827_v19  ;;  %v1864_v63 = vadd.f32 %v1863_v26, %v1818_v59  ;;  %v1757_v54 = vrot.slane %v1756_v48, 2 }
 0x19b   : > { %v1855_v23 = vadd.f32 %v1854_v34, %v1853_v21  ;;  %v1840_v0 = vadd.f32 %v1839_v37, %v1838_v20  ;;  %v1782_v60 = vadd.f32 %v1781_v62, %v1780_v50  ;;  %v1772_v4 = vrot.slane %v1771_v52, 1 }
 0x19c   : > { %v1830_v3 = vrot.slane %v1829_v11, 1  ;;  %v1865_v18 = vrot.slane %v1864_v63, 4  ;;  %v1758_v6 = vadd.f32 %v1757_v54, %v1756_v48  ;;  %vm1873_vm1 = vcmp.eq.s32.totalorder %v2593_v40, 0 }
 0x19d   : > { %v1856_v5 = vrot.slane %v1855_v23, 1  ;;  %v1841_v28 = vrot.slane %v1840_v0, 2  ;;  %v1783_v29 = vrot.slane %v1782_v60, 2  ;;  %v1747_v31 = vadd.f32 %v1746_v1, %v1745_v47 }
 0x19e   : > { %v1831_v7 = vadd.f32 %v1830_v3, %v1829_v11  ;;  %v1866_v8 = vadd.f32 %v1865_v18, %v1864_v63  ;;  %v1773_v12 = vadd.f32 %v1772_v4, %v1771_v52  ;;  %v1759_v56 = vrot.slane %v1758_v6, 1 }
 0x19f   : > { %v1857_v53 = vadd.f32 %v1856_v5, %v1855_v23  ;;  %v1842_v36 = vadd.f32 %v1841_v28, %v1840_v0  ;;  %v1784_v38 = vadd.f32 %v1783_v29, %v1782_v60 }
 0x1a0   : > { %v1875_v9 = vsel %vm1874_vm0, %v1831_v7, 0.0  ;;  %v1867_v57 = vrot.slane %v1866_v8, 2  ;;  %v1760_v32 = vadd.f32 %v1759_v56, %v1758_v6 }
 0x1a1   : > { %v1879_v13 = vsel %vm1873_vm1, %v1747_v31, %v1875_v9  ;;  %v1877_v14 = vsel %vm1874_vm0, %v1857_v53, 0.0  ;;  %v1843_v16 = vrot.slane %v1842_v36, 1  ;;  %v1785_v26 = vrot.slane %v1784_v38, 1 }
 0x1a2   : > { %1883 = vst [vmem:[%s272_s9] sm:$0xff] %v1879_v13  ;;  %v1881_v17 = vsel %vm1873_vm1, %v1773_v12, %v1877_v14  ;;  %v1868_v22 = vadd.f32 %v1867_v57, %v1866_v8 }
 0x1a3   : > { %1885 = vst [vmem:[%s272_s9 + $0x10] sm:$0xff] %v1881_v17  ;;  %v1844_v24 = vadd.f32 %v1843_v16, %v1842_v36  ;;  %v1786_v30 = vadd.f32 %v1785_v26, %v1784_v38 }
 0x1a4   : > { %v1869_v42 = vrot.slane %v1868_v22, 1 }
 0x1a5   : > { %v1876_v35 = vsel %vm1874_vm0, %v1844_v24, 0.0 }
 0x1a6   : > { %v1880_v43 = vsel %vm1873_vm1, %v1760_v32, %v1876_v35  ;;  %v1870_v27 = vadd.f32 %v1869_v42, %v1868_v22 }
 0x1a7   : > { %1884 = vst [vmem:[%s272_s9 + $0x8] sm:$0xff] %v1880_v43 }
 0x1a8   : > { %v1878_v10 = vsel %vm1874_vm0, %v1870_v27, 0.0 }
 0x1a9   : > { %v1882_v15 = vsel %vm1873_vm1, %v1786_v30, %v1878_v10 }
 0x1aa   : > { %1886 = vst [vmem:[%s272_s9 + $0x18] sm:$0xff] %v1882_v15 }
 0x1ab PF: > { %s17_s21 = sadd.s32 1, %s2426_s21  }
 0x1ac   : > { %p14_p5 = scmp.ge.s32.totalorder %s17_s21, 4  }
 0x1ae   :  { %16 = sbr.rel (!%p14_p5) target bundleno = 1 (0x1), region = 82 }

// kernel: _lambda_.40
= control target key start
LH: loop header
LB: loop body
LE: loop exit
PB: predicated region body
PF: predicated region fallthrough
CT: control target
= control target key end

     0   :  { %s78_s1 = inlined_call_operand.vmem [shape: f32[8,128], index: 1, kind: input, shape index: {}]   ;;  %s79_s4 = inlined_call_operand.vmem [shape: f32[8,128], index: 4, kind: output, shape index: {1}]   ;;  %s80_s0 = inlined_call_operand.vmem [shape: f32[8,128], index: 0, kind: input, shape index: {}]   ;;  %s81_s2 = inlined_call_operand.vmem [shape: f32[8,128], index: 2, kind: input, shape index: {}]   ;;  %s82_s3 = inlined_call_operand.vmem [shape: f32[8,128], index: 3, kind: output, shape index: {0}]  }
   0x1   :  { %v16_v0 = vld [vmem:[%s78_s1] sm:$0xff] }
   0x2   :  { %34 = vtanh.f32 %v16_v0  ;;  %v19_v3 = vld [vmem:[%s80_s0] sm:$0xff] }
   0x3   :  { %v20_v4 = vld [vmem:[%s81_s2] sm:$0xff] }
   0x4   :  { %v21_v5 = vadd.f32 %v20_v4, %v19_v3 }
   0xc   :  { %v35_v1 = vpop.eup %34 }
   0xd   :  { %18 = vst [vmem:[%s79_s4] sm:$0xff] %v35_v1  ;;  %v22_v2 = vmul.f32 1.442695, %v35_v1 }
   0xf   :  { %36 = vpow2.f32 %v22_v2 }
  0x19   :  { %v37_v6 = vpop.eup %36 }
  0x1a   :  { %v24_v7 = vmul.f32 %v37_v6, %v21_v5 }
  0x1c   :  { %25 = vst [vmem:[%s82_s3] sm:$0xff] %v24_v7 }

// kernel: _lambda_.42
= control target key start
LH: loop header
LB: loop body
LE: loop exit
PB: predicated region body
PF: predicated region fallthrough
CT: control target
= control target key end

     0   :  { %s511_s18 = smov 0   ;;  %s551_s0 = inlined_call_operand.vmem [shape: f32[128,16], index: 0, kind: input, shape index: {}]   ;;  %s552_s1 = inlined_call_operand.vmem [shape: bf16[16,128], index: 1, kind: input, shape index: {}]   ;;  %s553_s2 = inlined_call_operand.vmem [shape: f32[1,16], index: 2, kind: input, shape index: {}]   ;;  %s554_s3 = inlined_call_operand.vmem [shape: f32[1,16], index: 3, kind: input, shape index: {}]   ;;  %s555_s4 = inlined_call_operand.vmem [shape: f32[1,128], index: 4, kind: input, shape index: {}]   ;;  %s556_s5 = inlined_call_operand.vmem [shape: f32[128,128], index: 5, kind: output, shape index: {}]  }
   0x1 LB: > { %s428_s19 = sadd.s32 4294967295, %s479_s18   ;;  %p432_p0 = scmp.ge.s32.totalorder %s479_s18, 1  ;;  %s479_s18 = sphi %s511_s18, %s15_s18  }
   0x2   : > { %p188_p1 = scmp.lt.s32.totalorder %s479_s18, 3 }
   0x4   : > { %p189_p2 = pnand %p432_p0, %p188_p1 }
   0x5   : > { %v472_v0 = vld [vmem:[%s552_s1] sm:$0xff] (!%p189_p2)   ;;  %s433_s22 = sshll.u32 (!%p189_p2), %s428_s19, 3  ;;  %vm286_vm0 = vcmask (!%p189_p2), 130048  }
   0x6   : > { %192 = sbr.rel (%p189_p2) target bundleno = 244 (0xf4), region = 40  ;;  %p217_p3 = scmp.lt.s32.totalorder (!%p189_p2), %s433_s22, 15  ;;  %452 = vmatprep.subr.bf16.mxu0 (!%p189_p2), %v472_v0  ;;  %462 = vmatprep.subr.bf16.mxu1 (!%p189_p2), %v472_v0  ;;  %v437_v1 = vld [vmem:[%s553_s2] ss:$0 sm:$0xff] (!%p189_p2) }
   0x7   : > { %453 = vmatpush3.bf16.msra.mxu0 (!%p189_p2), %v472_v0  ;;  %463 = vmatpush3.bf16.msra.mxu1 (!%p189_p2), %v472_v0  ;;  %v438_v2 = vld [vmem:[%s554_s3] ss:$0 sm:$0xff] (!%p189_p2) }
   0x8   : > { %v439_v31 = vld [vmem:[%s555_s4] ss:$0 sm:$0xff] (!%p189_p2) }
   0xd   : > { %s558_s22 = smov (!%p217_p3, %s433_s22), 15 }
   0xe   : > { %s434_s23 = sshll.u32 %s558_s22, 3 }
   0xf   : > { %s220_s28 = scalar_lea.vmem %s551_s0, %s434_s23  ;;  %s226_s10 = scalar_lea.vmem %s556_s5, %s434_s23 }
  0x10   : > { %v229_v3 = vld [vmem:[%s220_s28] sm:$0xff]  ;;  %v230_v4 = vld [vmem:[%s220_s28 + $0x8] sm:$0xff]  ;;  %v231_v10 = vld [vmem:[%s220_s28 + $0x10] sm:$0xff] }
  0x11   : > { %v233_v5 = vld [vmem:[%s220_s28 + $0x20] sm:$0xff]  ;;  %v244_v6 = vadd.f32 %v437_v1, %v229_v3  ;;  %v245_v7 = vadd.f32 %v437_v1, %v230_v4  ;;  %v234_v8 = vld [vmem:[%s220_s28 + $0x28] sm:$0xff]  ;;  %v232_v11 = vld [vmem:[%s220_s28 + $0x18] sm:$0xff]  ;;  %v246_v13 = vadd.f32 %v437_v1, %v231_v10 }
  0x12   : > { %v248_v9 = vadd.f32 %v437_v1, %v233_v5  ;;  %v249_v12 = vadd.f32 %v437_v1, %v234_v8  ;;  %v247_v14 = vadd.f32 %v437_v1, %v232_v11  ;;  %v235_v15 = vld [vmem:[%s220_s28 + $0x30] sm:$0xff]  ;;  %v236_v16 = vld [vmem:[%s220_s28 + $0x38] sm:$0xff] }
  0x13   : > { %v259_v17 = vmul.f32 %v438_v2, %v244_v6  ;;  %v260_v18 = vmul.f32 %v438_v2, %v245_v7  ;;  %v250_v20 = vadd.f32 %v437_v1, %v235_v15  ;;  %v261_v22 = vmul.f32 %v438_v2, %v246_v13 }
  0x14   : > { %v263_v19 = vmul.f32 %v438_v2, %v248_v9  ;;  %v264_v21 = vmul.f32 %v438_v2, %v249_v12  ;;  %v262_v23 = vmul.f32 %v438_v2, %v247_v14  ;;  %v251_v24 = vadd.f32 %v437_v1, %v236_v16 }
  0x15   : > { %v267_v25 = vpack.c.bf16 %v260_v18, %v259_v17  ;;  %v265_v26 = vmul.f32 %v438_v2, %v250_v20 }
  0x16   : > { %v269_v27 = vpack.c.bf16 %v264_v21, %v263_v19  ;;  %v268_v28 = vpack.c.bf16 %v262_v23, %v261_v22  ;;  %v266_v29 = vmul.f32 %v438_v2, %v251_v24 }
  0x17   : > { %454 = vmatprep.mubr.msk.bf16.mxu0 %vm286_vm0, %v267_v25 }
  0x18   : > { %458 = vmatprep.mubr.msk.bf16.mxu1 %vm286_vm0, %v269_v27  ;;  %455 = vmatmul.mubr.msk.bf16.vlgmr.msra.gmra.mrb[0].mxu0 %vm286_vm0, %v268_v28  ;;  %v270_v30 = vpack.c.bf16 %v266_v29, %v265_v26 }
  0x1a   : > { %459 = vmatmul.mubr.msk.bf16.vlgmr.msra.gmra.mrb[0].mxu1 %vm286_vm0, %v270_v30 }
  0xeb   : > { %v456_v32 = vpop.f32.mrb[0].mxu0 }
  0xec   : > { %v342_v33 = vadd.f32 %v456_v32, %v439_v31  ;;  %v333_v34 = vpop.f32.mrb[1].mxu0 }
  0xed   : > { %v460_v35 = vpop.f32.mrb[0].mxu1  ;;  %v334_v36 = vadd.f32 %v439_v31, %v333_v34  ;;  %v457_v37 = vpop.f32.mrb[2].mxu0 }
  0xee   : > { %366 = vst [vmem:[%s226_s10 + $0x10] sm:$0xff] %v342_v33  ;;  %v358_v38 = vadd.f32 %v460_v35, %v439_v31  ;;  %v349_v39 = vpop.f32.mrb[1].mxu1  ;;  %v345_v40 = vadd.f32 %v457_v37, %v439_v31  ;;  %v336_v41 = vpop.f32.mrb[3].mxu0 }
  0xef   : > { %364 = vst [vmem:[%s226_s10] sm:$0xff] %v334_v36  ;;  %v350_v42 = vadd.f32 %v439_v31, %v349_v39  ;;  %v461_v43 = vpop.f32.mrb[2].mxu1  ;;  %v337_v44 = vadd.f32 %v439_v31, %v336_v41 }
  0xf0   : > { %370 = vst [vmem:[%s226_s10 + $0x30] sm:$0xff] %v358_v38  ;;  %367 = vst [vmem:[%s226_s10 + $0x18] sm:$0xff] %v345_v40  ;;  %v361_v45 = vadd.f32 %v461_v43, %v439_v31  ;;  %v352_v46 = vpop.f32.mrb[3].mxu1 }
  0xf1   : > { %368 = vst [vmem:[%s226_s10 + $0x20] sm:$0xff] %v350_v42  ;;  %365 = vst [vmem:[%s226_s10 + $0x8] sm:$0xff] %v337_v44  ;;  %v353_v47 = vadd.f32 %v439_v31, %v352_v46 }
  0xf2   : > { %371 = vst [vmem:[%s226_s10 + $0x38] sm:$0xff] %v361_v45 }
  0xf3   : > { %369 = vst [vmem:[%s226_s10 + $0x28] sm:$0xff] %v353_v47 }
  0xf4 PF: > { %s15_s18 = sadd.s32 1, %s479_s18  }
  0xf5   : > { %p12_p4 = scmp.ge.s32.totalorder %s15_s18, 4  }
  0xf7   :  { %14 = sbr.rel (!%p12_p4) target bundleno = 1 (0x1), region = 70 }

// kernel: _lambda_.48
= control target key start
LH: loop header
LB: loop body
LE: loop exit
PB: predicated region body
PF: predicated region fallthrough
CT: control target
= control target key end

     0   :  { %s579_s15 = smov 0   ;;  %s636_s0 = inlined_call_operand.vmem [shape: bf16[128,128], index: 0, kind: input, shape index: {}]   ;;  %s637_s1 = inlined_call_operand.vmem [shape: bf16[128,128], index: 1, kind: input, shape index: {}]   ;;  %s638_s2 = inlined_call_operand.vmem [shape: f32[1,128], index: 2, kind: input, shape index: {}]   ;;  %s639_s3 = inlined_call_operand.vmem [shape: f32[1,128], index: 3, kind: input, shape index: {}]   ;;  %s640_s4 = inlined_call_operand.vmem [shape: f32[128,128], index: 4, kind: output, shape index: {}]  }
   0x1 LB: > { %s449_s16 = sadd.s32 4294967295, %s552_s15   ;;  %p453_p0 = scmp.ge.s32.totalorder %s552_s15, 1  ;;  %s552_s15 = sphi %s579_s15, %s14_s15  }
   0x2   : > { %p163_p1 = scmp.lt.s32.totalorder %s552_s15, 3 }
   0x4   : > { %p164_p2 = pnand %p453_p0, %p163_p1 }
   0x5   : > { %v534_v0 = vld [vmem:[%s637_s1] sm:$0xff] (!%p164_p2)   ;;  %s454_s19 = sshll.u32 (!%p164_p2), %s449_s16, 3  ;;  %v535_v1 = vld [vmem:[%s637_s1 + $0x8] sm:$0xff] (!%p164_p2)   ;;  %v536_v2 = vld [vmem:[%s637_s1 + $0x10] sm:$0xff] (!%p164_p2)  }
   0x6   : > { %167 = sbr.rel (%p164_p2) target bundleno = 258 (0x102), region = 36  ;;  %p190_p3 = scmp.lt.s32.totalorder (!%p164_p2), %s454_s19, 15  ;;  %486 = vmatprep.subr.bf16.mxu0 (!%p164_p2), %v534_v0  ;;  %510 = vmatprep.subr.bf16.mxu1 (!%p164_p2), %v534_v0  ;;  %v537_v3 = vld [vmem:[%s637_s1 + $0x18] sm:$0xff] (!%p164_p2)   ;;  %v538_v6 = vld [vmem:[%s637_s1 + $0x20] sm:$0xff] (!%p164_p2)   ;;  %v539_v7 = vld [vmem:[%s637_s1 + $0x28] sm:$0xff] (!%p164_p2)  }
   0x7   : > { %487 = vmatpush3.bf16.msra.mxu0 (!%p164_p2), %v534_v0  ;;  %518 = vmatpush3.bf16.msra.mxu1 (!%p164_p2), %v534_v0  ;;  %v540_v8 = vld [vmem:[%s637_s1 + $0x30] sm:$0xff] (!%p164_p2)   ;;  %v541_v9 = vld [vmem:[%s637_s1 + $0x38] sm:$0xff] (!%p164_p2)   ;;  %v458_v12 = vld [vmem:[%s638_s2] ss:$0 sm:$0xff] (!%p164_p2) }
   0x8   : > { %488 = vmatprep.subr.bf16.mxu0 (!%p164_p2), %v535_v1  ;;  %511 = vmatprep.subr.bf16.mxu1 (!%p164_p2), %v535_v1  ;;  %v471_v14 = vld [vmem:[%s639_s3] ss:$0 sm:$0xff] (!%p164_p2) }
   0xb   : > { %489 = vmatpush3.bf16.msra.mxu0 (!%p164_p2), %v535_v1  ;;  %519 = vmatpush3.bf16.msra.mxu1 (!%p164_p2), %v535_v1 }
   0xc   : > { %490 = vmatprep.subr.bf16.mxu0 (!%p164_p2), %v536_v2  ;;  %512 = vmatprep.subr.bf16.mxu1 (!%p164_p2), %v536_v2 }
   0xd   : > { %s642_s19 = smov (!%p190_p3, %s454_s19), 15 }
   0xe   : > { %s455_s24 = sshll.u32 %s642_s19, 2  ;;  %s457_s14 = sshll.u32 %s642_s19, 3 }
   0xf   : > { %s602_s27 = scalar_lea.vmem %s636_s0, %s455_s24  ;;  %491 = vmatpush3.bf16.msra.mxu0 %v536_v2  ;;  %520 = vmatpush3.bf16.msra.mxu1 %v536_v2  ;;  %s199_s21 = scalar_lea.vmem %s640_s4, %s457_s14 }
  0x10   : > { %v542_v4 = vld [vmem:[%s602_s27] sm:$0xff]   ;;  %v543_v5 = vld [vmem:[%s602_s27 + $0x10] sm:$0xff]   ;;  %492 = vmatprep.subr.bf16.mxu0 %v537_v3  ;;  %513 = vmatprep.subr.bf16.mxu1 %v537_v3  ;;  %v544_v10 = vld [vmem:[%s602_s27 + $0x8] sm:$0xff]  }
  0x11   : > { %502 = vmatprep.mubr.bf16.mxu0 %v542_v4  ;;  %506 = vmatprep.mubr.bf16.mxu1 %v543_v5  ;;  %v545_v11 = vld [vmem:[%s602_s27 + $0x18] sm:$0xff]  }
  0x13   : > { %493 = vmatpush3.bf16.msra.mxu0 %v537_v3  ;;  %521 = vmatpush3.bf16.msra.mxu1 %v537_v3 }
  0x14   : > { %494 = vmatprep.subr.bf16.mxu0 %v538_v6  ;;  %514 = vmatprep.subr.bf16.mxu1 %v538_v6 }
  0x17   : > { %495 = vmatpush3.bf16.msra.mxu0 %v538_v6  ;;  %522 = vmatpush3.bf16.msra.mxu1 %v538_v6 }
  0x18   : > { %496 = vmatprep.subr.bf16.mxu0 %v539_v7  ;;  %515 = vmatprep.subr.bf16.mxu1 %v539_v7 }
  0x1b   : > { %497 = vmatpush3.bf16.msra.mxu0 %v539_v7  ;;  %523 = vmatpush3.bf16.msra.mxu1 %v539_v7 }
  0x1c   : > { %498 = vmatprep.subr.bf16.mxu0 %v540_v8  ;;  %516 = vmatprep.subr.bf16.mxu1 %v540_v8 }
  0x1f   : > { %499 = vmatpush3.bf16.msra.mxu0 %v540_v8  ;;  %524 = vmatpush3.bf16.msra.mxu1 %v540_v8 }
  0x20   : > { %500 = vmatprep.subr.bf16.mxu0 %v541_v9  ;;  %517 = vmatprep.subr.bf16.mxu1 %v541_v9 }
  0x23   : > { %501 = vmatpush3.bf16.msra.mxu0 %v541_v9  ;;  %525 = vmatpush3.bf16.msra.mxu1 %v541_v9 }
  0x26   : > { %503 = vmatmul.mubr.bf16.vlgmr.msra.gmra.mrb[0].mxu0 %v544_v10  ;;  %507 = vmatmul.mubr.bf16.vlgmr.msra.gmra.mrb[0].mxu1 %v545_v11 }
  0xf9   : > { %v504_v13 = vpop.f32.mrb[0].mxu0  ;;  %v508_v15 = vpop.f32.mrb[0].mxu1 }
  0xfa   : > { %v348_v16 = vadd.f32 %v504_v13, %v458_v12  ;;  %v364_v17 = vadd.f32 %v508_v15, %v458_v12  ;;  %v339_v18 = vpop.f32.mrb[1].mxu0  ;;  %v355_v19 = vpop.f32.mrb[1].mxu1 }
  0xfb   : > { %v340_v20 = vadd.f32 %v458_v12, %v339_v18  ;;  %v356_v21 = vadd.f32 %v458_v12, %v355_v19  ;;  %v505_v22 = vpop.f32.mrb[2].mxu0  ;;  %v509_v23 = vpop.f32.mrb[2].mxu1 }
  0xfc   : > { %v379_v24 = vmul.f32 %v471_v14, %v348_v16  ;;  %v383_v25 = vmul.f32 %v471_v14, %v364_v17  ;;  %v351_v26 = vadd.f32 %v505_v22, %v458_v12  ;;  %v367_v27 = vadd.f32 %v509_v23, %v458_v12  ;;  %v342_v28 = vpop.f32.mrb[3].mxu0  ;;  %v358_v29 = vpop.f32.mrb[3].mxu1 }
  0xfd   : > { %v377_v30 = vmul.f32 %v471_v14, %v340_v20  ;;  %v381_v31 = vmul.f32 %v471_v14, %v356_v21  ;;  %v343_v32 = vadd.f32 %v458_v12, %v342_v28  ;;  %v359_v33 = vadd.f32 %v458_v12, %v358_v29 }
  0xfe   : > { %387 = vst [vmem:[%s199_s21 + $0x10] sm:$0xff] %v379_v24  ;;  %391 = vst [vmem:[%s199_s21 + $0x30] sm:$0xff] %v383_v25  ;;  %v380_v34 = vmul.f32 %v471_v14, %v351_v26  ;;  %v384_v35 = vmul.f32 %v471_v14, %v367_v27 }
  0xff   : > { %385 = vst [vmem:[%s199_s21] sm:$0xff] %v377_v30  ;;  %389 = vst [vmem:[%s199_s21 + $0x20] sm:$0xff] %v381_v31  ;;  %v378_v36 = vmul.f32 %v471_v14, %v343_v32  ;;  %v382_v37 = vmul.f32 %v471_v14, %v359_v33 }
 0x100   : > { %388 = vst [vmem:[%s199_s21 + $0x18] sm:$0xff] %v380_v34  ;;  %392 = vst [vmem:[%s199_s21 + $0x38] sm:$0xff] %v384_v35 }
 0x101   : > { %386 = vst [vmem:[%s199_s21 + $0x8] sm:$0xff] %v378_v36  ;;  %390 = vst [vmem:[%s199_s21 + $0x28] sm:$0xff] %v382_v37 }
 0x102 PF: > { %s14_s15 = sadd.s32 1, %s552_s15  }
 0x103   : > { %p11_p4 = scmp.ge.s32.totalorder %s14_s15, 4  }
 0x105   :  { %13 = sbr.rel (!%p11_p4) target bundleno = 1 (0x1), region = 66 }

// kernel: _lambda_.49
= control target key start
LH: loop header
LB: loop body
LE: loop exit
PB: predicated region body
PF: predicated region fallthrough
CT: control target
= control target key end

     0   :  { %s79_s2 = inlined_call_operand.vmem [shape: f32[8,128], index: 2, kind: input, shape index: {}]   ;;  %s80_s0 = inlined_call_operand.vmem [shape: f32[8,128], index: 0, kind: input, shape index: {}]   ;;  %s81_s1 = inlined_call_operand.vmem [shape: f32[8,128], index: 1, kind: input, shape index: {}]   ;;  %s82_s3 = inlined_call_operand.vmem [shape: f32[8,128], index: 3, kind: output, shape index: {0}]   ;;  %s83_s4 = inlined_call_operand.vmem [shape: f32[8,128], index: 4, kind: output, shape index: {1}]  }
   0x1   :  { %v19_v0 = vld [vmem:[%s79_s2] sm:$0xff] }
   0x2   :  { %v20_v1 = vsub.f32 0.0, %v19_v0  ;;  %v16_v3 = vld [vmem:[%s80_s0] sm:$0xff] }
   0x3   :  { %v17_v4 = vld [vmem:[%s81_s1] sm:$0xff] }
   0x4   :  { %v21_v2 = vmul.f32 1.442695, %v20_v1  ;;  %v18_v5 = vsub.f32 %v16_v3, %v17_v4 }
   0x6   :  { %37 = vpow2.f32 %v21_v2 }
  0x10   :  { %v38_v6 = vpop.eup %37 }
  0x11   :  { %v23_v7 = vmul.f32 %v38_v6, %v18_v5 }
  0x13   :  { %24 = vst [vmem:[%s82_s3] sm:$0xff] %v23_v7  ;;  %v25_v8 = vmul.f32 0.5, %v23_v7 }
  0x15   :  { %v26_v9 = vmul.f32 %v25_v8, %v23_v7 }
  0x17   :  { %v27_v10 = vsub.f32 -0.9189385, %v26_v9 }
  0x19   :  { %28 = vst [vmem:[%s83_s4] sm:$0xff] %v27_v10 }

// kernel: _lambda_.50
= control target key start
LH: loop header
LB: loop body
LE: loop exit
PB: predicated region body
PF: predicated region fallthrough
CT: control target
= control target key end

     0   :  { %s236_s6 = smov 0   ;;  %s258_s0 = inlined_call_operand.vmem [shape: f32[32,32], index: 0, kind: input, shape index: {}]   ;;  %s259_s1 = inlined_call_operand.vmem [shape: f32[16,32], index: 1, kind: output, shape index: {}]  }
   0x1 LB: > { %s200_s7 = sadd.s32 4294967295, %s224_s6   ;;  %p204_p0 = scmp.ge.s32.totalorder %s224_s6, 1  ;;  %s224_s6 = sphi %s236_s6, %s11_s6  }
   0x2   : > { %p88_p1 = scmp.lt.s32.totalorder %s224_s6, 3 }
   0x4   : > { %p89_p2 = pnand %p204_p0, %p88_p1 }
   0x5   : > { %s205_s8 = sshll.u32 (!%p89_p2), %s200_s7, 1  ;;  %vm119_vm0 = vcmask (!%p89_p2), 261120   ;;  %p113_p4 = scmp.lt.s32.totalorder (!%p89_p2), %s200_s7, 1  ;;  %v140_v13 = vlaneseq (!%p89_p2) }
   0x6   : > { %92 = sbr.rel (%p89_p2) target bundleno = 37 (0x25), region = 24  ;;  %p108_p3 = scmp.lt.s32.totalorder (!%p89_p2), %s205_s8, 3 }
   0x7   : > { %v141_v18 = vshrl.u32 (!%p89_p2), %v140_v13, 7 }
   0x9   : > { %vm143_vm1 = vcmp.eq.s32.totalorder (!%p89_p2), %v141_v18, 1  ;;  %vm142_vm2 = vcmp.eq.s32.totalorder (!%p89_p2), %v141_v18, 0 }
   0xd   : > { %s261_s8 = smov (!%p108_p3, %s205_s8), 3  ;;  %s263_s7 = smov (!%p113_p4, %s200_s7), 1 }
   0xe   : > { %s206_s9 = sshll.u32 %s261_s8, 3  ;;  %s207_s13 = sshll.u32 %s263_s7, 3 }
   0xf   : > { %s111_s12 = scalar_lea.vmem %s258_s0, %s206_s9  ;;  %s116_s16 = scalar_lea.vmem %s259_s1, %s207_s13 }
  0x10   : > { %v117_v0 = vld [vmem:[%s111_s12] sm:$0xff]  ;;  %v118_v1 = vld [vmem:[%s111_s12 + $0x8] sm:$0xff] }
  0x11   : > { %v120_v2 = vsel %vm119_vm0, %v117_v0, 0.0  ;;  %v121_v3 = vsel %vm119_vm0, %v118_v1, 0.0  ;;  %v129_v4 = vmul.f32 %v117_v0, %v117_v0  ;;  %v130_v5 = vmul.f32 %v118_v1, %v118_v1 }
  0x12   : > { %v122_v6 = vadd.f32 %v121_v3, %v120_v2 }
  0x13   : > { %v131_v7 = vsel %vm119_vm0, %v129_v4, 0.0  ;;  %v132_v8 = vsel %vm119_vm0, %v130_v5, 0.0 }
  0x14   : > { %v123_v9 = vrot.slane %v122_v6, 4  ;;  %v133_v10 = vadd.f32 %v132_v8, %v131_v7 }
  0x16   : > { %v124_v11 = vadd.f32 %v123_v9, %v122_v6  ;;  %v134_v12 = vrot.slane %v133_v10, 4 }
  0x18   : > { %v125_v14 = vrot.slane %v124_v11, 2  ;;  %v135_v15 = vadd.f32 %v134_v12, %v133_v10 }
  0x1a   : > { %v126_v16 = vadd.f32 %v125_v14, %v124_v11  ;;  %v136_v17 = vrot.slane %v135_v15, 2 }
  0x1c   : > { %v127_v19 = vrot.slane %v126_v16, 1  ;;  %v137_v20 = vadd.f32 %v136_v17, %v135_v15 }
  0x1e   : > { %v138_v21 = vrot.slane %v137_v20, 1  ;;  %v128_v22 = vadd.f32 %v127_v19, %v126_v16 }
  0x20   : > { %v139_v23 = vadd.f32 %v138_v21, %v137_v20 }
  0x22   : > { %v144_v24 = vsel %vm143_vm1, %v139_v23, 0.0 }
  0x23   : > { %v145_v25 = vsel %vm142_vm2, %v128_v22, %v144_v24 }
  0x24   : > { %146 = vst.msk [vmem:[%s116_s16] sm:$0xff] %vm119_vm0, %v145_v25 }
  0x25 PF: > { %s11_s6 = sadd.s32 1, %s224_s6  }
  0x26   : > { %p8_p5 = scmp.ge.s32.totalorder %s11_s6, 4  }
  0x28   :  { %10 = sbr.rel (!%p8_p5) target bundleno = 1 (0x1), region = 54 }

// kernel: _lambda_.51
= control target key start
LH: loop header
LB: loop body
LE: loop exit
PB: predicated region body
PF: predicated region fallthrough
CT: control target
= control target key end

     0   :  { %s456_s18 = smov 0   ;;  %s488_s0 = inlined_call_operand.vmem [shape: f32[32,32], index: 0, kind: input, shape index: {}]   ;;  %s489_s1 = inlined_call_operand.vmem [shape: bf16[32,128], index: 1, kind: input, shape index: {}]   ;;  %s490_s2 = inlined_call_operand.vmem [shape: f32[1,32], index: 2, kind: input, shape index: {}]   ;;  %s491_s3 = inlined_call_operand.vmem [shape: f32[1,32], index: 3, kind: input, shape index: {}]   ;;  %s492_s4 = inlined_call_operand.vmem [shape: f32[1,128], index: 4, kind: input, shape index: {}]   ;;  %s493_s5 = inlined_call_operand.vmem [shape: f32[32,128], index: 5, kind: output, shape index: {}]  }
   0x1 LB: > { %s376_s19 = sadd.s32 4294967295, %s422_s18   ;;  %p380_p0 = scmp.ge.s32.totalorder %s422_s18, 1  ;;  %s422_s18 = sphi %s456_s18, %s15_s18  }
   0x2   : > { %p188_p1 = scmp.lt.s32.totalorder %s422_s18, 3 }
   0x4   : > { %p189_p2 = pnand %p380_p0, %p188_p1 }
   0x5   : > { %v414_v0 = vld [vmem:[%s489_s1] sm:$0xff] (!%p189_p2)   ;;  %v424_v1 = vmov (!%p189_p2), 0.0   ;;  %v415_v2 = vld [vmem:[%s489_s1 + $0x8] sm:$0xff] (!%p189_p2)   ;;  %vm425_vm0 = vmmov (!%p189_p2), 0   ;;  %s381_s24 = sshll.u32 (!%p189_p2), %s376_s19, 1  ;;  %vm273_vm1 = vcmask (!%p189_p2), 261120  }
   0x6   : > { %192 = sbr.rel (%p189_p2) target bundleno = 240 (0xf0), region = 40  ;;  %396 = vmatprep.subr.bf16.mxu0 (!%p189_p2), %v424_v1  ;;  %400 = vmatprep.mubr.msk.bf16.mxu0 (!%p189_p2), %vm425_vm0, %v424_v1  ;;  %p217_p3 = scmp.lt.s32.totalorder (!%p189_p2), %s381_s24, 3  ;;  %v385_v3 = vld [vmem:[%s490_s2] ss:$0 sm:$0xff] (!%p189_p2) }
   0x7   : > { %397 = vmatpush3.bf16.msra.mxu0 (!%p189_p2), %v414_v0  ;;  %v386_v6 = vld [vmem:[%s491_s3] ss:$0 sm:$0xff] (!%p189_p2) }
   0x8   : > { %398 = vmatprep.subr.bf16.mxu0 (!%p189_p2), %v424_v1  ;;  %v387_v12 = vld [vmem:[%s492_s4] ss:$0 sm:$0xff] (!%p189_p2) }
   0xb   : > { %399 = vmatpush3.bf16.msra.mxu0 (!%p189_p2), %v415_v2 }
   0xd   : > { %s495_s24 = smov (!%p217_p3, %s381_s24), 3 }
   0xe   : > { %s382_s25 = sshll.u32 %s495_s24, 3 }
   0xf   : > { %s220_s30 = scalar_lea.vmem %s488_s0, %s382_s25  ;;  %s226_s12 = scalar_lea.vmem %s493_s5, %s382_s25 }
  0x10   : > { %v229_v4 = vld [vmem:[%s220_s30] sm:$0xff]  ;;  %v230_v5 = vld [vmem:[%s220_s30 + $0x8] sm:$0xff] }
  0x11   : > { %v238_v7 = vadd.f32 %v385_v3, %v229_v4  ;;  %v239_v8 = vadd.f32 %v385_v3, %v230_v5 }
  0x13   : > { %v247_v9 = vmul.f32 %v386_v6, %v238_v7  ;;  %v248_v10 = vmul.f32 %v386_v6, %v239_v8 }
  0x15   : > { %v249_v11 = vpack.c.bf16 %v248_v10, %v247_v9 }
  0x17   : > { %401 = vmatmul.mubr.msk.bf16.vlgmr.msra.gmra.mrb[0].mxu0 %vm273_vm1, %v249_v11 }
  0xea   : > { %v311_v13 = vpop.f32.mrb[0].mxu0 }
  0xeb   : > { %v312_v14 = vadd.f32 %v387_v12, %v311_v13  ;;  %v402_v15 = vpop.f32.mrb[1].mxu0 }
  0xec   : > { %v314_v16 = vpop.f32.mrb[2].mxu0 }
  0xed   : > { %318 = vst [vmem:[%s226_s12] sm:$0xff] %v312_v14  ;;  %v315_v17 = vadd.f32 %v387_v12, %v314_v16  ;;  %v403_v18 = vpop.f32.mrb[3].mxu0 }
  0xef   : > { %319 = vst [vmem:[%s226_s12 + $0x8] sm:$0xff] %v315_v17 }
  0xf0 PF: > { %s15_s18 = sadd.s32 1, %s422_s18  }
  0xf1   : > { %p12_p4 = scmp.ge.s32.totalorder %s15_s18, 4  }
  0xf3   :  { %14 = sbr.rel (!%p12_p4) target bundleno = 1 (0x1), region = 70 }

// kernel: _lambda_.39
= control target key start
LH: loop header
LB: loop body
LE: loop exit
PB: predicated region body
PF: predicated region fallthrough
CT: control target
= control target key end

     0   :  { %s6340_s15 = smov 0   ;;  %s7591_s0 = inlined_call_operand.vmem [shape: bf16[128,4608], index: 0, kind: input, shape index: {}]   ;;  %s7592_s1 = inlined_call_operand.vmem [shape: bf16[4608,128], index: 1, kind: input, shape index: {}]   ;;  %s7593_s2 = inlined_call_operand.vmem [shape: f32[1,128], index: 2, kind: input, shape index: {}]   ;;  %s7594_s3 = inlined_call_operand.vmem [shape: f32[1,128], index: 3, kind: input, shape index: {}]   ;;  %s7595_s4 = inlined_call_operand.vmem [shape: f32[128,128], index: 4, kind: output, shape index: {}]  }
   0x1 LB: > { %s4629_s16 = sadd.s32 4294967295, %s6313_s15   ;;  %p4633_p0 = scmp.ge.s32.totalorder %s6313_s15, 1  ;;  %s6313_s15 = sphi %s6340_s15, %s14_s15  }
   0x2   : > { %p164_p1 = scmp.lt.s32.totalorder %s6313_s15, 3 }
   0x4   : > { %p165_p2 = pnand %p4633_p0, %p164_p1 }
   0x5   : > { %v5803_v0 = vld [vmem:[%s7592_s1 + $0x40] sm:$0xff] (!%p165_p2)   ;;  %v5807_v4 = vld [vmem:[%s7592_s1 + $0x48] sm:$0xff] (!%p165_p2)   ;;  %v5811_v8 = vld [vmem:[%s7592_s1 + $0x50] sm:$0xff] (!%p165_p2)   ;;  %s4634_s23 = sshll.u32 (!%p165_p2), %s4629_s16, 3 }
   0x6   : > { %168 = sbr.rel (%p165_p2) target bundleno = 592 (0x250), region = 36  ;;  %v5804_v1 = vld [vmem:[%s7592_s1 + $0xc0] sm:$0xff] (!%p165_p2)   ;;  %5074 = vmatprep.subr.bf16.mxu0 (!%p165_p2), %v5803_v0  ;;  %v5808_v5 = vld [vmem:[%s7592_s1 + $0xc8] sm:$0xff] (!%p165_p2)   ;;  %v5812_v9 = vld [vmem:[%s7592_s1 + $0xd0] sm:$0xff] (!%p165_p2)   ;;  %p192_p3 = scmp.lt.s32.totalorder (!%p165_p2), %s4634_s23, 15 }
   0x7   : > { %v5805_v2 = vld [vmem:[%s7592_s1] sm:$0xff] (!%p165_p2)   ;;  %5114 = vmatprep.subr.bf16.mxu1 (!%p165_p2), %v5804_v1  ;;  %v5809_v6 = vld [vmem:[%s7592_s1 + $0x8] sm:$0xff] (!%p165_p2)   ;;  %v5813_v10 = vld [vmem:[%s7592_s1 + $0x10] sm:$0xff] (!%p165_p2)  }
   0x8   : > { %v5806_v3 = vld [vmem:[%s7592_s1 + $0x80] sm:$0xff] (!%p165_p2)   ;;  %5075 = vmatpush3.bf16.msra.mxu0 (!%p165_p2), %v5805_v2  ;;  %v5810_v7 = vld [vmem:[%s7592_s1 + $0x88] sm:$0xff] (!%p165_p2)   ;;  %v5814_v11 = vld [vmem:[%s7592_s1 + $0x90] sm:$0xff] (!%p165_p2)  }
   0x9   : > { %5115 = vmatpush3.bf16.msra.mxu1 (!%p165_p2), %v5806_v3  ;;  %5076 = vmatprep.subr.bf16.mxu0 (!%p165_p2), %v5807_v4  ;;  %v5815_v12 = vld [vmem:[%s7592_s1 + $0x58] sm:$0xff] (!%p165_p2)   ;;  %v5819_v16 = vld [vmem:[%s7592_s1 + $0x60] sm:$0xff] (!%p165_p2)   ;;  %v5823_v20 = vld [vmem:[%s7592_s1 + $0x68] sm:$0xff] (!%p165_p2)  }
   0xa   : > { %5116 = vmatprep.subr.bf16.mxu1 (!%p165_p2), %v5808_v5  ;;  %v5816_v13 = vld [vmem:[%s7592_s1 + $0xd8] sm:$0xff] (!%p165_p2)   ;;  %v5820_v17 = vld [vmem:[%s7592_s1 + $0xe0] sm:$0xff] (!%p165_p2)   ;;  %v5824_v21 = vld [vmem:[%s7592_s1 + $0xe8] sm:$0xff] (!%p165_p2)  }
   0xb   : > { %v5817_v14 = vld [vmem:[%s7592_s1 + $0x18] sm:$0xff] (!%p165_p2)   ;;  %v5821_v18 = vld [vmem:[%s7592_s1 + $0x20] sm:$0xff] (!%p165_p2)   ;;  %v5825_v22 = vld [vmem:[%s7592_s1 + $0x28] sm:$0xff] (!%p165_p2)  }
   0xc   : > { %5077 = vmatpush3.bf16.msra.mxu0 (!%p165_p2), %v5809_v6  ;;  %v5818_v15 = vld [vmem:[%s7592_s1 + $0x98] sm:$0xff] (!%p165_p2)   ;;  %v5822_v19 = vld [vmem:[%s7592_s1 + $0xa0] sm:$0xff] (!%p165_p2)   ;;  %v5826_v23 = vld [vmem:[%s7592_s1 + $0xa8] sm:$0xff] (!%p165_p2)  }
   0xd   : > { %5117 = vmatpush3.bf16.msra.mxu1 %v5810_v7  ;;  %5078 = vmatprep.subr.bf16.mxu0 %v5811_v8  ;;  %s7597_s23 = smov (!%p192_p3, %s4634_s23), 15  ;;  %v5827_v24 = vld [vmem:[%s7592_s1 + $0x70] sm:$0xff]   ;;  %v5831_v28 = vld [vmem:[%s7592_s1 + $0x78] sm:$0xff]   ;;  %v5841_v36 = vld [vmem:[%s7592_s1 + $0x140] sm:$0xff]  }
   0xe   : > { %5118 = vmatprep.subr.bf16.mxu1 %v5812_v9  ;;  %v5828_v25 = vld [vmem:[%s7592_s1 + $0xf0] sm:$0xff]   ;;  %s5794_s21 = smul.u32 144, %s7597_s23  ;;  %v5832_v29 = vld [vmem:[%s7592_s1 + $0xf8] sm:$0xff]   ;;  %v5842_v37 = vld [vmem:[%s7592_s1 + $0x1c0] sm:$0xff]  }
   0xf   : > { %v5829_v26 = vld [vmem:[%s7592_s1 + $0x30] sm:$0xff]   ;;  %v5833_v30 = vld [vmem:[%s7592_s1 + $0x38] sm:$0xff]   ;;  %v5843_v38 = vld [vmem:[%s7592_s1 + $0x100] sm:$0xff]  }
  0x10   : > { %5079 = vmatpush3.bf16.msra.mxu0 %v5813_v10  ;;  %v5830_v27 = vld [vmem:[%s7592_s1 + $0xb0] sm:$0xff]   ;;  %s6446_s6 = scalar_lea.vmem %s7591_s0, %s5794_s21  ;;  %v5834_v31 = vld [vmem:[%s7592_s1 + $0xb8] sm:$0xff]   ;;  %v5844_v39 = vld [vmem:[%s7592_s1 + $0x180] sm:$0xff]  }
  0x11   : > { %5119 = vmatpush3.bf16.msra.mxu1 %v5814_v11  ;;  %5080 = vmatprep.subr.bf16.mxu0 %v5815_v12  ;;  %v5835_v32 = vld [vmem:[%s6446_s6] ss:$144 sps:$4 sm:$0xff]   ;;  %v5837_v33 = vld [vmem:[%s6446_s6 + $0x4] ss:$144 sps:$4 sm:$0xff]   ;;  %v5838_v34 = vld [vmem:[%s6446_s6 + $0x8] ss:$144 sps:$4 sm:$0xff]  }
  0x12   : > { %5120 = vmatprep.subr.bf16.mxu1 %v5816_v13  ;;  %v5840_v35 = vld [vmem:[%s6446_s6 + $0xc] ss:$144 sps:$4 sm:$0xff]   ;;  %3412 = vmatprep.mubr.bf16.mxu0 %v5837_v33  ;;  %v5849_v44 = vld [vmem:[%s6446_s6 + $0x124] ss:$144 sps:$4 sm:$0xff]   ;;  %v5853_v46 = vld [vmem:[%s6446_s6 + $0x120] ss:$144 sps:$4 sm:$0xff]  }
  0x13   : > { %3477 = vmatprep.mubr.bf16.mxu1 %v5840_v35  ;;  %v5845_v40 = vld [vmem:[%s7592_s1 + $0x148] sm:$0xff]   ;;  %v5855_v48 = vld [vmem:[%s7592_s1 + $0x150] sm:$0xff]   ;;  %v5859_v52 = vld [vmem:[%s7592_s1 + $0x158] sm:$0xff]  }
  0x14   : > { %5081 = vmatpush3.bf16.msra.mxu0 %v5817_v14  ;;  %v5846_v41 = vld [vmem:[%s7592_s1 + $0x1c8] sm:$0xff]   ;;  %v5856_v49 = vld [vmem:[%s7592_s1 + $0x1d0] sm:$0xff]   ;;  %v5860_v53 = vld [vmem:[%s7592_s1 + $0x1d8] sm:$0xff]  }
  0x15   : > { %5121 = vmatpush3.bf16.msra.mxu1 %v5818_v15  ;;  %5082 = vmatprep.subr.bf16.mxu0 %v5819_v16  ;;  %v5847_v42 = vld [vmem:[%s7592_s1 + $0x108] sm:$0xff]   ;;  %v5857_v50 = vld [vmem:[%s7592_s1 + $0x110] sm:$0xff]   ;;  %v5861_v54 = vld [vmem:[%s7592_s1 + $0x118] sm:$0xff]  }
  0x16   : > { %5122 = vmatprep.subr.bf16.mxu1 %v5820_v17  ;;  %v5848_v43 = vld [vmem:[%s7592_s1 + $0x188] sm:$0xff]   ;;  %v5858_v51 = vld [vmem:[%s7592_s1 + $0x190] sm:$0xff]   ;;  %v5862_v55 = vld [vmem:[%s7592_s1 + $0x198] sm:$0xff]  }
  0x17   : > { %v5851_v45 = vld [vmem:[%s6446_s6 + $0x12c] ss:$144 sps:$4 sm:$0xff]   ;;  %v5854_v47 = vld [vmem:[%s6446_s6 + $0x128] ss:$144 sps:$4 sm:$0xff]   ;;  %v5863_v56 = vld [vmem:[%s6446_s6 + $0x244] ss:$144 sps:$4 sm:$0xff]  }
  0x18   : > { %5083 = vmatpush3.bf16.msra.mxu0 %v5821_v18  ;;  %v5865_v57 = vld [vmem:[%s6446_s6 + $0x24c] ss:$144 sps:$4 sm:$0xff]   ;;  %v5867_v58 = vld [vmem:[%s6446_s6 + $0x240] ss:$144 sps:$4 sm:$0xff]   ;;  %v5868_v59 = vld [vmem:[%s6446_s6 + $0x248] ss:$144 sps:$4 sm:$0xff]  }
  0x19   : > { %5123 = vmatpush3.bf16.msra.mxu1 %v5822_v19  ;;  %5084 = vmatprep.subr.bf16.mxu0 %v5823_v20  ;;  %v5869_v60 = vld [vmem:[%s7592_s1 + $0x160] sm:$0xff]   ;;  %v5873_v0 = vld [vmem:[%s7592_s1 + $0x168] sm:$0xff]   ;;  %v5883_v8 = vld [vmem:[%s7592_s1 + $0x170] sm:$0xff]  }
  0x1a   : > { %5124 = vmatprep.subr.bf16.mxu1 %v5824_v21  ;;  %v5870_v61 = vld [vmem:[%s7592_s1 + $0x1e0] sm:$0xff]   ;;  %v5874_v1 = vld [vmem:[%s7592_s1 + $0x1e8] sm:$0xff]   ;;  %v5884_v9 = vld [vmem:[%s7592_s1 + $0x1f0] sm:$0xff]  }
  0x1b   : > { %v5871_v62 = vld [vmem:[%s7592_s1 + $0x120] sm:$0xff]   ;;  %v5875_v2 = vld [vmem:[%s7592_s1 + $0x128] sm:$0xff]   ;;  %v5885_v10 = vld [vmem:[%s7592_s1 + $0x130] sm:$0xff]  }
  0x1c   : > { %5085 = vmatpush3.bf16.msra.mxu0 %v5825_v22  ;;  %v5872_v63 = vld [vmem:[%s7592_s1 + $0x1a0] sm:$0xff]   ;;  %v5876_v3 = vld [vmem:[%s7592_s1 + $0x1a8] sm:$0xff]   ;;  %v5886_v11 = vld [vmem:[%s7592_s1 + $0x1b0] sm:$0xff]  }
  0x1d   : > { %5125 = vmatpush3.bf16.msra.mxu1 %v5826_v23  ;;  %5086 = vmatprep.subr.bf16.mxu0 %v5827_v24  ;;  %v5877_v4 = vld [vmem:[%s6446_s6 + $0x364] ss:$144 sps:$4 sm:$0xff]   ;;  %v5879_v5 = vld [vmem:[%s6446_s6 + $0x36c] ss:$144 sps:$4 sm:$0xff]   ;;  %v5881_v6 = vld [vmem:[%s6446_s6 + $0x360] ss:$144 sps:$4 sm:$0xff]  }
  0x1e   : > { %5126 = vmatprep.subr.bf16.mxu1 %v5828_v25  ;;  %v5882_v7 = vld [vmem:[%s6446_s6 + $0x368] ss:$144 sps:$4 sm:$0xff]   ;;  %v5891_v16 = vld [vmem:[%s6446_s6 + $0x10] ss:$144 sps:$4 sm:$0xff]   ;;  %v5893_v17 = vld [vmem:[%s6446_s6 + $0x14] ss:$144 sps:$4 sm:$0xff]  }
  0x1f   : > { %v5887_v12 = vld [vmem:[%s7592_s1 + $0x178] sm:$0xff]   ;;  %v5897_v20 = vld [vmem:[%s7592_s1 + $0x240] sm:$0xff]   ;;  %v5901_v24 = vld [vmem:[%s7592_s1 + $0x248] sm:$0xff]  }
  0x20   : > { %5087 = vmatpush3.bf16.msra.mxu0 %v5829_v26  ;;  %v5888_v13 = vld [vmem:[%s7592_s1 + $0x1f8] sm:$0xff]   ;;  %v5898_v21 = vld [vmem:[%s7592_s1 + $0x2c0] sm:$0xff]   ;;  %v5902_v25 = vld [vmem:[%s7592_s1 + $0x2c8] sm:$0xff]  }
  0x21   : > { %5127 = vmatpush3.bf16.msra.mxu1 %v5830_v27  ;;  %5088 = vmatprep.subr.bf16.mxu0 %v5831_v28  ;;  %v5889_v14 = vld [vmem:[%s7592_s1 + $0x138] sm:$0xff]   ;;  %v5899_v22 = vld [vmem:[%s7592_s1 + $0x200] sm:$0xff]   ;;  %v5903_v26 = vld [vmem:[%s7592_s1 + $0x208] sm:$0xff]  }
  0x22   : > { %5128 = vmatprep.subr.bf16.mxu1 %v5832_v29  ;;  %v5890_v15 = vld [vmem:[%s7592_s1 + $0x1b8] sm:$0xff]   ;;  %v5900_v23 = vld [vmem:[%s7592_s1 + $0x280] sm:$0xff]   ;;  %v5904_v27 = vld [vmem:[%s7592_s1 + $0x288] sm:$0xff]  }
  0x23   : > { %v5894_v18 = vld [vmem:[%s6446_s6 + $0x18] ss:$144 sps:$4 sm:$0xff]   ;;  %v5896_v19 = vld [vmem:[%s6446_s6 + $0x1c] ss:$144 sps:$4 sm:$0xff]   ;;  %v5905_v28 = vld [vmem:[%s6446_s6 + $0x134] ss:$144 sps:$4 sm:$0xff]  }
  0x24   : > { %5089 = vmatpush3.bf16.msra.mxu0 %v5833_v30  ;;  %v5907_v29 = vld [vmem:[%s6446_s6 + $0x13c] ss:$144 sps:$4 sm:$0xff]   ;;  %v5909_v30 = vld [vmem:[%s6446_s6 + $0x130] ss:$144 sps:$4 sm:$0xff]  }
  0x25   : > { %5129 = vmatpush3.bf16.msra.mxu1 %v5834_v31  ;;  %5154 = vmatprep.subr.bf16.mxu0 %v5841_v36  ;;  %v5910_v31 = vld [vmem:[%s6446_s6 + $0x138] ss:$144 sps:$4 sm:$0xff]   ;;  %v5912_v33 = vld [vmem:[%s7592_s1 + $0x2d0] sm:$0xff]  }
  0x26   : > { %5194 = vmatprep.subr.bf16.mxu1 %v5842_v37  ;;  %v5914_v35 = vld [vmem:[%s7592_s1 + $0x290] sm:$0xff]   ;;  %v5915_v36 = vld [vmem:[%s7592_s1 + $0x258] sm:$0xff]  }
  0x27   : > { %3413 = vmatmul.mubr.bf16.vlgmr.msra.gmra.mrb[0].mxu0 %v5835_v32  ;;  %v5911_v32 = vld [vmem:[%s7592_s1 + $0x250] sm:$0xff]   ;;  %v5916_v37 = vld [vmem:[%s7592_s1 + $0x2d8] sm:$0xff]  }
  0x28   : > { %3478 = vmatmul.mubr.bf16.vlgmr.msra.gmra.mrb[0].mxu1 %v5838_v34  ;;  %5155 = vmatpush3.bf16.msra.mxu0 %v5843_v38  ;;  %v5913_v34 = vld [vmem:[%s7592_s1 + $0x210] sm:$0xff]   ;;  %v5917_v38 = vld [vmem:[%s7592_s1 + $0x218] sm:$0xff]  }
  0x29   : > { %5195 = vmatpush3.bf16.msra.mxu1 %v5844_v39  ;;  %5156 = vmatprep.subr.bf16.mxu0 %v5845_v40  ;;  %v5918_v39 = vld [vmem:[%s7592_s1 + $0x298] sm:$0xff]   ;;  %v5919_v40 = vld [vmem:[%s6446_s6 + $0x254] ss:$144 sps:$4 sm:$0xff]  }
  0x2a   : > { %5196 = vmatprep.subr.bf16.mxu1 %v5846_v41  ;;  %3420 = vmatprep.mubr.bf16.mxu0 %v5849_v44  ;;  %v5921_v41 = vld [vmem:[%s6446_s6 + $0x25c] ss:$144 sps:$4 sm:$0xff]   ;;  %v5925_v44 = vld [vmem:[%s7592_s1 + $0x260] sm:$0xff]  }
  0x2b   : > { %3485 = vmatprep.mubr.bf16.mxu1 %v5851_v45  ;;  %v5926_v45 = vld [vmem:[%s7592_s1 + $0x2e0] sm:$0xff]  }
  0x2c   : > { %5157 = vmatpush3.bf16.msra.mxu0 %v5847_v42  ;;  %v5923_v42 = vld [vmem:[%s6446_s6 + $0x250] ss:$144 sps:$4 sm:$0xff]  }
  0x2d   : > { %5197 = vmatpush3.bf16.msra.mxu1 %v5848_v43  ;;  %5158 = vmatprep.subr.bf16.mxu0 %v5855_v48  ;;  %v5924_v43 = vld [vmem:[%s6446_s6 + $0x258] ss:$144 sps:$4 sm:$0xff]  }
  0x2e   : > { %5198 = vmatprep.subr.bf16.mxu1 %v5856_v49  ;;  %v5929_v48 = vld [vmem:[%s7592_s1 + $0x268] sm:$0xff]  }
  0x2f   : > { %3421 = vmatmul.mubr.bf16.gmra.mrb[4].mxu0 %v5853_v46  ;;  %v5927_v46 = vld [vmem:[%s7592_s1 + $0x220] sm:$0xff]   ;;  %v5930_v49 = vld [vmem:[%s7592_s1 + $0x2e8] sm:$0xff]  }
  0x30   : > { %3486 = vmatmul.mubr.bf16.gmra.mrb[4].mxu1 %v5854_v47  ;;  %5159 = vmatpush3.bf16.msra.mxu0 %v5857_v50  ;;  %v5928_v47 = vld [vmem:[%s7592_s1 + $0x2a0] sm:$0xff]   ;;  %v5931_v50 = vld [vmem:[%s7592_s1 + $0x228] sm:$0xff]  }
  0x31   : > { %5199 = vmatpush3.bf16.msra.mxu1 %v5858_v51  ;;  %5160 = vmatprep.subr.bf16.mxu0 %v5859_v52  ;;  %v5932_v51 = vld [vmem:[%s7592_s1 + $0x2a8] sm:$0xff]   ;;  %v5933_v52 = vld [vmem:[%s6446_s6 + $0x374] ss:$144 sps:$4 sm:$0xff]  }
  0x32   : > { %5200 = vmatprep.subr.bf16.mxu1 %v5860_v53  ;;  %3428 = vmatprep.mubr.bf16.mxu0 %v5863_v56  ;;  %v5935_v53 = vld [vmem:[%s6446_s6 + $0x37c] ss:$144 sps:$4 sm:$0xff]   ;;  %v5939_v56 = vld [vmem:[%s7592_s1 + $0x270] sm:$0xff]  }
  0x33   : > { %3493 = vmatprep.mubr.bf16.mxu1 %v5865_v57  ;;  %v5940_v57 = vld [vmem:[%s7592_s1 + $0x2f0] sm:$0xff]  }
  0x34   : > { %5161 = vmatpush3.bf16.msra.mxu0 %v5861_v54  ;;  %v5937_v54 = vld [vmem:[%s6446_s6 + $0x370] ss:$144 sps:$4 sm:$0xff]  }
  0x35   : > { %5201 = vmatpush3.bf16.msra.mxu1 %v5862_v55  ;;  %5162 = vmatprep.subr.bf16.mxu0 %v5869_v60  ;;  %v5938_v55 = vld [vmem:[%s6446_s6 + $0x378] ss:$144 sps:$4 sm:$0xff]  }
  0x36   : > { %5202 = vmatprep.subr.bf16.mxu1 %v5870_v61  ;;  %v5943_v60 = vld [vmem:[%s7592_s1 + $0x278] sm:$0xff]  }
  0x37   : > { %3429 = vmatmul.mubr.bf16.gmra.mrb[8].mxu0 %v5867_v58  ;;  %v5941_v58 = vld [vmem:[%s7592_s1 + $0x230] sm:$0xff]   ;;  %v5944_v61 = vld [vmem:[%s7592_s1 + $0x2f8] sm:$0xff]  }
  0x38   : > { %3494 = vmatmul.mubr.bf16.gmra.mrb[8].mxu1 %v5868_v59  ;;  %5163 = vmatpush3.bf16.msra.mxu0 %v5871_v62  ;;  %v5942_v59 = vld [vmem:[%s7592_s1 + $0x2b0] sm:$0xff]   ;;  %v5945_v62 = vld [vmem:[%s7592_s1 + $0x238] sm:$0xff]  }
  0x39   : > { %5203 = vmatpush3.bf16.msra.mxu1 %v5872_v63  ;;  %5164 = vmatprep.subr.bf16.mxu0 %v5873_v0  ;;  %v5946_v63 = vld [vmem:[%s7592_s1 + $0x2b8] sm:$0xff]   ;;  %v5947_v0 = vld [vmem:[%s6446_s6 + $0x20] ss:$144 sps:$4 sm:$0xff]  }
  0x3a   : > { %5204 = vmatprep.subr.bf16.mxu1 %v5874_v1  ;;  %3436 = vmatprep.mubr.bf16.mxu0 %v5877_v4  ;;  %v5949_v1 = vld [vmem:[%s6446_s6 + $0x24] ss:$144 sps:$4 sm:$0xff]  }
  0x3b   : > { %3501 = vmatprep.mubr.bf16.mxu1 %v5879_v5  ;;  %v5953_v4 = vld [vmem:[%s7592_s1 + $0x340] sm:$0xff]  }
  0x3c   : > { %5165 = vmatpush3.bf16.msra.mxu0 %v5875_v2  ;;  %v5950_v2 = vld [vmem:[%s6446_s6 + $0x28] ss:$144 sps:$4 sm:$0xff]   ;;  %v5954_v5 = vld [vmem:[%s7592_s1 + $0x3c0] sm:$0xff]  }
  0x3d   : > { %5205 = vmatpush3.bf16.msra.mxu1 %v5876_v3  ;;  %5166 = vmatprep.subr.bf16.mxu0 %v5883_v8  ;;  %v5952_v3 = vld [vmem:[%s6446_s6 + $0x2c] ss:$144 sps:$4 sm:$0xff]  }
  0x3e   : > { %5206 = vmatprep.subr.bf16.mxu1 %v5884_v9  ;;  %v5957_v8 = vld [vmem:[%s7592_s1 + $0x348] sm:$0xff]  }
  0x3f   : > { %3437 = vmatmul.mubr.bf16.gmra.mrb[12].mxu0 %v5881_v6  ;;  %v5955_v6 = vld [vmem:[%s7592_s1 + $0x300] sm:$0xff]   ;;  %v5958_v9 = vld [vmem:[%s7592_s1 + $0x3c8] sm:$0xff]  }
  0x40   : > { %3502 = vmatmul.mubr.bf16.gmra.mrb[12].mxu1 %v5882_v7  ;;  %5167 = vmatpush3.bf16.msra.mxu0 %v5885_v10  ;;  %v5956_v7 = vld [vmem:[%s7592_s1 + $0x380] sm:$0xff]   ;;  %v5959_v10 = vld [vmem:[%s7592_s1 + $0x308] sm:$0xff]  }
  0x41   : > { %5207 = vmatpush3.bf16.msra.mxu1 %v5886_v11  ;;  %5168 = vmatprep.subr.bf16.mxu0 %v5887_v12  ;;  %v5960_v11 = vld [vmem:[%s7592_s1 + $0x388] sm:$0xff]   ;;  %v5961_v12 = vld [vmem:[%s6446_s6 + $0x144] ss:$144 sps:$4 sm:$0xff]  }
  0x42   : > { %5208 = vmatprep.subr.bf16.mxu1 %v5888_v13  ;;  %3542 = vmatprep.mubr.bf16.mxu0 %v5893_v17  ;;  %v5963_v13 = vld [vmem:[%s6446_s6 + $0x14c] ss:$144 sps:$4 sm:$0xff]   ;;  %v5968_v17 = vld [vmem:[%s7592_s1 + $0x3d0] sm:$0xff]  }
  0x43   : > { %3607 = vmatprep.mubr.bf16.mxu1 %v5896_v19  ;;  %v5970_v19 = vld [vmem:[%s7592_s1 + $0x390] sm:$0xff]  }
  0x44   : > { %5169 = vmatpush3.bf16.msra.mxu0 %v5889_v14  ;;  %v5965_v14 = vld [vmem:[%s6446_s6 + $0x140] ss:$144 sps:$4 sm:$0xff]  }
  0x45   : > { %5209 = vmatpush3.bf16.msra.mxu1 %v5890_v15  ;;  %5234 = vmatprep.subr.bf16.mxu0 %v5897_v20  ;;  %v5966_v15 = vld [vmem:[%s6446_s6 + $0x148] ss:$144 sps:$4 sm:$0xff]  }
  0x46   : > { %5274 = vmatprep.subr.bf16.mxu1 %v5898_v21  ;;  %v5971_v20 = vld [vmem:[%s7592_s1 + $0x358] sm:$0xff]  }
  0x47   : > { %3543 = vmatmul.mubr.bf16.vlgmr.msra.gmra.mrb[16].mxu0 %v5891_v16  ;;  %v5967_v16 = vld [vmem:[%s7592_s1 + $0x350] sm:$0xff]   ;;  %v5972_v21 = vld [vmem:[%s7592_s1 + $0x3d8] sm:$0xff]  }
  0x48   : > { %3608 = vmatmul.mubr.bf16.vlgmr.msra.gmra.mrb[16].mxu1 %v5894_v18  ;;  %5235 = vmatpush3.bf16.msra.mxu0 %v5899_v22  ;;  %v5969_v18 = vld [vmem:[%s7592_s1 + $0x310] sm:$0xff]   ;;  %v5973_v22 = vld [vmem:[%s7592_s1 + $0x318] sm:$0xff]  }
  0x49   : > { %5275 = vmatpush3.bf16.msra.mxu1 %v5900_v23  ;;  %5236 = vmatprep.subr.bf16.mxu0 %v5901_v24  ;;  %v5974_v23 = vld [vmem:[%s7592_s1 + $0x398] sm:$0xff]   ;;  %v5975_v24 = vld [vmem:[%s6446_s6 + $0x264] ss:$144 sps:$4 sm:$0xff]  }
  0x4a   : > { %5276 = vmatprep.subr.bf16.mxu1 %v5902_v25  ;;  %3550 = vmatprep.mubr.bf16.mxu0 %v5905_v28  ;;  %v5977_v25 = vld [vmem:[%s6446_s6 + $0x26c] ss:$144 sps:$4 sm:$0xff]   ;;  %v5981_v28 = vld [vmem:[%s7592_s1 + $0x360] sm:$0xff]  }
  0x4b   : > { %3615 = vmatprep.mubr.bf16.mxu1 %v5907_v29  ;;  %v5982_v29 = vld [vmem:[%s7592_s1 + $0x3e0] sm:$0xff]  }
  0x4c   : > { %5237 = vmatpush3.bf16.msra.mxu0 %v5903_v26  ;;  %v5979_v26 = vld [vmem:[%s6446_s6 + $0x260] ss:$144 sps:$4 sm:$0xff]  }
  0x4d   : > { %5277 = vmatpush3.bf16.msra.mxu1 %v5904_v27  ;;  %5238 = vmatprep.subr.bf16.mxu0 %v5911_v32  ;;  %v5980_v27 = vld [vmem:[%s6446_s6 + $0x268] ss:$144 sps:$4 sm:$0xff]  }
  0x4e   : > { %5278 = vmatprep.subr.bf16.mxu1 %v5912_v33  ;;  %v5985_v32 = vld [vmem:[%s7592_s1 + $0x368] sm:$0xff]  }
  0x4f   : > { %3551 = vmatmul.mubr.bf16.gmra.mrb[20].mxu0 %v5909_v30  ;;  %v5983_v30 = vld [vmem:[%s7592_s1 + $0x320] sm:$0xff]   ;;  %v5986_v33 = vld [vmem:[%s7592_s1 + $0x3e8] sm:$0xff]  }
  0x50   : > { %3616 = vmatmul.mubr.bf16.gmra.mrb[20].mxu1 %v5910_v31  ;;  %5239 = vmatpush3.bf16.msra.mxu0 %v5913_v34  ;;  %v5984_v31 = vld [vmem:[%s7592_s1 + $0x3a0] sm:$0xff]   ;;  %v5987_v34 = vld [vmem:[%s7592_s1 + $0x328] sm:$0xff]  }
  0x51   : > { %5279 = vmatpush3.bf16.msra.mxu1 %v5914_v35  ;;  %5240 = vmatprep.subr.bf16.mxu0 %v5915_v36  ;;  %v5988_v35 = vld [vmem:[%s7592_s1 + $0x3a8] sm:$0xff]   ;;  %v5989_v36 = vld [vmem:[%s6446_s6 + $0x384] ss:$144 sps:$4 sm:$0xff]  }
  0x52   : > { %5280 = vmatprep.subr.bf16.mxu1 %v5916_v37  ;;  %3558 = vmatprep.mubr.bf16.mxu0 %v5919_v40  ;;  %v5991_v37 = vld [vmem:[%s6446_s6 + $0x38c] ss:$144 sps:$4 sm:$0xff]   ;;  %v5995_v40 = vld [vmem:[%s7592_s1 + $0x370] sm:$0xff]  }
  0x53   : > { %3623 = vmatprep.mubr.bf16.mxu1 %v5921_v41  ;;  %v5996_v41 = vld [vmem:[%s7592_s1 + $0x3f0] sm:$0xff]  }
  0x54   : > { %5241 = vmatpush3.bf16.msra.mxu0 %v5917_v38  ;;  %v5993_v38 = vld [vmem:[%s6446_s6 + $0x380] ss:$144 sps:$4 sm:$0xff]  }
  0x55   : > { %5281 = vmatpush3.bf16.msra.mxu1 %v5918_v39  ;;  %5242 = vmatprep.subr.bf16.mxu0 %v5925_v44  ;;  %v5994_v39 = vld [vmem:[%s6446_s6 + $0x388] ss:$144 sps:$4 sm:$0xff]  }
  0x56   : > { %5282 = vmatprep.subr.bf16.mxu1 %v5926_v45  ;;  %v5999_v44 = vld [vmem:[%s7592_s1 + $0x378] sm:$0xff]  }
  0x57   : > { %3559 = vmatmul.mubr.bf16.gmra.mrb[24].mxu0 %v5923_v42  ;;  %v5997_v42 = vld [vmem:[%s7592_s1 + $0x330] sm:$0xff]   ;;  %v6000_v45 = vld [vmem:[%s7592_s1 + $0x3f8] sm:$0xff]  }
  0x58   : > { %3624 = vmatmul.mubr.bf16.gmra.mrb[24].mxu1 %v5924_v43  ;;  %5243 = vmatpush3.bf16.msra.mxu0 %v5927_v46  ;;  %v5998_v43 = vld [vmem:[%s7592_s1 + $0x3b0] sm:$0xff]   ;;  %v6001_v46 = vld [vmem:[%s7592_s1 + $0x338] sm:$0xff]  }
  0x59   : > { %5283 = vmatpush3.bf16.msra.mxu1 %v5928_v47  ;;  %5244 = vmatprep.subr.bf16.mxu0 %v5929_v48  ;;  %v6002_v47 = vld [vmem:[%s7592_s1 + $0x3b8] sm:$0xff]   ;;  %v6003_v48 = vld [vmem:[%s6446_s6 + $0x30] ss:$144 sps:$4 sm:$0xff]  }
  0x5a   : > { %5284 = vmatprep.subr.bf16.mxu1 %v5930_v49  ;;  %3566 = vmatprep.mubr.bf16.mxu0 %v5933_v52  ;;  %v6005_v49 = vld [vmem:[%s6446_s6 + $0x34] ss:$144 sps:$4 sm:$0xff]  }
  0x5b   : > { %3631 = vmatprep.mubr.bf16.mxu1 %v5935_v53  ;;  %v6009_v52 = vld [vmem:[%s7592_s1 + $0x440] sm:$0xff]  }
  0x5c   : > { %5245 = vmatpush3.bf16.msra.mxu0 %v5931_v50  ;;  %v6006_v50 = vld [vmem:[%s6446_s6 + $0x38] ss:$144 sps:$4 sm:$0xff]   ;;  %v6010_v53 = vld [vmem:[%s7592_s1 + $0x4c0] sm:$0xff]  }
  0x5d   : > { %5285 = vmatpush3.bf16.msra.mxu1 %v5932_v51  ;;  %5246 = vmatprep.subr.bf16.mxu0 %v5939_v56  ;;  %v6008_v51 = vld [vmem:[%s6446_s6 + $0x3c] ss:$144 sps:$4 sm:$0xff]  }
  0x5e   : > { %5286 = vmatprep.subr.bf16.mxu1 %v5940_v57  ;;  %v6013_v56 = vld [vmem:[%s7592_s1 + $0x448] sm:$0xff]  }
  0x5f   : > { %3567 = vmatmul.mubr.bf16.gmra.mrb[28].mxu0 %v5937_v54  ;;  %v6011_v54 = vld [vmem:[%s7592_s1 + $0x400] sm:$0xff]   ;;  %v6014_v57 = vld [vmem:[%s7592_s1 + $0x4c8] sm:$0xff]  }
  0x60   : > { %3632 = vmatmul.mubr.bf16.gmra.mrb[28].mxu1 %v5938_v55  ;;  %5247 = vmatpush3.bf16.msra.mxu0 %v5941_v58  ;;  %v6012_v55 = vld [vmem:[%s7592_s1 + $0x480] sm:$0xff]   ;;  %v6015_v58 = vld [vmem:[%s7592_s1 + $0x408] sm:$0xff]  }
  0x61   : > { %5287 = vmatpush3.bf16.msra.mxu1 %v5942_v59  ;;  %5248 = vmatprep.subr.bf16.mxu0 %v5943_v60  ;;  %v6016_v59 = vld [vmem:[%s7592_s1 + $0x488] sm:$0xff]   ;;  %v6017_v60 = vld [vmem:[%s6446_s6 + $0x154] ss:$144 sps:$4 sm:$0xff]  }
  0x62   : > { %5288 = vmatprep.subr.bf16.mxu1 %v5944_v61  ;;  %3672 = vmatprep.mubr.bf16.mxu0 %v5949_v1  ;;  %v6019_v61 = vld [vmem:[%s6446_s6 + $0x15c] ss:$144 sps:$4 sm:$0xff]   ;;  %v6024_v1 = vld [vmem:[%s7592_s1 + $0x4d0] sm:$0xff]  }
  0x63   : > { %3737 = vmatprep.mubr.bf16.mxu1 %v5952_v3  ;;  %v6026_v3 = vld [vmem:[%s7592_s1 + $0x490] sm:$0xff]  }
  0x64   : > { %5249 = vmatpush3.bf16.msra.mxu0 %v5945_v62  ;;  %v6021_v62 = vld [vmem:[%s6446_s6 + $0x150] ss:$144 sps:$4 sm:$0xff]  }
  0x65   : > { %5289 = vmatpush3.bf16.msra.mxu1 %v5946_v63  ;;  %5314 = vmatprep.subr.bf16.mxu0 %v5953_v4  ;;  %v6022_v63 = vld [vmem:[%s6446_s6 + $0x158] ss:$144 sps:$4 sm:$0xff]  }
  0x66   : > { %5354 = vmatprep.subr.bf16.mxu1 %v5954_v5  ;;  %v6027_v4 = vld [vmem:[%s7592_s1 + $0x458] sm:$0xff]  }
  0x67   : > { %3673 = vmatmul.mubr.bf16.vlgmr.msra.gmra.mrb[32].mxu0 %v5947_v0  ;;  %v6023_v0 = vld [vmem:[%s7592_s1 + $0x450] sm:$0xff]   ;;  %v6028_v5 = vld [vmem:[%s7592_s1 + $0x4d8] sm:$0xff]  }
  0x68   : > { %3738 = vmatmul.mubr.bf16.vlgmr.msra.gmra.mrb[32].mxu1 %v5950_v2  ;;  %5315 = vmatpush3.bf16.msra.mxu0 %v5955_v6  ;;  %v6025_v2 = vld [vmem:[%s7592_s1 + $0x410] sm:$0xff]   ;;  %v6029_v6 = vld [vmem:[%s7592_s1 + $0x418] sm:$0xff]  }
  0x69   : > { %5355 = vmatpush3.bf16.msra.mxu1 %v5956_v7  ;;  %5316 = vmatprep.subr.bf16.mxu0 %v5957_v8  ;;  %v6030_v7 = vld [vmem:[%s7592_s1 + $0x498] sm:$0xff]   ;;  %v6031_v8 = vld [vmem:[%s6446_s6 + $0x274] ss:$144 sps:$4 sm:$0xff]  }
  0x6a   : > { %5356 = vmatprep.subr.bf16.mxu1 %v5958_v9  ;;  %3680 = vmatprep.mubr.bf16.mxu0 %v5961_v12  ;;  %v6033_v9 = vld [vmem:[%s6446_s6 + $0x27c] ss:$144 sps:$4 sm:$0xff]   ;;  %v6037_v12 = vld [vmem:[%s7592_s1 + $0x460] sm:$0xff]  }
  0x6b   : > { %3745 = vmatprep.mubr.bf16.mxu1 %v5963_v13  ;;  %v6038_v13 = vld [vmem:[%s7592_s1 + $0x4e0] sm:$0xff]  }
  0x6c   : > { %5317 = vmatpush3.bf16.msra.mxu0 %v5959_v10  ;;  %v6035_v10 = vld [vmem:[%s6446_s6 + $0x270] ss:$144 sps:$4 sm:$0xff]  }
  0x6d   : > { %5357 = vmatpush3.bf16.msra.mxu1 %v5960_v11  ;;  %5318 = vmatprep.subr.bf16.mxu0 %v5967_v16  ;;  %v6036_v11 = vld [vmem:[%s6446_s6 + $0x278] ss:$144 sps:$4 sm:$0xff]  }
  0x6e   : > { %5358 = vmatprep.subr.bf16.mxu1 %v5968_v17  ;;  %v6041_v16 = vld [vmem:[%s7592_s1 + $0x468] sm:$0xff]  }
  0x6f   : > { %3681 = vmatmul.mubr.bf16.gmra.mrb[36].mxu0 %v5965_v14  ;;  %v6039_v14 = vld [vmem:[%s7592_s1 + $0x420] sm:$0xff]   ;;  %v6042_v17 = vld [vmem:[%s7592_s1 + $0x4e8] sm:$0xff]  }
  0x70   : > { %3746 = vmatmul.mubr.bf16.gmra.mrb[36].mxu1 %v5966_v15  ;;  %5319 = vmatpush3.bf16.msra.mxu0 %v5969_v18  ;;  %v6040_v15 = vld [vmem:[%s7592_s1 + $0x4a0] sm:$0xff]   ;;  %v6043_v18 = vld [vmem:[%s7592_s1 + $0x428] sm:$0xff]  }
  0x71   : > { %5359 = vmatpush3.bf16.msra.mxu1 %v5970_v19  ;;  %5320 = vmatprep.subr.bf16.mxu0 %v5971_v20  ;;  %v6044_v19 = vld [vmem:[%s7592_s1 + $0x4a8] sm:$0xff]   ;;  %v6045_v20 = vld [vmem:[%s6446_s6 + $0x394] ss:$144 sps:$4 sm:$0xff]  }
  0x72   : > { %5360 = vmatprep.subr.bf16.mxu1 %v5972_v21  ;;  %3688 = vmatprep.mubr.bf16.mxu0 %v5975_v24  ;;  %v6047_v21 = vld [vmem:[%s6446_s6 + $0x39c] ss:$144 sps:$4 sm:$0xff]   ;;  %v6051_v24 = vld [vmem:[%s7592_s1 + $0x470] sm:$0xff]  }
  0x73   : > { %3753 = vmatprep.mubr.bf16.mxu1 %v5977_v25  ;;  %v6052_v25 = vld [vmem:[%s7592_s1 + $0x4f0] sm:$0xff]  }
  0x74   : > { %5321 = vmatpush3.bf16.msra.mxu0 %v5973_v22  ;;  %v6049_v22 = vld [vmem:[%s6446_s6 + $0x390] ss:$144 sps:$4 sm:$0xff]  }
  0x75   : > { %5361 = vmatpush3.bf16.msra.mxu1 %v5974_v23  ;;  %5322 = vmatprep.subr.bf16.mxu0 %v5981_v28  ;;  %v6050_v23 = vld [vmem:[%s6446_s6 + $0x398] ss:$144 sps:$4 sm:$0xff]  }
  0x76   : > { %5362 = vmatprep.subr.bf16.mxu1 %v5982_v29  ;;  %v6055_v28 = vld [vmem:[%s7592_s1 + $0x478] sm:$0xff]  }
  0x77   : > { %3689 = vmatmul.mubr.bf16.gmra.mrb[40].mxu0 %v5979_v26  ;;  %v6053_v26 = vld [vmem:[%s7592_s1 + $0x430] sm:$0xff]   ;;  %v6056_v29 = vld [vmem:[%s7592_s1 + $0x4f8] sm:$0xff]  }
  0x78   : > { %3754 = vmatmul.mubr.bf16.gmra.mrb[40].mxu1 %v5980_v27  ;;  %5323 = vmatpush3.bf16.msra.mxu0 %v5983_v30  ;;  %v6054_v27 = vld [vmem:[%s7592_s1 + $0x4b0] sm:$0xff]   ;;  %v6057_v30 = vld [vmem:[%s7592_s1 + $0x438] sm:$0xff]  }
  0x79   : > { %5363 = vmatpush3.bf16.msra.mxu1 %v5984_v31  ;;  %5324 = vmatprep.subr.bf16.mxu0 %v5985_v32  ;;  %v6058_v31 = vld [vmem:[%s7592_s1 + $0x4b8] sm:$0xff]   ;;  %v6059_v32 = vld [vmem:[%s6446_s6 + $0x40] ss:$144 sps:$4 sm:$0xff]  }
  0x7a   : > { %5364 = vmatprep.subr.bf16.mxu1 %v5986_v33  ;;  %3696 = vmatprep.mubr.bf16.mxu0 %v5989_v36  ;;  %v6061_v33 = vld [vmem:[%s6446_s6 + $0x44] ss:$144 sps:$4 sm:$0xff]  }
  0x7b   : > { %3761 = vmatprep.mubr.bf16.mxu1 %v5991_v37  ;;  %v6065_v36 = vld [vmem:[%s7592_s1 + $0x540] sm:$0xff]  }
  0x7c   : > { %5325 = vmatpush3.bf16.msra.mxu0 %v5987_v34  ;;  %v6062_v34 = vld [vmem:[%s6446_s6 + $0x48] ss:$144 sps:$4 sm:$0xff]   ;;  %v6066_v37 = vld [vmem:[%s7592_s1 + $0x5c0] sm:$0xff]  }
  0x7d   : > { %5365 = vmatpush3.bf16.msra.mxu1 %v5988_v35  ;;  %5326 = vmatprep.subr.bf16.mxu0 %v5995_v40  ;;  %v6064_v35 = vld [vmem:[%s6446_s6 + $0x4c] ss:$144 sps:$4 sm:$0xff]  }
  0x7e   : > { %5366 = vmatprep.subr.bf16.mxu1 %v5996_v41  ;;  %v6069_v40 = vld [vmem:[%s7592_s1 + $0x548] sm:$0xff]  }
  0x7f   : > { %3697 = vmatmul.mubr.bf16.gmra.mrb[44].mxu0 %v5993_v38  ;;  %v6067_v38 = vld [vmem:[%s7592_s1 + $0x500] sm:$0xff]   ;;  %v6070_v41 = vld [vmem:[%s7592_s1 + $0x5c8] sm:$0xff]  }
  0x80   : > { %3762 = vmatmul.mubr.bf16.gmra.mrb[44].mxu1 %v5994_v39  ;;  %5327 = vmatpush3.bf16.msra.mxu0 %v5997_v42  ;;  %v6068_v39 = vld [vmem:[%s7592_s1 + $0x580] sm:$0xff]   ;;  %v6071_v42 = vld [vmem:[%s7592_s1 + $0x508] sm:$0xff]  }
  0x81   : > { %5367 = vmatpush3.bf16.msra.mxu1 %v5998_v43  ;;  %5328 = vmatprep.subr.bf16.mxu0 %v5999_v44  ;;  %v6072_v43 = vld [vmem:[%s7592_s1 + $0x588] sm:$0xff]   ;;  %v6073_v44 = vld [vmem:[%s6446_s6 + $0x164] ss:$144 sps:$4 sm:$0xff]  }
  0x82   : > { %5368 = vmatprep.subr.bf16.mxu1 %v6000_v45  ;;  %3802 = vmatprep.mubr.bf16.mxu0 %v6005_v49  ;;  %v6075_v45 = vld [vmem:[%s6446_s6 + $0x16c] ss:$144 sps:$4 sm:$0xff]   ;;  %v6080_v49 = vld [vmem:[%s7592_s1 + $0x5d0] sm:$0xff]  }
  0x83   : > { %3867 = vmatprep.mubr.bf16.mxu1 %v6008_v51  ;;  %v6082_v51 = vld [vmem:[%s7592_s1 + $0x590] sm:$0xff]  }
  0x84   : > { %5329 = vmatpush3.bf16.msra.mxu0 %v6001_v46  ;;  %v6077_v46 = vld [vmem:[%s6446_s6 + $0x160] ss:$144 sps:$4 sm:$0xff]  }
  0x85   : > { %5369 = vmatpush3.bf16.msra.mxu1 %v6002_v47  ;;  %5394 = vmatprep.subr.bf16.mxu0 %v6009_v52  ;;  %v6078_v47 = vld [vmem:[%s6446_s6 + $0x168] ss:$144 sps:$4 sm:$0xff]  }
  0x86   : > { %5434 = vmatprep.subr.bf16.mxu1 %v6010_v53  ;;  %v6083_v52 = vld [vmem:[%s7592_s1 + $0x558] sm:$0xff]  }
  0x87   : > { %3803 = vmatmul.mubr.bf16.vlgmr.msra.gmra.mrb[48].mxu0 %v6003_v48  ;;  %v6079_v48 = vld [vmem:[%s7592_s1 + $0x550] sm:$0xff]   ;;  %v6084_v53 = vld [vmem:[%s7592_s1 + $0x5d8] sm:$0xff]  }
  0x88   : > { %3868 = vmatmul.mubr.bf16.vlgmr.msra.gmra.mrb[48].mxu1 %v6006_v50  ;;  %5395 = vmatpush3.bf16.msra.mxu0 %v6011_v54  ;;  %v6081_v50 = vld [vmem:[%s7592_s1 + $0x510] sm:$0xff]   ;;  %v6085_v54 = vld [vmem:[%s7592_s1 + $0x518] sm:$0xff]  }
  0x89   : > { %5435 = vmatpush3.bf16.msra.mxu1 %v6012_v55  ;;  %5396 = vmatprep.subr.bf16.mxu0 %v6013_v56  ;;  %v6086_v55 = vld [vmem:[%s7592_s1 + $0x598] sm:$0xff]   ;;  %v6087_v56 = vld [vmem:[%s6446_s6 + $0x284] ss:$144 sps:$4 sm:$0xff]  }
  0x8a   : > { %5436 = vmatprep.subr.bf16.mxu1 %v6014_v57  ;;  %3810 = vmatprep.mubr.bf16.mxu0 %v6017_v60  ;;  %v6089_v57 = vld [vmem:[%s6446_s6 + $0x28c] ss:$144 sps:$4 sm:$0xff]   ;;  %v6093_v60 = vld [vmem:[%s7592_s1 + $0x560] sm:$0xff]  }
  0x8b   : > { %3875 = vmatprep.mubr.bf16.mxu1 %v6019_v61  ;;  %v6094_v61 = vld [vmem:[%s7592_s1 + $0x5e0] sm:$0xff]  }
  0x8c   : > { %5397 = vmatpush3.bf16.msra.mxu0 %v6015_v58  ;;  %v6091_v58 = vld [vmem:[%s6446_s6 + $0x280] ss:$144 sps:$4 sm:$0xff]  }
  0x8d   : > { %5437 = vmatpush3.bf16.msra.mxu1 %v6016_v59  ;;  %5398 = vmatprep.subr.bf16.mxu0 %v6023_v0  ;;  %v6092_v59 = vld [vmem:[%s6446_s6 + $0x288] ss:$144 sps:$4 sm:$0xff]  }
  0x8e   : > { %5438 = vmatprep.subr.bf16.mxu1 %v6024_v1  ;;  %v6097_v0 = vld [vmem:[%s7592_s1 + $0x568] sm:$0xff]  }
  0x8f   : > { %3811 = vmatmul.mubr.bf16.gmra.mrb[52].mxu0 %v6021_v62  ;;  %v6095_v62 = vld [vmem:[%s7592_s1 + $0x520] sm:$0xff]   ;;  %v6098_v1 = vld [vmem:[%s7592_s1 + $0x5e8] sm:$0xff]  }
  0x90   : > { %3876 = vmatmul.mubr.bf16.gmra.mrb[52].mxu1 %v6022_v63  ;;  %5399 = vmatpush3.bf16.msra.mxu0 %v6025_v2  ;;  %v6096_v63 = vld [vmem:[%s7592_s1 + $0x5a0] sm:$0xff]   ;;  %v6099_v2 = vld [vmem:[%s7592_s1 + $0x528] sm:$0xff]  }
  0x91   : > { %5439 = vmatpush3.bf16.msra.mxu1 %v6026_v3  ;;  %5400 = vmatprep.subr.bf16.mxu0 %v6027_v4  ;;  %v6100_v3 = vld [vmem:[%s7592_s1 + $0x5a8] sm:$0xff]   ;;  %v6101_v4 = vld [vmem:[%s6446_s6 + $0x3a4] ss:$144 sps:$4 sm:$0xff]  }
  0x92   : > { %5440 = vmatprep.subr.bf16.mxu1 %v6028_v5  ;;  %3818 = vmatprep.mubr.bf16.mxu0 %v6031_v8  ;;  %v6103_v5 = vld [vmem:[%s6446_s6 + $0x3ac] ss:$144 sps:$4 sm:$0xff]   ;;  %v6107_v8 = vld [vmem:[%s7592_s1 + $0x570] sm:$0xff]  }
  0x93   : > { %3883 = vmatprep.mubr.bf16.mxu1 %v6033_v9  ;;  %v6108_v9 = vld [vmem:[%s7592_s1 + $0x5f0] sm:$0xff]  }
  0x94   : > { %5401 = vmatpush3.bf16.msra.mxu0 %v6029_v6  ;;  %v6105_v6 = vld [vmem:[%s6446_s6 + $0x3a0] ss:$144 sps:$4 sm:$0xff]  }
  0x95   : > { %5441 = vmatpush3.bf16.msra.mxu1 %v6030_v7  ;;  %5402 = vmatprep.subr.bf16.mxu0 %v6037_v12  ;;  %v6106_v7 = vld [vmem:[%s6446_s6 + $0x3a8] ss:$144 sps:$4 sm:$0xff]  }
  0x96   : > { %5442 = vmatprep.subr.bf16.mxu1 %v6038_v13  ;;  %v6111_v12 = vld [vmem:[%s7592_s1 + $0x578] sm:$0xff]  }
  0x97   : > { %3819 = vmatmul.mubr.bf16.gmra.mrb[56].mxu0 %v6035_v10  ;;  %v6109_v10 = vld [vmem:[%s7592_s1 + $0x530] sm:$0xff]   ;;  %v6112_v13 = vld [vmem:[%s7592_s1 + $0x5f8] sm:$0xff]  }
  0x98   : > { %3884 = vmatmul.mubr.bf16.gmra.mrb[56].mxu1 %v6036_v11  ;;  %5403 = vmatpush3.bf16.msra.mxu0 %v6039_v14  ;;  %v6110_v11 = vld [vmem:[%s7592_s1 + $0x5b0] sm:$0xff]   ;;  %v6113_v14 = vld [vmem:[%s7592_s1 + $0x538] sm:$0xff]  }
  0x99   : > { %5443 = vmatpush3.bf16.msra.mxu1 %v6040_v15  ;;  %5404 = vmatprep.subr.bf16.mxu0 %v6041_v16  ;;  %v6114_v15 = vld [vmem:[%s7592_s1 + $0x5b8] sm:$0xff]   ;;  %v6115_v16 = vld [vmem:[%s6446_s6 + $0x50] ss:$144 sps:$4 sm:$0xff]  }
  0x9a   : > { %5444 = vmatprep.subr.bf16.mxu1 %v6042_v17  ;;  %3826 = vmatprep.mubr.bf16.mxu0 %v6045_v20  ;;  %v6117_v17 = vld [vmem:[%s6446_s6 + $0x54] ss:$144 sps:$4 sm:$0xff]  }
  0x9b   : > { %3891 = vmatprep.mubr.bf16.mxu1 %v6047_v21  ;;  %v6121_v21 = vld [vmem:[%s7592_s1 + $0x640] sm:$0xff]  }
  0x9c   : > { %5405 = vmatpush3.bf16.msra.mxu0 %v6043_v18  ;;  %v6118_v18 = vld [vmem:[%s6446_s6 + $0x58] ss:$144 sps:$4 sm:$0xff]  }
  0x9d   : > { %5445 = vmatpush3.bf16.msra.mxu1 %v6044_v19  ;;  %5406 = vmatprep.subr.bf16.mxu0 %v6051_v24  ;;  %v6120_v19 = vld [vmem:[%s6446_s6 + $0x5c] ss:$144 sps:$4 sm:$0xff]  }
  0x9e   : > { %5446 = vmatprep.subr.bf16.mxu1 %v6052_v25  ;;  %v6123_v25 = vld [vmem:[%s7592_s1 + $0x600] sm:$0xff]  }
  0x9f   : > { %3827 = vmatmul.mubr.bf16.gmra.mrb[60].mxu0 %v6049_v22 }
  0xa0   : > { %3892 = vmatmul.mubr.bf16.gmra.mrb[60].mxu1 %v6050_v23  ;;  %5407 = vmatpush3.bf16.msra.mxu0 %v6053_v26  ;;  %v6122_v23 = vld [vmem:[%s7592_s1 + $0x6c0] sm:$0xff]  }
  0xa1   : > { %5447 = vmatpush3.bf16.msra.mxu1 %v6054_v27  ;;  %5408 = vmatprep.subr.bf16.mxu0 %v6055_v28  ;;  %v6124_v28 = vld [vmem:[%s7592_s1 + $0x680] sm:$0xff]  }
  0xa2   : > { %5448 = vmatprep.subr.bf16.mxu1 %v6056_v29  ;;  %3932 = vmatprep.mubr.bf16.mxu0 %v6061_v33  ;;  %v6126_v33 = vld [vmem:[%s7592_s1 + $0x6c8] sm:$0xff]  }
  0xa3   : > { %3997 = vmatprep.mubr.bf16.mxu1 %v6064_v35  ;;  %v6127_v35 = vld [vmem:[%s7592_s1 + $0x608] sm:$0xff]  }
  0xa4   : > { %5409 = vmatpush3.bf16.msra.mxu0 %v6057_v30 }
  0xa5   : > { %5449 = vmatpush3.bf16.msra.mxu1 %v6058_v31  ;;  %5474 = vmatprep.subr.bf16.mxu0 %v6065_v36  ;;  %v6125_v31 = vld [vmem:[%s7592_s1 + $0x648] sm:$0xff]  }
  0xa6   : > { %5514 = vmatprep.subr.bf16.mxu1 %v6066_v37 }
  0xa7   : > { %3933 = vmatmul.mubr.bf16.vlgmr.msra.gmra.mrb[64].mxu0 %v6059_v32 }
  0xa8   : > { %3998 = vmatmul.mubr.bf16.vlgmr.msra.gmra.mrb[64].mxu1 %v6062_v34  ;;  %5475 = vmatpush3.bf16.msra.mxu0 %v6067_v38  ;;  %v6128_v38 = vld [vmem:[%s7592_s1 + $0x688] sm:$0xff]  }
  0xa9   : > { %5515 = vmatpush3.bf16.msra.mxu1 %v6068_v39  ;;  %5476 = vmatprep.subr.bf16.mxu0 %v6069_v40  ;;  %v6129_v40 = vld [vmem:[%s6446_s6 + $0x174] ss:$144 sps:$4 sm:$0xff]  }
  0xaa   : > { %5516 = vmatprep.subr.bf16.mxu1 %v6070_v41  ;;  %3940 = vmatprep.mubr.bf16.mxu0 %v6073_v44  ;;  %v6131_v41 = vld [vmem:[%s6446_s6 + $0x17c] ss:$144 sps:$4 sm:$0xff]   ;;  %v6134_v44 = vld [vmem:[%s6446_s6 + $0x178] ss:$144 sps:$4 sm:$0xff]  }
  0xab   : > { %4005 = vmatprep.mubr.bf16.mxu1 %v6075_v45  ;;  %v6135_v45 = vld [vmem:[%s7592_s1 + $0x650] sm:$0xff]  }
  0xac   : > { %5477 = vmatpush3.bf16.msra.mxu0 %v6071_v42 }
  0xad   : > { %5517 = vmatpush3.bf16.msra.mxu1 %v6072_v43  ;;  %5478 = vmatprep.subr.bf16.mxu0 %v6079_v48  ;;  %v6133_v43 = vld [vmem:[%s6446_s6 + $0x170] ss:$144 sps:$4 sm:$0xff]  }
  0xae   : > { %5518 = vmatprep.subr.bf16.mxu1 %v6080_v49  ;;  %v6137_v49 = vld [vmem:[%s7592_s1 + $0x610] sm:$0xff]  }
  0xaf   : > { %3941 = vmatmul.mubr.bf16.gmra.mrb[68].mxu0 %v6077_v46 }
  0xb0   : > { %4006 = vmatmul.mubr.bf16.gmra.mrb[68].mxu1 %v6078_v47  ;;  %5479 = vmatpush3.bf16.msra.mxu0 %v6081_v50  ;;  %v6136_v47 = vld [vmem:[%s7592_s1 + $0x6d0] sm:$0xff]  }
  0xb1   : > { %5519 = vmatpush3.bf16.msra.mxu1 %v6082_v51  ;;  %5480 = vmatprep.subr.bf16.mxu0 %v6083_v52  ;;  %v6138_v52 = vld [vmem:[%s7592_s1 + $0x690] sm:$0xff]  }
  0xb2   : > { %5520 = vmatprep.subr.bf16.mxu1 %v6084_v53  ;;  %3948 = vmatprep.mubr.bf16.mxu0 %v6087_v56 }
  0xb3   : > { %4013 = vmatprep.mubr.bf16.mxu1 %v6089_v57  ;;  %v6140_v57 = vld [vmem:[%s7592_s1 + $0x6d8] sm:$0xff]  }
  0xb4   : > { %5481 = vmatpush3.bf16.msra.mxu0 %v6085_v54 }
  0xb5   : > { %5521 = vmatpush3.bf16.msra.mxu1 %v6086_v55  ;;  %5482 = vmatprep.subr.bf16.mxu0 %v6093_v60  ;;  %v6139_v55 = vld [vmem:[%s7592_s1 + $0x658] sm:$0xff]  }
  0xb6   : > { %5522 = vmatprep.subr.bf16.mxu1 %v6094_v61 }
  0xb7   : > { %3949 = vmatmul.mubr.bf16.gmra.mrb[72].mxu0 %v6091_v58 }
  0xb8   : > { %4014 = vmatmul.mubr.bf16.gmra.mrb[72].mxu1 %v6092_v59  ;;  %5483 = vmatpush3.bf16.msra.mxu0 %v6095_v62  ;;  %v6141_v59 = vld [vmem:[%s7592_s1 + $0x618] sm:$0xff]  }
  0xb9   : > { %5523 = vmatpush3.bf16.msra.mxu1 %v6096_v63  ;;  %5484 = vmatprep.subr.bf16.mxu0 %v6097_v0  ;;  %v6142_v62 = vld [vmem:[%s7592_s1 + $0x698] sm:$0xff]   ;;  %v6143_v0 = vld [vmem:[%s6446_s6 + $0x294] ss:$144 sps:$4 sm:$0xff]  }
  0xba   : > { %5524 = vmatprep.subr.bf16.mxu1 %v6098_v1  ;;  %3956 = vmatprep.mubr.bf16.mxu0 %v6101_v4  ;;  %v6145_v1 = vld [vmem:[%s6446_s6 + $0x29c] ss:$144 sps:$4 sm:$0xff]   ;;  %v6148_v4 = vld [vmem:[%s6446_s6 + $0x298] ss:$144 sps:$4 sm:$0xff]  }
  0xbb   : > { %4021 = vmatprep.mubr.bf16.mxu1 %v6103_v5  ;;  %v6149_v5 = vld [vmem:[%s7592_s1 + $0x660] sm:$0xff]  }
  0xbc   : > { %5485 = vmatpush3.bf16.msra.mxu0 %v6099_v2  ;;  %v6147_v2 = vld [vmem:[%s6446_s6 + $0x290] ss:$144 sps:$4 sm:$0xff]  }
  0xbd   : > { %5525 = vmatpush3.bf16.msra.mxu1 %v6100_v3  ;;  %5486 = vmatprep.subr.bf16.mxu0 %v6107_v8 }
  0xbe   : > { %5526 = vmatprep.subr.bf16.mxu1 %v6108_v9  ;;  %v6151_v9 = vld [vmem:[%s7592_s1 + $0x620] sm:$0xff]  }
  0xbf   : > { %3957 = vmatmul.mubr.bf16.gmra.mrb[76].mxu0 %v6105_v6 }
  0xc0   : > { %4022 = vmatmul.mubr.bf16.gmra.mrb[76].mxu1 %v6106_v7  ;;  %5487 = vmatpush3.bf16.msra.mxu0 %v6109_v10  ;;  %v6150_v7 = vld [vmem:[%s7592_s1 + $0x6e0] sm:$0xff]  }
  0xc1   : > { %5527 = vmatpush3.bf16.msra.mxu1 %v6110_v11  ;;  %5488 = vmatprep.subr.bf16.mxu0 %v6111_v12  ;;  %v6152_v12 = vld [vmem:[%s7592_s1 + $0x6a0] sm:$0xff]  }
  0xc2   : > { %5528 = vmatprep.subr.bf16.mxu1 %v6112_v13  ;;  %4062 = vmatprep.mubr.bf16.mxu0 %v6117_v17  ;;  %v6154_v17 = vld [vmem:[%s7592_s1 + $0x6e8] sm:$0xff]  }
  0xc3   : > { %4127 = vmatprep.mubr.bf16.mxu1 %v6120_v19  ;;  %v6155_v19 = vld [vmem:[%s7592_s1 + $0x628] sm:$0xff]  }
  0xc4   : > { %5489 = vmatpush3.bf16.msra.mxu0 %v6113_v14 }
  0xc5   : > { %5529 = vmatpush3.bf16.msra.mxu1 %v6114_v15  ;;  %5554 = vmatprep.subr.bf16.mxu0 %v6121_v21  ;;  %v6153_v15 = vld [vmem:[%s7592_s1 + $0x668] sm:$0xff]  }
  0xc6   : > { %5594 = vmatprep.subr.bf16.mxu1 %v6122_v23 }
  0xc7   : > { %4063 = vmatmul.mubr.bf16.vlgmr.msra.gmra.mrb[80].mxu0 %v6115_v16 }
  0xc8   : > { %4128 = vmatmul.mubr.bf16.vlgmr.msra.gmra.mrb[80].mxu1 %v6118_v18  ;;  %5555 = vmatpush3.bf16.msra.mxu0 %v6123_v25  ;;  %v6159_v25 = vld [vmem:[%s6446_s6 + $0x3bc] ss:$144 sps:$4 sm:$0xff]  }
  0xc9   : > { %5595 = vmatpush3.bf16.msra.mxu1 %v6124_v28  ;;  %5556 = vmatprep.subr.bf16.mxu0 %v6125_v31  ;;  %v6162_v28 = vld [vmem:[%s6446_s6 + $0x3b8] ss:$144 sps:$4 sm:$0xff]  }
  0xca   : > { %5596 = vmatprep.subr.bf16.mxu1 %v6126_v33  ;;  %4070 = vmatprep.mubr.bf16.mxu0 %v6129_v40 }
  0xcb   : > { %4135 = vmatprep.mubr.bf16.mxu1 %v6131_v41  ;;  %v6167_v41 = vld [vmem:[%s7592_s1 + $0x678] sm:$0xff]  }
  0xcc   : > { %5557 = vmatpush3.bf16.msra.mxu0 %v6127_v35 }
  0xcd   : > { %5597 = vmatpush3.bf16.msra.mxu1 %v6128_v38  ;;  %5558 = vmatprep.subr.bf16.mxu0 %v6135_v45 }
  0xce   : > { %5598 = vmatprep.subr.bf16.mxu1 %v6136_v47 }
  0xcf   : > { %4071 = vmatmul.mubr.bf16.gmra.mrb[84].mxu0 %v6133_v43 }
  0xd0   : > { %4136 = vmatmul.mubr.bf16.gmra.mrb[84].mxu1 %v6134_v44  ;;  %5559 = vmatpush3.bf16.msra.mxu0 %v6137_v49  ;;  %v6168_v44 = vld [vmem:[%s7592_s1 + $0x6f8] sm:$0xff]  }
  0xd1   : > { %5599 = vmatpush3.bf16.msra.mxu1 %v6138_v52  ;;  %5560 = vmatprep.subr.bf16.mxu0 %v6139_v55  ;;  %v6171_v52 = vld [vmem:[%s6446_s6 + $0x60] ss:$144 sps:$4 sm:$0xff]   ;;  %v6173_v55 = vld [vmem:[%s6446_s6 + $0x64] ss:$144 sps:$4 sm:$0xff]  }
  0xd2   : > { %5600 = vmatprep.subr.bf16.mxu1 %v6140_v57  ;;  %4078 = vmatprep.mubr.bf16.mxu0 %v6143_v0  ;;  %v6174_v57 = vld [vmem:[%s6446_s6 + $0x68] ss:$144 sps:$4 sm:$0xff]  }
  0xd3   : > { %4143 = vmatprep.mubr.bf16.mxu1 %v6145_v1  ;;  %v6179_v1 = vld [vmem:[%s7592_s1 + $0x700] sm:$0xff]  }
  0xd4   : > { %5561 = vmatpush3.bf16.msra.mxu0 %v6141_v59  ;;  %v6177_v59 = vld [vmem:[%s7592_s1 + $0x740] sm:$0xff]  }
  0xd5   : > { %5601 = vmatpush3.bf16.msra.mxu1 %v6142_v62  ;;  %5562 = vmatprep.subr.bf16.mxu0 %v6149_v5  ;;  %v6178_v62 = vld [vmem:[%s7592_s1 + $0x7c0] sm:$0xff]  }
  0xd6   : > { %5602 = vmatprep.subr.bf16.mxu1 %v6150_v7  ;;  %v6181_v7 = vld [vmem:[%s7592_s1 + $0x748] sm:$0xff]  }
  0xd7   : > { %4079 = vmatmul.mubr.bf16.gmra.mrb[88].mxu0 %v6147_v2 }
  0xd8   : > { %4144 = vmatmul.mubr.bf16.gmra.mrb[88].mxu1 %v6148_v4  ;;  %5563 = vmatpush3.bf16.msra.mxu0 %v6151_v9  ;;  %v6180_v4 = vld [vmem:[%s7592_s1 + $0x780] sm:$0xff]   ;;  %v6182_v9 = vld [vmem:[%s7592_s1 + $0x7c8] sm:$0xff]  }
  0xd9   : > { %5603 = vmatpush3.bf16.msra.mxu1 %v6152_v12  ;;  %5564 = vmatprep.subr.bf16.mxu0 %v6153_v15  ;;  %v6183_v12 = vld [vmem:[%s7592_s1 + $0x708] sm:$0xff]  }
  0xda   : > { %5604 = vmatprep.subr.bf16.mxu1 %v6154_v17  ;;  %4151 = vmatprep.mubr.bf16.mxu1 %v6159_v25  ;;  %v6191_v25 = vld [vmem:[%s7592_s1 + $0x750] sm:$0xff]  }
  0xdc   : > { %5565 = vmatpush3.bf16.msra.mxu0 %v6155_v19  ;;  %v6187_v19 = vld [vmem:[%s6446_s6 + $0x18c] ss:$144 sps:$4 sm:$0xff]  }
  0xe0   : > { %4152 = vmatmul.mubr.bf16.gmra.mrb[92].mxu1 %v6162_v28  ;;  %v6192_v28 = vld [vmem:[%s7592_s1 + $0x7d0] sm:$0xff]  }
  0xfa   : > { %v5090_v20 = vpop.f32.mrb[0].mxu0 }
  0xfb   : > { %v5130_v22 = vpop.f32.mrb[0].mxu1  ;;  %v5091_v24 = vpop.f32.mrb[1].mxu0 }
  0xfc   : > { %v7027_v26 = vadd.f32 %v5091_v24, %v5090_v20  ;;  %v5131_v27 = vpop.f32.mrb[1].mxu1  ;;  %v5093_v30 = vpop.f32.mrb[2].mxu0  ;;  %v6157_v24 = vld [vmem:[%s6446_s6 + $0x3b4] ss:$144 sps:$4 sm:$0xff]  }
  0xfd   : > { %v7032_v29 = vadd.f32 %v5131_v27, %v5130_v22  ;;  %v5133_v32 = vpop.f32.mrb[2].mxu1  ;;  %v5094_v34 = vpop.f32.mrb[3].mxu0  ;;  %v6156_v22 = vld [vmem:[%s7592_s1 + $0x6a8] sm:$0xff]   ;;  %v6161_v27 = vld [vmem:[%s6446_s6 + $0x3b0] ss:$144 sps:$4 sm:$0xff]   ;;  %4086 = vmatprep.mubr.bf16.mxu0 %v6157_v24 }
  0xfe   : > { %v7043_v36 = vadd.f32 %v5094_v34, %v5093_v30  ;;  %v5134_v37 = vpop.f32.mrb[3].mxu1  ;;  %5605 = vmatpush3.bf16.msra.mxu1 %v6156_v22  ;;  %v6163_v30 = vld [vmem:[%s7592_s1 + $0x670] sm:$0xff]   ;;  %4087 = vmatmul.mubr.bf16.gmra.mrb[92].mxu0 %v6161_v27  ;;  %v6190_v24 = vld [vmem:[%s6446_s6 + $0x188] ss:$144 sps:$4 sm:$0xff]  }
  0xff   : > { %v7048_v39 = vadd.f32 %v5134_v37, %v5133_v32  ;;  %v6164_v32 = vld [vmem:[%s7592_s1 + $0x6f0] sm:$0xff]   ;;  %5566 = vmatprep.subr.bf16.mxu0 %v6163_v30  ;;  %4192 = vmatprep.mubr.bf16.mxu0 %v6173_v55  ;;  %v6201_v55 = vld [vmem:[%s6446_s6 + $0x2ac] ss:$144 sps:$4 sm:$0xff]  }
 0x100   : > { %v6165_v34 = vld [vmem:[%s7592_s1 + $0x630] sm:$0xff]   ;;  %5606 = vmatprep.subr.bf16.mxu1 %v6164_v32 }
 0x101   : > { %v6166_v37 = vld [vmem:[%s7592_s1 + $0x6b0] sm:$0xff]   ;;  %5567 = vmatpush3.bf16.msra.mxu0 %v6165_v34 }
 0x102   : > { %v5096_v42 = vpop.f32.mrb[4].mxu0  ;;  %5607 = vmatpush3.bf16.msra.mxu1 %v6166_v37  ;;  %5568 = vmatprep.subr.bf16.mxu0 %v6167_v41  ;;  %v6194_v34 = vld [vmem:[%s7592_s1 + $0x790] sm:$0xff]  }
 0x103   : > { %v5136_v46 = vpop.f32.mrb[4].mxu1  ;;  %v5097_v48 = vpop.f32.mrb[5].mxu0  ;;  %5608 = vmatprep.subr.bf16.mxu1 %v6168_v44 }
 0x104   : > { %v7063_v50 = vadd.f32 %v5097_v48, %v5096_v42  ;;  %v5137_v51 = vpop.f32.mrb[5].mxu1  ;;  %v5099_v54 = vpop.f32.mrb[6].mxu0  ;;  %v6170_v48 = vld [vmem:[%s7592_s1 + $0x6b8] sm:$0xff]  }
 0x105   : > { %v7068_v53 = vadd.f32 %v5137_v51, %v5136_v46  ;;  %v5139_v56 = vpop.f32.mrb[6].mxu1  ;;  %v5100_v58 = vpop.f32.mrb[7].mxu0  ;;  %v6169_v46 = vld [vmem:[%s7592_s1 + $0x638] sm:$0xff]  }
 0x106   : > { %v7079_v60 = vadd.f32 %v5100_v58, %v5099_v54  ;;  %v5140_v61 = vpop.f32.mrb[7].mxu1  ;;  %5569 = vmatpush3.bf16.msra.mxu0 %v6169_v46  ;;  %5609 = vmatpush3.bf16.msra.mxu1 %v6170_v48  ;;  %v6176_v58 = vld [vmem:[%s6446_s6 + $0x6c] ss:$144 sps:$4 sm:$0xff]  }
 0x107   : > { %v7084_v63 = vadd.f32 %v5140_v61, %v5139_v56  ;;  %4257 = vmatprep.mubr.bf16.mxu1 %v6176_v58  ;;  %5634 = vmatprep.subr.bf16.mxu0 %v6177_v59  ;;  %v6198_v48 = vld [vmem:[%s7592_s1 + $0x798] sm:$0xff]   ;;  %v6205_v58 = vld [vmem:[%s7592_s1 + $0x760] sm:$0xff]  }
 0x108   : > { %5674 = vmatprep.subr.bf16.mxu1 %v6178_v62 }
 0x109   : > { %4193 = vmatmul.mubr.bf16.vlgmr.msra.gmra.mrb[96].mxu0 %v6171_v52  ;;  %4258 = vmatmul.mubr.bf16.vlgmr.msra.gmra.mrb[96].mxu1 %v6174_v57  ;;  %v6199_v52 = vld [vmem:[%s6446_s6 + $0x2a4] ss:$144 sps:$4 sm:$0xff]   ;;  %v6204_v57 = vld [vmem:[%s6446_s6 + $0x2a8] ss:$144 sps:$4 sm:$0xff]  }
 0x10a   : > { %v5102_v3 = vpop.f32.mrb[8].mxu0  ;;  %5635 = vmatpush3.bf16.msra.mxu0 %v6179_v1  ;;  %5675 = vmatpush3.bf16.msra.mxu1 %v6180_v4 }
 0x10b   : > { %v5142_v6 = vpop.f32.mrb[8].mxu1  ;;  %v5103_v8 = vpop.f32.mrb[9].mxu0  ;;  %5636 = vmatprep.subr.bf16.mxu0 %v6181_v7  ;;  %5676 = vmatprep.subr.bf16.mxu1 %v6182_v9  ;;  %v4638_v7 = vld [vmem:[%s7593_s2] ss:$0 sm:$0xff] }
 0x10c   : > { %v7099_v10 = vadd.f32 %v5103_v8, %v5102_v3  ;;  %v5143_v11 = vpop.f32.mrb[9].mxu1  ;;  %v5105_v14 = vpop.f32.mrb[10].mxu0  ;;  %4265 = vmatprep.mubr.bf16.mxu1 %v6187_v19  ;;  %v3415_v9 = vadd.f32 %v7027_v26, %v4638_v7  ;;  %v6210_v19 = vld [vmem:[%s7592_s1 + $0x7e8] sm:$0xff]  }
 0x10d   : > { %v7104_v13 = vadd.f32 %v5143_v11, %v5142_v6  ;;  %v5145_v16 = vpop.f32.mrb[10].mxu1  ;;  %v5106_v18 = vpop.f32.mrb[11].mxu0 }
 0x10e   : > { %v7115_v20 = vadd.f32 %v5106_v18, %v5105_v14  ;;  %v5146_v21 = vpop.f32.mrb[11].mxu1  ;;  %5637 = vmatpush3.bf16.msra.mxu0 %v6183_v12  ;;  %v6185_v18 = vld [vmem:[%s6446_s6 + $0x184] ss:$144 sps:$4 sm:$0xff]   ;;  %v3418_v12 = vadd.f32 %v7043_v36, %v4638_v7  ;;  %v3480_v36 = vadd.f32 %v7032_v29, %v3415_v9  ;;  %v6227_v9 = vld [vmem:[%s6446_s6 + $0x70] ss:$144 sps:$4 sm:$0xff]  }
 0x10f   : > { %v7120_v23 = vadd.f32 %v5146_v21, %v5145_v16  ;;  %v6184_v16 = vld [vmem:[%s7592_s1 + $0x788] sm:$0xff]   ;;  %v6189_v21 = vld [vmem:[%s6446_s6 + $0x180] ss:$144 sps:$4 sm:$0xff]   ;;  %4200 = vmatprep.mubr.bf16.mxu0 %v6185_v18  ;;  %5638 = vmatprep.subr.bf16.mxu0 %v6191_v25 }
 0x110   : > { %5677 = vmatpush3.bf16.msra.mxu1 %v6184_v16  ;;  %v3426_v16 = vadd.f32 %v7079_v60, %v4638_v7  ;;  %v3483_v60 = vadd.f32 %v7048_v39, %v3418_v12  ;;  %v6229_v12 = vld [vmem:[%s6446_s6 + $0x74] ss:$144 sps:$4 sm:$0xff]  }
 0x111   : > { %4201 = vmatmul.mubr.bf16.gmra.mrb[100].mxu0 %v6189_v21  ;;  %4266 = vmatmul.mubr.bf16.gmra.mrb[100].mxu1 %v6190_v24  ;;  %v3431_v21 = vadd.f32 %v7099_v10, %v4638_v7 }
 0x112   : > { %v5108_v31 = vpop.f32.mrb[12].mxu0  ;;  %5678 = vmatprep.subr.bf16.mxu1 %v6192_v28  ;;  %4208 = vmatprep.mubr.bf16.mxu0 %v6199_v52  ;;  %v3491_v10 = vadd.f32 %v7084_v63, %v3426_v16  ;;  %v6213_v63 = vld [vmem:[%s6446_s6 + $0x3c4] ss:$144 sps:$4 sm:$0xff]   ;;  %v6230_v16 = vld [vmem:[%s6446_s6 + $0x78] ss:$144 sps:$4 sm:$0xff]  }
 0x113   : > { %v5148_v33 = vpop.f32.mrb[12].mxu1  ;;  %v5109_v35 = vpop.f32.mrb[13].mxu0  ;;  %4273 = vmatprep.mubr.bf16.mxu1 %v6201_v55  ;;  %v3496_v29 = vadd.f32 %v7104_v13, %v3431_v21  ;;  %v6217_v13 = vld [vmem:[%s6446_s6 + $0x3c0] ss:$144 sps:$4 sm:$0xff]  }
 0x114   : > { %v7138_v38 = vadd.f32 %v5109_v35, %v5108_v31  ;;  %v5149_v40 = vpop.f32.mrb[13].mxu1  ;;  %v5111_v43 = vpop.f32.mrb[14].mxu0  ;;  %v6193_v31 = vld [vmem:[%s7592_s1 + $0x710] sm:$0xff]   ;;  %5679 = vmatpush3.bf16.msra.mxu1 %v6194_v34  ;;  %v6233_v21 = vld [vmem:[%s7592_s1 + $0x840] sm:$0xff]  }
 0x115   : > { %v7143_v42 = vadd.f32 %v5149_v40, %v5148_v33  ;;  %v5151_v45 = vpop.f32.mrb[14].mxu1  ;;  %v5112_v47 = vpop.f32.mrb[15].mxu0  ;;  %5639 = vmatpush3.bf16.msra.mxu0 %v6193_v31  ;;  %v6195_v40 = vld [vmem:[%s7592_s1 + $0x758] sm:$0xff]   ;;  %v6222_v52 = vld [vmem:[%s7592_s1 + $0x7b0] sm:$0xff]  }
 0x116   : > { %v7154_v49 = vadd.f32 %v5112_v47, %v5111_v43  ;;  %v5152_v51 = vpop.f32.mrb[15].mxu1  ;;  %v6196_v43 = vld [vmem:[%s7592_s1 + $0x7d8] sm:$0xff]   ;;  %5640 = vmatprep.subr.bf16.mxu0 %v6195_v40  ;;  %v3439_v26 = vadd.f32 %v7138_v38, %v4638_v7  ;;  %v6212_v38 = vld [vmem:[%s7592_s1 + $0x7a8] sm:$0xff]  }
 0x117   : > { %v7157_v54 = vadd.f32 %v5152_v51, %v5151_v45  ;;  %v6197_v45 = vld [vmem:[%s7592_s1 + $0x718] sm:$0xff]   ;;  %5680 = vmatprep.subr.bf16.mxu1 %v6196_v43 }
 0x118   : > { %5681 = vmatpush3.bf16.msra.mxu1 %v6198_v48  ;;  %v3442_v24 = vadd.f32 %v7154_v49, %v4638_v7  ;;  %v3504_v28 = vadd.f32 %v7143_v42, %v3439_v26  ;;  %v6215_v40 = vld [vmem:[%s6446_s6 + $0x3cc] ss:$144 sps:$4 sm:$0xff]   ;;  %v6234_v26 = vld [vmem:[%s7592_s1 + $0x8c0] sm:$0xff]  }
 0x119   : > { %5641 = vmatpush3.bf16.msra.mxu0 %v6197_v45  ;;  %4274 = vmatmul.mubr.bf16.gmra.mrb[104].mxu1 %v6204_v57 }
 0x11a   : > { %v5170_v56 = vpop.f32.mrb[16].mxu0  ;;  %5642 = vmatprep.subr.bf16.mxu0 %v6205_v58  ;;  %v3507_v39 = vadd.f32 %v7157_v54, %v3442_v24  ;;  %v6219_v54 = vld [vmem:[%s7592_s1 + $0x770] sm:$0xff]   ;;  %4281 = vmatprep.mubr.bf16.mxu1 %v6215_v40  ;;  %v6223_v58 = vld [vmem:[%s7592_s1 + $0x778] sm:$0xff]  }
 0x11b   : > { %v5210_v61 = vpop.f32.mrb[16].mxu1  ;;  %v5171_v0 = vpop.f32.mrb[17].mxu0  ;;  %v6243_v40 = vld [vmem:[%s6446_s6 + $0x19c] ss:$144 sps:$4 sm:$0xff]  }
 0x11c   : > { %v7171_v2 = vadd.f32 %v5171_v0, %v5170_v56  ;;  %v5211_v3 = vpop.f32.mrb[17].mxu1  ;;  %v5173_v6 = vpop.f32.mrb[18].mxu0  ;;  %v6203_v56 = vld [vmem:[%s6446_s6 + $0x2a0] ss:$144 sps:$4 sm:$0xff]  }
 0x11d   : > { %v7176_v5 = vadd.f32 %v5211_v3, %v5210_v61  ;;  %v5213_v8 = vpop.f32.mrb[18].mxu1  ;;  %v5174_v11 = vpop.f32.mrb[19].mxu0  ;;  %4209 = vmatmul.mubr.bf16.gmra.mrb[104].mxu0 %v6203_v56  ;;  %v6206_v61 = vld [vmem:[%s7592_s1 + $0x7e0] sm:$0xff]  }
 0x11e   : > { %v7187_v14 = vadd.f32 %v5174_v11, %v5173_v6  ;;  %v5214_v15 = vpop.f32.mrb[19].mxu1  ;;  %v6207_v0 = vld [vmem:[%s7592_s1 + $0x720] sm:$0xff]   ;;  %5682 = vmatprep.subr.bf16.mxu1 %v6206_v61  ;;  %v6209_v11 = vld [vmem:[%s7592_s1 + $0x768] sm:$0xff]   ;;  %4216 = vmatprep.mubr.bf16.mxu0 %v6213_v63 }
 0x11f   : > { %v7192_v17 = vadd.f32 %v5214_v15, %v5213_v8  ;;  %v6208_v3 = vld [vmem:[%s7592_s1 + $0x7a0] sm:$0xff]   ;;  %5643 = vmatpush3.bf16.msra.mxu0 %v6207_v0  ;;  %v3423_v15 = vadd.f32 %v7063_v50, %v4638_v7  ;;  %v6211_v50 = vld [vmem:[%s7592_s1 + $0x728] sm:$0xff]  }
 0x120   : > { %5683 = vmatpush3.bf16.msra.mxu1 %v6208_v3  ;;  %5644 = vmatprep.subr.bf16.mxu0 %v6209_v11  ;;  %v3548_v31 = vadd.f32 %v7187_v14, %v3483_v60  ;;  %v6236_v60 = vld [vmem:[%s7592_s1 + $0x880] sm:$0xff]  }
 0x121   : > { %5684 = vmatprep.subr.bf16.mxu1 %v6210_v19 }
 0x122   : > { %v5176_v22 = vpop.f32.mrb[20].mxu0  ;;  %v7289_v14 = vadd.f32 %v7192_v17, %v3548_v31  ;;  %v6221_v17 = vld [vmem:[%s7592_s1 + $0x730] sm:$0xff]   ;;  %v6240_v31 = vld [vmem:[%s7592_s1 + $0x888] sm:$0xff]  }
 0x123   : > { %v5216_v27 = vpop.f32.mrb[20].mxu1  ;;  %v5177_v30 = vpop.f32.mrb[21].mxu0  ;;  %5645 = vmatpush3.bf16.msra.mxu0 %v6211_v50 }
 0x124   : > { %v7207_v32 = vadd.f32 %v5177_v30, %v5176_v22  ;;  %v5217_v33 = vpop.f32.mrb[21].mxu1  ;;  %v5179_v37 = vpop.f32.mrb[22].mxu0  ;;  %v3434_v22 = vadd.f32 %v7115_v20, %v4638_v7  ;;  %v3545_v30 = vadd.f32 %v7171_v2, %v3480_v36  ;;  %5685 = vmatpush3.bf16.msra.mxu1 %v6212_v38  ;;  %5646 = vmatprep.subr.bf16.mxu0 %v6219_v54  ;;  %v6226_v7 = vld [vmem:[%s7592_s1 + $0x7b8] sm:$0xff]  }
 0x125   : > { %v7212_v35 = vadd.f32 %v5217_v33, %v5216_v27  ;;  %v5219_v41 = vpop.f32.mrb[22].mxu1  ;;  %v5180_v44 = vpop.f32.mrb[23].mxu0  ;;  %v3488_v27 = vadd.f32 %v7068_v53, %v3423_v15  ;;  %4217 = vmatmul.mubr.bf16.gmra.mrb[108].mxu0 %v6217_v13  ;;  %v6245_v13 = vld [vmem:[%s6446_s6 + $0x190] ss:$144 sps:$4 sm:$0xff]  }
 0x126   : > { %v5181_v46 = vadd.f32 %v5180_v44, %v5179_v37  ;;  %v5220_v47 = vpop.f32.mrb[23].mxu1  ;;  %v3499_v49 = vadd.f32 %v7120_v23, %v3434_v22  ;;  %v7286_v2 = vadd.f32 %v7176_v5, %v3545_v30  ;;  %4322 = vmatprep.mubr.bf16.mxu0 %v6229_v12  ;;  %v6261_v12 = vld [vmem:[%s7592_s1 + $0x860] sm:$0xff]  }
 0x127   : > { %v7226_v51 = vadd.f32 %v5220_v47, %v5219_v41  ;;  %v3553_v33 = vadd.f32 %v7207_v32, %v3488_v27  ;;  %v6218_v41 = vld [vmem:[%s6446_s6 + $0x3c8] ss:$144 sps:$4 sm:$0xff]   ;;  %5647 = vmatpush3.bf16.msra.mxu0 %v6221_v17 }
 0x128   : > { %v3556_v34 = vadd.f32 %v5181_v46, %v3491_v10  ;;  %v6220_v46 = vld [vmem:[%s7592_s1 + $0x7f0] sm:$0xff]   ;;  %4282 = vmatmul.mubr.bf16.gmra.mrb[108].mxu1 %v6218_v41  ;;  %5648 = vmatprep.subr.bf16.mxu0 %v6223_v58 }
 0x129   : > { %v7292_v32 = vadd.f32 %v7212_v35, %v3553_v33  ;;  %5686 = vmatprep.subr.bf16.mxu1 %v6220_v46 }
 0x12a   : > { %v5182_v59 = vpop.f32.mrb[24].mxu0  ;;  %v7295_v44 = vadd.f32 %v7226_v51, %v3556_v34  ;;  %5687 = vmatpush3.bf16.msra.mxu1 %v6222_v52  ;;  %v6241_v34 = vld [vmem:[%s6446_s6 + $0x194] ss:$144 sps:$4 sm:$0xff]  }
 0x12b   : > { %v5222_v62 = vpop.f32.mrb[24].mxu1  ;;  %v5183_v1 = vpop.f32.mrb[25].mxu0 }
 0x12c   : > { %v5184_v4 = vadd.f32 %v5183_v1, %v5182_v59  ;;  %v5223_v6 = vpop.f32.mrb[25].mxu1  ;;  %v5185_v18 = vpop.f32.mrb[26].mxu0  ;;  %v6225_v1 = vld [vmem:[%s7592_s1 + $0x738] sm:$0xff]  }
 0x12d   : > { %v5224_v8 = vadd.f32 %v5223_v6, %v5222_v62  ;;  %v5225_v25 = vpop.f32.mrb[26].mxu1  ;;  %v5186_v20 = vpop.f32.mrb[27].mxu0  ;;  %v6224_v62 = vld [vmem:[%s7592_s1 + $0x7f8] sm:$0xff]   ;;  %5649 = vmatpush3.bf16.msra.mxu0 %v6225_v1 }
 0x12e   : > { %v5226_v53 = vpop.f32.mrb[27].mxu1  ;;  %v3561_v23 = vadd.f32 %v5184_v4, %v3496_v29  ;;  %v5187_v43 = vadd.f32 %v5186_v20, %v5185_v18  ;;  %5688 = vmatprep.subr.bf16.mxu1 %v6224_v62  ;;  %v6232_v18 = vld [vmem:[%s6446_s6 + $0x7c] ss:$144 sps:$4 sm:$0xff]   ;;  %5714 = vmatprep.subr.bf16.mxu0 %v6233_v21  ;;  %v6263_v21 = vld [vmem:[%s7592_s1 + $0x820] sm:$0xff]  }
 0x12f   : > { %v5227_v42 = vadd.f32 %v5226_v53, %v5225_v25  ;;  %5689 = vmatpush3.bf16.msra.mxu1 %v6226_v7  ;;  %4387 = vmatprep.mubr.bf16.mxu1 %v6232_v18  ;;  %v6235_v25 = vld [vmem:[%s7592_s1 + $0x800] sm:$0xff]   ;;  %v6237_v20 = vld [vmem:[%s7592_s1 + $0x848] sm:$0xff]  }
 0x130   : > { %v7300_v47 = vadd.f32 %v5224_v8, %v3561_v23  ;;  %v3564_v5 = vadd.f32 %v5187_v43, %v3499_v49  ;;  %4323 = vmatmul.mubr.bf16.vlgmr.msra.gmra.mrb[112].mxu0 %v6227_v9  ;;  %5754 = vmatprep.subr.bf16.mxu1 %v6234_v26  ;;  %v6238_v49 = vld [vmem:[%s7592_s1 + $0x8c8] sm:$0xff]   ;;  %v6259_v9 = vld [vmem:[%s6446_s6 + $0x2b0] ss:$144 sps:$4 sm:$0xff]  }
 0x131   : > { %5715 = vmatpush3.bf16.msra.mxu0 %v6235_v25  ;;  %4330 = vmatprep.mubr.bf16.mxu0 %v6241_v34  ;;  %v6246_v23 = vld [vmem:[%s6446_s6 + $0x198] ss:$144 sps:$4 sm:$0xff]   ;;  %v6262_v18 = vld [vmem:[%s7592_s1 + $0x8e0] sm:$0xff]  }
 0x132   : > { %v5188_v37 = vpop.f32.mrb[28].mxu0  ;;  %v7308_v55 = vadd.f32 %v5227_v42, %v3564_v5  ;;  %4388 = vmatmul.mubr.bf16.vlgmr.msra.gmra.mrb[112].mxu1 %v6230_v16  ;;  %5716 = vmatprep.subr.bf16.mxu0 %v6237_v20  ;;  %v6247_v42 = vld [vmem:[%s7592_s1 + $0x850] sm:$0xff]  }
 0x133   : > { %v5228_v45 = vpop.f32.mrb[28].mxu1  ;;  %v5189_v48 = vpop.f32.mrb[29].mxu0  ;;  %5755 = vmatpush3.bf16.msra.mxu1 %v6236_v60  ;;  %4395 = vmatprep.mubr.bf16.mxu1 %v6243_v40  ;;  %v6273_v34 = vld [vmem:[%s6446_s6 + $0x3d0] ss:$144 sps:$4 sm:$0xff]  }
 0x134   : > { %v5190_v35 = vadd.f32 %v5189_v48, %v5188_v37  ;;  %v5229_v51 = vpop.f32.mrb[29].mxu1  ;;  %v5191_v57 = vpop.f32.mrb[30].mxu0  ;;  %5756 = vmatprep.subr.bf16.mxu1 %v6238_v49  ;;  %v6250_v48 = vld [vmem:[%s7592_s1 + $0x890] sm:$0xff]  }
 0x135   : > { %v5230_v56 = vadd.f32 %v5229_v51, %v5228_v45  ;;  %v5231_v61 = vpop.f32.mrb[30].mxu1  ;;  %v5192_v0 = vpop.f32.mrb[31].mxu0  ;;  %v6249_v45 = vld [vmem:[%s7592_s1 + $0x810] sm:$0xff]   ;;  %v6251_v51 = vld [vmem:[%s7592_s1 + $0x858] sm:$0xff]  }
 0x136   : > { %v3569_v59 = vadd.f32 %v5190_v35, %v3504_v28  ;;  %v5193_v4 = vadd.f32 %v5192_v0, %v5191_v57  ;;  %v5232_v6 = vpop.f32.mrb[31].mxu1  ;;  %v6252_v57 = vld [vmem:[%s7592_s1 + $0x8d8] sm:$0xff]  }
 0x137   : > { %v5233_v8 = vadd.f32 %v5232_v6, %v5231_v61  ;;  %5757 = vmatpush3.bf16.msra.mxu1 %v6240_v31  ;;  %v6271_v31 = vld [vmem:[%s6446_s6 + $0x3dc] ss:$144 sps:$4 sm:$0xff]  }
 0x138   : > { %v7319_v3 = vadd.f32 %v5230_v56, %v3569_v59  ;;  %v3572_v11 = vadd.f32 %v5193_v4, %v3507_v39  ;;  %v6239_v39 = vld [vmem:[%s7592_s1 + $0x808] sm:$0xff]   ;;  %4331 = vmatmul.mubr.bf16.gmra.mrb[116].mxu0 %v6245_v13  ;;  %v6253_v59 = vld [vmem:[%s7592_s1 + $0x818] sm:$0xff]   ;;  %v6255_v4 = vld [vmem:[%s6446_s6 + $0x2b4] ss:$144 sps:$4 sm:$0xff]  }
 0x139   : > { %5717 = vmatpush3.bf16.msra.mxu0 %v6239_v39  ;;  %4338 = vmatprep.mubr.bf16.mxu0 %v6255_v4  ;;  %v6275_v13 = vld [vmem:[%s7592_s1 + $0x870] sm:$0xff]  }
 0x13a   : > { %v5250_v15 = vpop.f32.mrb[32].mxu0  ;;  %v7328_v19 = vadd.f32 %v5233_v8, %v3572_v11  ;;  %4396 = vmatmul.mubr.bf16.gmra.mrb[116].mxu1 %v6246_v23  ;;  %5718 = vmatprep.subr.bf16.mxu0 %v6247_v42  ;;  %v6257_v8 = vld [vmem:[%s6446_s6 + $0x2bc] ss:$144 sps:$4 sm:$0xff]   ;;  %v6260_v11 = vld [vmem:[%s6446_s6 + $0x2b8] ss:$144 sps:$4 sm:$0xff]   ;;  %v6277_v42 = vld [vmem:[%s7592_s1 + $0x830] sm:$0xff]  }
 0x13b   : > { %v5290_v22 = vpop.f32.mrb[32].mxu1  ;;  %v5251_v24 = vpop.f32.mrb[33].mxu0  ;;  %4403 = vmatprep.mubr.bf16.mxu1 %v6257_v8 }
 0x13c   : > { %v5252_v36 = vadd.f32 %v5251_v24, %v5250_v15  ;;  %v5291_v50 = vpop.f32.mrb[33].mxu1  ;;  %v5253_v10 = vpop.f32.mrb[34].mxu0  ;;  %v6264_v24 = vld [vmem:[%s7592_s1 + $0x8a0] sm:$0xff]  }
 0x13d   : > { %v5292_v27 = vadd.f32 %v5291_v50, %v5290_v22  ;;  %v5293_v29 = vpop.f32.mrb[34].mxu1  ;;  %v5254_v28 = vpop.f32.mrb[35].mxu0  ;;  %5719 = vmatpush3.bf16.msra.mxu0 %v6249_v45  ;;  %v6265_v50 = vld [vmem:[%s7592_s1 + $0x868] sm:$0xff]  }
 0x13e   : > { %v3675_v38 = vadd.f32 %v5252_v36, %v7286_v2  ;;  %v5255_v63 = vadd.f32 %v5254_v28, %v5253_v10  ;;  %v5294_v30 = vpop.f32.mrb[35].mxu1  ;;  %v6248_v2 = vld [vmem:[%s7592_s1 + $0x8d0] sm:$0xff]   ;;  %5720 = vmatprep.subr.bf16.mxu0 %v6251_v51  ;;  %v6266_v10 = vld [vmem:[%s7592_s1 + $0x8e8] sm:$0xff]  }
 0x13f   : > { %v5295_v33 = vadd.f32 %v5294_v30, %v5293_v29  ;;  %5758 = vmatprep.subr.bf16.mxu1 %v6248_v2 }
 0x140   : > { %v7352_v53 = vadd.f32 %v5292_v27, %v3675_v38  ;;  %v3678_v37 = vadd.f32 %v5255_v63, %v7289_v14  ;;  %5759 = vmatpush3.bf16.msra.mxu1 %v6250_v48  ;;  %4339 = vmatmul.mubr.bf16.gmra.mrb[120].mxu0 %v6259_v9  ;;  %v6267_v38 = vld [vmem:[%s7592_s1 + $0x828] sm:$0xff]   ;;  %v6269_v63 = vld [vmem:[%s6446_s6 + $0x3d4] ss:$144 sps:$4 sm:$0xff]  }
 0x141   : > { %5760 = vmatprep.subr.bf16.mxu1 %v6252_v57  ;;  %5721 = vmatpush3.bf16.msra.mxu0 %v6253_v59 }
 0x142   : > { %v5256_v41 = vpop.f32.mrb[36].mxu0  ;;  %v7362_v43 = vadd.f32 %v5295_v33, %v3678_v37  ;;  %4404 = vmatmul.mubr.bf16.gmra.mrb[120].mxu1 %v6260_v11  ;;  %5722 = vmatprep.subr.bf16.mxu0 %v6261_v12  ;;  %v6274_v37 = vld [vmem:[%s6446_s6 + $0x3d8] ss:$144 sps:$4 sm:$0xff]   ;;  %v6289_v11 = vld [vmem:[%s6446_s6 + $0x1a4] ss:$144 sps:$4 sm:$0xff]  }
 0x143   : > { %v5296_v54 = vpop.f32.mrb[36].mxu1  ;;  %v5257_v14 = vpop.f32.mrb[37].mxu0  ;;  %4346 = vmatprep.mubr.bf16.mxu0 %v6269_v63  ;;  %4411 = vmatprep.mubr.bf16.mxu1 %v6271_v31 }
 0x144   : > { %v5258_v46 = vadd.f32 %v5257_v14, %v5256_v41  ;;  %v5297_v5 = vpop.f32.mrb[37].mxu1  ;;  %v5259_v35 = vpop.f32.mrb[38].mxu0  ;;  %v6278_v14 = vld [vmem:[%s7592_s1 + $0x8b0] sm:$0xff]  }
 0x145   : > { %v5298_v17 = vadd.f32 %v5297_v5, %v5296_v54  ;;  %v5299_v56 = vpop.f32.mrb[38].mxu1  ;;  %v5260_v58 = vpop.f32.mrb[39].mxu0  ;;  %5723 = vmatpush3.bf16.msra.mxu0 %v6263_v21  ;;  %v6279_v5 = vld [vmem:[%s7592_s1 + $0x878] sm:$0xff]  }
 0x146   : > { %v3683_v52 = vadd.f32 %v5258_v46, %v7292_v32  ;;  %v5261_v62 = vadd.f32 %v5260_v58, %v5259_v35  ;;  %v5300_v0 = vpop.f32.mrb[39].mxu1  ;;  %v6254_v32 = vld [vmem:[%s7592_s1 + $0x898] sm:$0xff]   ;;  %5724 = vmatprep.subr.bf16.mxu0 %v6265_v50 }
 0x147   : > { %v5301_v1 = vadd.f32 %v5300_v0, %v5299_v56  ;;  %5761 = vmatpush3.bf16.msra.mxu1 %v6254_v32  ;;  %v6280_v35 = vld [vmem:[%s7592_s1 + $0x8f8] sm:$0xff]   ;;  %v6285_v0 = vld [vmem:[%s6446_s6 + $0x84] ss:$144 sps:$4 sm:$0xff]  }
 0x148   : > { %v7386_v61 = vadd.f32 %v5298_v17, %v3683_v52  ;;  %v3686_v6 = vadd.f32 %v5261_v62, %v7295_v44  ;;  %5762 = vmatprep.subr.bf16.mxu1 %v6262_v18  ;;  %4347 = vmatmul.mubr.bf16.gmra.mrb[124].mxu0 %v6273_v34  ;;  %v6281_v52 = vld [vmem:[%s7592_s1 + $0x838] sm:$0xff]   ;;  %v6283_v62 = vld [vmem:[%s6446_s6 + $0x80] ss:$144 sps:$4 sm:$0xff]  }
 0x149   : > { %5725 = vmatpush3.bf16.msra.mxu0 %v6267_v38  ;;  %4452 = vmatprep.mubr.bf16.mxu0 %v6285_v0  ;;  %v6297_v38 = vld [vmem:[%s6446_s6 + $0x2cc] ss:$144 sps:$4 sm:$0xff]   ;;  %v6299_v34 = vld [vmem:[%s6446_s6 + $0x2c0] ss:$144 sps:$4 sm:$0xff]  }
 0x14a   : > { %v5262_v7 = vpop.f32.mrb[40].mxu0  ;;  %v7399_v15 = vadd.f32 %v5301_v1, %v3686_v6  ;;  %4412 = vmatmul.mubr.bf16.gmra.mrb[124].mxu1 %v6274_v37  ;;  %5726 = vmatprep.subr.bf16.mxu0 %v6275_v13  ;;  %v6286_v1 = vld [vmem:[%s6446_s6 + $0x88] ss:$144 sps:$4 sm:$0xff]   ;;  %v6288_v6 = vld [vmem:[%s6446_s6 + $0x8c] ss:$144 sps:$4 sm:$0xff]  }
 0x14b   : > { %v5302_v16 = vpop.f32.mrb[40].mxu1  ;;  %v5263_v44 = vpop.f32.mrb[41].mxu0  ;;  %5763 = vmatpush3.bf16.msra.mxu1 %v6264_v24  ;;  %4517 = vmatprep.mubr.bf16.mxu1 %v6288_v6 }
 0x14c   : > { %v5264_v22 = vadd.f32 %v5263_v44, %v5262_v7  ;;  %v5303_v26 = vpop.f32.mrb[41].mxu1  ;;  %v5265_v36 = vpop.f32.mrb[42].mxu0  ;;  %5764 = vmatprep.subr.bf16.mxu1 %v6266_v10  ;;  %v6291_v44 = vld [vmem:[%s6446_s6 + $0x1ac] ss:$144 sps:$4 sm:$0xff]  }
 0x14d   : > { %v5304_v25 = vadd.f32 %v5303_v26, %v5302_v16  ;;  %v5305_v27 = vpop.f32.mrb[42].mxu1  ;;  %v5266_v20 = vpop.f32.mrb[43].mxu0  ;;  %5727 = vmatpush3.bf16.msra.mxu0 %v6277_v42  ;;  %v6300_v42 = vld [vmem:[%s6446_s6 + $0x2c8] ss:$144 sps:$4 sm:$0xff]  }
 0x14e   : > { %v3691_v60 = vadd.f32 %v5264_v22, %v7300_v47  ;;  %v5267_v49 = vadd.f32 %v5266_v20, %v5265_v36  ;;  %v5306_v28 = vpop.f32.mrb[43].mxu1  ;;  %v6268_v47 = vld [vmem:[%s7592_s1 + $0x8a8] sm:$0xff]   ;;  %5728 = vmatprep.subr.bf16.mxu0 %v6279_v5  ;;  %v6293_v36 = vld [vmem:[%s6446_s6 + $0x1a0] ss:$144 sps:$4 sm:$0xff]  }
 0x14f   : > { %v5307_v39 = vadd.f32 %v5306_v28, %v5305_v27  ;;  %5765 = vmatpush3.bf16.msra.mxu1 %v6268_v47  ;;  %v6295_v27 = vld [vmem:[%s6446_s6 + $0x2c4] ss:$144 sps:$4 sm:$0xff]   ;;  %v6294_v20 = vld [vmem:[%s6446_s6 + $0x1a8] ss:$144 sps:$4 sm:$0xff]   ;;  %v6305_v5 = vld [vmem:[%s6446_s6 + $0x3e0] ss:$144 sps:$4 sm:$0xff]  }
 0x150   : > { %v7420_v29 = vadd.f32 %v5304_v25, %v3691_v60  ;;  %v3694_v30 = vadd.f32 %v5267_v49, %v7308_v55  ;;  %v6276_v55 = vld [vmem:[%s7592_s1 + $0x8f0] sm:$0xff]  }
 0x151   : > { %5766 = vmatprep.subr.bf16.mxu1 %v6276_v55  ;;  %5729 = vmatpush3.bf16.msra.mxu0 %v6281_v52  ;;  %v6301_v55 = vld [vmem:[%s6446_s6 + $0x3e4] ss:$144 sps:$4 sm:$0xff]   ;;  %v6306_v52 = vld [vmem:[%s6446_s6 + $0x3e8] ss:$144 sps:$4 sm:$0xff]  }
 0x152   : > { %v5268_v33 = vpop.f32.mrb[44].mxu0  ;;  %v7430_v40 = vadd.f32 %v5307_v39, %v3694_v30 }
 0x153   : > { %v5308_v41 = vpop.f32.mrb[44].mxu1  ;;  %v5269_v23 = vpop.f32.mrb[45].mxu0  ;;  %5767 = vmatpush3.bf16.msra.mxu1 %v6278_v14  ;;  %v6303_v14 = vld [vmem:[%s6446_s6 + $0x3ec] ss:$144 sps:$4 sm:$0xff]   ;;  %s4637_s6 = sshll.u32 %s7597_s23, 3 }
 0x154   : > { %v5270_v54 = vadd.f32 %v5269_v23, %v5268_v33  ;;  %v5309_v2 = vpop.f32.mrb[45].mxu1  ;;  %v5271_v46 = vpop.f32.mrb[46].mxu0  ;;  %5768 = vmatprep.subr.bf16.mxu1 %v6280_v35  ;;  %4453 = vmatmul.mubr.bf16.vlgmr.msra.gmra.mrb[128].mxu0 %v6283_v62  ;;  %s7564_s26 = scalar_lea.vmem %s7595_s4, %s4637_s6 }
 0x155   : > { %v5310_v45 = vadd.f32 %v5309_v2, %v5308_v41  ;;  %v5311_v17 = vpop.f32.mrb[46].mxu1  ;;  %v5272_v51 = vpop.f32.mrb[47].mxu0  ;;  %4460 = vmatprep.mubr.bf16.mxu0 %v6289_v11 }
 0x156   : > { %v3699_v48 = vadd.f32 %v5270_v54, %v7319_v3  ;;  %v5273_v57 = vadd.f32 %v5272_v51, %v5271_v46  ;;  %v5312_v58 = vpop.f32.mrb[47].mxu1  ;;  %v6282_v3 = vld [vmem:[%s7592_s1 + $0x8b8] sm:$0xff]  }
 0x157   : > { %v5313_v59 = vadd.f32 %v5312_v58, %v5311_v17  ;;  %5769 = vmatpush3.bf16.msra.mxu1 %v6282_v3 }
 0x158   : > { %v7454_v56 = vadd.f32 %v5310_v45, %v3699_v48  ;;  %v3702_v32 = vadd.f32 %v5273_v57, %v7328_v19 }
 0x15a   : > { %v5330_v4 = vpop.f32.mrb[48].mxu0  ;;  %v7464_v7 = vadd.f32 %v5313_v59, %v3702_v32  ;;  %4518 = vmatmul.mubr.bf16.vlgmr.msra.gmra.mrb[128].mxu1 %v6286_v1 }
 0x15b   : > { %v5370_v8 = vpop.f32.mrb[48].mxu1  ;;  %v5331_v9 = vpop.f32.mrb[49].mxu0  ;;  %4525 = vmatprep.mubr.bf16.mxu1 %v6291_v44 }
 0x15c   : > { %v5332_v12 = vadd.f32 %v5331_v9, %v5330_v4  ;;  %v5371_v16 = vpop.f32.mrb[49].mxu1  ;;  %v5333_v18 = vpop.f32.mrb[50].mxu0  ;;  %4461 = vmatmul.mubr.bf16.gmra.mrb[132].mxu0 %v6293_v36 }
 0x15d   : > { %v5372_v19 = vadd.f32 %v5371_v16, %v5370_v8  ;;  %v5373_v22 = vpop.f32.mrb[50].mxu1  ;;  %v5334_v26 = vpop.f32.mrb[51].mxu0  ;;  %4468 = vmatprep.mubr.bf16.mxu0 %v6295_v27 }
 0x15e   : > { %v3805_v21 = vadd.f32 %v5332_v12, %v7352_v53  ;;  %v5335_v24 = vadd.f32 %v5334_v26, %v5333_v18  ;;  %v5374_v25 = vpop.f32.mrb[51].mxu1 }
 0x15f   : > { %v5375_v60 = vadd.f32 %v5374_v25, %v5373_v22 }
 0x160   : > { %v7470_v50 = vadd.f32 %v5372_v19, %v3805_v21  ;;  %v3808_v10 = vadd.f32 %v5335_v24, %v7362_v43 }
 0x162   : > { %v7476_v49 = vadd.f32 %v5375_v60, %v3808_v10  ;;  %v5336_v28 = vpop.f32.mrb[52].mxu0  ;;  %4526 = vmatmul.mubr.bf16.gmra.mrb[132].mxu1 %v6294_v20 }
 0x163   : > { %v5376_v53 = vpop.f32.mrb[52].mxu1  ;;  %v5337_v47 = vpop.f32.mrb[53].mxu0  ;;  %4533 = vmatprep.mubr.bf16.mxu1 %v6297_v38 }
 0x164   : > { %v5338_v39 = vadd.f32 %v5337_v47, %v5336_v28  ;;  %v5377_v63 = vpop.f32.mrb[53].mxu1  ;;  %v5339_v30 = vpop.f32.mrb[54].mxu0  ;;  %4469 = vmatmul.mubr.bf16.gmra.mrb[136].mxu0 %v6299_v34 }
 0x165   : > { %v5378_v31 = vadd.f32 %v5377_v63, %v5376_v53  ;;  %v5379_v43 = vpop.f32.mrb[54].mxu1  ;;  %v5340_v33 = vpop.f32.mrb[55].mxu0  ;;  %4476 = vmatprep.mubr.bf16.mxu0 %v6301_v55 }
 0x166   : > { %v3813_v37 = vadd.f32 %v5338_v39, %v7386_v61  ;;  %v5341_v13 = vadd.f32 %v5340_v33, %v5339_v30  ;;  %v5380_v41 = vpop.f32.mrb[55].mxu1 }
 0x167   : > { %v5381_v23 = vadd.f32 %v5380_v41, %v5379_v43 }
 0x168   : > { %v7482_v54 = vadd.f32 %v5378_v31, %v3813_v37  ;;  %v3816_v2 = vadd.f32 %v5341_v13, %v7399_v15 }
 0x16a   : > { %v7486_v45 = vadd.f32 %v5381_v23, %v3816_v2  ;;  %4534 = vmatmul.mubr.bf16.gmra.mrb[136].mxu1 %v6300_v42  ;;  %v5342_v46 = vpop.f32.mrb[56].mxu0 }
 0x16b   : > { %4541 = vmatprep.mubr.bf16.mxu1 %v6303_v14  ;;  %v5382_v61 = vpop.f32.mrb[56].mxu1  ;;  %v5343_v48 = vpop.f32.mrb[57].mxu0 }
 0x16c   : > { %v5344_v17 = vadd.f32 %v5343_v48, %v5342_v46  ;;  %v5383_v35 = vpop.f32.mrb[57].mxu1  ;;  %v5345_v51 = vpop.f32.mrb[58].mxu0  ;;  %4477 = vmatmul.mubr.bf16.gmra.mrb[140].mxu0 %v6305_v5 }
 0x16d   : > { %v5384_v57 = vadd.f32 %v5383_v35, %v5382_v61  ;;  %v5385_v58 = vpop.f32.mrb[58].mxu1  ;;  %v5346_v3 = vpop.f32.mrb[59].mxu0 }
 0x16e   : > { %v3821_v15 = vadd.f32 %v5344_v17, %v7420_v29  ;;  %v5347_v59 = vadd.f32 %v5346_v3, %v5345_v51  ;;  %v5386_v62 = vpop.f32.mrb[59].mxu1 }
 0x16f   : > { %v5387_v0 = vadd.f32 %v5386_v62, %v5385_v58 }
 0x170   : > { %v3886_v32 = vadd.f32 %v5384_v57, %v3821_v15  ;;  %v3824_v1 = vadd.f32 %v5347_v59, %v7430_v40 }
 0x172   : > { %4542 = vmatmul.mubr.bf16.gmra.mrb[140].mxu1 %v6306_v52  ;;  %v7492_v4 = vadd.f32 %v5387_v0, %v3824_v1  ;;  %v5348_v6 = vpop.f32.mrb[60].mxu0 }
 0x173   : > { %v5388_v8 = vpop.f32.mrb[60].mxu1  ;;  %v5349_v9 = vpop.f32.mrb[61].mxu0 }
 0x174   : > { %v5389_v11 = vpop.f32.mrb[61].mxu1  ;;  %v5350_v12 = vadd.f32 %v5349_v9, %v5348_v6  ;;  %v5351_v18 = vpop.f32.mrb[62].mxu0 }
 0x175   : > { %v5390_v16 = vadd.f32 %v5389_v11, %v5388_v8  ;;  %v5391_v44 = vpop.f32.mrb[62].mxu1  ;;  %v5352_v19 = vpop.f32.mrb[63].mxu0 }
 0x176   : > { %v5392_v29 = vpop.f32.mrb[63].mxu1  ;;  %v3829_v21 = vadd.f32 %v5350_v12, %v7454_v56  ;;  %v5353_v22 = vadd.f32 %v5352_v19, %v5351_v18 }
 0x177   : > { %v5393_v26 = vadd.f32 %v5392_v29, %v5391_v44 }
 0x178   : > { %v3894_v24 = vadd.f32 %v5390_v16, %v3829_v21  ;;  %v3832_v40 = vadd.f32 %v5353_v22, %v7464_v7 }
 0x17a   : > { %v7496_v25 = vadd.f32 %v5393_v26, %v3832_v40  ;;  %v5410_v36 = vpop.f32.mrb[64].mxu0 }
 0x17b   : > { %v5411_v60 = vpop.f32.mrb[65].mxu0  ;;  %v5450_v27 = vpop.f32.mrb[64].mxu1 }
 0x17c   : > { %v5412_v10 = vadd.f32 %v5411_v60, %v5410_v36  ;;  %v5413_v20 = vpop.f32.mrb[66].mxu0  ;;  %v5451_v38 = vpop.f32.mrb[65].mxu1 }
 0x17d   : > { %v5414_v28 = vpop.f32.mrb[67].mxu0  ;;  %v5452_v47 = vadd.f32 %v5451_v38, %v5450_v27  ;;  %v5453_v39 = vpop.f32.mrb[66].mxu1 }
 0x17e   : > { %v3935_v53 = vadd.f32 %v5412_v10, %v7470_v50  ;;  %v5415_v63 = vadd.f32 %v5414_v28, %v5413_v20  ;;  %v5454_v56 = vpop.f32.mrb[67].mxu1 }
 0x17f   : > { %v5455_v43 = vadd.f32 %v5454_v56, %v5453_v39 }
 0x180   : > { %v4000_v30 = vadd.f32 %v5452_v47, %v3935_v53  ;;  %v3938_v31 = vadd.f32 %v5415_v63, %v7476_v49 }
 0x182   : > { %v7500_v7 = vadd.f32 %v5455_v43, %v3938_v31  ;;  %v5416_v33 = vpop.f32.mrb[68].mxu0 }
 0x183   : > { %v5456_v34 = vpop.f32.mrb[68].mxu1  ;;  %v5417_v37 = vpop.f32.mrb[69].mxu0 }
 0x184   : > { %v5418_v13 = vadd.f32 %v5417_v37, %v5416_v33  ;;  %v5457_v41 = vpop.f32.mrb[69].mxu1  ;;  %v5419_v55 = vpop.f32.mrb[70].mxu0 }
 0x185   : > { %v5458_v23 = vadd.f32 %v5457_v41, %v5456_v34  ;;  %v5459_v42 = vpop.f32.mrb[70].mxu1  ;;  %v5420_v2 = vpop.f32.mrb[71].mxu0 }
 0x186   : > { %v3943_v50 = vadd.f32 %v5418_v13, %v7482_v54  ;;  %v5421_v14 = vadd.f32 %v5420_v2, %v5419_v55  ;;  %v5460_v46 = vpop.f32.mrb[71].mxu1 }
 0x187   : > { %v5461_v5 = vadd.f32 %v5460_v46, %v5459_v42 }
 0x188   : > { %v4008_v61 = vadd.f32 %v5458_v23, %v3943_v50  ;;  %v3946_v49 = vadd.f32 %v5421_v14, %v7486_v45 }
 0x18a   : > { %v7504_v48 = vadd.f32 %v5461_v5, %v3946_v49  ;;  %v5422_v17 = vpop.f32.mrb[72].mxu0 }
 0x18b   : > { %v5462_v35 = vpop.f32.mrb[72].mxu1  ;;  %v5423_v51 = vpop.f32.mrb[73].mxu0 }
 0x18c   : > { %v5463_v52 = vpop.f32.mrb[73].mxu1  ;;  %v5424_v57 = vadd.f32 %v5423_v51, %v5422_v17  ;;  %v5425_v3 = vpop.f32.mrb[74].mxu0 }
 0x18d   : > { %v5464_v58 = vadd.f32 %v5463_v52, %v5462_v35  ;;  %v5465_v15 = vpop.f32.mrb[74].mxu1  ;;  %v5426_v59 = vpop.f32.mrb[75].mxu0 }
 0x18e   : > { %v5466_v62 = vpop.f32.mrb[75].mxu1  ;;  %v3951_v0 = vadd.f32 %v5424_v57, %v3886_v32  ;;  %v5427_v54 = vadd.f32 %v5426_v59, %v5425_v3 }
 0x18f   : > { %v5467_v1 = vadd.f32 %v5466_v62, %v5465_v15 }
 0x190   : > { %v4016_v6 = vadd.f32 %v5464_v58, %v3951_v0  ;;  %v3954_v8 = vadd.f32 %v5427_v54, %v7492_v4 }
 0x192   : > { %v7507_v9 = vadd.f32 %v5467_v1, %v3954_v8  ;;  %v5428_v45 = vpop.f32.mrb[76].mxu0 }
 0x193   : > { %v5468_v11 = vpop.f32.mrb[76].mxu1  ;;  %v5429_v12 = vpop.f32.mrb[77].mxu0 }
 0x194   : > { %v5430_v16 = vadd.f32 %v5429_v12, %v5428_v45  ;;  %v5469_v18 = vpop.f32.mrb[77].mxu1  ;;  %v5431_v44 = vpop.f32.mrb[78].mxu0 }
 0x195   : > { %v5470_v19 = vadd.f32 %v5469_v18, %v5468_v11  ;;  %v5471_v29 = vpop.f32.mrb[78].mxu1  ;;  %v5432_v21 = vpop.f32.mrb[79].mxu0 }
 0x196   : > { %v3959_v22 = vadd.f32 %v5430_v16, %v3894_v24  ;;  %v5433_v26 = vadd.f32 %v5432_v21, %v5431_v44  ;;  %v5472_v40 = vpop.f32.mrb[79].mxu1 }
 0x197   : > { %v5473_v32 = vadd.f32 %v5472_v40, %v5471_v29 }
 0x198   : > { %v4024_v36 = vadd.f32 %v5470_v19, %v3959_v22  ;;  %v3962_v60 = vadd.f32 %v5433_v26, %v7496_v25 }
 0x19a   : > { %v7510_v27 = vadd.f32 %v5473_v32, %v3962_v60  ;;  %v5490_v4 = vpop.f32.mrb[80].mxu0 }
 0x19b   : > { %v5530_v10 = vpop.f32.mrb[80].mxu1  ;;  %v5491_v20 = vpop.f32.mrb[81].mxu0 }
 0x19c   : > { %v5492_v38 = vadd.f32 %v5491_v20, %v5490_v4  ;;  %v5531_v28 = vpop.f32.mrb[81].mxu1  ;;  %v5493_v53 = vpop.f32.mrb[82].mxu0 }
 0x19d   : > { %v5532_v47 = vadd.f32 %v5531_v28, %v5530_v10  ;;  %v5533_v39 = vpop.f32.mrb[82].mxu1  ;;  %v5494_v63 = vpop.f32.mrb[83].mxu0 }
 0x19e   : > { %v4065_v56 = vadd.f32 %v5492_v38, %v4000_v30  ;;  %v5495_v31 = vadd.f32 %v5494_v63, %v5493_v53  ;;  %v5534_v24 = vpop.f32.mrb[83].mxu1 }
 0x19f   : > { %v5535_v43 = vadd.f32 %v5534_v24, %v5533_v39 }
 0x1a0   : > { %v4130_v33 = vadd.f32 %v5532_v47, %v4065_v56  ;;  %v4068_v34 = vadd.f32 %v5495_v31, %v7500_v7 }
 0x1a2   : > { %v7513_v37 = vadd.f32 %v5535_v43, %v4068_v34  ;;  %v5496_v25 = vpop.f32.mrb[84].mxu0 }
 0x1a3   : > { %v5536_v13 = vpop.f32.mrb[84].mxu1  ;;  %v5497_v41 = vpop.f32.mrb[85].mxu0 }
 0x1a4   : > { %v5537_v55 = vpop.f32.mrb[85].mxu1  ;;  %v5498_v23 = vadd.f32 %v5497_v41, %v5496_v25  ;;  %v5499_v2 = vpop.f32.mrb[86].mxu0 }
 0x1a5   : > { %v5538_v42 = vadd.f32 %v5537_v55, %v5536_v13  ;;  %v5539_v50 = vpop.f32.mrb[86].mxu1  ;;  %v5500_v14 = vpop.f32.mrb[87].mxu0 }
 0x1a6   : > { %v5540_v46 = vpop.f32.mrb[87].mxu1  ;;  %v4073_v5 = vadd.f32 %v5498_v23, %v4008_v61  ;;  %v5501_v30 = vadd.f32 %v5500_v14, %v5499_v2 }
 0x1a7   : > { %v5541_v49 = vadd.f32 %v5540_v46, %v5539_v50 }
 0x1a8   : > { %v4138_v17 = vadd.f32 %v5538_v42, %v4073_v5  ;;  %v4076_v35 = vadd.f32 %v5501_v30, %v7504_v48 }
 0x1aa   : > { %v7516_v51 = vadd.f32 %v5541_v49, %v4076_v35  ;;  %v5502_v7 = vpop.f32.mrb[88].mxu0 }
 0x1ab   : > { %v5542_v52 = vpop.f32.mrb[88].mxu1  ;;  %v5503_v57 = vpop.f32.mrb[89].mxu0 }
 0x1ac   : > { %v5504_v58 = vadd.f32 %v5503_v57, %v5502_v7  ;;  %v5543_v3 = vpop.f32.mrb[89].mxu1  ;;  %v5505_v15 = vpop.f32.mrb[90].mxu0 }
 0x1ad   : > { %v5544_v59 = vadd.f32 %v5543_v3, %v5542_v52  ;;  %v5545_v62 = vpop.f32.mrb[90].mxu1  ;;  %v5506_v0 = vpop.f32.mrb[91].mxu0 }
 0x1ae   : > { %v4081_v54 = vadd.f32 %v5504_v58, %v4016_v6  ;;  %v5507_v1 = vadd.f32 %v5506_v0, %v5505_v15  ;;  %v5546_v8 = vpop.f32.mrb[91].mxu1 }
 0x1af   : > { %v5547_v61 = vadd.f32 %v5546_v8, %v5545_v62 }
 0x1b0   : > { %v4146_v45 = vadd.f32 %v5544_v59, %v4081_v54  ;;  %v4084_v11 = vadd.f32 %v5507_v1, %v7507_v9 }
 0x1b2   : > { %v7519_v12 = vadd.f32 %v5547_v61, %v4084_v11 }
 0x1b3   : > { %v5548_v16 = vpop.f32.mrb[92].mxu1 }
 0x1b4   : > { %v5549_v19 = vpop.f32.mrb[93].mxu1 }
 0x1b5   : > { %v5550_v21 = vadd.f32 %v5549_v19, %v5548_v16  ;;  %v5551_v22 = vpop.f32.mrb[94].mxu1 }
 0x1b6   : > { %v5552_v6 = vpop.f32.mrb[95].mxu1 }
 0x1b7   : > { %v5553_v60 = vadd.f32 %v5552_v6, %v5551_v22 }
 0x1d1   : > { %v5508_v48 = vpop.f32.mrb[92].mxu0 }
 0x1d2   : > { %v5509_v18 = vpop.f32.mrb[93].mxu0 }
 0x1d3   : > { %v5510_v44 = vadd.f32 %v5509_v18, %v5508_v48  ;;  %v5511_v29 = vpop.f32.mrb[94].mxu0 }
 0x1d4   : > { %v5512_v26 = vpop.f32.mrb[95].mxu0 }
 0x1d5   : > { %v4089_v40 = vadd.f32 %v5510_v44, %v4024_v36  ;;  %v5513_v32 = vadd.f32 %v5512_v26, %v5511_v29 }
 0x1d7   : > { %v4154_v4 = vadd.f32 %v5550_v21, %v4089_v40  ;;  %v4092_v10 = vadd.f32 %v5513_v32, %v7510_v27 }
 0x1d9   : > { %v7522_v20 = vadd.f32 %v5553_v60, %v4092_v10 }
 0x1dc   : > { %v5570_v9 = vpop.f32.mrb[96].mxu0  ;;  %v5610_v38 = vpop.f32.mrb[96].mxu1 }
 0x1dd   : > { %v5571_v28 = vpop.f32.mrb[97].mxu0  ;;  %v5611_v47 = vpop.f32.mrb[97].mxu1 }
 0x1de   : > { %v5572_v53 = vadd.f32 %v5571_v28, %v5570_v9  ;;  %v5573_v39 = vpop.f32.mrb[98].mxu0  ;;  %v5612_v63 = vadd.f32 %v5611_v47, %v5610_v38  ;;  %v5613_v56 = vpop.f32.mrb[98].mxu1 }
 0x1df   : > { %v5574_v31 = vpop.f32.mrb[99].mxu0  ;;  %v5614_v36 = vpop.f32.mrb[99].mxu1 }
 0x1e0   : > { %v4195_v24 = vadd.f32 %v5572_v53, %v4130_v33  ;;  %v5575_v43 = vadd.f32 %v5574_v31, %v5573_v39  ;;  %v5615_v34 = vadd.f32 %v5614_v36, %v5613_v56 }
 0x1e2   : > { %v4260_v25 = vadd.f32 %v5612_v63, %v4195_v24  ;;  %v4198_v13 = vadd.f32 %v5575_v43, %v7513_v37 }
 0x1e4   : > { %v7525_v41 = vadd.f32 %v5615_v34, %v4198_v13  ;;  %v5576_v27 = vpop.f32.mrb[100].mxu0  ;;  %v5616_v55 = vpop.f32.mrb[100].mxu1 }
 0x1e5   : > { %v5577_v23 = vpop.f32.mrb[101].mxu0  ;;  %v5617_v2 = vpop.f32.mrb[101].mxu1 }
 0x1e6   : > { %v5578_v42 = vadd.f32 %v5577_v23, %v5576_v27  ;;  %v5579_v50 = vpop.f32.mrb[102].mxu0  ;;  %v5618_v14 = vadd.f32 %v5617_v2, %v5616_v55  ;;  %v5619_v46 = vpop.f32.mrb[102].mxu1 }
 0x1e7   : > { %v5580_v5 = vpop.f32.mrb[103].mxu0  ;;  %v5620_v33 = vpop.f32.mrb[103].mxu1 }
 0x1e8   : > { %v4203_v30 = vadd.f32 %v5578_v42, %v4138_v17  ;;  %v5581_v49 = vadd.f32 %v5580_v5, %v5579_v50  ;;  %v5621_v35 = vadd.f32 %v5620_v33, %v5619_v46 }
 0x1ea   : > { %v4268_v7 = vadd.f32 %v5618_v14, %v4203_v30  ;;  %v4206_v52 = vadd.f32 %v5581_v49, %v7516_v51 }
 0x1ec   : > { %v7528_v57 = vadd.f32 %v5621_v35, %v4206_v52  ;;  %v5622_v58 = vpop.f32.mrb[104].mxu1 }
 0x1ed   : > { %v5623_v59 = vpop.f32.mrb[105].mxu1 }
 0x1ee   : > { %v5624_v0 = vadd.f32 %v5623_v59, %v5622_v58  ;;  %v5625_v54 = vpop.f32.mrb[106].mxu1 }
 0x1ef   : > { %v5626_v17 = vpop.f32.mrb[107].mxu1 }
 0x1f0   : > { %v5582_v37 = vpop.f32.mrb[104].mxu0  ;;  %v5627_v11 = vadd.f32 %v5626_v17, %v5625_v54 }
 0x1f1   : > { %v5583_v3 = vpop.f32.mrb[105].mxu0 }
 0x1f2   : > { %v5584_v15 = vadd.f32 %v5583_v3, %v5582_v37  ;;  %v5585_v62 = vpop.f32.mrb[106].mxu0 }
 0x1f3   : > { %v5586_v1 = vpop.f32.mrb[107].mxu0 }
 0x1f4   : > { %v4211_v8 = vadd.f32 %v5584_v15, %v4146_v45  ;;  %v5587_v61 = vadd.f32 %v5586_v1, %v5585_v62 }
 0x1f6   : > { %v4276_v48 = vadd.f32 %v5624_v0, %v4211_v8  ;;  %v4214_v16 = vadd.f32 %v5587_v61, %v7519_v12 }
 0x1f8   : > { %v7531_v18 = vadd.f32 %v5627_v11, %v4214_v16  ;;  %v5588_v51 = vpop.f32.mrb[108].mxu0 }
 0x1f9   : > { %v5589_v19 = vpop.f32.mrb[109].mxu0 }
 0x1fa   : > { %v5590_v29 = vadd.f32 %v5589_v19, %v5588_v51  ;;  %v5591_v22 = vpop.f32.mrb[110].mxu0 }
 0x1fb   : > { %v5628_v44 = vpop.f32.mrb[108].mxu1  ;;  %v5592_v32 = vpop.f32.mrb[111].mxu0 }
 0x1fc   : > { %v5629_v21 = vpop.f32.mrb[109].mxu1  ;;  %v4219_v6 = vadd.f32 %v5590_v29, %v4154_v4  ;;  %v5593_v60 = vadd.f32 %v5592_v32, %v5591_v22 }
 0x1fd   : > { %v5630_v26 = vadd.f32 %v5629_v21, %v5628_v44  ;;  %v5631_v40 = vpop.f32.mrb[110].mxu1 }
 0x1fe   : > { %v5632_v45 = vpop.f32.mrb[111].mxu1  ;;  %v4222_v38 = vadd.f32 %v5593_v60, %v7522_v20 }
 0x1ff   : > { %v5633_v10 = vadd.f32 %v5632_v45, %v5631_v40  ;;  %v4284_v9 = vadd.f32 %v5630_v26, %v4219_v6 }
 0x201   : > { %v7534_v28 = vadd.f32 %v5633_v10, %v4222_v38 }
 0x203   : > { %v5650_v12 = vpop.f32.mrb[112].mxu0 }
 0x204   : > { %v5651_v47 = vpop.f32.mrb[113].mxu0 }
 0x205   : > { %v5690_v53 = vpop.f32.mrb[112].mxu1  ;;  %v5652_v39 = vadd.f32 %v5651_v47, %v5650_v12  ;;  %v5653_v56 = vpop.f32.mrb[114].mxu0 }
 0x206   : > { %v5691_v63 = vpop.f32.mrb[113].mxu1  ;;  %v5654_v43 = vpop.f32.mrb[115].mxu0 }
 0x207   : > { %v5692_v31 = vadd.f32 %v5691_v63, %v5690_v53  ;;  %v5693_v24 = vpop.f32.mrb[114].mxu1  ;;  %v4325_v36 = vadd.f32 %v5652_v39, %v4260_v25  ;;  %v5655_v34 = vadd.f32 %v5654_v43, %v5653_v56 }
 0x208   : > { %v5694_v4 = vpop.f32.mrb[115].mxu1 }
 0x209   : > { %v5695_v13 = vadd.f32 %v5694_v4, %v5693_v24  ;;  %v4390_v27 = vadd.f32 %v5692_v31, %v4325_v36  ;;  %v4328_v55 = vadd.f32 %v5655_v34, %v7525_v41 }
 0x20b   : > { %v7537_v23 = vadd.f32 %v5695_v13, %v4328_v55  ;;  %v5656_v20 = vpop.f32.mrb[116].mxu0  ;;  %v7558_v13 = vld [vmem:[%s7594_s3] ss:$0 sm:$0xff] }
 0x20c   : > { %v5657_v2 = vpop.f32.mrb[117].mxu0 }
 0x20d   : > { %v5696_v42 = vpop.f32.mrb[116].mxu1  ;;  %v5658_v50 = vadd.f32 %v5657_v2, %v5656_v20  ;;  %v5659_v46 = vpop.f32.mrb[118].mxu0 }
 0x20e   : > { %v5697_v14 = vpop.f32.mrb[117].mxu1  ;;  %v5660_v49 = vpop.f32.mrb[119].mxu0 }
 0x20f   : > { %v5698_v5 = vadd.f32 %v5697_v14, %v5696_v42  ;;  %v5699_v30 = vpop.f32.mrb[118].mxu1  ;;  %v4333_v33 = vadd.f32 %v5658_v50, %v4268_v7  ;;  %v5661_v35 = vadd.f32 %v5660_v49, %v5659_v46 }
 0x210   : > { %v5700_v25 = vpop.f32.mrb[119].mxu1 }
 0x211   : > { %v5701_v52 = vadd.f32 %v5700_v25, %v5699_v30  ;;  %v7539_v37 = vadd.f32 %v5698_v5, %v4333_v33  ;;  %v4336_v58 = vadd.f32 %v5661_v35, %v7528_v57 }
 0x213   : > { %v7542_v41 = vadd.f32 %v5701_v52, %v4336_v58  ;;  %v5662_v3 = vpop.f32.mrb[120].mxu0 }
 0x214   : > { %v5663_v59 = vpop.f32.mrb[121].mxu0 }
 0x215   : > { %v5702_v15 = vpop.f32.mrb[120].mxu1  ;;  %v5664_v62 = vadd.f32 %v5663_v59, %v5662_v3  ;;  %v5665_v54 = vpop.f32.mrb[122].mxu0 }
 0x216   : > { %v5703_v0 = vpop.f32.mrb[121].mxu1  ;;  %v5666_v61 = vpop.f32.mrb[123].mxu0 }
 0x217   : > { %v5704_v1 = vadd.f32 %v5703_v0, %v5702_v15  ;;  %v5705_v8 = vpop.f32.mrb[122].mxu1  ;;  %v4341_v17 = vadd.f32 %v5664_v62, %v4276_v48  ;;  %v5667_v7 = vadd.f32 %v5666_v61, %v5665_v54 }
 0x218   : > { %v5706_v11 = vpop.f32.mrb[123].mxu1 }
 0x219   : > { %v5707_v16 = vadd.f32 %v5706_v11, %v5705_v8  ;;  %v7544_v51 = vadd.f32 %v5704_v1, %v4341_v17  ;;  %v4344_v44 = vadd.f32 %v5667_v7, %v7531_v18 }
 0x21b   : > { %v7547_v57 = vadd.f32 %v5707_v16, %v4344_v44  ;;  %v5668_v19 = vpop.f32.mrb[124].mxu0 }
 0x21c   : > { %v5669_v21 = vpop.f32.mrb[125].mxu0 }
 0x21d   : > { %v5708_v29 = vpop.f32.mrb[124].mxu1  ;;  %v5670_v26 = vadd.f32 %v5669_v21, %v5668_v19  ;;  %v5671_v32 = vpop.f32.mrb[126].mxu0 }
 0x21e   : > { %v5709_v22 = vpop.f32.mrb[125].mxu1  ;;  %v5672_v60 = vpop.f32.mrb[127].mxu0 }
 0x21f   : > { %v5710_v40 = vadd.f32 %v5709_v22, %v5708_v29  ;;  %v5711_v6 = vpop.f32.mrb[126].mxu1  ;;  %v4349_v45 = vadd.f32 %v5670_v26, %v4284_v9  ;;  %v5673_v10 = vadd.f32 %v5672_v60, %v5671_v32 }
 0x220   : > { %v5712_v48 = vpop.f32.mrb[127].mxu1 }
 0x221   : > { %v5713_v38 = vadd.f32 %v5712_v48, %v5711_v6  ;;  %v7549_v12 = vadd.f32 %v5710_v40, %v4349_v45  ;;  %v4352_v18 = vadd.f32 %v5673_v10, %v7534_v28 }
 0x223   : > { %v7552_v53 = vadd.f32 %v5713_v38, %v4352_v18 }
 0x227   : > { %v5730_v47 = vpop.f32.mrb[128].mxu0 }
 0x228   : > { %v5731_v39 = vpop.f32.mrb[129].mxu0 }
 0x229   : > { %v5732_v56 = vadd.f32 %v5731_v39, %v5730_v47  ;;  %v5733_v31 = vpop.f32.mrb[130].mxu0 }
 0x22a   : > { %v5734_v43 = vpop.f32.mrb[131].mxu0 }
 0x22b   : > { %v4455_v36 = vadd.f32 %v5732_v56, %v4390_v27  ;;  %v5735_v9 = vadd.f32 %v5734_v43, %v5733_v31 }
 0x22d   : > { %v5770_v63 = vpop.f32.mrb[128].mxu1  ;;  %v4458_v20 = vadd.f32 %v5735_v9, %v7537_v23 }
 0x22e   : > { %v5771_v24 = vpop.f32.mrb[129].mxu1 }
 0x22f   : > { %v5772_v34 = vadd.f32 %v5771_v24, %v5770_v63  ;;  %v5773_v4 = vpop.f32.mrb[130].mxu1  ;;  %v5736_v50 = vpop.f32.mrb[132].mxu0 }
 0x230   : > { %v5774_v28 = vpop.f32.mrb[131].mxu1  ;;  %v5737_v14 = vpop.f32.mrb[133].mxu0 }
 0x231   : > { %v4520_v55 = vadd.f32 %v5772_v34, %v4455_v36  ;;  %v5775_v42 = vadd.f32 %v5774_v28, %v5773_v4  ;;  %v5738_v30 = vadd.f32 %v5737_v14, %v5736_v50  ;;  %v5739_v49 = vpop.f32.mrb[134].mxu0 }
 0x232   : > { %v5740_v33 = vpop.f32.mrb[135].mxu0 }
 0x233   : > { %v4557_v27 = vmul.f32 %v7558_v13, %v4520_v55  ;;  %v4523_v2 = vadd.f32 %v5775_v42, %v4458_v20  ;;  %v4463_v35 = vadd.f32 %v5738_v30, %v7539_v37  ;;  %v5741_v58 = vadd.f32 %v5740_v33, %v5739_v49 }
 0x235   : > { %4565 = vst [vmem:[%s7564_s26] sm:$0xff] %v4557_v27  ;;  %v4558_v46 = vmul.f32 %v7558_v13, %v4523_v2  ;;  %v5776_v5 = vpop.f32.mrb[132].mxu1  ;;  %v4466_v59 = vadd.f32 %v5741_v58, %v7542_v41 }
 0x236   : > { %v5777_v23 = vpop.f32.mrb[133].mxu1 }
 0x237   : > { %4566 = vst [vmem:[%s7564_s26 + $0x8] sm:$0xff] %v4558_v46  ;;  %v5778_v25 = vadd.f32 %v5777_v23, %v5776_v5  ;;  %v5779_v52 = vpop.f32.mrb[134].mxu1  ;;  %v5742_v1 = vpop.f32.mrb[136].mxu0 }
 0x238   : > { %v5780_v3 = vpop.f32.mrb[135].mxu1  ;;  %v5743_v8 = vpop.f32.mrb[137].mxu0 }
 0x239   : > { %v4528_v15 = vadd.f32 %v5778_v25, %v4463_v35  ;;  %v5781_v62 = vadd.f32 %v5780_v3, %v5779_v52  ;;  %v5744_v7 = vadd.f32 %v5743_v8, %v5742_v1  ;;  %v5745_v37 = vpop.f32.mrb[138].mxu0 }
 0x23a   : > { %v5746_v16 = vpop.f32.mrb[139].mxu0 }
 0x23b   : > { %v4559_v0 = vmul.f32 %v7558_v13, %v4528_v15  ;;  %v4531_v54 = vadd.f32 %v5781_v62, %v4466_v59  ;;  %v4471_v44 = vadd.f32 %v5744_v7, %v7544_v51  ;;  %v5747_v29 = vadd.f32 %v5746_v16, %v5745_v37 }
 0x23d   : > { %4567 = vst [vmem:[%s7564_s26 + $0x10] sm:$0xff] %v4559_v0  ;;  %v4560_v61 = vmul.f32 %v7558_v13, %v4531_v54  ;;  %v5782_v17 = vpop.f32.mrb[136].mxu1  ;;  %v4474_v26 = vadd.f32 %v5747_v29, %v7547_v57 }
 0x23e   : > { %v5783_v11 = vpop.f32.mrb[137].mxu1 }
 0x23f   : > { %4568 = vst [vmem:[%s7564_s26 + $0x18] sm:$0xff] %v4560_v61  ;;  %v5784_v19 = vadd.f32 %v5783_v11, %v5782_v17  ;;  %v5785_v41 = vpop.f32.mrb[138].mxu1  ;;  %v5748_v60 = vpop.f32.mrb[140].mxu0 }
 0x240   : > { %v5786_v21 = vpop.f32.mrb[139].mxu1  ;;  %v5749_v48 = vpop.f32.mrb[141].mxu0 }
 0x241   : > { %v4536_v22 = vadd.f32 %v5784_v19, %v4471_v44  ;;  %v5787_v40 = vadd.f32 %v5786_v21, %v5785_v41  ;;  %v5750_v51 = vadd.f32 %v5749_v48, %v5748_v60  ;;  %v5751_v38 = vpop.f32.mrb[142].mxu0 }
 0x242   : > { %v5752_v47 = vpop.f32.mrb[143].mxu0 }
 0x243   : > { %v4561_v32 = vmul.f32 %v7558_v13, %v4536_v22  ;;  %v4539_v6 = vadd.f32 %v5787_v40, %v4474_v26  ;;  %v4479_v39 = vadd.f32 %v5750_v51, %v7549_v12  ;;  %v5753_v56 = vadd.f32 %v5752_v47, %v5751_v38 }
 0x245   : > { %4569 = vst [vmem:[%s7564_s26 + $0x20] sm:$0xff] %v4561_v32  ;;  %v4562_v45 = vmul.f32 %v7558_v13, %v4539_v6  ;;  %v5788_v10 = vpop.f32.mrb[140].mxu1  ;;  %v4482_v43 = vadd.f32 %v5753_v56, %v7552_v53 }
 0x246   : > { %v5789_v18 = vpop.f32.mrb[141].mxu1 }
 0x247   : > { %4570 = vst [vmem:[%s7564_s26 + $0x28] sm:$0xff] %v4562_v45  ;;  %v5790_v57 = vadd.f32 %v5789_v18, %v5788_v10  ;;  %v5791_v63 = vpop.f32.mrb[142].mxu1 }
 0x248   : > { %v5792_v31 = vpop.f32.mrb[143].mxu1 }
 0x249   : > { %v4544_v24 = vadd.f32 %v5790_v57, %v4479_v39  ;;  %v5793_v36 = vadd.f32 %v5792_v31, %v5791_v63 }
 0x24b   : > { %v4563_v34 = vmul.f32 %v7558_v13, %v4544_v24  ;;  %v4547_v4 = vadd.f32 %v5793_v36, %v4482_v43 }
 0x24d   : > { %4571 = vst [vmem:[%s7564_s26 + $0x30] sm:$0xff] %v4563_v34  ;;  %v4564_v9 = vmul.f32 %v7558_v13, %v4547_v4 }
 0x24f   : > { %4572 = vst [vmem:[%s7564_s26 + $0x38] sm:$0xff] %v4564_v9 }
 0x250 PF: > { %s14_s15 = sadd.s32 1, %s6313_s15  }
 0x251   : > { %p11_p4 = scmp.ge.s32.totalorder %s14_s15, 4  }
 0x253   :  { %13 = sbr.rel (!%p11_p4) target bundleno = 1 (0x1), region = 66 }

// kernel: _lambda_.54
= control target key start
LH: loop header
LB: loop body
LE: loop exit
PB: predicated region body
PF: predicated region fallthrough
CT: control target
= control target key end

     0   :  { %s396_s12 = smov 0   ;;  %s426_s0 = inlined_call_operand.vmem [shape: bf16[32,512], index: 0, kind: input, shape index: {}]   ;;  %s427_s1 = inlined_call_operand.vmem [shape: f32[1,512], index: 1, kind: input, shape index: {}]   ;;  %s428_s2 = inlined_call_operand.vmem [shape: f32[1,512], index: 2, kind: input, shape index: {}]   ;;  %s429_s3 = inlined_call_operand.vmem [shape: bf16[32,512], index: 3, kind: output, shape index: {}]  }
   0x1 LB: > { %s337_s13 = sadd.s32 4294967295, %s374_s12   ;;  %p341_p0 = scmp.ge.s32.totalorder %s374_s12, 1  ;;  %s374_s12 = sphi %s396_s12, %s13_s12  }
   0x2   : > { %p139_p1 = scmp.lt.s32.totalorder %s374_s12, 3 }
   0x4   : > { %p140_p2 = pnand %p341_p0, %p139_p1 }
   0x5   : > { %s342_s14 = sshll.u32 (!%p140_p2), %s337_s13, 1  ;;  %v193_v0 = vlaneseq (!%p140_p2)  ;;  %v191_v2 = vld [vmem:[%s427_s1] sm:$0xf] (!%p140_p2) }
   0x6   : > { %143 = sbr.rel (%p140_p2) target bundleno = 27 (0x1b), region = 32  ;;  %p166_p3 = scmp.lt.s32.totalorder (!%p140_p2), %s342_s14, 3  ;;  %v221_v3 = vld [vmem:[%s428_s2] sm:$0xf] (!%p140_p2) }
   0x7   : > { %v194_v1 = vshrl.u32 (!%p140_p2), %v193_v0, 7 }
   0x9   : > { %v195_v4 = vsub.s32 (!%p140_p2), 0, %v194_v1  ;;  %v199_v5 = vsub.s32 (!%p140_p2), 1, %v194_v1  ;;  %v203_v6 = vsub.s32 (!%p140_p2), 2, %v194_v1  ;;  %v207_v7 = vsub.s32 (!%p140_p2), 3, %v194_v1 }
   0xb   : > { %v196_v8 = vrot.slane (!%p140_p2), %v191_v2, %v195_v4  ;;  %v200_v9 = vrot.slane (!%p140_p2), %v191_v2, %v199_v5  ;;  %v226_v10 = vrot.slane (!%p140_p2), %v221_v3, %v195_v4  ;;  %v230_v11 = vrot.slane (!%p140_p2), %v221_v3, %v199_v5 }
   0xc   : > { %v204_v15 = vrot.slane (!%p140_p2), %v191_v2, %v203_v6  ;;  %v208_v16 = vrot.slane (!%p140_p2), %v191_v2, %v207_v7  ;;  %v234_v17 = vrot.slane (!%p140_p2), %v221_v3, %v203_v6  ;;  %v238_v18 = vrot.slane (!%p140_p2), %v221_v3, %v207_v7 }
   0xd   : > { %s431_s14 = smov (!%p166_p3, %s342_s14), 3 }
   0xe   : > { %s354_s19 = sshll.u32 %s431_s14, 4 }
   0xf   : > { %s170_s22 = scalar_lea.vmem %s426_s0, %s354_s19  ;;  %s177_s25 = scalar_lea.vmem %s429_s3, %s354_s19 }
  0x10   : > { %v179_v12 = vld [vmem:[%s170_s22] sm:$0xff]  ;;  %v181_v13 = vld [vmem:[%s170_s22 + $0x10] sm:$0xff]  ;;  %v182_v14 = vld [vmem:[%s170_s22 + $0x18] sm:$0xff] }
  0x11   : > { %v183_v19 = vunpack.c.l.bf16 %v179_v12  ;;  %v184_v20 = vunpack.c.h.bf16 %v179_v12  ;;  %v180_v21 = vld [vmem:[%s170_s22 + $0x8] sm:$0xff]  ;;  %v187_v22 = vunpack.c.l.bf16 %v181_v13  ;;  %v188_v23 = vunpack.c.h.bf16 %v181_v13 }
  0x12   : > { %v185_v24 = vunpack.c.l.bf16 %v180_v21  ;;  %v186_v25 = vunpack.c.h.bf16 %v180_v21  ;;  %v189_v26 = vunpack.c.l.bf16 %v182_v14  ;;  %v190_v27 = vunpack.c.h.bf16 %v182_v14 }
  0x13   : > { %v213_v28 = vadd.f32 %v196_v8, %v183_v19  ;;  %v214_v29 = vadd.f32 %v200_v9, %v184_v20  ;;  %v217_v30 = vadd.f32 %v196_v8, %v187_v22  ;;  %v218_v31 = vadd.f32 %v200_v9, %v188_v23 }
  0x14   : > { %v215_v32 = vadd.f32 %v204_v15, %v185_v24  ;;  %v216_v33 = vadd.f32 %v208_v16, %v186_v25  ;;  %v219_v34 = vadd.f32 %v204_v15, %v189_v26  ;;  %v220_v35 = vadd.f32 %v208_v16, %v190_v27 }
  0x15   : > { %v243_v36 = vmul.f32 %v226_v10, %v213_v28  ;;  %v244_v37 = vmul.f32 %v230_v11, %v214_v29  ;;  %v247_v38 = vmul.f32 %v226_v10, %v217_v30  ;;  %v248_v39 = vmul.f32 %v230_v11, %v218_v31 }
  0x16   : > { %v245_v40 = vmul.f32 %v234_v17, %v215_v32  ;;  %v246_v41 = vmul.f32 %v238_v18, %v216_v33  ;;  %v249_v42 = vmul.f32 %v234_v17, %v219_v34  ;;  %v250_v43 = vmul.f32 %v238_v18, %v220_v35 }
  0x17   : > { %v356_v44 = vpack.c.bf16 %v244_v37, %v243_v36  ;;  %v358_v45 = vpack.c.bf16 %v248_v39, %v247_v38 }
  0x18   : > { %v357_v46 = vpack.c.bf16 %v246_v41, %v245_v40  ;;  %v359_v47 = vpack.c.bf16 %v250_v43, %v249_v42 }
  0x19   : > { %275 = vst [vmem:[%s177_s25] sm:$0xff] %v356_v44  ;;  %277 = vst [vmem:[%s177_s25 + $0x10] sm:$0xff] %v358_v45 }
  0x1a   : > { %276 = vst [vmem:[%s177_s25 + $0x8] sm:$0xff] %v357_v46  ;;  %278 = vst [vmem:[%s177_s25 + $0x18] sm:$0xff] %v359_v47 }
  0x1b PF: > { %s13_s12 = sadd.s32 1, %s374_s12  }
  0x1c   : > { %p10_p4 = scmp.ge.s32.totalorder %s13_s12, 4  }
  0x1e   :  { %12 = sbr.rel (!%p10_p4) target bundleno = 1 (0x1), region = 62 }

// kernel: _lambda_.52
= control target key start
LH: loop header
LB: loop body
LE: loop exit
PB: predicated region body
PF: predicated region fallthrough
CT: control target
= control target key end

     0   :  { %s1178_s15 = smov 0   ;;  %s1441_s0 = inlined_call_operand.vmem [shape: bf16[32,256], index: 0, kind: input, shape index: {}]   ;;  %s1442_s1 = inlined_call_operand.vmem [shape: bf16[256,512], index: 1, kind: input, shape index: {}]   ;;  %s1443_s2 = inlined_call_operand.vmem [shape: f32[1,512], index: 2, kind: input, shape index: {}]   ;;  %s1444_s3 = inlined_call_operand.vmem [shape: bf16[32,512], index: 3, kind: output, shape index: {0}]   ;;  %s1445_s4 = inlined_call_operand.vmem [shape: f32[16,512], index: 4, kind: output, shape index: {1}]  }
   0x1 LB: > { %s1184_s16 = sadd.s32 4294967295, %s1151_s15   ;;  %p950_p0 = scmp.ge.s32.totalorder %s1151_s15, 1  ;;  %s1151_s15 = sphi %s1178_s15, %s15_s15  }
   0x2   : > { %p167_p1 = scmp.lt.s32.totalorder %s1151_s15, 3 }
   0x4   : > { %p168_p2 = pnand %p950_p0, %p167_p1 }
   0x5   : > { %v1046_v0 = vld [vmem:[%s1442_s1 + $0x4] ss:$16 sps:$4 sm:$0xff] (!%p168_p2)   ;;  %v1048_v1 = vld [vmem:[%s1442_s1 + $0xc] ss:$16 sps:$4 sm:$0xff] (!%p168_p2)   ;;  %v1050_v2 = vld [vmem:[%s1442_s1] ss:$16 sps:$4 sm:$0xff] (!%p168_p2)  }
   0x6   : > { %171 = sbr.rel (%p168_p2) target bundleno = 316 (0x13c), region = 32  ;;  %637 = vmatprep.subr.bf16.mxu0 (!%p168_p2), %v1046_v0  ;;  %v1051_v3 = vld [vmem:[%s1442_s1 + $0x8] ss:$16 sps:$4 sm:$0xff] (!%p168_p2)   ;;  %680 = vmatprep.subr.bf16.mxu1 (!%p168_p2), %v1048_v1  ;;  %v1052_v4 = vld [vmem:[%s1442_s1 + $0x24] ss:$16 sps:$4 sm:$0xff] (!%p168_p2)   ;;  %s951_s29 = sshll.u32 (!%p168_p2), %s1184_s16, 1 }
   0x7   : > { %638 = vmatpush1.bf16.msra.mxu0 (!%p168_p2), %v1050_v2  ;;  %681 = vmatpush1.bf16.msra.mxu1 (!%p168_p2), %v1051_v3  ;;  %v1054_v5 = vld [vmem:[%s1442_s1 + $0x2c] ss:$16 sps:$4 sm:$0xff] (!%p168_p2)   ;;  %v1056_v6 = vld [vmem:[%s1442_s1 + $0x20] ss:$16 sps:$4 sm:$0xff] (!%p168_p2)   ;;  %v1057_v7 = vld [vmem:[%s1442_s1 + $0x28] ss:$16 sps:$4 sm:$0xff] (!%p168_p2)   ;;  %v287_v2 = vlaneseq (!%p168_p2) }
   0x8   : > { %639 = vmatprep.subr.bf16.mxu0 (!%p168_p2), %v1052_v4  ;;  %682 = vmatprep.subr.bf16.mxu1 (!%p168_p2), %v1054_v5  ;;  %v1058_v8 = vld [vmem:[%s1442_s1 + $0x44] ss:$16 sps:$4 sm:$0xff] (!%p168_p2)   ;;  %v1060_v9 = vld [vmem:[%s1442_s1 + $0x4c] ss:$16 sps:$4 sm:$0xff] (!%p168_p2)   ;;  %v1062_v10 = vld [vmem:[%s1442_s1 + $0x40] ss:$16 sps:$4 sm:$0xff] (!%p168_p2)  }
   0x9   : > { %v1063_v11 = vld [vmem:[%s1442_s1 + $0x48] ss:$16 sps:$4 sm:$0xff] (!%p168_p2)   ;;  %v1064_v12 = vld [vmem:[%s1442_s1 + $0x64] ss:$16 sps:$4 sm:$0xff] (!%p168_p2)   ;;  %v1066_v13 = vld [vmem:[%s1442_s1 + $0x6c] ss:$16 sps:$4 sm:$0xff] (!%p168_p2)  }
   0xa   : > { %v1068_v14 = vld [vmem:[%s1442_s1 + $0x60] ss:$16 sps:$4 sm:$0xff] (!%p168_p2)   ;;  %v1069_v15 = vld [vmem:[%s1442_s1 + $0x68] ss:$16 sps:$4 sm:$0xff] (!%p168_p2)   ;;  %v1070_v16 = vld [vmem:[%s1442_s1 + $0x84] ss:$16 sps:$4 sm:$0xff] (!%p168_p2)  }
   0xb   : > { %640 = vmatpush1.bf16.msra.mxu0 (!%p168_p2), %v1056_v6  ;;  %683 = vmatpush1.bf16.msra.mxu1 (!%p168_p2), %v1057_v7  ;;  %v1072_v17 = vld [vmem:[%s1442_s1 + $0x8c] ss:$16 sps:$4 sm:$0xff] (!%p168_p2)   ;;  %v1074_v18 = vld [vmem:[%s1442_s1 + $0x80] ss:$16 sps:$4 sm:$0xff] (!%p168_p2)   ;;  %v1075_v19 = vld [vmem:[%s1442_s1 + $0x88] ss:$16 sps:$4 sm:$0xff] (!%p168_p2)  }
   0xc   : > { %641 = vmatprep.subr.bf16.mxu0 (!%p168_p2), %v1058_v8  ;;  %684 = vmatprep.subr.bf16.mxu1 (!%p168_p2), %v1060_v9  ;;  %v1076_v20 = vld [vmem:[%s1442_s1 + $0xa4] ss:$16 sps:$4 sm:$0xff] (!%p168_p2)   ;;  %v1078_v21 = vld [vmem:[%s1442_s1 + $0xac] ss:$16 sps:$4 sm:$0xff] (!%p168_p2)   ;;  %v1080_v22 = vld [vmem:[%s1442_s1 + $0xa0] ss:$16 sps:$4 sm:$0xff] (!%p168_p2)  }
   0xd   : > { %v1081_v23 = vld [vmem:[%s1442_s1 + $0xa8] ss:$16 sps:$4 sm:$0xff]   ;;  %v1082_v24 = vld [vmem:[%s1442_s1 + $0xc4] ss:$16 sps:$4 sm:$0xff]   ;;  %v1084_v25 = vld [vmem:[%s1442_s1 + $0xcc] ss:$16 sps:$4 sm:$0xff]  }
   0xe   : > { %v1086_v26 = vld [vmem:[%s1442_s1 + $0xc0] ss:$16 sps:$4 sm:$0xff]   ;;  %v1087_v27 = vld [vmem:[%s1442_s1 + $0xc8] ss:$16 sps:$4 sm:$0xff]   ;;  %v1088_v28 = vld [vmem:[%s1442_s1 + $0xe4] ss:$16 sps:$4 sm:$0xff]  }
   0xf   : > { %642 = vmatpush1.bf16.msra.mxu0 %v1062_v10  ;;  %685 = vmatpush1.bf16.msra.mxu1 %v1063_v11  ;;  %v1090_v29 = vld [vmem:[%s1442_s1 + $0xec] ss:$16 sps:$4 sm:$0xff]   ;;  %v1092_v30 = vld [vmem:[%s1442_s1 + $0xe0] ss:$16 sps:$4 sm:$0xff]   ;;  %v1093_v31 = vld [vmem:[%s1442_s1 + $0xe8] ss:$16 sps:$4 sm:$0xff]  }
  0x10   : > { %643 = vmatprep.subr.bf16.mxu0 %v1064_v12  ;;  %686 = vmatprep.subr.bf16.mxu1 %v1066_v13  ;;  %v1094_v32 = vld [vmem:[%s1442_s1 + $0x104] ss:$16 sps:$4 sm:$0xff]   ;;  %v1096_v33 = vld [vmem:[%s1442_s1 + $0x10c] ss:$16 sps:$4 sm:$0xff]   ;;  %p201_p3 = scmp.lt.s32.totalorder %s951_s29, 3  ;;  %v1391_v3 = vshrl.u32 %v287_v2, 7 }
  0x11   : > { %v1098_v34 = vld [vmem:[%s1442_s1 + $0x100] ss:$16 sps:$4 sm:$0xff]   ;;  %v1099_v35 = vld [vmem:[%s1442_s1 + $0x108] ss:$16 sps:$4 sm:$0xff]   ;;  %v1100_v36 = vld [vmem:[%s1442_s1 + $0x124] ss:$16 sps:$4 sm:$0xff]  }
  0x12   : > { %v1102_v37 = vld [vmem:[%s1442_s1 + $0x12c] ss:$16 sps:$4 sm:$0xff]   ;;  %s1447_s29 = smov (!%p201_p3, %s951_s29), 3  ;;  %v1104_v38 = vld [vmem:[%s1442_s1 + $0x120] ss:$16 sps:$4 sm:$0xff]   ;;  %v289_v4 = vsub.s32 0, %v1391_v3 }
  0x13   : > { %644 = vmatpush1.bf16.msra.mxu0 %v1068_v14  ;;  %687 = vmatpush1.bf16.msra.mxu1 %v1069_v15  ;;  %v1105_v39 = vld [vmem:[%s1442_s1 + $0x128] ss:$16 sps:$4 sm:$0xff]   ;;  %v1106_v40 = vld [vmem:[%s1442_s1 + $0x144] ss:$16 sps:$4 sm:$0xff]   ;;  %v1108_v41 = vld [vmem:[%s1442_s1 + $0x14c] ss:$16 sps:$4 sm:$0xff]  }
  0x14   : > { %645 = vmatprep.subr.bf16.mxu0 %v1070_v16  ;;  %688 = vmatprep.subr.bf16.mxu1 %v1072_v17  ;;  %s1031_s5 = sshll.u32 %s1447_s29, 3  ;;  %v1110_v42 = vld [vmem:[%s1442_s1 + $0x140] ss:$16 sps:$4 sm:$0xff]   ;;  %v1111_v43 = vld [vmem:[%s1442_s1 + $0x148] ss:$16 sps:$4 sm:$0xff]   ;;  %v297_v5 = vsub.s32 2, %v1391_v3 }
  0x15   : > { %v1112_v44 = vld [vmem:[%s1442_s1 + $0x164] ss:$16 sps:$4 sm:$0xff]   ;;  %s1330_s14 = scalar_lea.vmem %s1441_s0, %s1031_s5  ;;  %v1114_v45 = vld [vmem:[%s1442_s1 + $0x16c] ss:$16 sps:$4 sm:$0xff]   ;;  %v1116_v47 = vld [vmem:[%s1442_s1 + $0x160] ss:$16 sps:$4 sm:$0xff]  }
  0x16   : > { %v1144_v46 = vld [vmem:[%s1330_s14 + $0x4] ss:$8 sps:$4 sm:$0xff]   ;;  %v1117_v48 = vld [vmem:[%s1442_s1 + $0x168] ss:$16 sps:$4 sm:$0xff]   ;;  %v1122_v51 = vld [vmem:[%s1442_s1 + $0x180] ss:$16 sps:$4 sm:$0xff]  }
  0x17   : > { %646 = vmatpush1.bf16.msra.mxu0 %v1074_v18  ;;  %689 = vmatpush1.bf16.msra.mxu1 %v1075_v19  ;;  %v1118_v49 = vld [vmem:[%s1442_s1 + $0x184] ss:$16 sps:$4 sm:$0xff]   ;;  %v1120_v50 = vld [vmem:[%s1442_s1 + $0x18c] ss:$16 sps:$4 sm:$0xff]   ;;  %v1123_v52 = vld [vmem:[%s1442_s1 + $0x188] ss:$16 sps:$4 sm:$0xff]  }
  0x18   : > { %647 = vmatprep.subr.bf16.mxu0 %v1076_v20  ;;  %690 = vmatprep.subr.bf16.mxu1 %v1078_v21  ;;  %v1124_v53 = vld [vmem:[%s1442_s1 + $0x1a4] ss:$16 sps:$4 sm:$0xff]   ;;  %v1126_v54 = vld [vmem:[%s1442_s1 + $0x1ac] ss:$16 sps:$4 sm:$0xff]   ;;  %v1128_v55 = vld [vmem:[%s1442_s1 + $0x1a0] ss:$16 sps:$4 sm:$0xff]  }
  0x19   : > { %669 = vmatprep.mubr.bf16.mxu0 %v1144_v46  ;;  %712 = vmatprep.mubr.bf16.mxu1 %v1144_v46  ;;  %v1129_v56 = vld [vmem:[%s1442_s1 + $0x1a8] ss:$16 sps:$4 sm:$0xff]   ;;  %v1130_v57 = vld [vmem:[%s1442_s1 + $0x1c4] ss:$16 sps:$4 sm:$0xff]   ;;  %v1132_v58 = vld [vmem:[%s1442_s1 + $0x1cc] ss:$16 sps:$4 sm:$0xff]  }
  0x1a   : > { %v1134_v59 = vld [vmem:[%s1442_s1 + $0x1c0] ss:$16 sps:$4 sm:$0xff]   ;;  %v1135_v60 = vld [vmem:[%s1442_s1 + $0x1c8] ss:$16 sps:$4 sm:$0xff]   ;;  %v1136_v61 = vld [vmem:[%s1442_s1 + $0x1e4] ss:$16 sps:$4 sm:$0xff]  }
  0x1b   : > { %648 = vmatpush1.bf16.msra.mxu0 %v1080_v22  ;;  %691 = vmatpush1.bf16.msra.mxu1 %v1081_v23  ;;  %v1138_v62 = vld [vmem:[%s1442_s1 + $0x1ec] ss:$16 sps:$4 sm:$0xff]   ;;  %v1140_v63 = vld [vmem:[%s1442_s1 + $0x1e0] ss:$16 sps:$4 sm:$0xff]   ;;  %v1141_v0 = vld [vmem:[%s1442_s1 + $0x1e8] ss:$16 sps:$4 sm:$0xff]  }
  0x1c   : > { %649 = vmatprep.subr.bf16.mxu0 %v1082_v24  ;;  %692 = vmatprep.subr.bf16.mxu1 %v1084_v25  ;;  %v1142_v1 = vld [vmem:[%s1330_s14] ss:$8 sps:$4 sm:$0xff]   ;;  %v293_v7 = vsub.s32 1, %v1391_v3  ;;  %v301_v8 = vsub.s32 3, %v1391_v3  ;;  %s1032_s14 = sshll.u32 %s1447_s29, 4  ;;  %p214_p4 = scmp.lt.s32.totalorder %s1184_s16, 1 }
  0x1d   : > { %v285_v6 = vld [vmem:[%s1443_s2] sm:$0xf]  ;;  %s1404_s11 = scalar_lea.vmem %s1444_s3, %s1032_s14  ;;  %vm842_vm8 = vcmp.eq.s32.totalorder %v1391_v3, 1  ;;  %vm841_vm9 = vcmp.eq.s32.totalorder %v1391_v3, 0 }
  0x1e   : > { %v290_v9 = vrot.slane %v285_v6, %v289_v4  ;;  %v298_v10 = vrot.slane %v285_v6, %v297_v5  ;;  %v294_v11 = vrot.slane %v285_v6, %v293_v7  ;;  %v302_v12 = vrot.slane %v285_v6, %v301_v8  ;;  %s1449_s16 = smov (!%p214_p4, %s1184_s16), 1 }
  0x1f   : > { %650 = vmatpush1.bf16.msra.mxu0 %v1086_v26  ;;  %693 = vmatpush1.bf16.msra.mxu1 %v1087_v27  ;;  %s1033_s12 = sshll.u32 %s1449_s16, 5 }
  0x20   : > { %651 = vmatprep.subr.bf16.mxu0 %v1088_v28  ;;  %694 = vmatprep.subr.bf16.mxu1 %v1090_v29  ;;  %s218_s18 = scalar_lea.vmem %s1445_s4, %s1033_s12 }
  0x23   : > { %652 = vmatpush1.bf16.msra.mxu0 %v1092_v30  ;;  %695 = vmatpush1.bf16.msra.mxu1 %v1093_v31 }
  0x24   : > { %653 = vmatprep.subr.bf16.mxu0 %v1094_v32  ;;  %696 = vmatprep.subr.bf16.mxu1 %v1096_v33 }
  0x27   : > { %654 = vmatpush1.bf16.msra.mxu0 %v1098_v34  ;;  %697 = vmatpush1.bf16.msra.mxu1 %v1099_v35 }
  0x28   : > { %655 = vmatprep.subr.bf16.mxu0 %v1100_v36  ;;  %698 = vmatprep.subr.bf16.mxu1 %v1102_v37 }
  0x2b   : > { %656 = vmatpush1.bf16.msra.mxu0 %v1104_v38  ;;  %699 = vmatpush1.bf16.msra.mxu1 %v1105_v39 }
  0x2c   : > { %657 = vmatprep.subr.bf16.mxu0 %v1106_v40  ;;  %700 = vmatprep.subr.bf16.mxu1 %v1108_v41 }
  0x2f   : > { %658 = vmatpush1.bf16.msra.mxu0 %v1110_v42  ;;  %701 = vmatpush1.bf16.msra.mxu1 %v1111_v43 }
  0x30   : > { %659 = vmatprep.subr.bf16.mxu0 %v1112_v44  ;;  %702 = vmatprep.subr.bf16.mxu1 %v1114_v45 }
  0x33   : > { %660 = vmatpush1.bf16.msra.mxu0 %v1116_v47  ;;  %703 = vmatpush1.bf16.msra.mxu1 %v1117_v48 }
  0x34   : > { %661 = vmatprep.subr.bf16.mxu0 %v1118_v49  ;;  %704 = vmatprep.subr.bf16.mxu1 %v1120_v50 }
  0x37   : > { %662 = vmatpush1.bf16.msra.mxu0 %v1122_v51  ;;  %705 = vmatpush1.bf16.msra.mxu1 %v1123_v52 }
  0x38   : > { %663 = vmatprep.subr.bf16.mxu0 %v1124_v53  ;;  %706 = vmatprep.subr.bf16.mxu1 %v1126_v54 }
  0x3b   : > { %664 = vmatpush1.bf16.msra.mxu0 %v1128_v55  ;;  %707 = vmatpush1.bf16.msra.mxu1 %v1129_v56 }
  0x3c   : > { %665 = vmatprep.subr.bf16.mxu0 %v1130_v57  ;;  %708 = vmatprep.subr.bf16.mxu1 %v1132_v58 }
  0x3f   : > { %666 = vmatpush1.bf16.msra.mxu0 %v1134_v59  ;;  %709 = vmatpush1.bf16.msra.mxu1 %v1135_v60 }
  0x40   : > { %667 = vmatprep.subr.bf16.mxu0 %v1136_v61  ;;  %710 = vmatprep.subr.bf16.mxu1 %v1138_v62 }
  0x43   : > { %668 = vmatpush1.bf16.msra.mxu0 %v1140_v63  ;;  %711 = vmatpush1.bf16.msra.mxu1 %v1141_v0 }
  0x46   : > { %670 = vmatmul.mubr.bf16.vlgmr.msra.gmra.mrb[0].mxu0 %v1142_v1  ;;  %713 = vmatmul.mubr.bf16.vlgmr.msra.gmra.mrb[0].mxu1 %v1142_v1 }
 0x119   : > { %v671_v13 = vpop.f32.mrb[0].mxu0  ;;  %v714_v14 = vpop.f32.mrb[0].mxu1 }
 0x11a   : > { %v672_v15 = vadd.f32 %v671_v13, %v290_v9  ;;  %v715_v16 = vadd.f32 %v714_v14, %v298_v10  ;;  %v673_v17 = vpop.f32.mrb[1].mxu0  ;;  %v716_v18 = vpop.f32.mrb[1].mxu1 }
 0x11b   : > { %v674_v19 = vadd.f32 %v673_v17, %v294_v11  ;;  %v717_v20 = vadd.f32 %v716_v18, %v302_v12  ;;  %v675_v21 = vpop.f32.mrb[2].mxu0  ;;  %v718_v22 = vpop.f32.mrb[2].mxu1 }
 0x11c   : > { %vm723_vm0 = vcmp.ge.f32.partialorder %v672_v15, 0.0  ;;  %v731_v23 = vmul.f32 0.1, %v672_v15  ;;  %vm725_vm1 = vcmp.ge.f32.partialorder %v715_v16, 0.0  ;;  %v733_v24 = vmul.f32 0.1, %v715_v16 }
 0x11d   : > { %vm724_vm2 = vcmp.ge.f32.partialorder %v674_v19, 0.0  ;;  %v732_v25 = vmul.f32 0.1, %v674_v19  ;;  %vm726_vm3 = vcmp.ge.f32.partialorder %v717_v20, 0.0  ;;  %v734_v26 = vmul.f32 0.1, %v717_v20 }
 0x11e   : > { %v739_v27 = vsel %vm723_vm0, %v672_v15, %v731_v23  ;;  %v741_v28 = vsel %vm725_vm1, %v715_v16, %v733_v24  ;;  %v676_v29 = vadd.f32 %v675_v21, %v290_v9  ;;  %v719_v30 = vadd.f32 %v718_v22, %v298_v10  ;;  %v677_v31 = vpop.f32.mrb[3].mxu0  ;;  %v720_v32 = vpop.f32.mrb[3].mxu1 }
 0x11f   : > { %v740_v33 = vsel %vm724_vm2, %v674_v19, %v732_v25  ;;  %v742_v34 = vsel %vm726_vm3, %v717_v20, %v734_v26  ;;  %v678_v39 = vadd.f32 %v677_v31, %v294_v11  ;;  %v721_v40 = vadd.f32 %v720_v32, %v302_v12 }
 0x120   : > { %v1034_v35 = vpack.c.bf16 %v740_v33, %v739_v27  ;;  %v1035_v36 = vpack.c.bf16 %v742_v34, %v741_v28  ;;  %vm727_vm4 = vcmp.ge.f32.partialorder %v676_v29, 0.0  ;;  %v735_v37 = vmul.f32 0.1, %v676_v29 }
 0x121   : > { %vm729_vm5 = vcmp.ge.f32.partialorder %v719_v30, 0.0  ;;  %v737_v38 = vmul.f32 0.1, %v719_v30  ;;  %v803_v41 = vmul.f32 %v739_v27, %v739_v27  ;;  %v805_v42 = vmul.f32 %v741_v28, %v741_v28 }
 0x122   : > { %771 = vst [vmem:[%s1404_s11] sm:$0xff] %v1034_v35  ;;  %772 = vst [vmem:[%s1404_s11 + $0x8] sm:$0xff] %v1035_v36  ;;  %v743_v43 = vsel %vm727_vm4, %v676_v29, %v735_v37  ;;  %vm728_vm6 = vcmp.ge.f32.partialorder %v678_v39, 0.0  ;;  %v736_v49 = vmul.f32 0.1, %v678_v39  ;;  %vm730_vm7 = vcmp.ge.f32.partialorder %v721_v40, 0.0 }
 0x123   : > { %v745_v44 = vsel %vm729_vm5, %v719_v30, %v737_v38  ;;  %v775_v45 = vadd.f32 %v743_v43, %v739_v27  ;;  %v807_v46 = vmul.f32 %v743_v43, %v743_v43  ;;  %v738_v50 = vmul.f32 0.1, %v721_v40 }
 0x124   : > { %v789_v47 = vadd.f32 %v745_v44, %v741_v28  ;;  %v809_v48 = vmul.f32 %v745_v44, %v745_v44  ;;  %v804_v55 = vmul.f32 %v740_v33, %v740_v33  ;;  %v806_v56 = vmul.f32 %v742_v34, %v742_v34 }
 0x125   : > { %v776_v51 = vrot.slane %v775_v45, 4  ;;  %v811_v52 = vadd.f32 %v807_v46, %v803_v41  ;;  %v744_v57 = vsel %vm728_vm6, %v678_v39, %v736_v49  ;;  %v746_v58 = vsel %vm730_vm7, %v721_v40, %v738_v50 }
 0x126   : > { %v790_v53 = vrot.slane %v789_v47, 4  ;;  %v825_v54 = vadd.f32 %v809_v48, %v805_v42  ;;  %v1036_v63 = vpack.c.bf16 %v744_v57, %v743_v43  ;;  %v782_v0 = vadd.f32 %v744_v57, %v740_v33 }
 0x127   : > { %v777_v59 = vadd.f32 %v776_v51, %v775_v45  ;;  %v812_v60 = vrot.slane %v811_v52, 4  ;;  %v808_v1 = vmul.f32 %v744_v57, %v744_v57  ;;  %v1037_v2 = vpack.c.bf16 %v746_v58, %v745_v44 }
 0x128   : > { %v791_v61 = vadd.f32 %v790_v53, %v789_v47  ;;  %v826_v62 = vrot.slane %v825_v54, 4  ;;  %773 = vst [vmem:[%s1404_s11 + $0x10] sm:$0xff] %v1036_v63  ;;  %v783_v8 = vrot.slane %v782_v0, 4  ;;  %v796_v10 = vadd.f32 %v746_v58, %v742_v34 }
 0x129   : > { %v778_v4 = vrot.slane %v777_v59, 2  ;;  %v813_v5 = vadd.f32 %v812_v60, %v811_v52  ;;  %v818_v9 = vadd.f32 %v808_v1, %v804_v55  ;;  %774 = vst [vmem:[%s1404_s11 + $0x18] sm:$0xff] %v1037_v2  ;;  %v810_v11 = vmul.f32 %v746_v58, %v746_v58 }
 0x12a   : > { %v792_v6 = vrot.slane %v791_v61, 2  ;;  %v827_v7 = vadd.f32 %v826_v62, %v825_v54  ;;  %v784_v16 = vadd.f32 %v783_v8, %v782_v0  ;;  %v797_v18 = vrot.slane %v796_v10, 4 }
 0x12b   : > { %v779_v12 = vadd.f32 %v778_v4, %v777_v59  ;;  %v814_v13 = vrot.slane %v813_v5, 2  ;;  %v819_v17 = vrot.slane %v818_v9, 4  ;;  %v832_v19 = vadd.f32 %v810_v11, %v806_v56 }
 0x12c   : > { %v793_v14 = vadd.f32 %v792_v6, %v791_v61  ;;  %v828_v15 = vrot.slane %v827_v7, 2  ;;  %v785_v24 = vrot.slane %v784_v16, 2  ;;  %v798_v26 = vadd.f32 %v797_v18, %v796_v10 }
 0x12d   : > { %v780_v20 = vrot.slane %v779_v12, 1  ;;  %v815_v21 = vadd.f32 %v814_v13, %v813_v5  ;;  %v820_v25 = vadd.f32 %v819_v17, %v818_v9  ;;  %v833_v27 = vrot.slane %v832_v19, 4 }
 0x12e   : > { %v794_v22 = vrot.slane %v793_v14, 1  ;;  %v829_v23 = vadd.f32 %v828_v15, %v827_v7  ;;  %v786_v30 = vadd.f32 %v785_v24, %v784_v16  ;;  %v799_v32 = vrot.slane %v798_v26, 2 }
 0x12f   : > { %v816_v28 = vrot.slane %v815_v21, 1  ;;  %v821_v31 = vrot.slane %v820_v25, 2  ;;  %v834_v33 = vadd.f32 %v833_v27, %v832_v19  ;;  %v781_v34 = vadd.f32 %v780_v20, %v779_v12 }
 0x130   : > { %v830_v29 = vrot.slane %v829_v23, 1  ;;  %v795_v37 = vadd.f32 %v794_v22, %v793_v14  ;;  %v800_v39 = vadd.f32 %v799_v32, %v798_v26  ;;  %v787_v43 = vrot.slane %v786_v30, 1 }
 0x131   : > { %v817_v35 = vadd.f32 %v816_v28, %v815_v21  ;;  %v822_v38 = vadd.f32 %v821_v31, %v820_v25  ;;  %v835_v40 = vrot.slane %v834_v33, 2 }
 0x132   : > { %v831_v36 = vadd.f32 %v830_v29, %v829_v23  ;;  %v801_v49 = vrot.slane %v800_v39, 1  ;;  %v788_v50 = vadd.f32 %v787_v43, %v786_v30 }
 0x133   : > { %v843_v41 = vsel %vm842_vm8, %v817_v35, 0.0  ;;  %v823_v46 = vrot.slane %v822_v38, 1  ;;  %v836_v47 = vadd.f32 %v835_v40, %v834_v33 }
 0x134   : > { %v845_v42 = vsel %vm842_vm8, %v831_v36, 0.0  ;;  %v847_v44 = vsel %vm841_vm9, %v781_v34, %v843_v41  ;;  %v802_v55 = vadd.f32 %v801_v49, %v800_v39 }
 0x135   : > { %v849_v45 = vsel %vm841_vm9, %v795_v37, %v845_v42  ;;  %851 = vst [vmem:[%s218_s18] sm:$0xff] %v847_v44  ;;  %v824_v48 = vadd.f32 %v823_v46, %v822_v38  ;;  %v837_v51 = vrot.slane %v836_v47, 1 }
 0x136   : > { %853 = vst [vmem:[%s218_s18 + $0x10] sm:$0xff] %v849_v45 }
 0x137   : > { %v844_v52 = vsel %vm842_vm8, %v824_v48, 0.0  ;;  %v838_v54 = vadd.f32 %v837_v51, %v836_v47 }
 0x138   : > { %v848_v53 = vsel %vm841_vm9, %v788_v50, %v844_v52 }
 0x139   : > { %852 = vst [vmem:[%s218_s18 + $0x8] sm:$0xff] %v848_v53  ;;  %v846_v56 = vsel %vm842_vm8, %v838_v54, 0.0 }
 0x13a   : > { %v850_v57 = vsel %vm841_vm9, %v802_v55, %v846_v56 }
 0x13b   : > { %854 = vst [vmem:[%s218_s18 + $0x18] sm:$0xff] %v850_v57 }
 0x13c PF: > { %s15_s15 = sadd.s32 1, %s1151_s15  }
 0x13d   : > { %p12_p5 = scmp.ge.s32.totalorder %s15_s15, 4  }
 0x13f   :  { %14 = sbr.rel (!%p12_p5) target bundleno = 1 (0x1), region = 74 }

// kernel: _lambda_.53
= control target key start
LH: loop header
LB: loop body
LE: loop exit
PB: predicated region body
PF: predicated region fallthrough
CT: control target
= control target key end

     0   :  { %s1947_s21 = smov 0   ;;  %s2449_s0 = inlined_call_operand.vmem [shape: bf16[32,512], index: 0, kind: input, shape index: {}]   ;;  %s2450_s1 = inlined_call_operand.vmem [shape: bf16[512,512], index: 1, kind: input, shape index: {}]   ;;  %s2451_s2 = inlined_call_operand.vmem [shape: f32[1,512], index: 2, kind: input, shape index: {}]   ;;  %s2452_s3 = inlined_call_operand.vmem [shape: f32[1,512], index: 3, kind: input, shape index: {}]   ;;  %s2453_s4 = inlined_call_operand.vmem [shape: f32[1,512], index: 4, kind: input, shape index: {}]   ;;  %s2454_s5 = inlined_call_operand.vmem [shape: bf16[32,512], index: 5, kind: output, shape index: {0}]   ;;  %s2455_s6 = inlined_call_operand.vmem [shape: f32[16,512], index: 6, kind: output, shape index: {1}]  }
   0x1 LB: > { %s1953_s22 = sadd.s32 4294967295, %s1910_s21   ;;  %p1538_p0 = scmp.ge.s32.totalorder %s1910_s21, 1  ;;  %s1910_s21 = sphi %s1947_s21, %s17_s21  }
   0x2   : > { %p217_p1 = scmp.lt.s32.totalorder %s1910_s21, 3 }
   0x4   : > { %p218_p2 = pnand %p1538_p0, %p217_p1 }
   0x5   : > { %v1712_v0 = vld [vmem:[%s2450_s1 + $0x4] ss:$16 sps:$4 sm:$0xff] (!%p218_p2)   ;;  %v1714_v1 = vld [vmem:[%s2450_s1 + $0xc] ss:$16 sps:$4 sm:$0xff] (!%p218_p2)   ;;  %v1716_v2 = vld [vmem:[%s2450_s1] ss:$16 sps:$4 sm:$0xff] (!%p218_p2)   ;;  %v287_v36 = vlaneseq (!%p218_p2) }
   0x6   : > { %221 = sbr.rel (%p218_p2) target bundleno = 380 (0x17c), region = 40  ;;  %1139 = vmatprep.subr.bf16.mxu0 (!%p218_p2), %v1712_v0  ;;  %v1717_v3 = vld [vmem:[%s2450_s1 + $0x8] ss:$16 sps:$4 sm:$0xff] (!%p218_p2)   ;;  %1225 = vmatprep.subr.bf16.mxu1 (!%p218_p2), %v1714_v1  ;;  %v1718_v4 = vld [vmem:[%s2450_s1 + $0x24] ss:$16 sps:$4 sm:$0xff] (!%p218_p2)   ;;  %s1539_s15 = sshll.u32 (!%p218_p2), %s1953_s22, 1 }
   0x7   : > { %1140 = vmatpush1.bf16.msra.mxu0 (!%p218_p2), %v1716_v2  ;;  %1226 = vmatpush1.bf16.msra.mxu1 (!%p218_p2), %v1717_v3  ;;  %v1720_v5 = vld [vmem:[%s2450_s1 + $0x2c] ss:$16 sps:$4 sm:$0xff] (!%p218_p2)   ;;  %v1722_v6 = vld [vmem:[%s2450_s1 + $0x20] ss:$16 sps:$4 sm:$0xff] (!%p218_p2)   ;;  %v1723_v7 = vld [vmem:[%s2450_s1 + $0x28] ss:$16 sps:$4 sm:$0xff] (!%p218_p2)  }
   0x8   : > { %1141 = vmatprep.subr.bf16.mxu0 (!%p218_p2), %v1718_v4  ;;  %1227 = vmatprep.subr.bf16.mxu1 (!%p218_p2), %v1720_v5  ;;  %v1724_v8 = vld [vmem:[%s2450_s1 + $0x44] ss:$16 sps:$4 sm:$0xff] (!%p218_p2)   ;;  %v1726_v9 = vld [vmem:[%s2450_s1 + $0x4c] ss:$16 sps:$4 sm:$0xff] (!%p218_p2)   ;;  %v1728_v10 = vld [vmem:[%s2450_s1 + $0x40] ss:$16 sps:$4 sm:$0xff] (!%p218_p2)  }
   0x9   : > { %v1729_v11 = vld [vmem:[%s2450_s1 + $0x48] ss:$16 sps:$4 sm:$0xff] (!%p218_p2)   ;;  %v1730_v12 = vld [vmem:[%s2450_s1 + $0x64] ss:$16 sps:$4 sm:$0xff] (!%p218_p2)   ;;  %v1732_v13 = vld [vmem:[%s2450_s1 + $0x6c] ss:$16 sps:$4 sm:$0xff] (!%p218_p2)  }
   0xa   : > { %v1734_v14 = vld [vmem:[%s2450_s1 + $0x60] ss:$16 sps:$4 sm:$0xff] (!%p218_p2)   ;;  %v1735_v15 = vld [vmem:[%s2450_s1 + $0x68] ss:$16 sps:$4 sm:$0xff] (!%p218_p2)   ;;  %v1736_v16 = vld [vmem:[%s2450_s1 + $0x84] ss:$16 sps:$4 sm:$0xff] (!%p218_p2)  }
   0xb   : > { %1142 = vmatpush1.bf16.msra.mxu0 (!%p218_p2), %v1722_v6  ;;  %1228 = vmatpush1.bf16.msra.mxu1 (!%p218_p2), %v1723_v7  ;;  %v1738_v17 = vld [vmem:[%s2450_s1 + $0x8c] ss:$16 sps:$4 sm:$0xff] (!%p218_p2)   ;;  %v1740_v18 = vld [vmem:[%s2450_s1 + $0x80] ss:$16 sps:$4 sm:$0xff] (!%p218_p2)   ;;  %v1741_v19 = vld [vmem:[%s2450_s1 + $0x88] ss:$16 sps:$4 sm:$0xff] (!%p218_p2)  }
   0xc   : > { %1143 = vmatprep.subr.bf16.mxu0 (!%p218_p2), %v1724_v8  ;;  %1229 = vmatprep.subr.bf16.mxu1 (!%p218_p2), %v1726_v9  ;;  %v1742_v20 = vld [vmem:[%s2450_s1 + $0xa4] ss:$16 sps:$4 sm:$0xff] (!%p218_p2)   ;;  %v1744_v21 = vld [vmem:[%s2450_s1 + $0xac] ss:$16 sps:$4 sm:$0xff] (!%p218_p2)   ;;  %v1746_v22 = vld [vmem:[%s2450_s1 + $0xa0] ss:$16 sps:$4 sm:$0xff] (!%p218_p2)  }
   0xd   : > { %v1747_v23 = vld [vmem:[%s2450_s1 + $0xa8] ss:$16 sps:$4 sm:$0xff]   ;;  %v1748_v24 = vld [vmem:[%s2450_s1 + $0xc4] ss:$16 sps:$4 sm:$0xff]   ;;  %v1750_v25 = vld [vmem:[%s2450_s1 + $0xcc] ss:$16 sps:$4 sm:$0xff]  }
   0xe   : > { %v1752_v26 = vld [vmem:[%s2450_s1 + $0xc0] ss:$16 sps:$4 sm:$0xff]   ;;  %v1753_v27 = vld [vmem:[%s2450_s1 + $0xc8] ss:$16 sps:$4 sm:$0xff]   ;;  %v1754_v28 = vld [vmem:[%s2450_s1 + $0xe4] ss:$16 sps:$4 sm:$0xff]  }
   0xf   : > { %1144 = vmatpush1.bf16.msra.mxu0 %v1728_v10  ;;  %1230 = vmatpush1.bf16.msra.mxu1 %v1729_v11  ;;  %v1756_v29 = vld [vmem:[%s2450_s1 + $0xec] ss:$16 sps:$4 sm:$0xff]   ;;  %v1758_v30 = vld [vmem:[%s2450_s1 + $0xe0] ss:$16 sps:$4 sm:$0xff]   ;;  %v1759_v31 = vld [vmem:[%s2450_s1 + $0xe8] ss:$16 sps:$4 sm:$0xff]  }
  0x10   : > { %1145 = vmatprep.subr.bf16.mxu0 %v1730_v12  ;;  %1231 = vmatprep.subr.bf16.mxu1 %v1732_v13  ;;  %v1760_v32 = vld [vmem:[%s2450_s1 + $0x104] ss:$16 sps:$4 sm:$0xff]   ;;  %p255_p3 = scmp.lt.s32.totalorder %s1539_s15, 3  ;;  %v1762_v33 = vld [vmem:[%s2450_s1 + $0x10c] ss:$16 sps:$4 sm:$0xff]   ;;  %v2077_v40 = vshrl.u32 %v287_v36, 7 }
  0x11   : > { %v1764_v34 = vld [vmem:[%s2450_s1 + $0x100] ss:$16 sps:$4 sm:$0xff]   ;;  %v1765_v35 = vld [vmem:[%s2450_s1 + $0x108] ss:$16 sps:$4 sm:$0xff]   ;;  %v1766_v37 = vld [vmem:[%s2450_s1 + $0x124] ss:$16 sps:$4 sm:$0xff]  }
  0x12   : > { %s2457_s15 = smov (!%p255_p3, %s1539_s15), 3  ;;  %v1768_v38 = vld [vmem:[%s2450_s1 + $0x12c] ss:$16 sps:$4 sm:$0xff]   ;;  %v1770_v39 = vld [vmem:[%s2450_s1 + $0x120] ss:$16 sps:$4 sm:$0xff]   ;;  %v2106_v47 = vsub.s32 1, %v2077_v40 }
  0x13   : > { %1146 = vmatpush1.bf16.msra.mxu0 %v1734_v14  ;;  %1232 = vmatpush1.bf16.msra.mxu1 %v1735_v15  ;;  %v1771_v41 = vld [vmem:[%s2450_s1 + $0x128] ss:$16 sps:$4 sm:$0xff]   ;;  %v1772_v42 = vld [vmem:[%s2450_s1 + $0x144] ss:$16 sps:$4 sm:$0xff]   ;;  %s1681_s17 = sshll.u32 %s2457_s15, 4  ;;  %v2146_v1 = vsub.s32 0, %v2077_v40 }
  0x14   : > { %1147 = vmatprep.subr.bf16.mxu0 %v1736_v16  ;;  %1233 = vmatprep.subr.bf16.mxu1 %v1738_v17  ;;  %v1774_v43 = vld [vmem:[%s2450_s1 + $0x14c] ss:$16 sps:$4 sm:$0xff]   ;;  %v1776_v44 = vld [vmem:[%s2450_s1 + $0x140] ss:$16 sps:$4 sm:$0xff]   ;;  %v1777_v45 = vld [vmem:[%s2450_s1 + $0x148] ss:$16 sps:$4 sm:$0xff]   ;;  %s2100_s28 = scalar_lea.vmem %s2449_s0, %s1681_s17  ;;  %s2412_s30 = scalar_lea.vmem %s2454_s5, %s1681_s17 }
  0x15   : > { %v1778_v46 = vld [vmem:[%s2450_s1 + $0x164] ss:$16 sps:$4 sm:$0xff]   ;;  %v1780_v48 = vld [vmem:[%s2450_s1 + $0x16c] ss:$16 sps:$4 sm:$0xff]   ;;  %v1782_v49 = vld [vmem:[%s2450_s1 + $0x160] ss:$16 sps:$4 sm:$0xff]  }
  0x16   : > { %v1783_v50 = vld [vmem:[%s2450_s1 + $0x168] ss:$16 sps:$4 sm:$0xff]   ;;  %v273_v51 = vld [vmem:[%s2100_s28] sm:$0xff]  ;;  %v275_v52 = vld [vmem:[%s2100_s28 + $0x10] sm:$0xff]  ;;  %p268_p4 = scmp.lt.s32.totalorder %s1953_s22, 1  ;;  %vm1430_vm8 = vcmp.eq.s32.totalorder %v2077_v40, 1 }
  0x17   : > { %1148 = vmatpush1.bf16.msra.mxu0 %v1740_v18  ;;  %1234 = vmatpush1.bf16.msra.mxu1 %v1741_v19  ;;  %v278_v53 = vunpack.c.h.bf16 %v273_v51  ;;  %v2122_v54 = vld [vmem:[%s2451_s2] sm:$0xf]  ;;  %v1784_v56 = vld [vmem:[%s2450_s1 + $0x184] ss:$16 sps:$4 sm:$0xff]   ;;  %v282_v57 = vunpack.c.h.bf16 %v275_v52  ;;  %v1786_v60 = vld [vmem:[%s2450_s1 + $0x18c] ss:$16 sps:$4 sm:$0xff]   ;;  %v277_v9 = vunpack.c.l.bf16 %v273_v51  ;;  %v281_v10 = vunpack.c.l.bf16 %v275_v52 }
  0x18   : > { %1149 = vmatprep.subr.bf16.mxu0 %v1742_v20  ;;  %1235 = vmatprep.subr.bf16.mxu1 %v1744_v21  ;;  %v2127_v55 = vld [vmem:[%s2452_s3] sm:$0xf]  ;;  %v294_v58 = vrot.slane %v2122_v54, %v2106_v47  ;;  %v1789_v0 = vld [vmem:[%s2450_s1 + $0x188] ss:$16 sps:$4 sm:$0xff]   ;;  %v1790_v2 = vld [vmem:[%s2450_s1 + $0x1a4] ss:$16 sps:$4 sm:$0xff]   ;;  %v290_v11 = vrot.slane %v2122_v54, %v2146_v1 }
  0x19   : > { %v324_v59 = vrot.slane %v2127_v55, %v2106_v47  ;;  %v1788_v63 = vld [vmem:[%s2450_s1 + $0x180] ss:$16 sps:$4 sm:$0xff]   ;;  %v1792_v5 = vld [vmem:[%s2450_s1 + $0x1ac] ss:$16 sps:$4 sm:$0xff]   ;;  %v1795_v8 = vld [vmem:[%s2450_s1 + $0x1a8] ss:$16 sps:$4 sm:$0xff]   ;;  %v320_v18 = vrot.slane %v2127_v55, %v2146_v1 }
  0x1a   : > { %v308_v61 = vadd.f32 %v294_v58, %v278_v53  ;;  %v312_v62 = vadd.f32 %v294_v58, %v282_v57  ;;  %v1794_v7 = vld [vmem:[%s2450_s1 + $0x1a0] ss:$16 sps:$4 sm:$0xff]   ;;  %v1796_v12 = vld [vmem:[%s2450_s1 + $0x1c4] ss:$16 sps:$4 sm:$0xff]   ;;  %v1798_v13 = vld [vmem:[%s2450_s1 + $0x1cc] ss:$16 sps:$4 sm:$0xff]   ;;  %v307_v16 = vadd.f32 %v290_v11, %v277_v9  ;;  %v311_v17 = vadd.f32 %v290_v11, %v281_v10 }
  0x1b   : > { %1150 = vmatpush1.bf16.msra.mxu0 %v1746_v22  ;;  %1236 = vmatpush1.bf16.msra.mxu1 %v1747_v23  ;;  %v1800_v14 = vld [vmem:[%s2450_s1 + $0x1c0] ss:$16 sps:$4 sm:$0xff]   ;;  %v1801_v15 = vld [vmem:[%s2450_s1 + $0x1c8] ss:$16 sps:$4 sm:$0xff]   ;;  %v1802_v19 = vld [vmem:[%s2450_s1 + $0x1e4] ss:$16 sps:$4 sm:$0xff]  }
  0x1c   : > { %1151 = vmatprep.subr.bf16.mxu0 %v1748_v24  ;;  %1237 = vmatprep.subr.bf16.mxu1 %v1750_v25  ;;  %v338_v3 = vmul.f32 %v324_v59, %v308_v61  ;;  %v342_v4 = vmul.f32 %v324_v59, %v312_v62  ;;  %v1804_v20 = vld [vmem:[%s2450_s1 + $0x1ec] ss:$16 sps:$4 sm:$0xff]   ;;  %v1806_v21 = vld [vmem:[%s2450_s1 + $0x1e0] ss:$16 sps:$4 sm:$0xff]   ;;  %v1807_v22 = vld [vmem:[%s2450_s1 + $0x1e8] ss:$16 sps:$4 sm:$0xff]   ;;  %v337_v23 = vmul.f32 %v320_v18, %v307_v16 }
  0x1d   : > { %v341_v24 = vmul.f32 %v320_v18, %v311_v17  ;;  %v1810_v25 = vld [vmem:[%s2450_s1 + $0x204] ss:$16 sps:$4 sm:$0xff]   ;;  %v1820_v36 = vld [vmem:[%s2450_s1 + $0x240] ss:$16 sps:$4 sm:$0xff]   ;;  %v2258_v51 = vsub.s32 2, %v2077_v40  ;;  %v276_v61 = vld [vmem:[%s2100_s28 + $0x18] sm:$0xff] }
  0x1e   : > { %v346_v6 = vpack.c.bf16 %v342_v4, %v338_v3  ;;  %v1838_v52 = vld [vmem:[%s2450_s1 + $0x2a0] ss:$16 sps:$4 sm:$0xff]   ;;  %v1841_v53 = vld [vmem:[%s2450_s1 + $0x2a8] ss:$16 sps:$4 sm:$0xff]   ;;  %v1849_v57 = vld [vmem:[%s2450_s1 + $0x2cc] ss:$16 sps:$4 sm:$0xff]   ;;  %v283_v4 = vunpack.c.l.bf16 %v276_v61 }
  0x1f   : > { %1152 = vmatpush1.bf16.msra.mxu0 %v1752_v26  ;;  %1238 = vmatpush1.bf16.msra.mxu1 %v1753_v27  ;;  %v1813_v26 = vld [vmem:[%s2450_s1 + $0x20c] ss:$16 sps:$4 sm:$0xff]   ;;  %v1808_v27 = vld [vmem:[%s2450_s1 + $0x200] ss:$16 sps:$4 sm:$0xff]   ;;  %v298_v59 = vrot.slane %v2122_v54, %v2258_v51  ;;  %v1858_v17 = vld [vmem:[%s2450_s1 + $0x304] ss:$16 sps:$4 sm:$0xff]  }
  0x20   : > { %1153 = vmatprep.subr.bf16.mxu0 %v1754_v28  ;;  %1239 = vmatprep.subr.bf16.mxu1 %v1756_v29  ;;  %v1811_v28 = vld [vmem:[%s2450_s1 + $0x208] ss:$16 sps:$4 sm:$0xff]   ;;  %v345_v29 = vpack.c.bf16 %v341_v24, %v337_v23  ;;  %v1844_v3 = vld [vmem:[%s2450_s1 + $0x2c0] ss:$16 sps:$4 sm:$0xff]   ;;  %v1861_v18 = vld [vmem:[%s2450_s1 + $0x30c] ss:$16 sps:$4 sm:$0xff]  }
  0x21   : > { %1171 = vmatprep.mubr.bf16.mxu0 %v346_v6  ;;  %1257 = vmatprep.mubr.bf16.mxu1 %v346_v6  ;;  %v1852_v6 = vld [vmem:[%s2450_s1 + $0x2e4] ss:$16 sps:$4 sm:$0xff]   ;;  %v313_v10 = vadd.f32 %v298_v59, %v283_v4  ;;  %v1867_v24 = vld [vmem:[%s2450_s1 + $0x32c] ss:$16 sps:$4 sm:$0xff]   ;;  %s2459_s22 = smov (!%p268_p4, %s1953_s22), 1  ;;  %vm1429_vm9 = vcmp.eq.s32.totalorder %v2077_v40, 0 }
  0x22   : > { %v1864_v23 = vld [vmem:[%s2450_s1 + $0x324] ss:$16 sps:$4 sm:$0xff]   ;;  %s1683_s15 = sshll.u32 %s2459_s22, 5 }
  0x23   : > { %1154 = vmatpush1.bf16.msra.mxu0 %v1758_v30  ;;  %1240 = vmatpush1.bf16.msra.mxu1 %v1759_v31  ;;  %v1816_v30 = vld [vmem:[%s2450_s1 + $0x224] ss:$16 sps:$4 sm:$0xff]   ;;  %v1819_v31 = vld [vmem:[%s2450_s1 + $0x22c] ss:$16 sps:$4 sm:$0xff]   ;;  %s272_s8 = scalar_lea.vmem %s2455_s6, %s1683_s15 }
  0x24   : > { %1155 = vmatprep.subr.bf16.mxu0 %v1760_v32  ;;  %1241 = vmatprep.subr.bf16.mxu1 %v1762_v33  ;;  %v1814_v32 = vld [vmem:[%s2450_s1 + $0x220] ss:$16 sps:$4 sm:$0xff]   ;;  %v1817_v33 = vld [vmem:[%s2450_s1 + $0x228] ss:$16 sps:$4 sm:$0xff]  }
  0x27   : > { %1156 = vmatpush1.bf16.msra.mxu0 %v1764_v34  ;;  %1242 = vmatpush1.bf16.msra.mxu1 %v1765_v35  ;;  %v1822_v34 = vld [vmem:[%s2450_s1 + $0x244] ss:$16 sps:$4 sm:$0xff]   ;;  %v1825_v35 = vld [vmem:[%s2450_s1 + $0x24c] ss:$16 sps:$4 sm:$0xff]  }
  0x28   : > { %1157 = vmatprep.subr.bf16.mxu0 %v1766_v37  ;;  %1243 = vmatprep.subr.bf16.mxu1 %v1768_v38  ;;  %v1823_v37 = vld [vmem:[%s2450_s1 + $0x248] ss:$16 sps:$4 sm:$0xff]   ;;  %v1828_v38 = vld [vmem:[%s2450_s1 + $0x264] ss:$16 sps:$4 sm:$0xff]  }
  0x2b   : > { %1158 = vmatpush1.bf16.msra.mxu0 %v1770_v39  ;;  %1244 = vmatpush1.bf16.msra.mxu1 %v1771_v41  ;;  %v1831_v39 = vld [vmem:[%s2450_s1 + $0x26c] ss:$16 sps:$4 sm:$0xff]   ;;  %v1826_v41 = vld [vmem:[%s2450_s1 + $0x260] ss:$16 sps:$4 sm:$0xff]  }
  0x2c   : > { %1159 = vmatprep.subr.bf16.mxu0 %v1772_v42  ;;  %1245 = vmatprep.subr.bf16.mxu1 %v1774_v43  ;;  %v1829_v42 = vld [vmem:[%s2450_s1 + $0x268] ss:$16 sps:$4 sm:$0xff]   ;;  %v1834_v43 = vld [vmem:[%s2450_s1 + $0x284] ss:$16 sps:$4 sm:$0xff]  }
  0x2f   : > { %1160 = vmatpush1.bf16.msra.mxu0 %v1776_v44  ;;  %1246 = vmatpush1.bf16.msra.mxu1 %v1777_v45  ;;  %v1837_v44 = vld [vmem:[%s2450_s1 + $0x28c] ss:$16 sps:$4 sm:$0xff]   ;;  %v1832_v45 = vld [vmem:[%s2450_s1 + $0x280] ss:$16 sps:$4 sm:$0xff]  }
  0x30   : > { %1161 = vmatprep.subr.bf16.mxu0 %v1778_v46  ;;  %1247 = vmatprep.subr.bf16.mxu1 %v1780_v48  ;;  %v1835_v46 = vld [vmem:[%s2450_s1 + $0x288] ss:$16 sps:$4 sm:$0xff]   ;;  %v1840_v48 = vld [vmem:[%s2450_s1 + $0x2a4] ss:$16 sps:$4 sm:$0xff]  }
  0x33   : > { %1162 = vmatpush1.bf16.msra.mxu0 %v1782_v49  ;;  %1248 = vmatpush1.bf16.msra.mxu1 %v1783_v50  ;;  %v1843_v49 = vld [vmem:[%s2450_s1 + $0x2ac] ss:$16 sps:$4 sm:$0xff]   ;;  %v2255_v50 = vsub.s32 3, %v2077_v40 }
  0x34   : > { %1163 = vmatprep.subr.bf16.mxu0 %v1784_v56  ;;  %1249 = vmatprep.subr.bf16.mxu1 %v1786_v60  ;;  %v1846_v56 = vld [vmem:[%s2450_s1 + $0x2c4] ss:$16 sps:$4 sm:$0xff]   ;;  %v274_v60 = vld [vmem:[%s2100_s28 + $0x8] sm:$0xff] }
  0x35   : > { %v302_v58 = vrot.slane %v2122_v54, %v2255_v50  ;;  %v279_v62 = vunpack.c.l.bf16 %v274_v60  ;;  %v1847_v54 = vld [vmem:[%s2450_s1 + $0x2c8] ss:$16 sps:$4 sm:$0xff]  }
  0x37   : > { %1164 = vmatpush1.bf16.msra.mxu0 %v1788_v63  ;;  %1250 = vmatpush1.bf16.msra.mxu1 %v1789_v0  ;;  %v280_v63 = vunpack.c.h.bf16 %v274_v60  ;;  %v332_v0 = vrot.slane %v2127_v55, %v2255_v50 }
  0x38   : > { %1165 = vmatprep.subr.bf16.mxu0 %v1790_v2  ;;  %1251 = vmatprep.subr.bf16.mxu1 %v1792_v5  ;;  %v328_v2 = vrot.slane %v2127_v55, %v2258_v51  ;;  %v284_v5 = vunpack.c.h.bf16 %v276_v61  ;;  %v1855_v55 = vld [vmem:[%s2450_s1 + $0x2ec] ss:$16 sps:$4 sm:$0xff]  }
  0x3a   : > { %v314_v9 = vadd.f32 %v302_v58, %v284_v5  ;;  %v343_v16 = vmul.f32 %v328_v2, %v313_v10 }
  0x3b   : > { %1166 = vmatpush1.bf16.msra.mxu0 %v1794_v7  ;;  %1252 = vmatpush1.bf16.msra.mxu1 %v1795_v8  ;;  %v310_v7 = vadd.f32 %v302_v58, %v280_v63  ;;  %v309_v8 = vadd.f32 %v298_v59, %v279_v62 }
  0x3c   : > { %1167 = vmatprep.subr.bf16.mxu0 %v1796_v12  ;;  %1253 = vmatprep.subr.bf16.mxu1 %v1798_v13  ;;  %v1850_v13 = vld [vmem:[%s2450_s1 + $0x2e0] ss:$16 sps:$4 sm:$0xff]  }
  0x3d   : > { %v340_v11 = vmul.f32 %v332_v0, %v310_v7  ;;  %v339_v12 = vmul.f32 %v328_v2, %v309_v8 }
  0x3f   : > { %1168 = vmatpush1.bf16.msra.mxu0 %v1800_v14  ;;  %1254 = vmatpush1.bf16.msra.mxu1 %v1801_v15  ;;  %v1853_v14 = vld [vmem:[%s2450_s1 + $0x2e8] ss:$16 sps:$4 sm:$0xff]   ;;  %v344_v15 = vmul.f32 %v332_v0, %v314_v9 }
  0x40   : > { %1169 = vmatprep.subr.bf16.mxu0 %v1802_v19  ;;  %1255 = vmatprep.subr.bf16.mxu1 %v1804_v20  ;;  %v2306_v20 = vpack.c.bf16 %v343_v16, %v339_v12 }
  0x41   : > { %v348_v19 = vpack.c.bf16 %v344_v15, %v340_v11 }
  0x43   : > { %1170 = vmatpush1.bf16.msra.mxu0 %v1806_v21  ;;  %1256 = vmatpush1.bf16.msra.mxu1 %v1807_v22  ;;  %v1856_v21 = vld [vmem:[%s2450_s1 + $0x300] ss:$16 sps:$4 sm:$0xff]   ;;  %v1859_v22 = vld [vmem:[%s2450_s1 + $0x308] ss:$16 sps:$4 sm:$0xff]  }
  0x44   : > { %1182 = vmatprep.subr.bf16.mxu0 %v1810_v25  ;;  %1268 = vmatprep.subr.bf16.mxu1 %v1813_v26  ;;  %v1862_v25 = vld [vmem:[%s2450_s1 + $0x320] ss:$16 sps:$4 sm:$0xff]   ;;  %v1865_v26 = vld [vmem:[%s2450_s1 + $0x328] ss:$16 sps:$4 sm:$0xff]  }
  0x46   : > { %1172 = vmatmul.mubr.bf16.vlgmr.msra.gmra.mrb[0].mxu0 %v345_v29  ;;  %1258 = vmatmul.mubr.bf16.vlgmr.msra.gmra.mrb[0].mxu1 %v345_v29  ;;  %v1868_v29 = vld [vmem:[%s2450_s1 + $0x340] ss:$16 sps:$4 sm:$0xff]  }
  0x47   : > { %1183 = vmatpush1.bf16.msra.mxu0 %v1808_v27  ;;  %1269 = vmatpush1.bf16.msra.mxu1 %v1811_v28  ;;  %v1870_v27 = vld [vmem:[%s2450_s1 + $0x344] ss:$16 sps:$4 sm:$0xff]   ;;  %v1873_v28 = vld [vmem:[%s2450_s1 + $0x34c] ss:$16 sps:$4 sm:$0xff]  }
  0x48   : > { %1184 = vmatprep.subr.bf16.mxu0 %v1816_v30  ;;  %1270 = vmatprep.subr.bf16.mxu1 %v1819_v31  ;;  %v1871_v30 = vld [vmem:[%s2450_s1 + $0x348] ss:$16 sps:$4 sm:$0xff]   ;;  %v1876_v31 = vld [vmem:[%s2450_s1 + $0x364] ss:$16 sps:$4 sm:$0xff]  }
  0x49   : > { %1214 = vmatprep.mubr.bf16.mxu0 %v348_v19  ;;  %1300 = vmatprep.mubr.bf16.mxu1 %v348_v19 }
  0x4b   : > { %1185 = vmatpush1.bf16.msra.mxu0 %v1814_v32  ;;  %1271 = vmatpush1.bf16.msra.mxu1 %v1817_v33  ;;  %v1879_v32 = vld [vmem:[%s2450_s1 + $0x36c] ss:$16 sps:$4 sm:$0xff]   ;;  %v1874_v33 = vld [vmem:[%s2450_s1 + $0x360] ss:$16 sps:$4 sm:$0xff]  }
  0x4c   : > { %1186 = vmatprep.subr.bf16.mxu0 %v1822_v34  ;;  %1272 = vmatprep.subr.bf16.mxu1 %v1825_v35  ;;  %v1877_v34 = vld [vmem:[%s2450_s1 + $0x368] ss:$16 sps:$4 sm:$0xff]   ;;  %v1882_v35 = vld [vmem:[%s2450_s1 + $0x384] ss:$16 sps:$4 sm:$0xff]  }
  0x4f   : > { %1187 = vmatpush1.bf16.msra.mxu0 %v1820_v36  ;;  %1273 = vmatpush1.bf16.msra.mxu1 %v1823_v37  ;;  %v1885_v36 = vld [vmem:[%s2450_s1 + $0x38c] ss:$16 sps:$4 sm:$0xff]   ;;  %v1880_v37 = vld [vmem:[%s2450_s1 + $0x380] ss:$16 sps:$4 sm:$0xff]  }
  0x50   : > { %1188 = vmatprep.subr.bf16.mxu0 %v1828_v38  ;;  %1274 = vmatprep.subr.bf16.mxu1 %v1831_v39  ;;  %v1883_v38 = vld [vmem:[%s2450_s1 + $0x388] ss:$16 sps:$4 sm:$0xff]   ;;  %v1888_v39 = vld [vmem:[%s2450_s1 + $0x3a4] ss:$16 sps:$4 sm:$0xff]  }
  0x53   : > { %1189 = vmatpush1.bf16.msra.mxu0 %v1826_v41  ;;  %1275 = vmatpush1.bf16.msra.mxu1 %v1829_v42  ;;  %v1891_v41 = vld [vmem:[%s2450_s1 + $0x3ac] ss:$16 sps:$4 sm:$0xff]   ;;  %v1886_v42 = vld [vmem:[%s2450_s1 + $0x3a0] ss:$16 sps:$4 sm:$0xff]  }
  0x54   : > { %1190 = vmatprep.subr.bf16.mxu0 %v1834_v43  ;;  %1276 = vmatprep.subr.bf16.mxu1 %v1837_v44  ;;  %v1889_v43 = vld [vmem:[%s2450_s1 + $0x3a8] ss:$16 sps:$4 sm:$0xff]   ;;  %v1894_v44 = vld [vmem:[%s2450_s1 + $0x3c4] ss:$16 sps:$4 sm:$0xff]  }
  0x57   : > { %1191 = vmatpush1.bf16.msra.mxu0 %v1832_v45  ;;  %1277 = vmatpush1.bf16.msra.mxu1 %v1835_v46  ;;  %v1897_v45 = vld [vmem:[%s2450_s1 + $0x3cc] ss:$16 sps:$4 sm:$0xff]   ;;  %v1892_v46 = vld [vmem:[%s2450_s1 + $0x3c0] ss:$16 sps:$4 sm:$0xff]  }
  0x58   : > { %1192 = vmatprep.subr.bf16.mxu0 %v1840_v48  ;;  %1278 = vmatprep.subr.bf16.mxu1 %v1843_v49  ;;  %v1895_v48 = vld [vmem:[%s2450_s1 + $0x3c8] ss:$16 sps:$4 sm:$0xff]   ;;  %v1900_v49 = vld [vmem:[%s2450_s1 + $0x3e4] ss:$16 sps:$4 sm:$0xff]  }
  0x5b   : > { %1193 = vmatpush1.bf16.msra.mxu0 %v1838_v52  ;;  %1279 = vmatpush1.bf16.msra.mxu1 %v1841_v53  ;;  %v1903_v52 = vld [vmem:[%s2450_s1 + $0x3ec] ss:$16 sps:$4 sm:$0xff]   ;;  %v1898_v53 = vld [vmem:[%s2450_s1 + $0x3e0] ss:$16 sps:$4 sm:$0xff]  }
  0x5c   : > { %1194 = vmatprep.subr.bf16.mxu0 %v1846_v56  ;;  %1280 = vmatprep.subr.bf16.mxu1 %v1849_v57  ;;  %v1901_v56 = vld [vmem:[%s2450_s1 + $0x3e8] ss:$16 sps:$4 sm:$0xff]   ;;  %v477_v57 = vld [vmem:[%s2453_s4] sm:$0xf] }
  0x5d   : > { %v482_v58 = vrot.slane %v477_v57, %v2146_v1  ;;  %v490_v59 = vrot.slane %v477_v57, %v2258_v51  ;;  %v486_v60 = vrot.slane %v477_v57, %v2106_v47  ;;  %v494_v61 = vrot.slane %v477_v57, %v2255_v50 }
  0x5f   : > { %1195 = vmatpush1.bf16.msra.mxu0 %v1844_v3  ;;  %1281 = vmatpush1.bf16.msra.mxu1 %v1847_v54 }
  0x60   : > { %1196 = vmatprep.subr.bf16.mxu0 %v1852_v6  ;;  %1282 = vmatprep.subr.bf16.mxu1 %v1855_v55 }
  0x63   : > { %1197 = vmatpush1.bf16.msra.mxu0 %v1850_v13  ;;  %1283 = vmatpush1.bf16.msra.mxu1 %v1853_v14 }
  0x64   : > { %1198 = vmatprep.subr.bf16.mxu0 %v1858_v17  ;;  %1284 = vmatprep.subr.bf16.mxu1 %v1861_v18 }
  0x67   : > { %1199 = vmatpush1.bf16.msra.mxu0 %v1856_v21  ;;  %1285 = vmatpush1.bf16.msra.mxu1 %v1859_v22 }
  0x68   : > { %1200 = vmatprep.subr.bf16.mxu0 %v1864_v23  ;;  %1286 = vmatprep.subr.bf16.mxu1 %v1867_v24 }
  0x6b   : > { %1201 = vmatpush1.bf16.msra.mxu0 %v1862_v25  ;;  %1287 = vmatpush1.bf16.msra.mxu1 %v1865_v26 }
  0x6c   : > { %1202 = vmatprep.subr.bf16.mxu0 %v1870_v27  ;;  %1288 = vmatprep.subr.bf16.mxu1 %v1873_v28 }
  0x6f   : > { %1203 = vmatpush1.bf16.msra.mxu0 %v1868_v29  ;;  %1289 = vmatpush1.bf16.msra.mxu1 %v1871_v30 }
  0x70   : > { %1204 = vmatprep.subr.bf16.mxu0 %v1876_v31  ;;  %1290 = vmatprep.subr.bf16.mxu1 %v1879_v32 }
  0x73   : > { %1205 = vmatpush1.bf16.msra.mxu0 %v1874_v33  ;;  %1291 = vmatpush1.bf16.msra.mxu1 %v1877_v34 }
  0x74   : > { %1206 = vmatprep.subr.bf16.mxu0 %v1882_v35  ;;  %1292 = vmatprep.subr.bf16.mxu1 %v1885_v36 }
  0x77   : > { %1207 = vmatpush1.bf16.msra.mxu0 %v1880_v37  ;;  %1293 = vmatpush1.bf16.msra.mxu1 %v1883_v38 }
  0x78   : > { %1208 = vmatprep.subr.bf16.mxu0 %v1888_v39  ;;  %1294 = vmatprep.subr.bf16.mxu1 %v1891_v41 }
  0x7b   : > { %1209 = vmatpush1.bf16.msra.mxu0 %v1886_v42  ;;  %1295 = vmatpush1.bf16.msra.mxu1 %v1889_v43 }
  0x7c   : > { %1210 = vmatprep.subr.bf16.mxu0 %v1894_v44  ;;  %1296 = vmatprep.subr.bf16.mxu1 %v1897_v45 }
  0x7f   : > { %1211 = vmatpush1.bf16.msra.mxu0 %v1892_v46  ;;  %1297 = vmatpush1.bf16.msra.mxu1 %v1895_v48 }
  0x80   : > { %1212 = vmatprep.subr.bf16.mxu0 %v1900_v49  ;;  %1298 = vmatprep.subr.bf16.mxu1 %v1903_v52 }
  0x83   : > { %1213 = vmatpush1.bf16.msra.mxu0 %v1898_v53  ;;  %1299 = vmatpush1.bf16.msra.mxu1 %v1901_v56 }
  0x86   : > { %1215 = vmatmul.mubr.bf16.vlgmr.msra.gmra.mrb[0].mxu0 %v2306_v20  ;;  %1301 = vmatmul.mubr.bf16.vlgmr.msra.gmra.mrb[0].mxu1 %v2306_v20 }
 0x159   : > { %v1216_v62 = vpop.f32.mrb[0].mxu0  ;;  %v1302_v63 = vpop.f32.mrb[0].mxu1 }
 0x15a   : > { %v1688_v0 = vadd.f32 %v1216_v62, %v482_v58  ;;  %v1692_v2 = vadd.f32 %v1302_v63, %v490_v59  ;;  %v1218_v3 = vpop.f32.mrb[1].mxu0  ;;  %v1304_v54 = vpop.f32.mrb[1].mxu1 }
 0x15b   : > { %v1689_v4 = vadd.f32 %v1218_v3, %v486_v60  ;;  %v1693_v5 = vadd.f32 %v1304_v54, %v494_v61  ;;  %v1220_v6 = vpop.f32.mrb[2].mxu0  ;;  %v1306_v55 = vpop.f32.mrb[2].mxu1 }
 0x15c   : > { %vm1311_vm0 = vcmp.ge.f32.partialorder %v1688_v0, 0.0  ;;  %v1319_v7 = vmul.f32 0.1, %v1688_v0  ;;  %vm1313_vm1 = vcmp.ge.f32.partialorder %v1692_v2, 0.0  ;;  %v1321_v1 = vmul.f32 0.1, %v1692_v2 }
 0x15d   : > { %vm1312_vm2 = vcmp.ge.f32.partialorder %v1689_v4, 0.0  ;;  %v1320_v51 = vmul.f32 0.1, %v1689_v4  ;;  %vm1314_vm3 = vcmp.ge.f32.partialorder %v1693_v5, 0.0  ;;  %v1322_v47 = vmul.f32 0.1, %v1693_v5 }
 0x15e   : > { %v1327_v50 = vsel %vm1311_vm0, %v1688_v0, %v1319_v7  ;;  %v1329_v8 = vsel %vm1313_vm1, %v1692_v2, %v1321_v1  ;;  %v1690_v9 = vadd.f32 %v1220_v6, %v482_v58  ;;  %v1694_v10 = vadd.f32 %v1306_v55, %v490_v59  ;;  %v1222_v11 = vpop.f32.mrb[3].mxu0  ;;  %v1308_v12 = vpop.f32.mrb[3].mxu1 }
 0x15f   : > { %v1328_v13 = vsel %vm1312_vm2, %v1689_v4, %v1320_v51  ;;  %v1330_v14 = vsel %vm1314_vm3, %v1693_v5, %v1322_v47  ;;  %v1691_v19 = vadd.f32 %v1222_v11, %v486_v60  ;;  %v1695_v20 = vadd.f32 %v1308_v12, %v494_v61 }
 0x160   : > { %v1684_v15 = vpack.c.bf16 %v1328_v13, %v1327_v50  ;;  %v1685_v16 = vpack.c.bf16 %v1330_v14, %v1329_v8  ;;  %vm1315_vm4 = vcmp.ge.f32.partialorder %v1690_v9, 0.0  ;;  %v1323_v17 = vmul.f32 0.1, %v1690_v9 }
 0x161   : > { %vm1317_vm5 = vcmp.ge.f32.partialorder %v1694_v10, 0.0  ;;  %v1325_v18 = vmul.f32 0.1, %v1694_v10  ;;  %v1391_v21 = vmul.f32 %v1327_v50, %v1327_v50  ;;  %v1393_v22 = vmul.f32 %v1329_v8, %v1329_v8 }
 0x162   : > { %1359 = vst [vmem:[%s2412_s30] sm:$0xff] %v1684_v15  ;;  %1360 = vst [vmem:[%s2412_s30 + $0x8] sm:$0xff] %v1685_v16  ;;  %v1331_v23 = vsel %vm1315_vm4, %v1690_v9, %v1323_v17  ;;  %vm1316_vm6 = vcmp.ge.f32.partialorder %v1691_v19, 0.0  ;;  %v1324_v29 = vmul.f32 0.1, %v1691_v19  ;;  %vm1318_vm7 = vcmp.ge.f32.partialorder %v1695_v20, 0.0 }
 0x163   : > { %v1333_v24 = vsel %vm1317_vm5, %v1694_v10, %v1325_v18  ;;  %v1363_v25 = vadd.f32 %v1331_v23, %v1327_v50  ;;  %v1395_v26 = vmul.f32 %v1331_v23, %v1331_v23  ;;  %v1326_v30 = vmul.f32 0.1, %v1695_v20 }
 0x164   : > { %v1377_v27 = vadd.f32 %v1333_v24, %v1329_v8  ;;  %v1397_v28 = vmul.f32 %v1333_v24, %v1333_v24  ;;  %v1392_v35 = vmul.f32 %v1328_v13, %v1328_v13  ;;  %v1394_v36 = vmul.f32 %v1330_v14, %v1330_v14 }
 0x165   : > { %v1364_v31 = vrot.slane %v1363_v25, 4  ;;  %v1399_v32 = vadd.f32 %v1395_v26, %v1391_v21  ;;  %v1332_v37 = vsel %vm1316_vm6, %v1691_v19, %v1324_v29  ;;  %v1334_v38 = vsel %vm1318_vm7, %v1695_v20, %v1326_v30 }
 0x166   : > { %v1378_v33 = vrot.slane %v1377_v27, 4  ;;  %v1413_v34 = vadd.f32 %v1397_v28, %v1393_v22  ;;  %v1686_v44 = vpack.c.bf16 %v1332_v37, %v1331_v23  ;;  %v1370_v45 = vadd.f32 %v1332_v37, %v1328_v13 }
 0x167   : > { %v1365_v39 = vadd.f32 %v1364_v31, %v1363_v25  ;;  %v1400_v41 = vrot.slane %v1399_v32, 4  ;;  %v1396_v46 = vmul.f32 %v1332_v37, %v1332_v37  ;;  %v1687_v48 = vpack.c.bf16 %v1334_v38, %v1333_v24 }
 0x168   : > { %v1379_v42 = vadd.f32 %v1378_v33, %v1377_v27  ;;  %v1414_v43 = vrot.slane %v1413_v34, 4  ;;  %1361 = vst [vmem:[%s2412_s30 + $0x10] sm:$0xff] %v1686_v44  ;;  %v1371_v57 = vrot.slane %v1370_v45, 4  ;;  %v1384_v59 = vadd.f32 %v1334_v38, %v1330_v14 }
 0x169   : > { %v1366_v49 = vrot.slane %v1365_v39, 2  ;;  %v1401_v52 = vadd.f32 %v1400_v41, %v1399_v32  ;;  %v1406_v58 = vadd.f32 %v1396_v46, %v1392_v35  ;;  %1362 = vst [vmem:[%s2412_s30 + $0x18] sm:$0xff] %v1687_v48  ;;  %v1398_v60 = vmul.f32 %v1334_v38, %v1334_v38 }
 0x16a   : > { %v1380_v53 = vrot.slane %v1379_v42, 2  ;;  %v1415_v56 = vadd.f32 %v1414_v43, %v1413_v34  ;;  %v1372_v2 = vadd.f32 %v1371_v57, %v1370_v45  ;;  %v1385_v54 = vrot.slane %v1384_v59, 4 }
 0x16b   : > { %v1367_v61 = vadd.f32 %v1366_v49, %v1365_v39  ;;  %v1402_v62 = vrot.slane %v1401_v52, 2  ;;  %v1407_v3 = vrot.slane %v1406_v58, 4  ;;  %v1420_v4 = vadd.f32 %v1398_v60, %v1394_v36 }
 0x16c   : > { %v1381_v63 = vadd.f32 %v1380_v53, %v1379_v42  ;;  %v1416_v0 = vrot.slane %v1415_v56, 2  ;;  %v1373_v1 = vrot.slane %v1372_v2, 2  ;;  %v1386_v47 = vadd.f32 %v1385_v54, %v1384_v59 }
 0x16d   : > { %v1368_v5 = vrot.slane %v1367_v61, 1  ;;  %v1403_v6 = vadd.f32 %v1402_v62, %v1401_v52  ;;  %v1408_v51 = vadd.f32 %v1407_v3, %v1406_v58  ;;  %v1421_v50 = vrot.slane %v1420_v4, 4 }
 0x16e   : > { %v1382_v55 = vrot.slane %v1381_v63, 1  ;;  %v1417_v7 = vadd.f32 %v1416_v0, %v1415_v56  ;;  %v1374_v10 = vadd.f32 %v1373_v1, %v1372_v2  ;;  %v1387_v12 = vrot.slane %v1386_v47, 2 }
 0x16f   : > { %v1404_v8 = vrot.slane %v1403_v6, 1  ;;  %v1409_v11 = vrot.slane %v1408_v51, 2  ;;  %v1422_v13 = vadd.f32 %v1421_v50, %v1420_v4  ;;  %v1369_v14 = vadd.f32 %v1368_v5, %v1367_v61 }
 0x170   : > { %v1418_v9 = vrot.slane %v1417_v7, 1  ;;  %v1383_v17 = vadd.f32 %v1382_v55, %v1381_v63  ;;  %v1388_v19 = vadd.f32 %v1387_v12, %v1386_v47  ;;  %v1375_v23 = vrot.slane %v1374_v10, 1 }
 0x171   : > { %v1405_v15 = vadd.f32 %v1404_v8, %v1403_v6  ;;  %v1410_v18 = vadd.f32 %v1409_v11, %v1408_v51  ;;  %v1423_v20 = vrot.slane %v1422_v13, 2 }
 0x172   : > { %v1419_v16 = vadd.f32 %v1418_v9, %v1417_v7  ;;  %v1389_v29 = vrot.slane %v1388_v19, 1  ;;  %v1376_v30 = vadd.f32 %v1375_v23, %v1374_v10 }
 0x173   : > { %v1431_v21 = vsel %vm1430_vm8, %v1405_v15, 0.0  ;;  %v1411_v26 = vrot.slane %v1410_v18, 1  ;;  %v1424_v27 = vadd.f32 %v1423_v20, %v1422_v13 }
 0x174   : > { %v1433_v22 = vsel %vm1430_vm8, %v1419_v16, 0.0  ;;  %v1435_v24 = vsel %vm1429_vm9, %v1369_v14, %v1431_v21  ;;  %v1390_v35 = vadd.f32 %v1389_v29, %v1388_v19 }
 0x175   : > { %v1437_v25 = vsel %vm1429_vm9, %v1383_v17, %v1433_v22  ;;  %1439 = vst [vmem:[%s272_s8] sm:$0xff] %v1435_v24  ;;  %v1412_v28 = vadd.f32 %v1411_v26, %v1410_v18  ;;  %v1425_v31 = vrot.slane %v1424_v27, 1 }
 0x176   : > { %1441 = vst [vmem:[%s272_s8 + $0x10] sm:$0xff] %v1437_v25 }
 0x177   : > { %v1432_v32 = vsel %vm1430_vm8, %v1412_v28, 0.0  ;;  %v1426_v34 = vadd.f32 %v1425_v31, %v1424_v27 }
 0x178   : > { %v1436_v33 = vsel %vm1429_vm9, %v1376_v30, %v1432_v32 }
 0x179   : > { %1440 = vst [vmem:[%s272_s8 + $0x8] sm:$0xff] %v1436_v33  ;;  %v1434_v36 = vsel %vm1430_vm8, %v1426_v34, 0.0 }
 0x17a   : > { %v1438_v37 = vsel %vm1429_vm9, %v1390_v35, %v1434_v36 }
 0x17b   : > { %1442 = vst [vmem:[%s272_s8 + $0x18] sm:$0xff] %v1438_v37 }
 0x17c PF: > { %s17_s21 = sadd.s32 1, %s1910_s21  }
 0x17d   : > { %p14_p5 = scmp.ge.s32.totalorder %s17_s21, 4  }
 0x17f   :  { %16 = sbr.rel (!%p14_p5) target bundleno = 1 (0x1), region = 82 }

// kernel: _lambda_.64
= control target key start
LH: loop header
LB: loop body
LE: loop exit
PB: predicated region body
PF: predicated region fallthrough
CT: control target
= control target key end

     0   :  { %s738_s15 = smov 0   ;;  %s837_s0 = inlined_call_operand.vmem [shape: bf16[32,384], index: 0, kind: input, shape index: {}]   ;;  %s838_s1 = inlined_call_operand.vmem [shape: bf16[384,128], index: 1, kind: input, shape index: {}]   ;;  %s839_s2 = inlined_call_operand.vmem [shape: f32[1,128], index: 2, kind: input, shape index: {}]   ;;  %s840_s3 = inlined_call_operand.vmem [shape: f32[1,128], index: 3, kind: input, shape index: {}]   ;;  %s841_s4 = inlined_call_operand.vmem [shape: f32[32,128], index: 4, kind: output, shape index: {}]  }
   0x1 LB: > { %s573_s16 = sadd.s32 4294967295, %s709_s15   ;;  %p577_p0 = scmp.ge.s32.totalorder %s709_s15, 1  ;;  %s709_s15 = sphi %s738_s15, %s14_s15  }
   0x2   : > { %p164_p1 = scmp.lt.s32.totalorder %s709_s15, 3 }
   0x4   : > { %p165_p2 = pnand %p577_p0, %p164_p1 }
   0x5   : > { %v675_v0 = vld [vmem:[%s838_s1 + $0x40] sm:$0xff] (!%p165_p2)   ;;  %v711_v2 = vmov (!%p165_p2), 0.0   ;;  %v678_v4 = vld [vmem:[%s838_s1 + $0x48] sm:$0xff] (!%p165_p2)   ;;  %vm712_vm0 = vmmov (!%p165_p2), 0   ;;  %v681_v7 = vld [vmem:[%s838_s1 + $0x50] sm:$0xff] (!%p165_p2)   ;;  %s578_s5 = sshll.u32 (!%p165_p2), %s573_s16, 1 }
   0x6   : > { %168 = sbr.rel (%p165_p2) target bundleno = 262 (0x106), region = 36  ;;  %v676_v1 = vld [vmem:[%s838_s1] sm:$0xff] (!%p165_p2)   ;;  %644 = vmatprep.subr.bf16.mxu1 (!%p165_p2), %v711_v2  ;;  %613 = vmatprep.subr.bf16.mxu0 (!%p165_p2), %v675_v0  ;;  %v679_v5 = vld [vmem:[%s838_s1 + $0x8] sm:$0xff] (!%p165_p2)   ;;  %v682_v8 = vld [vmem:[%s838_s1 + $0x10] sm:$0xff] (!%p165_p2)   ;;  %p192_p3 = scmp.lt.s32.totalorder (!%p165_p2), %s578_s5, 3 }
   0x7   : > { %v677_v3 = vld [vmem:[%s838_s1 + $0x80] sm:$0xff] (!%p165_p2)   ;;  %614 = vmatpush3.bf16.msra.mxu0 (!%p165_p2), %v676_v1  ;;  %660 = vmatprep.mubr.msk.bf16.mxu1 (!%p165_p2), %vm712_vm0, %v711_v2  ;;  %v680_v6 = vld [vmem:[%s838_s1 + $0x88] sm:$0xff] (!%p165_p2)   ;;  %v683_v9 = vld [vmem:[%s838_s1 + $0x90] sm:$0xff] (!%p165_p2)  }
   0x8   : > { %645 = vmatpush3.bf16.msra.mxu1 (!%p165_p2), %v677_v3  ;;  %615 = vmatprep.subr.bf16.mxu0 (!%p165_p2), %v678_v4  ;;  %v684_v10 = vld [vmem:[%s838_s1 + $0x58] sm:$0xff] (!%p165_p2)   ;;  %v687_v13 = vld [vmem:[%s838_s1 + $0x60] sm:$0xff] (!%p165_p2)   ;;  %v690_v16 = vld [vmem:[%s838_s1 + $0x68] sm:$0xff] (!%p165_p2)  }
   0x9   : > { %646 = vmatprep.subr.bf16.mxu1 (!%p165_p2), %v711_v2  ;;  %v685_v11 = vld [vmem:[%s838_s1 + $0x18] sm:$0xff] (!%p165_p2)   ;;  %v688_v14 = vld [vmem:[%s838_s1 + $0x20] sm:$0xff] (!%p165_p2)   ;;  %v691_v17 = vld [vmem:[%s838_s1 + $0x28] sm:$0xff] (!%p165_p2)  }
   0xa   : > { %v686_v12 = vld [vmem:[%s838_s1 + $0x98] sm:$0xff] (!%p165_p2)   ;;  %v689_v15 = vld [vmem:[%s838_s1 + $0xa0] sm:$0xff] (!%p165_p2)   ;;  %v692_v18 = vld [vmem:[%s838_s1 + $0xa8] sm:$0xff] (!%p165_p2)  }
   0xb   : > { %616 = vmatpush3.bf16.msra.mxu0 (!%p165_p2), %v679_v5  ;;  %v693_v19 = vld [vmem:[%s838_s1 + $0x70] sm:$0xff] (!%p165_p2)   ;;  %v696_v22 = vld [vmem:[%s838_s1 + $0x78] sm:$0xff] (!%p165_p2)   ;;  %v582_v30 = vld [vmem:[%s839_s2] ss:$0 sm:$0xff] (!%p165_p2) }
   0xc   : > { %647 = vmatpush3.bf16.msra.mxu1 (!%p165_p2), %v680_v6  ;;  %617 = vmatprep.subr.bf16.mxu0 (!%p165_p2), %v681_v7  ;;  %v694_v20 = vld [vmem:[%s838_s1 + $0x30] sm:$0xff] (!%p165_p2)   ;;  %v697_v24 = vld [vmem:[%s838_s1 + $0x38] sm:$0xff] (!%p165_p2)   ;;  %v610_v40 = vld [vmem:[%s840_s3] ss:$0 sm:$0xff] (!%p165_p2) }
   0xd   : > { %648 = vmatprep.subr.bf16.mxu1 %v711_v2  ;;  %s843_s5 = smov (!%p192_p3, %s578_s5), 3  ;;  %v695_v21 = vld [vmem:[%s838_s1 + $0xb0] sm:$0xff]   ;;  %v701_v25 = vld [vmem:[%s838_s1 + $0xb8] sm:$0xff]  }
   0xe   : > { %s664_s25 = smul.u32 12, %s843_s5  ;;  %s581_s23 = sshll.u32 %s843_s5, 3 }
   0xf   : > { %618 = vmatpush3.bf16.msra.mxu0 %v682_v8  ;;  %s202_s28 = scalar_lea.vmem %s841_s4, %s581_s23 }
  0x10   : > { %649 = vmatpush3.bf16.msra.mxu1 %v683_v9  ;;  %619 = vmatprep.subr.bf16.mxu0 %v684_v10  ;;  %s196_s11 = scalar_lea.vmem %s837_s0, %s664_s25 }
  0x11   : > { %650 = vmatprep.subr.bf16.mxu1 %v711_v2  ;;  %v700_v23 = vld [vmem:[%s196_s11 + $0x4] ss:$12 sps:$4 sm:$0xff]   ;;  %v698_v26 = vld [vmem:[%s196_s11] ss:$12 sps:$4 sm:$0xff]   ;;  %v702_v27 = vld [vmem:[%s196_s11 + $0x8] ss:$12 sps:$4 sm:$0xff]  }
  0x12   : > { %456 = vmatprep.mubr.bf16.mxu0 %v700_v23 }
  0x13   : > { %620 = vmatpush3.bf16.msra.mxu0 %v685_v11 }
  0x14   : > { %651 = vmatpush3.bf16.msra.mxu1 %v686_v12  ;;  %621 = vmatprep.subr.bf16.mxu0 %v687_v13 }
  0x15   : > { %652 = vmatprep.subr.bf16.mxu1 %v711_v2 }
  0x17   : > { %622 = vmatpush3.bf16.msra.mxu0 %v688_v14 }
  0x18   : > { %653 = vmatpush3.bf16.msra.mxu1 %v689_v15  ;;  %623 = vmatprep.subr.bf16.mxu0 %v690_v16 }
  0x19   : > { %654 = vmatprep.subr.bf16.mxu1 %v711_v2 }
  0x1b   : > { %624 = vmatpush3.bf16.msra.mxu0 %v691_v17 }
  0x1c   : > { %655 = vmatpush3.bf16.msra.mxu1 %v692_v18  ;;  %625 = vmatprep.subr.bf16.mxu0 %v693_v19 }
  0x1d   : > { %656 = vmatprep.subr.bf16.mxu1 %v711_v2 }
  0x1f   : > { %626 = vmatpush3.bf16.msra.mxu0 %v694_v20 }
  0x20   : > { %657 = vmatpush3.bf16.msra.mxu1 %v695_v21  ;;  %627 = vmatprep.subr.bf16.mxu0 %v696_v22 }
  0x21   : > { %658 = vmatprep.subr.bf16.mxu1 %v711_v2 }
  0x23   : > { %628 = vmatpush3.bf16.msra.mxu0 %v697_v24 }
  0x24   : > { %659 = vmatpush3.bf16.msra.mxu1 %v701_v25 }
  0x26   : > { %457 = vmatmul.mubr.bf16.vlgmr.msra.gmra.mrb[0].mxu0 %v698_v26 }
  0x27   : > { %661 = vmatmul.mubr.bf16.vlgmr.msra.gmra.mrb[0].mxu1 %v702_v27 }
  0xf9   : > { %v629_v28 = vpop.f32.mrb[0].mxu0 }
  0xfa   : > { %v630_v29 = vpop.f32.mrb[1].mxu0  ;;  %v499_v31 = vpop.f32.mrb[0].mxu1 }
  0xfb   : > { %v631_v32 = vadd.f32 %v630_v29, %v629_v28  ;;  %v632_v33 = vpop.f32.mrb[2].mxu0  ;;  %v662_v34 = vpop.f32.mrb[1].mxu1 }
  0xfc   : > { %v633_v35 = vpop.f32.mrb[3].mxu0  ;;  %v502_v36 = vpop.f32.mrb[2].mxu1 }
  0xfd   : > { %v459_v37 = vadd.f32 %v631_v32, %v582_v30  ;;  %v634_v38 = vadd.f32 %v633_v35, %v632_v33  ;;  %v663_v39 = vpop.f32.mrb[3].mxu1 }
  0xff   : > { %v500_v41 = vadd.f32 %v499_v31, %v459_v37  ;;  %v462_v42 = vadd.f32 %v634_v38, %v582_v30 }
 0x101   : > { %v513_v43 = vmul.f32 %v610_v40, %v500_v41  ;;  %v503_v44 = vadd.f32 %v502_v36, %v462_v42 }
 0x103   : > { %515 = vst [vmem:[%s202_s28] sm:$0xff] %v513_v43  ;;  %v514_v45 = vmul.f32 %v610_v40, %v503_v44 }
 0x105   : > { %516 = vst [vmem:[%s202_s28 + $0x8] sm:$0xff] %v514_v45 }
 0x106 PF: > { %s14_s15 = sadd.s32 1, %s709_s15  }
 0x107   : > { %p11_p4 = scmp.ge.s32.totalorder %s14_s15, 4  }
 0x109   :  { %13 = sbr.rel (!%p11_p4) target bundleno = 1 (0x1), region = 66 }

// kernel: _lambda_.55
= control target key start
LH: loop header
LB: loop body
LE: loop exit
PB: predicated region body
PF: predicated region fallthrough
CT: control target
= control target key end

     0   :  { %s4654_s15 = smov 0   ;;  %s5591_s0 = inlined_call_operand.vmem [shape: bf16[32,4608], index: 0, kind: input, shape index: {}]   ;;  %s5592_s1 = inlined_call_operand.vmem [shape: bf16[4608,128], index: 1, kind: input, shape index: {}]   ;;  %s5593_s2 = inlined_call_operand.vmem [shape: f32[1,128], index: 2, kind: input, shape index: {}]   ;;  %s5594_s3 = inlined_call_operand.vmem [shape: f32[1,128], index: 3, kind: input, shape index: {}]   ;;  %s5595_s4 = inlined_call_operand.vmem [shape: f32[32,128], index: 4, kind: output, shape index: {}]  }
   0x1 LB: > { %s3537_s16 = sadd.s32 4294967295, %s4627_s15   ;;  %p3541_p0 = scmp.ge.s32.totalorder %s4627_s15, 1  ;;  %s4627_s15 = sphi %s4654_s15, %s14_s15  }
   0x2   : > { %p164_p1 = scmp.lt.s32.totalorder %s4627_s15, 3 }
   0x4   : > { %p165_p2 = pnand %p3541_p0, %p164_p1 }
   0x5   : > { %v4279_v0 = vld [vmem:[%s5592_s1 + $0x40] sm:$0xff] (!%p165_p2)   ;;  %v4283_v4 = vld [vmem:[%s5592_s1 + $0x48] sm:$0xff] (!%p165_p2)   ;;  %v4287_v8 = vld [vmem:[%s5592_s1 + $0x50] sm:$0xff] (!%p165_p2)   ;;  %s3542_s23 = sshll.u32 (!%p165_p2), %s3537_s16, 1 }
   0x6   : > { %168 = sbr.rel (%p165_p2) target bundleno = 519 (0x207), region = 36  ;;  %v4280_v1 = vld [vmem:[%s5592_s1 + $0xc0] sm:$0xff] (!%p165_p2)   ;;  %3874 = vmatprep.subr.bf16.mxu0 (!%p165_p2), %v4279_v0  ;;  %v4284_v5 = vld [vmem:[%s5592_s1 + $0xc8] sm:$0xff] (!%p165_p2)   ;;  %v4288_v9 = vld [vmem:[%s5592_s1 + $0xd0] sm:$0xff] (!%p165_p2)   ;;  %p192_p3 = scmp.lt.s32.totalorder (!%p165_p2), %s3542_s23, 3 }
   0x7   : > { %v4281_v2 = vld [vmem:[%s5592_s1] sm:$0xff] (!%p165_p2)   ;;  %3896 = vmatprep.subr.bf16.mxu1 (!%p165_p2), %v4280_v1  ;;  %v4285_v6 = vld [vmem:[%s5592_s1 + $0x8] sm:$0xff] (!%p165_p2)   ;;  %v4289_v10 = vld [vmem:[%s5592_s1 + $0x10] sm:$0xff] (!%p165_p2)  }
   0x8   : > { %v4282_v3 = vld [vmem:[%s5592_s1 + $0x80] sm:$0xff] (!%p165_p2)   ;;  %3875 = vmatpush3.bf16.msra.mxu0 (!%p165_p2), %v4281_v2  ;;  %v4286_v7 = vld [vmem:[%s5592_s1 + $0x88] sm:$0xff] (!%p165_p2)   ;;  %v4290_v11 = vld [vmem:[%s5592_s1 + $0x90] sm:$0xff] (!%p165_p2)  }
   0x9   : > { %3897 = vmatpush3.bf16.msra.mxu1 (!%p165_p2), %v4282_v3  ;;  %3876 = vmatprep.subr.bf16.mxu0 (!%p165_p2), %v4283_v4  ;;  %v4291_v12 = vld [vmem:[%s5592_s1 + $0x58] sm:$0xff] (!%p165_p2)   ;;  %v4295_v16 = vld [vmem:[%s5592_s1 + $0x60] sm:$0xff] (!%p165_p2)   ;;  %v4299_v20 = vld [vmem:[%s5592_s1 + $0x68] sm:$0xff] (!%p165_p2)  }
   0xa   : > { %3898 = vmatprep.subr.bf16.mxu1 (!%p165_p2), %v4284_v5  ;;  %v4292_v13 = vld [vmem:[%s5592_s1 + $0xd8] sm:$0xff] (!%p165_p2)   ;;  %v4296_v17 = vld [vmem:[%s5592_s1 + $0xe0] sm:$0xff] (!%p165_p2)   ;;  %v4300_v21 = vld [vmem:[%s5592_s1 + $0xe8] sm:$0xff] (!%p165_p2)  }
   0xb   : > { %v4293_v14 = vld [vmem:[%s5592_s1 + $0x18] sm:$0xff] (!%p165_p2)   ;;  %v4297_v18 = vld [vmem:[%s5592_s1 + $0x20] sm:$0xff] (!%p165_p2)   ;;  %v4301_v22 = vld [vmem:[%s5592_s1 + $0x28] sm:$0xff] (!%p165_p2)  }
   0xc   : > { %3877 = vmatpush3.bf16.msra.mxu0 (!%p165_p2), %v4285_v6  ;;  %v4294_v15 = vld [vmem:[%s5592_s1 + $0x98] sm:$0xff] (!%p165_p2)   ;;  %v4298_v19 = vld [vmem:[%s5592_s1 + $0xa0] sm:$0xff] (!%p165_p2)   ;;  %v4302_v23 = vld [vmem:[%s5592_s1 + $0xa8] sm:$0xff] (!%p165_p2)  }
   0xd   : > { %3899 = vmatpush3.bf16.msra.mxu1 %v4286_v7  ;;  %3878 = vmatprep.subr.bf16.mxu0 %v4287_v8  ;;  %s5597_s23 = smov (!%p192_p3, %s3542_s23), 3  ;;  %v4303_v24 = vld [vmem:[%s5592_s1 + $0x70] sm:$0xff]   ;;  %v4307_v28 = vld [vmem:[%s5592_s1 + $0x78] sm:$0xff]   ;;  %v4317_v36 = vld [vmem:[%s5592_s1 + $0x140] sm:$0xff]  }
   0xe   : > { %3900 = vmatprep.subr.bf16.mxu1 %v4288_v9  ;;  %v4304_v25 = vld [vmem:[%s5592_s1 + $0xf0] sm:$0xff]   ;;  %s4270_s21 = smul.u32 144, %s5597_s23  ;;  %v4308_v29 = vld [vmem:[%s5592_s1 + $0xf8] sm:$0xff]   ;;  %v4318_v37 = vld [vmem:[%s5592_s1 + $0x1c0] sm:$0xff]  }
   0xf   : > { %v4305_v26 = vld [vmem:[%s5592_s1 + $0x30] sm:$0xff]   ;;  %v4309_v30 = vld [vmem:[%s5592_s1 + $0x38] sm:$0xff]   ;;  %v4319_v38 = vld [vmem:[%s5592_s1 + $0x100] sm:$0xff]  }
  0x10   : > { %3879 = vmatpush3.bf16.msra.mxu0 %v4289_v10  ;;  %v4306_v27 = vld [vmem:[%s5592_s1 + $0xb0] sm:$0xff]   ;;  %s4760_s6 = scalar_lea.vmem %s5591_s0, %s4270_s21  ;;  %v4310_v31 = vld [vmem:[%s5592_s1 + $0xb8] sm:$0xff]   ;;  %v4320_v39 = vld [vmem:[%s5592_s1 + $0x180] sm:$0xff]  }
  0x11   : > { %3901 = vmatpush3.bf16.msra.mxu1 %v4290_v11  ;;  %3880 = vmatprep.subr.bf16.mxu0 %v4291_v12  ;;  %v4311_v32 = vld [vmem:[%s4760_s6] ss:$144 sps:$4 sm:$0xff]   ;;  %v4313_v33 = vld [vmem:[%s4760_s6 + $0x4] ss:$144 sps:$4 sm:$0xff]   ;;  %v4314_v34 = vld [vmem:[%s4760_s6 + $0x8] ss:$144 sps:$4 sm:$0xff]  }
  0x12   : > { %3902 = vmatprep.subr.bf16.mxu1 %v4292_v13  ;;  %v4316_v35 = vld [vmem:[%s4760_s6 + $0xc] ss:$144 sps:$4 sm:$0xff]   ;;  %2764 = vmatprep.mubr.bf16.mxu0 %v4313_v33  ;;  %v4325_v44 = vld [vmem:[%s5592_s1 + $0x150] sm:$0xff]   ;;  %v4333_v52 = vld [vmem:[%s5592_s1 + $0x160] sm:$0xff]  }
  0x13   : > { %2805 = vmatprep.mubr.bf16.mxu1 %v4316_v35  ;;  %v4321_v40 = vld [vmem:[%s5592_s1 + $0x148] sm:$0xff]   ;;  %v4326_v45 = vld [vmem:[%s5592_s1 + $0x1d0] sm:$0xff]   ;;  %v4329_v48 = vld [vmem:[%s5592_s1 + $0x158] sm:$0xff]  }
  0x14   : > { %3881 = vmatpush3.bf16.msra.mxu0 %v4293_v14  ;;  %v4322_v41 = vld [vmem:[%s5592_s1 + $0x1c8] sm:$0xff]   ;;  %v4327_v46 = vld [vmem:[%s5592_s1 + $0x110] sm:$0xff]   ;;  %v4330_v49 = vld [vmem:[%s5592_s1 + $0x1d8] sm:$0xff]  }
  0x15   : > { %3903 = vmatpush3.bf16.msra.mxu1 %v4294_v15  ;;  %3882 = vmatprep.subr.bf16.mxu0 %v4295_v16  ;;  %v4323_v42 = vld [vmem:[%s5592_s1 + $0x108] sm:$0xff]   ;;  %v4328_v47 = vld [vmem:[%s5592_s1 + $0x190] sm:$0xff]   ;;  %v4331_v50 = vld [vmem:[%s5592_s1 + $0x118] sm:$0xff]  }
  0x16   : > { %3904 = vmatprep.subr.bf16.mxu1 %v4296_v17  ;;  %v4324_v43 = vld [vmem:[%s5592_s1 + $0x188] sm:$0xff]   ;;  %v4332_v51 = vld [vmem:[%s5592_s1 + $0x198] sm:$0xff]   ;;  %v4334_v53 = vld [vmem:[%s5592_s1 + $0x1e0] sm:$0xff]  }
  0x17   : > { %v4335_v54 = vld [vmem:[%s5592_s1 + $0x120] sm:$0xff]   ;;  %v4337_v56 = vld [vmem:[%s5592_s1 + $0x168] sm:$0xff]   ;;  %v4341_v60 = vld [vmem:[%s5592_s1 + $0x170] sm:$0xff]  }
  0x18   : > { %3883 = vmatpush3.bf16.msra.mxu0 %v4297_v18  ;;  %v4336_v55 = vld [vmem:[%s5592_s1 + $0x1a0] sm:$0xff]   ;;  %v4338_v57 = vld [vmem:[%s5592_s1 + $0x1e8] sm:$0xff]   ;;  %v4342_v61 = vld [vmem:[%s5592_s1 + $0x1f0] sm:$0xff]  }
  0x19   : > { %3905 = vmatpush3.bf16.msra.mxu1 %v4298_v19  ;;  %3884 = vmatprep.subr.bf16.mxu0 %v4299_v20  ;;  %v4339_v58 = vld [vmem:[%s5592_s1 + $0x128] sm:$0xff]   ;;  %v4343_v62 = vld [vmem:[%s5592_s1 + $0x130] sm:$0xff]   ;;  %v4345_v0 = vld [vmem:[%s5592_s1 + $0x178] sm:$0xff]  }
  0x1a   : > { %3906 = vmatprep.subr.bf16.mxu1 %v4300_v21  ;;  %v4340_v59 = vld [vmem:[%s5592_s1 + $0x1a8] sm:$0xff]   ;;  %v4344_v63 = vld [vmem:[%s5592_s1 + $0x1b0] sm:$0xff]   ;;  %v4346_v1 = vld [vmem:[%s5592_s1 + $0x1f8] sm:$0xff]  }
  0x1b   : > { %v4347_v2 = vld [vmem:[%s5592_s1 + $0x138] sm:$0xff]   ;;  %v4349_v4 = vld [vmem:[%s4760_s6 + $0x10] ss:$144 sps:$4 sm:$0xff]   ;;  %v4351_v5 = vld [vmem:[%s4760_s6 + $0x14] ss:$144 sps:$4 sm:$0xff]  }
  0x1c   : > { %3885 = vmatpush3.bf16.msra.mxu0 %v4301_v22  ;;  %v4348_v3 = vld [vmem:[%s5592_s1 + $0x1b8] sm:$0xff]   ;;  %v4355_v8 = vld [vmem:[%s5592_s1 + $0x240] sm:$0xff]   ;;  %v4359_v12 = vld [vmem:[%s5592_s1 + $0x248] sm:$0xff]  }
  0x1d   : > { %3907 = vmatpush3.bf16.msra.mxu1 %v4302_v23  ;;  %3886 = vmatprep.subr.bf16.mxu0 %v4303_v24  ;;  %v4352_v6 = vld [vmem:[%s4760_s6 + $0x18] ss:$144 sps:$4 sm:$0xff]   ;;  %v4354_v7 = vld [vmem:[%s4760_s6 + $0x1c] ss:$144 sps:$4 sm:$0xff]   ;;  %v4356_v9 = vld [vmem:[%s5592_s1 + $0x2c0] sm:$0xff]  }
  0x1e   : > { %3908 = vmatprep.subr.bf16.mxu1 %v4304_v25  ;;  %v4357_v10 = vld [vmem:[%s5592_s1 + $0x200] sm:$0xff]   ;;  %v4360_v13 = vld [vmem:[%s5592_s1 + $0x2c8] sm:$0xff]   ;;  %v4363_v16 = vld [vmem:[%s5592_s1 + $0x250] sm:$0xff]  }
  0x1f   : > { %v4358_v11 = vld [vmem:[%s5592_s1 + $0x280] sm:$0xff]   ;;  %v4361_v14 = vld [vmem:[%s5592_s1 + $0x208] sm:$0xff]   ;;  %v4364_v17 = vld [vmem:[%s5592_s1 + $0x2d0] sm:$0xff]  }
  0x20   : > { %3887 = vmatpush3.bf16.msra.mxu0 %v4305_v26  ;;  %v4362_v15 = vld [vmem:[%s5592_s1 + $0x288] sm:$0xff]   ;;  %v4365_v18 = vld [vmem:[%s5592_s1 + $0x210] sm:$0xff]   ;;  %v4367_v20 = vld [vmem:[%s5592_s1 + $0x258] sm:$0xff]  }
  0x21   : > { %3909 = vmatpush3.bf16.msra.mxu1 %v4306_v27  ;;  %3888 = vmatprep.subr.bf16.mxu0 %v4307_v28  ;;  %v4366_v19 = vld [vmem:[%s5592_s1 + $0x290] sm:$0xff]   ;;  %v4368_v21 = vld [vmem:[%s5592_s1 + $0x2d8] sm:$0xff]   ;;  %v4371_v24 = vld [vmem:[%s5592_s1 + $0x260] sm:$0xff]  }
  0x22   : > { %3910 = vmatprep.subr.bf16.mxu1 %v4308_v29  ;;  %v4369_v22 = vld [vmem:[%s5592_s1 + $0x218] sm:$0xff]   ;;  %v4372_v25 = vld [vmem:[%s5592_s1 + $0x2e0] sm:$0xff]   ;;  %v4375_v28 = vld [vmem:[%s5592_s1 + $0x268] sm:$0xff]  }
  0x23   : > { %v4370_v23 = vld [vmem:[%s5592_s1 + $0x298] sm:$0xff]   ;;  %v4373_v26 = vld [vmem:[%s5592_s1 + $0x220] sm:$0xff]   ;;  %v4376_v29 = vld [vmem:[%s5592_s1 + $0x2e8] sm:$0xff]  }
  0x24   : > { %3889 = vmatpush3.bf16.msra.mxu0 %v4309_v30  ;;  %v4374_v27 = vld [vmem:[%s5592_s1 + $0x2a0] sm:$0xff]   ;;  %v4377_v30 = vld [vmem:[%s5592_s1 + $0x228] sm:$0xff]   ;;  %v4380_v33 = vld [vmem:[%s5592_s1 + $0x2f0] sm:$0xff]  }
  0x25   : > { %3911 = vmatpush3.bf16.msra.mxu1 %v4310_v31  ;;  %3918 = vmatprep.subr.bf16.mxu0 %v4317_v36  ;;  %v4378_v31 = vld [vmem:[%s5592_s1 + $0x2a8] sm:$0xff]   ;;  %v4382_v35 = vld [vmem:[%s5592_s1 + $0x2b0] sm:$0xff]   ;;  %v4383_v36 = vld [vmem:[%s5592_s1 + $0x278] sm:$0xff]  }
  0x26   : > { %3940 = vmatprep.subr.bf16.mxu1 %v4318_v37  ;;  %v4384_v37 = vld [vmem:[%s5592_s1 + $0x2f8] sm:$0xff]  }
  0x27   : > { %2765 = vmatmul.mubr.bf16.vlgmr.msra.gmra.mrb[0].mxu0 %v4311_v32  ;;  %v4379_v32 = vld [vmem:[%s5592_s1 + $0x270] sm:$0xff]  }
  0x28   : > { %2806 = vmatmul.mubr.bf16.vlgmr.msra.gmra.mrb[0].mxu1 %v4314_v34  ;;  %3919 = vmatpush3.bf16.msra.mxu0 %v4319_v38  ;;  %v4381_v34 = vld [vmem:[%s5592_s1 + $0x230] sm:$0xff]   ;;  %v4385_v38 = vld [vmem:[%s5592_s1 + $0x238] sm:$0xff]  }
  0x29   : > { %3941 = vmatpush3.bf16.msra.mxu1 %v4320_v39  ;;  %3920 = vmatprep.subr.bf16.mxu0 %v4321_v40  ;;  %v4386_v39 = vld [vmem:[%s5592_s1 + $0x2b8] sm:$0xff]   ;;  %v4387_v40 = vld [vmem:[%s4760_s6 + $0x20] ss:$144 sps:$4 sm:$0xff]  }
  0x2a   : > { %3942 = vmatprep.subr.bf16.mxu1 %v4322_v41  ;;  %2846 = vmatprep.mubr.bf16.mxu0 %v4351_v5  ;;  %v4389_v41 = vld [vmem:[%s4760_s6 + $0x24] ss:$144 sps:$4 sm:$0xff]  }
  0x2b   : > { %2887 = vmatprep.mubr.bf16.mxu1 %v4354_v7  ;;  %v4418_v5 = vld [vmem:[%s5592_s1 + $0x3f0] sm:$0xff]  }
  0x2c   : > { %3921 = vmatpush3.bf16.msra.mxu0 %v4323_v42  ;;  %v4390_v42 = vld [vmem:[%s4760_s6 + $0x28] ss:$144 sps:$4 sm:$0xff]   ;;  %v4420_v7 = vld [vmem:[%s5592_s1 + $0x3b0] sm:$0xff]  }
  0x2d   : > { %3943 = vmatpush3.bf16.msra.mxu1 %v4324_v43  ;;  %3922 = vmatprep.subr.bf16.mxu0 %v4325_v44  ;;  %v4392_v43 = vld [vmem:[%s4760_s6 + $0x2c] ss:$144 sps:$4 sm:$0xff]   ;;  %v4393_v44 = vld [vmem:[%s5592_s1 + $0x340] sm:$0xff]  }
  0x2e   : > { %3944 = vmatprep.subr.bf16.mxu1 %v4326_v45  ;;  %v4394_v45 = vld [vmem:[%s5592_s1 + $0x3c0] sm:$0xff]  }
  0x30   : > { %3923 = vmatpush3.bf16.msra.mxu0 %v4327_v46  ;;  %v4395_v46 = vld [vmem:[%s5592_s1 + $0x300] sm:$0xff]  }
  0x31   : > { %3945 = vmatpush3.bf16.msra.mxu1 %v4328_v47  ;;  %3924 = vmatprep.subr.bf16.mxu0 %v4329_v48  ;;  %v4396_v47 = vld [vmem:[%s5592_s1 + $0x380] sm:$0xff]   ;;  %v4397_v48 = vld [vmem:[%s5592_s1 + $0x348] sm:$0xff]  }
  0x32   : > { %3946 = vmatprep.subr.bf16.mxu1 %v4330_v49  ;;  %v4398_v49 = vld [vmem:[%s5592_s1 + $0x3c8] sm:$0xff]  }
  0x34   : > { %3925 = vmatpush3.bf16.msra.mxu0 %v4331_v50  ;;  %v4399_v50 = vld [vmem:[%s5592_s1 + $0x308] sm:$0xff]  }
  0x35   : > { %3947 = vmatpush3.bf16.msra.mxu1 %v4332_v51  ;;  %3926 = vmatprep.subr.bf16.mxu0 %v4333_v52  ;;  %v4400_v51 = vld [vmem:[%s5592_s1 + $0x388] sm:$0xff]   ;;  %v4401_v52 = vld [vmem:[%s5592_s1 + $0x350] sm:$0xff]  }
  0x36   : > { %3948 = vmatprep.subr.bf16.mxu1 %v4334_v53  ;;  %v4402_v53 = vld [vmem:[%s5592_s1 + $0x3d0] sm:$0xff]  }
  0x38   : > { %3927 = vmatpush3.bf16.msra.mxu0 %v4335_v54  ;;  %v4403_v54 = vld [vmem:[%s5592_s1 + $0x310] sm:$0xff]  }
  0x39   : > { %3949 = vmatpush3.bf16.msra.mxu1 %v4336_v55  ;;  %3928 = vmatprep.subr.bf16.mxu0 %v4337_v56  ;;  %v4404_v55 = vld [vmem:[%s5592_s1 + $0x390] sm:$0xff]   ;;  %v4405_v56 = vld [vmem:[%s5592_s1 + $0x358] sm:$0xff]  }
  0x3a   : > { %3950 = vmatprep.subr.bf16.mxu1 %v4338_v57  ;;  %v4406_v57 = vld [vmem:[%s5592_s1 + $0x3d8] sm:$0xff]  }
  0x3c   : > { %3929 = vmatpush3.bf16.msra.mxu0 %v4339_v58  ;;  %v4407_v58 = vld [vmem:[%s5592_s1 + $0x318] sm:$0xff]  }
  0x3d   : > { %3951 = vmatpush3.bf16.msra.mxu1 %v4340_v59  ;;  %3930 = vmatprep.subr.bf16.mxu0 %v4341_v60  ;;  %v4408_v59 = vld [vmem:[%s5592_s1 + $0x398] sm:$0xff]   ;;  %v4409_v60 = vld [vmem:[%s5592_s1 + $0x360] sm:$0xff]  }
  0x3e   : > { %3952 = vmatprep.subr.bf16.mxu1 %v4342_v61  ;;  %v4410_v61 = vld [vmem:[%s5592_s1 + $0x3e0] sm:$0xff]  }
  0x40   : > { %3931 = vmatpush3.bf16.msra.mxu0 %v4343_v62  ;;  %v4411_v62 = vld [vmem:[%s5592_s1 + $0x320] sm:$0xff]  }
  0x41   : > { %3953 = vmatpush3.bf16.msra.mxu1 %v4344_v63  ;;  %3932 = vmatprep.subr.bf16.mxu0 %v4345_v0  ;;  %v4412_v63 = vld [vmem:[%s5592_s1 + $0x3a0] sm:$0xff]   ;;  %v4413_v0 = vld [vmem:[%s5592_s1 + $0x368] sm:$0xff]  }
  0x42   : > { %3954 = vmatprep.subr.bf16.mxu1 %v4346_v1  ;;  %v4414_v1 = vld [vmem:[%s5592_s1 + $0x3e8] sm:$0xff]  }
  0x44   : > { %3933 = vmatpush3.bf16.msra.mxu0 %v4347_v2  ;;  %v4415_v2 = vld [vmem:[%s5592_s1 + $0x328] sm:$0xff]  }
  0x45   : > { %3955 = vmatpush3.bf16.msra.mxu1 %v4348_v3  ;;  %3962 = vmatprep.subr.bf16.mxu0 %v4355_v8  ;;  %v4416_v3 = vld [vmem:[%s5592_s1 + $0x3a8] sm:$0xff]   ;;  %v4421_v8 = vld [vmem:[%s5592_s1 + $0x378] sm:$0xff]  }
  0x46   : > { %3984 = vmatprep.subr.bf16.mxu1 %v4356_v9  ;;  %v4422_v9 = vld [vmem:[%s5592_s1 + $0x3f8] sm:$0xff]  }
  0x47   : > { %2847 = vmatmul.mubr.bf16.vlgmr.msra.gmra.mrb[4].mxu0 %v4349_v4  ;;  %v4417_v4 = vld [vmem:[%s5592_s1 + $0x370] sm:$0xff]  }
  0x48   : > { %2888 = vmatmul.mubr.bf16.vlgmr.msra.gmra.mrb[4].mxu1 %v4352_v6  ;;  %3963 = vmatpush3.bf16.msra.mxu0 %v4357_v10  ;;  %v4419_v6 = vld [vmem:[%s5592_s1 + $0x330] sm:$0xff]   ;;  %v4423_v10 = vld [vmem:[%s5592_s1 + $0x338] sm:$0xff]  }
  0x49   : > { %3985 = vmatpush3.bf16.msra.mxu1 %v4358_v11  ;;  %3964 = vmatprep.subr.bf16.mxu0 %v4359_v12  ;;  %v4424_v11 = vld [vmem:[%s5592_s1 + $0x3b8] sm:$0xff]   ;;  %v4425_v12 = vld [vmem:[%s4760_s6 + $0x30] ss:$144 sps:$4 sm:$0xff]  }
  0x4a   : > { %3986 = vmatprep.subr.bf16.mxu1 %v4360_v13  ;;  %2928 = vmatprep.mubr.bf16.mxu0 %v4389_v41  ;;  %v4427_v13 = vld [vmem:[%s4760_s6 + $0x34] ss:$144 sps:$4 sm:$0xff]  }
  0x4b   : > { %2969 = vmatprep.mubr.bf16.mxu1 %v4392_v43  ;;  %v4456_v41 = vld [vmem:[%s5592_s1 + $0x4f0] sm:$0xff]  }
  0x4c   : > { %3965 = vmatpush3.bf16.msra.mxu0 %v4361_v14  ;;  %v4428_v14 = vld [vmem:[%s4760_s6 + $0x38] ss:$144 sps:$4 sm:$0xff]   ;;  %v4458_v43 = vld [vmem:[%s5592_s1 + $0x4b0] sm:$0xff]  }
  0x4d   : > { %3987 = vmatpush3.bf16.msra.mxu1 %v4362_v15  ;;  %3966 = vmatprep.subr.bf16.mxu0 %v4363_v16  ;;  %v4430_v15 = vld [vmem:[%s4760_s6 + $0x3c] ss:$144 sps:$4 sm:$0xff]   ;;  %v4431_v16 = vld [vmem:[%s5592_s1 + $0x440] sm:$0xff]  }
  0x4e   : > { %3988 = vmatprep.subr.bf16.mxu1 %v4364_v17  ;;  %v4432_v17 = vld [vmem:[%s5592_s1 + $0x4c0] sm:$0xff]  }
  0x50   : > { %3967 = vmatpush3.bf16.msra.mxu0 %v4365_v18  ;;  %v4433_v18 = vld [vmem:[%s5592_s1 + $0x400] sm:$0xff]  }
  0x51   : > { %3989 = vmatpush3.bf16.msra.mxu1 %v4366_v19  ;;  %3968 = vmatprep.subr.bf16.mxu0 %v4367_v20  ;;  %v4434_v19 = vld [vmem:[%s5592_s1 + $0x480] sm:$0xff]   ;;  %v4435_v20 = vld [vmem:[%s5592_s1 + $0x448] sm:$0xff]  }
  0x52   : > { %3990 = vmatprep.subr.bf16.mxu1 %v4368_v21  ;;  %v4436_v21 = vld [vmem:[%s5592_s1 + $0x4c8] sm:$0xff]  }
  0x54   : > { %3969 = vmatpush3.bf16.msra.mxu0 %v4369_v22  ;;  %v4437_v22 = vld [vmem:[%s5592_s1 + $0x408] sm:$0xff]  }
  0x55   : > { %3991 = vmatpush3.bf16.msra.mxu1 %v4370_v23  ;;  %3970 = vmatprep.subr.bf16.mxu0 %v4371_v24  ;;  %v4438_v23 = vld [vmem:[%s5592_s1 + $0x488] sm:$0xff]   ;;  %v4439_v24 = vld [vmem:[%s5592_s1 + $0x450] sm:$0xff]  }
  0x56   : > { %3992 = vmatprep.subr.bf16.mxu1 %v4372_v25  ;;  %v4440_v25 = vld [vmem:[%s5592_s1 + $0x4d0] sm:$0xff]  }
  0x58   : > { %3971 = vmatpush3.bf16.msra.mxu0 %v4373_v26  ;;  %v4441_v26 = vld [vmem:[%s5592_s1 + $0x410] sm:$0xff]  }
  0x59   : > { %3993 = vmatpush3.bf16.msra.mxu1 %v4374_v27  ;;  %3972 = vmatprep.subr.bf16.mxu0 %v4375_v28  ;;  %v4442_v27 = vld [vmem:[%s5592_s1 + $0x490] sm:$0xff]   ;;  %v4443_v28 = vld [vmem:[%s5592_s1 + $0x458] sm:$0xff]  }
  0x5a   : > { %3994 = vmatprep.subr.bf16.mxu1 %v4376_v29  ;;  %v4444_v29 = vld [vmem:[%s5592_s1 + $0x4d8] sm:$0xff]  }
  0x5c   : > { %3973 = vmatpush3.bf16.msra.mxu0 %v4377_v30  ;;  %v4445_v30 = vld [vmem:[%s5592_s1 + $0x418] sm:$0xff]  }
  0x5d   : > { %3995 = vmatpush3.bf16.msra.mxu1 %v4378_v31  ;;  %3974 = vmatprep.subr.bf16.mxu0 %v4379_v32  ;;  %v4446_v31 = vld [vmem:[%s5592_s1 + $0x498] sm:$0xff]   ;;  %v4447_v32 = vld [vmem:[%s5592_s1 + $0x460] sm:$0xff]  }
  0x5e   : > { %3996 = vmatprep.subr.bf16.mxu1 %v4380_v33  ;;  %v4448_v33 = vld [vmem:[%s5592_s1 + $0x4e0] sm:$0xff]  }
  0x60   : > { %3975 = vmatpush3.bf16.msra.mxu0 %v4381_v34  ;;  %v4449_v34 = vld [vmem:[%s5592_s1 + $0x420] sm:$0xff]  }
  0x61   : > { %3997 = vmatpush3.bf16.msra.mxu1 %v4382_v35  ;;  %3976 = vmatprep.subr.bf16.mxu0 %v4383_v36  ;;  %v4450_v35 = vld [vmem:[%s5592_s1 + $0x4a0] sm:$0xff]   ;;  %v4451_v36 = vld [vmem:[%s5592_s1 + $0x468] sm:$0xff]  }
  0x62   : > { %3998 = vmatprep.subr.bf16.mxu1 %v4384_v37  ;;  %v4452_v37 = vld [vmem:[%s5592_s1 + $0x4e8] sm:$0xff]  }
  0x64   : > { %3977 = vmatpush3.bf16.msra.mxu0 %v4385_v38  ;;  %v4453_v38 = vld [vmem:[%s5592_s1 + $0x428] sm:$0xff]  }
  0x65   : > { %3999 = vmatpush3.bf16.msra.mxu1 %v4386_v39  ;;  %4006 = vmatprep.subr.bf16.mxu0 %v4393_v44  ;;  %v4454_v39 = vld [vmem:[%s5592_s1 + $0x4a8] sm:$0xff]   ;;  %v4459_v44 = vld [vmem:[%s5592_s1 + $0x478] sm:$0xff]  }
  0x66   : > { %4028 = vmatprep.subr.bf16.mxu1 %v4394_v45  ;;  %v4460_v45 = vld [vmem:[%s5592_s1 + $0x4f8] sm:$0xff]  }
  0x67   : > { %2929 = vmatmul.mubr.bf16.vlgmr.msra.gmra.mrb[8].mxu0 %v4387_v40  ;;  %v4455_v40 = vld [vmem:[%s5592_s1 + $0x470] sm:$0xff]  }
  0x68   : > { %2970 = vmatmul.mubr.bf16.vlgmr.msra.gmra.mrb[8].mxu1 %v4390_v42  ;;  %4007 = vmatpush3.bf16.msra.mxu0 %v4395_v46  ;;  %v4457_v42 = vld [vmem:[%s5592_s1 + $0x430] sm:$0xff]   ;;  %v4461_v46 = vld [vmem:[%s5592_s1 + $0x438] sm:$0xff]  }
  0x69   : > { %4029 = vmatpush3.bf16.msra.mxu1 %v4396_v47  ;;  %4008 = vmatprep.subr.bf16.mxu0 %v4397_v48  ;;  %v4462_v47 = vld [vmem:[%s5592_s1 + $0x4b8] sm:$0xff]   ;;  %v4463_v48 = vld [vmem:[%s4760_s6 + $0x40] ss:$144 sps:$4 sm:$0xff]  }
  0x6a   : > { %4030 = vmatprep.subr.bf16.mxu1 %v4398_v49  ;;  %3010 = vmatprep.mubr.bf16.mxu0 %v4427_v13  ;;  %v4465_v49 = vld [vmem:[%s4760_s6 + $0x44] ss:$144 sps:$4 sm:$0xff]  }
  0x6b   : > { %3051 = vmatprep.mubr.bf16.mxu1 %v4430_v15  ;;  %v4494_v13 = vld [vmem:[%s5592_s1 + $0x5f0] sm:$0xff]  }
  0x6c   : > { %4009 = vmatpush3.bf16.msra.mxu0 %v4399_v50  ;;  %v4466_v50 = vld [vmem:[%s4760_s6 + $0x48] ss:$144 sps:$4 sm:$0xff]   ;;  %v4496_v15 = vld [vmem:[%s5592_s1 + $0x5b0] sm:$0xff]  }
  0x6d   : > { %4031 = vmatpush3.bf16.msra.mxu1 %v4400_v51  ;;  %4010 = vmatprep.subr.bf16.mxu0 %v4401_v52  ;;  %v4468_v51 = vld [vmem:[%s4760_s6 + $0x4c] ss:$144 sps:$4 sm:$0xff]   ;;  %v4469_v52 = vld [vmem:[%s5592_s1 + $0x540] sm:$0xff]  }
  0x6e   : > { %4032 = vmatprep.subr.bf16.mxu1 %v4402_v53  ;;  %v4470_v53 = vld [vmem:[%s5592_s1 + $0x5c0] sm:$0xff]  }
  0x70   : > { %4011 = vmatpush3.bf16.msra.mxu0 %v4403_v54  ;;  %v4471_v54 = vld [vmem:[%s5592_s1 + $0x500] sm:$0xff]  }
  0x71   : > { %4033 = vmatpush3.bf16.msra.mxu1 %v4404_v55  ;;  %4012 = vmatprep.subr.bf16.mxu0 %v4405_v56  ;;  %v4472_v55 = vld [vmem:[%s5592_s1 + $0x580] sm:$0xff]   ;;  %v4473_v56 = vld [vmem:[%s5592_s1 + $0x548] sm:$0xff]  }
  0x72   : > { %4034 = vmatprep.subr.bf16.mxu1 %v4406_v57  ;;  %v4474_v57 = vld [vmem:[%s5592_s1 + $0x5c8] sm:$0xff]  }
  0x74   : > { %4013 = vmatpush3.bf16.msra.mxu0 %v4407_v58  ;;  %v4475_v58 = vld [vmem:[%s5592_s1 + $0x508] sm:$0xff]  }
  0x75   : > { %4035 = vmatpush3.bf16.msra.mxu1 %v4408_v59  ;;  %4014 = vmatprep.subr.bf16.mxu0 %v4409_v60  ;;  %v4476_v59 = vld [vmem:[%s5592_s1 + $0x588] sm:$0xff]   ;;  %v4477_v60 = vld [vmem:[%s5592_s1 + $0x550] sm:$0xff]  }
  0x76   : > { %4036 = vmatprep.subr.bf16.mxu1 %v4410_v61  ;;  %v4478_v61 = vld [vmem:[%s5592_s1 + $0x5d0] sm:$0xff]  }
  0x78   : > { %4015 = vmatpush3.bf16.msra.mxu0 %v4411_v62  ;;  %v4479_v62 = vld [vmem:[%s5592_s1 + $0x510] sm:$0xff]  }
  0x79   : > { %4037 = vmatpush3.bf16.msra.mxu1 %v4412_v63  ;;  %4016 = vmatprep.subr.bf16.mxu0 %v4413_v0  ;;  %v4480_v63 = vld [vmem:[%s5592_s1 + $0x590] sm:$0xff]   ;;  %v4481_v0 = vld [vmem:[%s5592_s1 + $0x558] sm:$0xff]  }
  0x7a   : > { %4038 = vmatprep.subr.bf16.mxu1 %v4414_v1  ;;  %v4482_v1 = vld [vmem:[%s5592_s1 + $0x5d8] sm:$0xff]  }
  0x7c   : > { %4017 = vmatpush3.bf16.msra.mxu0 %v4415_v2  ;;  %v4483_v2 = vld [vmem:[%s5592_s1 + $0x518] sm:$0xff]  }
  0x7d   : > { %4039 = vmatpush3.bf16.msra.mxu1 %v4416_v3  ;;  %4018 = vmatprep.subr.bf16.mxu0 %v4417_v4  ;;  %v4484_v3 = vld [vmem:[%s5592_s1 + $0x598] sm:$0xff]   ;;  %v4485_v4 = vld [vmem:[%s5592_s1 + $0x560] sm:$0xff]  }
  0x7e   : > { %4040 = vmatprep.subr.bf16.mxu1 %v4418_v5  ;;  %v4486_v5 = vld [vmem:[%s5592_s1 + $0x5e0] sm:$0xff]  }
  0x80   : > { %4019 = vmatpush3.bf16.msra.mxu0 %v4419_v6  ;;  %v4487_v6 = vld [vmem:[%s5592_s1 + $0x520] sm:$0xff]  }
  0x81   : > { %4041 = vmatpush3.bf16.msra.mxu1 %v4420_v7  ;;  %4020 = vmatprep.subr.bf16.mxu0 %v4421_v8  ;;  %v4488_v7 = vld [vmem:[%s5592_s1 + $0x5a0] sm:$0xff]   ;;  %v4489_v8 = vld [vmem:[%s5592_s1 + $0x568] sm:$0xff]  }
  0x82   : > { %4042 = vmatprep.subr.bf16.mxu1 %v4422_v9  ;;  %v4490_v9 = vld [vmem:[%s5592_s1 + $0x5e8] sm:$0xff]  }
  0x84   : > { %4021 = vmatpush3.bf16.msra.mxu0 %v4423_v10  ;;  %v4491_v10 = vld [vmem:[%s5592_s1 + $0x528] sm:$0xff]  }
  0x85   : > { %4043 = vmatpush3.bf16.msra.mxu1 %v4424_v11  ;;  %4050 = vmatprep.subr.bf16.mxu0 %v4431_v16  ;;  %v4492_v11 = vld [vmem:[%s5592_s1 + $0x5a8] sm:$0xff]   ;;  %v4497_v16 = vld [vmem:[%s5592_s1 + $0x578] sm:$0xff]  }
  0x86   : > { %4072 = vmatprep.subr.bf16.mxu1 %v4432_v17  ;;  %v4498_v17 = vld [vmem:[%s5592_s1 + $0x5f8] sm:$0xff]  }
  0x87   : > { %3011 = vmatmul.mubr.bf16.vlgmr.msra.gmra.mrb[12].mxu0 %v4425_v12  ;;  %v4493_v12 = vld [vmem:[%s5592_s1 + $0x570] sm:$0xff]  }
  0x88   : > { %3052 = vmatmul.mubr.bf16.vlgmr.msra.gmra.mrb[12].mxu1 %v4428_v14  ;;  %4051 = vmatpush3.bf16.msra.mxu0 %v4433_v18  ;;  %v4495_v14 = vld [vmem:[%s5592_s1 + $0x530] sm:$0xff]   ;;  %v4499_v18 = vld [vmem:[%s5592_s1 + $0x538] sm:$0xff]  }
  0x89   : > { %4073 = vmatpush3.bf16.msra.mxu1 %v4434_v19  ;;  %4052 = vmatprep.subr.bf16.mxu0 %v4435_v20  ;;  %v4500_v19 = vld [vmem:[%s5592_s1 + $0x5b8] sm:$0xff]   ;;  %v4501_v20 = vld [vmem:[%s4760_s6 + $0x50] ss:$144 sps:$4 sm:$0xff]  }
  0x8a   : > { %4074 = vmatprep.subr.bf16.mxu1 %v4436_v21  ;;  %3092 = vmatprep.mubr.bf16.mxu0 %v4465_v49  ;;  %v4503_v21 = vld [vmem:[%s4760_s6 + $0x54] ss:$144 sps:$4 sm:$0xff]  }
  0x8b   : > { %3133 = vmatprep.mubr.bf16.mxu1 %v4468_v51  ;;  %v4532_v49 = vld [vmem:[%s5592_s1 + $0x6f0] sm:$0xff]  }
  0x8c   : > { %4053 = vmatpush3.bf16.msra.mxu0 %v4437_v22  ;;  %v4504_v22 = vld [vmem:[%s4760_s6 + $0x58] ss:$144 sps:$4 sm:$0xff]   ;;  %v4534_v51 = vld [vmem:[%s5592_s1 + $0x6b0] sm:$0xff]  }
  0x8d   : > { %4075 = vmatpush3.bf16.msra.mxu1 %v4438_v23  ;;  %4054 = vmatprep.subr.bf16.mxu0 %v4439_v24  ;;  %v4506_v23 = vld [vmem:[%s4760_s6 + $0x5c] ss:$144 sps:$4 sm:$0xff]   ;;  %v4507_v24 = vld [vmem:[%s5592_s1 + $0x640] sm:$0xff]  }
  0x8e   : > { %4076 = vmatprep.subr.bf16.mxu1 %v4440_v25  ;;  %v4508_v25 = vld [vmem:[%s5592_s1 + $0x6c0] sm:$0xff]  }
  0x90   : > { %4055 = vmatpush3.bf16.msra.mxu0 %v4441_v26  ;;  %v4509_v26 = vld [vmem:[%s5592_s1 + $0x600] sm:$0xff]  }
  0x91   : > { %4077 = vmatpush3.bf16.msra.mxu1 %v4442_v27  ;;  %4056 = vmatprep.subr.bf16.mxu0 %v4443_v28  ;;  %v4510_v27 = vld [vmem:[%s5592_s1 + $0x680] sm:$0xff]   ;;  %v4511_v28 = vld [vmem:[%s5592_s1 + $0x648] sm:$0xff]  }
  0x92   : > { %4078 = vmatprep.subr.bf16.mxu1 %v4444_v29  ;;  %v4512_v29 = vld [vmem:[%s5592_s1 + $0x6c8] sm:$0xff]  }
  0x94   : > { %4057 = vmatpush3.bf16.msra.mxu0 %v4445_v30  ;;  %v4513_v30 = vld [vmem:[%s5592_s1 + $0x608] sm:$0xff]  }
  0x95   : > { %4079 = vmatpush3.bf16.msra.mxu1 %v4446_v31  ;;  %4058 = vmatprep.subr.bf16.mxu0 %v4447_v32  ;;  %v4514_v31 = vld [vmem:[%s5592_s1 + $0x688] sm:$0xff]   ;;  %v4515_v32 = vld [vmem:[%s5592_s1 + $0x650] sm:$0xff]  }
  0x96   : > { %4080 = vmatprep.subr.bf16.mxu1 %v4448_v33  ;;  %v4516_v33 = vld [vmem:[%s5592_s1 + $0x6d0] sm:$0xff]  }
  0x98   : > { %4059 = vmatpush3.bf16.msra.mxu0 %v4449_v34  ;;  %v4517_v34 = vld [vmem:[%s5592_s1 + $0x610] sm:$0xff]  }
  0x99   : > { %4081 = vmatpush3.bf16.msra.mxu1 %v4450_v35  ;;  %4060 = vmatprep.subr.bf16.mxu0 %v4451_v36  ;;  %v4518_v35 = vld [vmem:[%s5592_s1 + $0x690] sm:$0xff]   ;;  %v4519_v36 = vld [vmem:[%s5592_s1 + $0x658] sm:$0xff]  }
  0x9a   : > { %4082 = vmatprep.subr.bf16.mxu1 %v4452_v37  ;;  %v4520_v37 = vld [vmem:[%s5592_s1 + $0x6d8] sm:$0xff]  }
  0x9c   : > { %4061 = vmatpush3.bf16.msra.mxu0 %v4453_v38  ;;  %v4521_v38 = vld [vmem:[%s5592_s1 + $0x618] sm:$0xff]  }
  0x9d   : > { %4083 = vmatpush3.bf16.msra.mxu1 %v4454_v39  ;;  %4062 = vmatprep.subr.bf16.mxu0 %v4455_v40  ;;  %v4522_v39 = vld [vmem:[%s5592_s1 + $0x698] sm:$0xff]   ;;  %v4523_v40 = vld [vmem:[%s5592_s1 + $0x660] sm:$0xff]  }
  0x9e   : > { %4084 = vmatprep.subr.bf16.mxu1 %v4456_v41  ;;  %v4524_v41 = vld [vmem:[%s5592_s1 + $0x6e0] sm:$0xff]  }
  0xa0   : > { %4063 = vmatpush3.bf16.msra.mxu0 %v4457_v42  ;;  %v4525_v42 = vld [vmem:[%s5592_s1 + $0x620] sm:$0xff]  }
  0xa1   : > { %4085 = vmatpush3.bf16.msra.mxu1 %v4458_v43  ;;  %4064 = vmatprep.subr.bf16.mxu0 %v4459_v44  ;;  %v4526_v43 = vld [vmem:[%s5592_s1 + $0x6a0] sm:$0xff]   ;;  %v4527_v44 = vld [vmem:[%s5592_s1 + $0x668] sm:$0xff]  }
  0xa2   : > { %4086 = vmatprep.subr.bf16.mxu1 %v4460_v45  ;;  %v4528_v45 = vld [vmem:[%s5592_s1 + $0x6e8] sm:$0xff]  }
  0xa4   : > { %4065 = vmatpush3.bf16.msra.mxu0 %v4461_v46  ;;  %v4529_v46 = vld [vmem:[%s5592_s1 + $0x628] sm:$0xff]  }
  0xa5   : > { %4087 = vmatpush3.bf16.msra.mxu1 %v4462_v47  ;;  %4094 = vmatprep.subr.bf16.mxu0 %v4469_v52  ;;  %v4530_v47 = vld [vmem:[%s5592_s1 + $0x6a8] sm:$0xff]   ;;  %v4535_v52 = vld [vmem:[%s5592_s1 + $0x678] sm:$0xff]  }
  0xa6   : > { %4116 = vmatprep.subr.bf16.mxu1 %v4470_v53  ;;  %v4536_v53 = vld [vmem:[%s5592_s1 + $0x6f8] sm:$0xff]  }
  0xa7   : > { %3093 = vmatmul.mubr.bf16.vlgmr.msra.gmra.mrb[16].mxu0 %v4463_v48  ;;  %v4531_v48 = vld [vmem:[%s5592_s1 + $0x670] sm:$0xff]  }
  0xa8   : > { %3134 = vmatmul.mubr.bf16.vlgmr.msra.gmra.mrb[16].mxu1 %v4466_v50  ;;  %4095 = vmatpush3.bf16.msra.mxu0 %v4471_v54  ;;  %v4533_v50 = vld [vmem:[%s5592_s1 + $0x630] sm:$0xff]   ;;  %v4537_v54 = vld [vmem:[%s5592_s1 + $0x638] sm:$0xff]  }
  0xa9   : > { %4117 = vmatpush3.bf16.msra.mxu1 %v4472_v55  ;;  %4096 = vmatprep.subr.bf16.mxu0 %v4473_v56  ;;  %v4538_v55 = vld [vmem:[%s5592_s1 + $0x6b8] sm:$0xff]   ;;  %v4539_v56 = vld [vmem:[%s4760_s6 + $0x60] ss:$144 sps:$4 sm:$0xff]  }
  0xaa   : > { %4118 = vmatprep.subr.bf16.mxu1 %v4474_v57  ;;  %3174 = vmatprep.mubr.bf16.mxu0 %v4503_v21  ;;  %v4541_v57 = vld [vmem:[%s4760_s6 + $0x64] ss:$144 sps:$4 sm:$0xff]   ;;  %v4558_v21 = vld [vmem:[%s5592_s1 + $0x7d8] sm:$0xff]  }
  0xab   : > { %3215 = vmatprep.mubr.bf16.mxu1 %v4506_v23  ;;  %v4560_v23 = vld [vmem:[%s5592_s1 + $0x798] sm:$0xff]  }
  0xac   : > { %4097 = vmatpush3.bf16.msra.mxu0 %v4475_v58  ;;  %v4542_v58 = vld [vmem:[%s4760_s6 + $0x68] ss:$144 sps:$4 sm:$0xff]  }
  0xad   : > { %4119 = vmatpush3.bf16.msra.mxu1 %v4476_v59  ;;  %4098 = vmatprep.subr.bf16.mxu0 %v4477_v60  ;;  %v4544_v59 = vld [vmem:[%s4760_s6 + $0x6c] ss:$144 sps:$4 sm:$0xff]   ;;  %v4545_v60 = vld [vmem:[%s5592_s1 + $0x740] sm:$0xff]  }
  0xae   : > { %4120 = vmatprep.subr.bf16.mxu1 %v4478_v61  ;;  %v4546_v61 = vld [vmem:[%s5592_s1 + $0x7c0] sm:$0xff]  }
  0xb0   : > { %4099 = vmatpush3.bf16.msra.mxu0 %v4479_v62  ;;  %v4547_v62 = vld [vmem:[%s5592_s1 + $0x700] sm:$0xff]  }
  0xb1   : > { %4121 = vmatpush3.bf16.msra.mxu1 %v4480_v63  ;;  %4100 = vmatprep.subr.bf16.mxu0 %v4481_v0  ;;  %v4548_v63 = vld [vmem:[%s5592_s1 + $0x780] sm:$0xff]   ;;  %v4549_v0 = vld [vmem:[%s5592_s1 + $0x748] sm:$0xff]  }
  0xb2   : > { %4122 = vmatprep.subr.bf16.mxu1 %v4482_v1 }
  0xb4   : > { %4101 = vmatpush3.bf16.msra.mxu0 %v4483_v2  ;;  %v4550_v2 = vld [vmem:[%s5592_s1 + $0x7c8] sm:$0xff]  }
  0xb5   : > { %4123 = vmatpush3.bf16.msra.mxu1 %v4484_v3  ;;  %4102 = vmatprep.subr.bf16.mxu0 %v4485_v4  ;;  %v4551_v4 = vld [vmem:[%s5592_s1 + $0x708] sm:$0xff]  }
  0xb6   : > { %4124 = vmatprep.subr.bf16.mxu1 %v4486_v5 }
  0xb8   : > { %4103 = vmatpush3.bf16.msra.mxu0 %v4487_v6  ;;  %v4552_v6 = vld [vmem:[%s5592_s1 + $0x788] sm:$0xff]  }
  0xb9   : > { %4125 = vmatpush3.bf16.msra.mxu1 %v4488_v7  ;;  %4104 = vmatprep.subr.bf16.mxu0 %v4489_v8 }
  0xba   : > { %4126 = vmatprep.subr.bf16.mxu1 %v4490_v9  ;;  %v4553_v9 = vld [vmem:[%s5592_s1 + $0x750] sm:$0xff]  }
  0xbc   : > { %4105 = vmatpush3.bf16.msra.mxu0 %v4491_v10 }
  0xbd   : > { %4127 = vmatpush3.bf16.msra.mxu1 %v4492_v11  ;;  %4106 = vmatprep.subr.bf16.mxu0 %v4493_v12  ;;  %v4554_v12 = vld [vmem:[%s5592_s1 + $0x7d0] sm:$0xff]  }
  0xbe   : > { %4128 = vmatprep.subr.bf16.mxu1 %v4494_v13 }
  0xc0   : > { %4107 = vmatpush3.bf16.msra.mxu0 %v4495_v14  ;;  %v4555_v14 = vld [vmem:[%s5592_s1 + $0x710] sm:$0xff]  }
  0xc1   : > { %4129 = vmatpush3.bf16.msra.mxu1 %v4496_v15  ;;  %4108 = vmatprep.subr.bf16.mxu0 %v4497_v16  ;;  %v4556_v16 = vld [vmem:[%s5592_s1 + $0x790] sm:$0xff]  }
  0xc2   : > { %4130 = vmatprep.subr.bf16.mxu1 %v4498_v17 }
  0xc4   : > { %4109 = vmatpush3.bf16.msra.mxu0 %v4499_v18 }
  0xc5   : > { %4131 = vmatpush3.bf16.msra.mxu1 %v4500_v19  ;;  %4138 = vmatprep.subr.bf16.mxu0 %v4507_v24  ;;  %v4557_v19 = vld [vmem:[%s5592_s1 + $0x758] sm:$0xff]   ;;  %v4561_v24 = vld [vmem:[%s5592_s1 + $0x760] sm:$0xff]  }
  0xc6   : > { %4160 = vmatprep.subr.bf16.mxu1 %v4508_v25  ;;  %v4562_v25 = vld [vmem:[%s5592_s1 + $0x7e0] sm:$0xff]  }
  0xc7   : > { %3175 = vmatmul.mubr.bf16.vlgmr.msra.gmra.mrb[20].mxu0 %v4501_v20 }
  0xc8   : > { %3216 = vmatmul.mubr.bf16.vlgmr.msra.gmra.mrb[20].mxu1 %v4504_v22  ;;  %4139 = vmatpush3.bf16.msra.mxu0 %v4509_v26  ;;  %v4559_v22 = vld [vmem:[%s5592_s1 + $0x718] sm:$0xff]   ;;  %v4563_v26 = vld [vmem:[%s5592_s1 + $0x720] sm:$0xff]  }
  0xc9   : > { %4161 = vmatpush3.bf16.msra.mxu1 %v4510_v27  ;;  %4140 = vmatprep.subr.bf16.mxu0 %v4511_v28  ;;  %v4564_v27 = vld [vmem:[%s5592_s1 + $0x7a0] sm:$0xff]  }
  0xca   : > { %4162 = vmatprep.subr.bf16.mxu1 %v4512_v29  ;;  %3256 = vmatprep.mubr.bf16.mxu0 %v4541_v57  ;;  %v3546_v28 = vld [vmem:[%s5593_s2] ss:$0 sm:$0xff] }
  0xcb   : > { %3297 = vmatprep.mubr.bf16.mxu1 %v4544_v59  ;;  %v4589_v59 = vld [vmem:[%s5592_s1 + $0x808] sm:$0xff]  }
  0xcc   : > { %4141 = vmatpush3.bf16.msra.mxu0 %v4513_v30  ;;  %v4565_v30 = vld [vmem:[%s5592_s1 + $0x768] sm:$0xff]  }
  0xcd   : > { %4163 = vmatpush3.bf16.msra.mxu1 %v4514_v31  ;;  %4142 = vmatprep.subr.bf16.mxu0 %v4515_v32  ;;  %v4566_v32 = vld [vmem:[%s5592_s1 + $0x7e8] sm:$0xff]  }
  0xce   : > { %4164 = vmatprep.subr.bf16.mxu1 %v4516_v33 }
  0xd0   : > { %4143 = vmatpush3.bf16.msra.mxu0 %v4517_v34  ;;  %v4567_v34 = vld [vmem:[%s5592_s1 + $0x728] sm:$0xff]  }
  0xd1   : > { %4165 = vmatpush3.bf16.msra.mxu1 %v4518_v35  ;;  %4144 = vmatprep.subr.bf16.mxu0 %v4519_v36  ;;  %v4568_v36 = vld [vmem:[%s5592_s1 + $0x7a8] sm:$0xff]  }
  0xd2   : > { %4166 = vmatprep.subr.bf16.mxu1 %v4520_v37  ;;  %v4569_v37 = vld [vmem:[%s5592_s1 + $0x770] sm:$0xff]  }
  0xd4   : > { %4145 = vmatpush3.bf16.msra.mxu0 %v4521_v38  ;;  %v4570_v38 = vld [vmem:[%s5592_s1 + $0x7f0] sm:$0xff]  }
  0xd5   : > { %4167 = vmatpush3.bf16.msra.mxu1 %v4522_v39  ;;  %4146 = vmatprep.subr.bf16.mxu0 %v4523_v40  ;;  %v4571_v39 = vld [vmem:[%s5592_s1 + $0x730] sm:$0xff]  }
  0xd6   : > { %4168 = vmatprep.subr.bf16.mxu1 %v4524_v41  ;;  %v4572_v40 = vld [vmem:[%s5592_s1 + $0x7b0] sm:$0xff]   ;;  %v4573_v41 = vld [vmem:[%s5592_s1 + $0x778] sm:$0xff]  }
  0xd8   : > { %4147 = vmatpush3.bf16.msra.mxu0 %v4525_v42  ;;  %v4574_v42 = vld [vmem:[%s5592_s1 + $0x7f8] sm:$0xff]  }
  0xd9   : > { %4169 = vmatpush3.bf16.msra.mxu1 %v4526_v43  ;;  %4148 = vmatprep.subr.bf16.mxu0 %v4527_v44  ;;  %v4575_v43 = vld [vmem:[%s5592_s1 + $0x738] sm:$0xff]  }
  0xda   : > { %4170 = vmatprep.subr.bf16.mxu1 %v4528_v45  ;;  %v4576_v44 = vld [vmem:[%s5592_s1 + $0x7b8] sm:$0xff]   ;;  %v4577_v45 = vld [vmem:[%s4760_s6 + $0x70] ss:$144 sps:$4 sm:$0xff]  }
  0xdc   : > { %4149 = vmatpush3.bf16.msra.mxu0 %v4529_v46  ;;  %v4579_v46 = vld [vmem:[%s4760_s6 + $0x74] ss:$144 sps:$4 sm:$0xff]  }
  0xdd   : > { %4171 = vmatpush3.bf16.msra.mxu1 %v4530_v47  ;;  %4150 = vmatprep.subr.bf16.mxu0 %v4531_v48  ;;  %v4580_v47 = vld [vmem:[%s4760_s6 + $0x78] ss:$144 sps:$4 sm:$0xff]   ;;  %v4582_v48 = vld [vmem:[%s4760_s6 + $0x7c] ss:$144 sps:$4 sm:$0xff]  }
  0xde   : > { %4172 = vmatprep.subr.bf16.mxu1 %v4532_v49  ;;  %v4583_v49 = vld [vmem:[%s5592_s1 + $0x840] sm:$0xff]  }
  0xe0   : > { %4151 = vmatpush3.bf16.msra.mxu0 %v4533_v50  ;;  %v4584_v50 = vld [vmem:[%s5592_s1 + $0x8c0] sm:$0xff]  }
  0xe1   : > { %4173 = vmatpush3.bf16.msra.mxu1 %v4534_v51  ;;  %4152 = vmatprep.subr.bf16.mxu0 %v4535_v52  ;;  %v4585_v51 = vld [vmem:[%s5592_s1 + $0x800] sm:$0xff]  }
  0xe2   : > { %4174 = vmatprep.subr.bf16.mxu1 %v4536_v53  ;;  %v4586_v52 = vld [vmem:[%s5592_s1 + $0x880] sm:$0xff]  }
  0xe4   : > { %4153 = vmatpush3.bf16.msra.mxu0 %v4537_v54  ;;  %v4587_v54 = vld [vmem:[%s5592_s1 + $0x848] sm:$0xff]  }
  0xe5   : > { %4175 = vmatpush3.bf16.msra.mxu1 %v4538_v55  ;;  %4182 = vmatprep.subr.bf16.mxu0 %v4545_v60 }
  0xe6   : > { %4204 = vmatprep.subr.bf16.mxu1 %v4546_v61  ;;  %v4590_v61 = vld [vmem:[%s5592_s1 + $0x888] sm:$0xff]  }
  0xe7   : > { %3257 = vmatmul.mubr.bf16.vlgmr.msra.gmra.mrb[24].mxu0 %v4539_v56  ;;  %v4588_v56 = vld [vmem:[%s5592_s1 + $0x8c8] sm:$0xff]  }
  0xe8   : > { %3298 = vmatmul.mubr.bf16.vlgmr.msra.gmra.mrb[24].mxu1 %v4542_v58  ;;  %4183 = vmatpush3.bf16.msra.mxu0 %v4547_v62 }
  0xe9   : > { %4205 = vmatpush3.bf16.msra.mxu1 %v4548_v63  ;;  %4184 = vmatprep.subr.bf16.mxu0 %v4549_v0 }
  0xea   : > { %4206 = vmatprep.subr.bf16.mxu1 %v4550_v2  ;;  %3338 = vmatprep.mubr.bf16.mxu0 %v4579_v46 }
  0xeb   : > { %3379 = vmatprep.mubr.bf16.mxu1 %v4582_v48 }
  0xec   : > { %4185 = vmatpush3.bf16.msra.mxu0 %v4551_v4 }
  0xed   : > { %4207 = vmatpush3.bf16.msra.mxu1 %v4552_v6  ;;  %4186 = vmatprep.subr.bf16.mxu0 %v4553_v9  ;;  %v4593_v6 = vld [vmem:[%s5592_s1 + $0x810] sm:$0xff]  }
  0xee   : > { %4208 = vmatprep.subr.bf16.mxu1 %v4554_v12  ;;  %v4594_v9 = vld [vmem:[%s5592_s1 + $0x890] sm:$0xff]  }
  0xf0   : > { %4187 = vmatpush3.bf16.msra.mxu0 %v4555_v14  ;;  %v4597_v14 = vld [vmem:[%s5592_s1 + $0x818] sm:$0xff]  }
  0xf1   : > { %4209 = vmatpush3.bf16.msra.mxu1 %v4556_v16  ;;  %4188 = vmatprep.subr.bf16.mxu0 %v4557_v19  ;;  %v4598_v16 = vld [vmem:[%s5592_s1 + $0x898] sm:$0xff]   ;;  %v4601_v19 = vld [vmem:[%s5592_s1 + $0x820] sm:$0xff]  }
  0xf2   : > { %4210 = vmatprep.subr.bf16.mxu1 %v4558_v21  ;;  %v4603_v21 = vld [vmem:[%s5592_s1 + $0x868] sm:$0xff]  }
  0xf4   : > { %4189 = vmatpush3.bf16.msra.mxu0 %v4559_v22  ;;  %v4604_v22 = vld [vmem:[%s5592_s1 + $0x8e8] sm:$0xff]  }
  0xf5   : > { %4211 = vmatpush3.bf16.msra.mxu1 %v4560_v23  ;;  %4190 = vmatprep.subr.bf16.mxu0 %v4561_v24  ;;  %v4605_v23 = vld [vmem:[%s5592_s1 + $0x828] sm:$0xff]  }
  0xf6   : > { %4212 = vmatprep.subr.bf16.mxu1 %v4562_v25  ;;  %v4606_v24 = vld [vmem:[%s5592_s1 + $0x8a8] sm:$0xff]   ;;  %v4607_v25 = vld [vmem:[%s5592_s1 + $0x870] sm:$0xff]  }
  0xf8   : > { %4191 = vmatpush3.bf16.msra.mxu0 %v4563_v26  ;;  %v4608_v26 = vld [vmem:[%s5592_s1 + $0x8f0] sm:$0xff]  }
  0xf9   : > { %4213 = vmatpush3.bf16.msra.mxu1 %v4564_v27  ;;  %4192 = vmatprep.subr.bf16.mxu0 %v4565_v30  ;;  %v4609_v27 = vld [vmem:[%s5592_s1 + $0x830] sm:$0xff]   ;;  %v4612_v30 = vld [vmem:[%s5592_s1 + $0x8f8] sm:$0xff]  }
  0xfa   : > { %v3890_v1 = vpop.f32.mrb[0].mxu0  ;;  %4214 = vmatprep.subr.bf16.mxu1 %v4566_v32  ;;  %v4614_v32 = vld [vmem:[%s5592_s1 + $0x8b8] sm:$0xff]  }
  0xfb   : > { %v3912_v3 = vpop.f32.mrb[0].mxu1  ;;  %v3891_v5 = vpop.f32.mrb[1].mxu0 }
  0xfc   : > { %v3892_v7 = vadd.f32 %v3891_v5, %v3890_v1  ;;  %v3913_v8 = vpop.f32.mrb[1].mxu1  ;;  %v3893_v11 = vpop.f32.mrb[2].mxu0  ;;  %4193 = vmatpush3.bf16.msra.mxu0 %v4567_v34  ;;  %v4591_v1 = vld [vmem:[%s5592_s1 + $0x850] sm:$0xff]  }
  0xfd   : > { %v3914_v10 = vadd.f32 %v3913_v8, %v3912_v3  ;;  %v3915_v13 = vpop.f32.mrb[2].mxu1  ;;  %v3894_v15 = vpop.f32.mrb[3].mxu0  ;;  %4215 = vmatpush3.bf16.msra.mxu1 %v4568_v36  ;;  %4194 = vmatprep.subr.bf16.mxu0 %v4569_v37  ;;  %v4592_v3 = vld [vmem:[%s5592_s1 + $0x8d0] sm:$0xff]   ;;  %v4620_v36 = vld [vmem:[%s4760_s6 + $0x8c] ss:$144 sps:$4 sm:$0xff]  }
  0xfe   : > { %v3895_v17 = vadd.f32 %v3894_v15, %v3893_v11  ;;  %v3916_v18 = vpop.f32.mrb[3].mxu1  ;;  %v2767_v29 = vadd.f32 %v3892_v7, %v3546_v28  ;;  %4216 = vmatprep.subr.bf16.mxu1 %v4570_v38  ;;  %v4595_v11 = vld [vmem:[%s5592_s1 + $0x858] sm:$0xff]   ;;  %v4617_v34 = vld [vmem:[%s4760_s6 + $0x84] ss:$144 sps:$4 sm:$0xff]  }
  0xff   : > { %v3917_v20 = vadd.f32 %v3916_v18, %v3915_v13  ;;  %v4596_v13 = vld [vmem:[%s5592_s1 + $0x8d8] sm:$0xff]   ;;  %v4600_v18 = vld [vmem:[%s5592_s1 + $0x8e0] sm:$0xff]  }
 0x100   : > { %v2770_v31 = vadd.f32 %v3895_v17, %v3546_v28  ;;  %v2808_v33 = vadd.f32 %v3914_v10, %v2767_v29  ;;  %4195 = vmatpush3.bf16.msra.mxu0 %v4571_v39  ;;  %v4599_v17 = vld [vmem:[%s5592_s1 + $0x860] sm:$0xff]   ;;  %v4610_v28 = vld [vmem:[%s5592_s1 + $0x8b0] sm:$0xff]   ;;  %v4611_v29 = vld [vmem:[%s5592_s1 + $0x878] sm:$0xff]  }
 0x101   : > { %4217 = vmatpush3.bf16.msra.mxu1 %v4572_v40  ;;  %4196 = vmatprep.subr.bf16.mxu0 %v4573_v41 }
 0x102   : > { %v5444_v35 = vadd.f32 %v3917_v20, %v2770_v31  ;;  %4218 = vmatprep.subr.bf16.mxu1 %v4574_v42  ;;  %v4602_v20 = vld [vmem:[%s5592_s1 + $0x8a0] sm:$0xff]   ;;  %v4613_v31 = vld [vmem:[%s5592_s1 + $0x838] sm:$0xff]  }
 0x104   : > { %4197 = vmatpush3.bf16.msra.mxu0 %v4575_v43 }
 0x105   : > { %4219 = vmatpush3.bf16.msra.mxu1 %v4576_v44  ;;  %4226 = vmatprep.subr.bf16.mxu0 %v4583_v49 }
 0x106   : > { %4248 = vmatprep.subr.bf16.mxu1 %v4584_v50 }
 0x107   : > { %3339 = vmatmul.mubr.bf16.vlgmr.msra.gmra.mrb[28].mxu0 %v4577_v45 }
 0x108   : > { %3380 = vmatmul.mubr.bf16.vlgmr.msra.gmra.mrb[28].mxu1 %v4580_v47  ;;  %4227 = vmatpush3.bf16.msra.mxu0 %v4585_v51 }
 0x109   : > { %4249 = vmatpush3.bf16.msra.mxu1 %v4586_v52  ;;  %4228 = vmatprep.subr.bf16.mxu0 %v4587_v54 }
 0x10a   : > { %4250 = vmatprep.subr.bf16.mxu1 %v4588_v56  ;;  %3420 = vmatprep.mubr.bf16.mxu0 %v4617_v34 }
 0x10b   : > { %3461 = vmatprep.mubr.bf16.mxu1 %v4620_v36 }
 0x10c   : > { %4229 = vmatpush3.bf16.msra.mxu0 %v4589_v59 }
 0x10d   : > { %4251 = vmatpush3.bf16.msra.mxu1 %v4590_v61  ;;  %4230 = vmatprep.subr.bf16.mxu0 %v4591_v1 }
 0x10e   : > { %4252 = vmatprep.subr.bf16.mxu1 %v4592_v3 }
 0x110   : > { %4231 = vmatpush3.bf16.msra.mxu0 %v4593_v6 }
 0x111   : > { %4253 = vmatpush3.bf16.msra.mxu1 %v4594_v9  ;;  %4232 = vmatprep.subr.bf16.mxu0 %v4595_v11 }
 0x112   : > { %4254 = vmatprep.subr.bf16.mxu1 %v4596_v13 }
 0x114   : > { %4233 = vmatpush3.bf16.msra.mxu0 %v4597_v14 }
 0x115   : > { %4255 = vmatpush3.bf16.msra.mxu1 %v4598_v16  ;;  %4234 = vmatprep.subr.bf16.mxu0 %v4599_v17 }
 0x116   : > { %4256 = vmatprep.subr.bf16.mxu1 %v4600_v18 }
 0x118   : > { %4235 = vmatpush3.bf16.msra.mxu0 %v4601_v19 }
 0x119   : > { %4257 = vmatpush3.bf16.msra.mxu1 %v4602_v20  ;;  %4236 = vmatprep.subr.bf16.mxu0 %v4603_v21 }
 0x11a   : > { %v3934_v53 = vpop.f32.mrb[4].mxu0  ;;  %4258 = vmatprep.subr.bf16.mxu1 %v4604_v22 }
 0x11b   : > { %v3935_v55 = vpop.f32.mrb[5].mxu0  ;;  %v3956_v57 = vpop.f32.mrb[4].mxu1 }
 0x11c   : > { %v3936_v58 = vadd.f32 %v3935_v55, %v3934_v53  ;;  %v3957_v60 = vpop.f32.mrb[5].mxu1  ;;  %v3937_v0 = vpop.f32.mrb[6].mxu0  ;;  %4237 = vmatpush3.bf16.msra.mxu0 %v4605_v23 }
 0x11d   : > { %v3958_v63 = vadd.f32 %v3957_v60, %v3956_v57  ;;  %v3959_v2 = vpop.f32.mrb[6].mxu1  ;;  %v3938_v5 = vpop.f32.mrb[7].mxu0  ;;  %4259 = vmatpush3.bf16.msra.mxu1 %v4606_v24  ;;  %4238 = vmatprep.subr.bf16.mxu0 %v4607_v25 }
 0x11e   : > { %v2849_v62 = vadd.f32 %v3936_v58, %v2808_v33  ;;  %v3939_v7 = vadd.f32 %v3938_v5, %v3937_v0  ;;  %v3960_v8 = vpop.f32.mrb[7].mxu1  ;;  %4260 = vmatprep.subr.bf16.mxu1 %v4608_v26  ;;  %v4615_v33 = vld [vmem:[%s4760_s6 + $0x80] ss:$144 sps:$4 sm:$0xff]  }
 0x11f   : > { %v3961_v10 = vadd.f32 %v3960_v8, %v3959_v2 }
 0x120   : > { %v5507_v4 = vadd.f32 %v3958_v63, %v2849_v62  ;;  %v2852_v12 = vadd.f32 %v3939_v7, %v5444_v35  ;;  %4239 = vmatpush3.bf16.msra.mxu0 %v4609_v27  ;;  %v4618_v35 = vld [vmem:[%s4760_s6 + $0x88] ss:$144 sps:$4 sm:$0xff]   ;;  %s3545_s6 = sshll.u32 %s5597_s23, 3 }
 0x121   : > { %4261 = vmatpush3.bf16.msra.mxu1 %v4610_v28  ;;  %4240 = vmatprep.subr.bf16.mxu0 %v4611_v29  ;;  %s202_s26 = scalar_lea.vmem %s5595_s4, %s3545_s6 }
 0x122   : > { %v2893_v15 = vadd.f32 %v3961_v10, %v2852_v12  ;;  %4262 = vmatprep.subr.bf16.mxu1 %v4612_v30 }
 0x124   : > { %4241 = vmatpush3.bf16.msra.mxu0 %v4613_v31 }
 0x125   : > { %4263 = vmatpush3.bf16.msra.mxu1 %v4614_v32 }
 0x127   : > { %3421 = vmatmul.mubr.bf16.vlgmr.msra.gmra.mrb[32].mxu0 %v4615_v33 }
 0x128   : > { %3462 = vmatmul.mubr.bf16.vlgmr.msra.gmra.mrb[32].mxu1 %v4618_v35 }
 0x13a   : > { %v3978_v37 = vpop.f32.mrb[8].mxu0 }
 0x13b   : > { %v4000_v38 = vpop.f32.mrb[8].mxu1  ;;  %v3979_v39 = vpop.f32.mrb[9].mxu0 }
 0x13c   : > { %v3980_v40 = vadd.f32 %v3979_v39, %v3978_v37  ;;  %v4001_v41 = vpop.f32.mrb[9].mxu1  ;;  %v3981_v42 = vpop.f32.mrb[10].mxu0 }
 0x13d   : > { %v4002_v43 = vadd.f32 %v4001_v41, %v4000_v38  ;;  %v4003_v44 = vpop.f32.mrb[10].mxu1  ;;  %v3982_v45 = vpop.f32.mrb[11].mxu0 }
 0x13e   : > { %v2931_v46 = vadd.f32 %v3980_v40, %v5507_v4  ;;  %v3983_v47 = vadd.f32 %v3982_v45, %v3981_v42  ;;  %v4004_v48 = vpop.f32.mrb[11].mxu1 }
 0x13f   : > { %v4005_v49 = vadd.f32 %v4004_v48, %v4003_v44 }
 0x140   : > { %v2972_v50 = vadd.f32 %v4002_v43, %v2931_v46  ;;  %v2934_v51 = vadd.f32 %v3983_v47, %v2893_v15 }
 0x142   : > { %v2975_v52 = vadd.f32 %v4005_v49, %v2934_v51 }
 0x15a   : > { %v4022_v53 = vpop.f32.mrb[12].mxu0 }
 0x15b   : > { %v4044_v54 = vpop.f32.mrb[12].mxu1  ;;  %v4023_v55 = vpop.f32.mrb[13].mxu0 }
 0x15c   : > { %v4024_v56 = vadd.f32 %v4023_v55, %v4022_v53  ;;  %v4045_v57 = vpop.f32.mrb[13].mxu1  ;;  %v4025_v58 = vpop.f32.mrb[14].mxu0 }
 0x15d   : > { %v4046_v59 = vadd.f32 %v4045_v57, %v4044_v54  ;;  %v4047_v60 = vpop.f32.mrb[14].mxu1  ;;  %v4026_v61 = vpop.f32.mrb[15].mxu0 }
 0x15e   : > { %v3013_v62 = vadd.f32 %v4024_v56, %v2972_v50  ;;  %v4027_v63 = vadd.f32 %v4026_v61, %v4025_v58  ;;  %v4048_v0 = vpop.f32.mrb[15].mxu1 }
 0x15f   : > { %v4049_v1 = vadd.f32 %v4048_v0, %v4047_v60 }
 0x160   : > { %v3054_v2 = vadd.f32 %v4046_v59, %v3013_v62  ;;  %v3016_v3 = vadd.f32 %v4027_v63, %v2975_v52 }
 0x162   : > { %v3057_v4 = vadd.f32 %v4049_v1, %v3016_v3 }
 0x17a   : > { %v4066_v5 = vpop.f32.mrb[16].mxu0 }
 0x17b   : > { %v4067_v6 = vpop.f32.mrb[17].mxu0  ;;  %v4088_v7 = vpop.f32.mrb[16].mxu1 }
 0x17c   : > { %v4068_v8 = vadd.f32 %v4067_v6, %v4066_v5  ;;  %v4069_v9 = vpop.f32.mrb[18].mxu0  ;;  %v4089_v10 = vpop.f32.mrb[17].mxu1 }
 0x17d   : > { %v4070_v11 = vpop.f32.mrb[19].mxu0  ;;  %v4090_v13 = vadd.f32 %v4089_v10, %v4088_v7  ;;  %v4091_v14 = vpop.f32.mrb[18].mxu1 }
 0x17e   : > { %v3095_v12 = vadd.f32 %v4068_v8, %v3054_v2  ;;  %v4071_v15 = vadd.f32 %v4070_v11, %v4069_v9  ;;  %v4092_v16 = vpop.f32.mrb[19].mxu1 }
 0x17f   : > { %v4093_v19 = vadd.f32 %v4092_v16, %v4091_v14  ;;  %v3871_v16 = vld [vmem:[%s5594_s3] ss:$0 sm:$0xff] }
 0x180   : > { %v3136_v17 = vadd.f32 %v4090_v13, %v3095_v12  ;;  %v3098_v18 = vadd.f32 %v4071_v15, %v3057_v4 }
 0x182   : > { %v3139_v20 = vadd.f32 %v4093_v19, %v3098_v18 }
 0x19a   : > { %v4110_v21 = vpop.f32.mrb[20].mxu0 }
 0x19b   : > { %v4132_v22 = vpop.f32.mrb[20].mxu1  ;;  %v4111_v23 = vpop.f32.mrb[21].mxu0 }
 0x19c   : > { %v4112_v24 = vadd.f32 %v4111_v23, %v4110_v21  ;;  %v4133_v25 = vpop.f32.mrb[21].mxu1  ;;  %v4113_v26 = vpop.f32.mrb[22].mxu0 }
 0x19d   : > { %v4134_v27 = vadd.f32 %v4133_v25, %v4132_v22  ;;  %v4135_v28 = vpop.f32.mrb[22].mxu1  ;;  %v4114_v29 = vpop.f32.mrb[23].mxu0 }
 0x19e   : > { %v3177_v30 = vadd.f32 %v4112_v24, %v3136_v17  ;;  %v4115_v31 = vadd.f32 %v4114_v29, %v4113_v26  ;;  %v4136_v32 = vpop.f32.mrb[23].mxu1 }
 0x19f   : > { %v4137_v33 = vadd.f32 %v4136_v32, %v4135_v28 }
 0x1a0   : > { %v3218_v34 = vadd.f32 %v4134_v27, %v3177_v30  ;;  %v3180_v35 = vadd.f32 %v4115_v31, %v3139_v20 }
 0x1a2   : > { %v3221_v36 = vadd.f32 %v4137_v33, %v3180_v35 }
 0x1ba   : > { %v4154_v37 = vpop.f32.mrb[24].mxu0 }
 0x1bb   : > { %v4176_v38 = vpop.f32.mrb[24].mxu1  ;;  %v4155_v39 = vpop.f32.mrb[25].mxu0 }
 0x1bc   : > { %v4156_v40 = vadd.f32 %v4155_v39, %v4154_v37  ;;  %v4177_v41 = vpop.f32.mrb[25].mxu1  ;;  %v4157_v42 = vpop.f32.mrb[26].mxu0 }
 0x1bd   : > { %v4178_v43 = vadd.f32 %v4177_v41, %v4176_v38  ;;  %v4179_v44 = vpop.f32.mrb[26].mxu1  ;;  %v4158_v45 = vpop.f32.mrb[27].mxu0 }
 0x1be   : > { %v3259_v46 = vadd.f32 %v4156_v40, %v3218_v34  ;;  %v4159_v47 = vadd.f32 %v4158_v45, %v4157_v42  ;;  %v4180_v48 = vpop.f32.mrb[27].mxu1 }
 0x1bf   : > { %v4181_v49 = vadd.f32 %v4180_v48, %v4179_v44 }
 0x1c0   : > { %v3300_v50 = vadd.f32 %v4178_v43, %v3259_v46  ;;  %v3262_v51 = vadd.f32 %v4159_v47, %v3221_v36 }
 0x1c2   : > { %v3303_v52 = vadd.f32 %v4181_v49, %v3262_v51 }
 0x1da   : > { %v4198_v53 = vpop.f32.mrb[28].mxu0 }
 0x1db   : > { %v4220_v54 = vpop.f32.mrb[28].mxu1  ;;  %v4199_v55 = vpop.f32.mrb[29].mxu0 }
 0x1dc   : > { %v4200_v56 = vadd.f32 %v4199_v55, %v4198_v53  ;;  %v4221_v57 = vpop.f32.mrb[29].mxu1  ;;  %v4201_v58 = vpop.f32.mrb[30].mxu0 }
 0x1dd   : > { %v4222_v59 = vadd.f32 %v4221_v57, %v4220_v54  ;;  %v4223_v60 = vpop.f32.mrb[30].mxu1  ;;  %v4202_v61 = vpop.f32.mrb[31].mxu0 }
 0x1de   : > { %v3341_v62 = vadd.f32 %v4200_v56, %v3300_v50  ;;  %v4203_v63 = vadd.f32 %v4202_v61, %v4201_v58  ;;  %v4224_v0 = vpop.f32.mrb[31].mxu1 }
 0x1df   : > { %v4225_v1 = vadd.f32 %v4224_v0, %v4223_v60 }
 0x1e0   : > { %v3382_v2 = vadd.f32 %v4222_v59, %v3341_v62  ;;  %v3344_v3 = vadd.f32 %v4203_v63, %v3303_v52 }
 0x1e2   : > { %v3385_v4 = vadd.f32 %v4225_v1, %v3344_v3 }
 0x1fa   : > { %v4242_v5 = vpop.f32.mrb[32].mxu0 }
 0x1fb   : > { %v4243_v6 = vpop.f32.mrb[33].mxu0  ;;  %v4264_v7 = vpop.f32.mrb[32].mxu1 }
 0x1fc   : > { %v4244_v8 = vadd.f32 %v4243_v6, %v4242_v5  ;;  %v4245_v9 = vpop.f32.mrb[34].mxu0  ;;  %v4265_v10 = vpop.f32.mrb[33].mxu1 }
 0x1fd   : > { %v4246_v11 = vpop.f32.mrb[35].mxu0  ;;  %v4266_v13 = vadd.f32 %v4265_v10, %v4264_v7  ;;  %v4267_v14 = vpop.f32.mrb[34].mxu1 }
 0x1fe   : > { %v3423_v12 = vadd.f32 %v4244_v8, %v3382_v2  ;;  %v4247_v15 = vadd.f32 %v4246_v11, %v4245_v9  ;;  %v4268_v17 = vpop.f32.mrb[35].mxu1 }
 0x1ff   : > { %v4269_v20 = vadd.f32 %v4268_v17, %v4267_v14 }
 0x200   : > { %v3464_v18 = vadd.f32 %v4266_v13, %v3423_v12  ;;  %v3426_v19 = vadd.f32 %v4247_v15, %v3385_v4 }
 0x202   : > { %v3477_v21 = vmul.f32 %v3871_v16, %v3464_v18  ;;  %v3467_v22 = vadd.f32 %v4269_v20, %v3426_v19 }
 0x204   : > { %3479 = vst [vmem:[%s202_s26] sm:$0xff] %v3477_v21  ;;  %v3478_v23 = vmul.f32 %v3871_v16, %v3467_v22 }
 0x206   : > { %3480 = vst [vmem:[%s202_s26 + $0x8] sm:$0xff] %v3478_v23 }
 0x207 PF: > { %s14_s15 = sadd.s32 1, %s4627_s15  }
 0x208   : > { %p11_p4 = scmp.ge.s32.totalorder %s14_s15, 4  }
 0x20a   :  { %13 = sbr.rel (!%p11_p4) target bundleno = 1 (0x1), region = 66 }

</bundles_post_ra>
